<compile_context>
chip_gen: v7x
topology: tpu7x:2x2x1
jax: 0.10.0
libtpu: 0.0.40
codegen_flags: <defaults>
</compile_context>

<pallas_src>
import jax
import jax.numpy as jnp
from jax.experimental import pallas as pl
from jax.experimental.pallas import tpu as pltpu

_B = 8  # images per pallas grid step (must be a multiple of 8)


# ----------------------------------------------------------------------------
# Fused network kernel (one grid step == _B images)
# ----------------------------------------------------------------------------
def _deepmind_kernel(x_ref, w1_ref, b1_ref, w2_ref, b2_ref, w3_ref, b3_ref,
                     w4_ref, b4_ref, out_ref, a1_ref, a2_ref):
    f32 = jnp.float32
    bf16 = jnp.bfloat16
    B = _B

    # ---- conv1: 16ch (68,92), k=8, stride=4 -> a1 (16, 22B, 128) bf16 ----
    # x_ref[0, h] is (22B, 128): for each (even-then-odd ordered) output column
    # and image, the (8 px * 16 ch) window of input row h.  One tap per kernel
    # row -> 8 matmuls of (22B,128)x(128,128).
    def conv1_row(oh, carry):
        acc = jnp.zeros((22 * B, 128), f32)
        for i in range(8):
            acc = acc + jnp.dot(x_ref[0, 4 * oh + i, :, :], w1_ref[i],
                                preferred_element_type=f32)
        a1_ref[oh] = jnp.maximum(acc + b1_ref[...], 0.0).astype(bf16)
        return carry

    jax.lax.fori_loop(0, 16, conv1_row, 0)

    # ---- conv2: k=4, stride=2 -> a2 (7, 10B, 128) bf16 ----
    # a1 columns are even-then-odd ordered, so the stride-2 taps are the
    # contiguous, sublane-aligned slabs at column offsets (0, 11, 1, 12)*B.
    def conv2_row(oh, carry):
        acc = jnp.zeros((10 * B, 128), f32)
        for i in range(4):
            h = 2 * oh + i
            for j, off in zip(range(4), (0, 11, 1, 12)):
                acc = acc + jnp.dot(a1_ref[h, off * B:(off + 10) * B, :],
                                    w2_ref[4 * i + j],
                                    preferred_element_type=f32)
        a2_ref[oh] = jnp.maximum(acc + b2_ref[...], 0.0).astype(bf16)
        return carry

    jax.lax.fori_loop(0, 7, conv2_row, 0)

    # ---- conv3 (k=3, stride=1) fused with fc1, batched over the B images ----
    acc4 = jnp.zeros((B, 512), f32) + b4_ref[...]          # fc1 bias
    for oh in range(5):
        acc3 = jnp.zeros((8 * B, 128), f32)
        for i in range(3):
            for j in range(3):
                acc3 = acc3 + jnp.dot(a2_ref[oh + i, j * B:(j + 8) * B, :],
                                      w3_ref[3 * i + j],
                                      preferred_element_type=f32)
        row3 = jnp.maximum(acc3 + b3_ref[...], 0.0).astype(bf16)   # (8B, 128)
        row3 = row3[:, 0:32]                    # real conv3 channels only
        for w in range(8):                      # fc1 contribution of (oh, w)
            acc4 = acc4 + jnp.dot(row3[w * B:(w + 1) * B, :],
                                  w4_ref[8 * oh + w],
                                  preferred_element_type=f32)
    out_ref[0] = jnp.maximum(acc4, 0.0)


# ----------------------------------------------------------------------------
# Forward pass (matches deepmind.forward); params pre-packed once at init.
# ----------------------------------------------------------------------------
@jax.jit
def deepmind_forward(params, x):
    n = x.shape[0]
    steps = -(-n // _B)
    n_pad = steps * _B

    # NCHW -> NHWC, bf16 once.
    xh = jnp.transpose(x, (0, 2, 3, 1)).astype(jnp.bfloat16)     # (N,68,92,16)
    if n_pad != n:
        xh = jnp.pad(xh, ((0, n_pad - n), (0, 0), (0, 0), (0, 0)))

    # conv1 im2col over W (k=8, stride=4): 22 output columns, each a 128-lane
    # (kw, cin) group, pre-ordered even-then-odd for conv2's stride-2 taps.
    order = list(range(0, 22, 2)) + list(range(1, 22, 2))
    cols = [xh[:, :, 4 * ow:4 * ow + 8, :] for ow in order]      # (Np,68,8,16)
    xg = jnp.stack(cols, axis=2).reshape(n_pad, 68, 22, 128)
    # Interleave the B images of each grid step innermost along the column axis.
    xg = xg.reshape(steps, _B, 68, 22, 128).transpose(0, 2, 3, 1, 4)
    xg = xg.reshape(steps, 68, 22 * _B, 128)

    out = pl.pallas_call(
        _deepmind_kernel,
        out_shape=jax.ShapeDtypeStruct((steps, _B, 512), jnp.float32),
        grid_spec=pltpu.PrefetchScalarGridSpec(
            num_scalar_prefetch=0,
            grid=(steps,),
            in_specs=[
                pl.BlockSpec((1, 68, 22 * _B, 128), lambda i: (i, 0, 0, 0)),  # x
                pl.BlockSpec((8, 128, 128), lambda i: (0, 0, 0)),             # w1
                pl.BlockSpec((1, 128), lambda i: (0, 0)),                     # b1
                pl.BlockSpec((16, 128, 128), lambda i: (0, 0, 0)),            # w2
                pl.BlockSpec((1, 128), lambda i: (0, 0)),                     # b2
                pl.BlockSpec((9, 128, 128), lambda i: (0, 0, 0)),             # w3
                pl.BlockSpec((1, 128), lambda i: (0, 0)),                     # b3
                pl.BlockSpec((40, 32, 512), lambda i: (0, 0, 0)),             # w4
                pl.BlockSpec((1, 512), lambda i: (0, 0)),                     # b4
            ],
            out_specs=pl.BlockSpec((1, _B, 512), lambda i: (i, 0, 0)),
            scratch_shapes=[
                pltpu.VMEM((16, 22 * _B, 128), jnp.bfloat16),  # conv1 output
                pltpu.VMEM((7, 10 * _B, 128), jnp.bfloat16),   # conv2 output
            ],
        ),
        compiler_params=pltpu.CompilerParams(
            dimension_semantics=("parallel",),
            vmem_limit_bytes=24 * 1024 * 1024,
        ),
    )(xg, params["w1"], params["b1"], params["w2"], params["b2"],
      params["w3"], params["b3"], params["w4"], params["b4"])
    return out.reshape(n_pad, 512)[:n]


# ----------------------------------------------------------------------------
# Deterministic parameter init (orthogonal, relu gain, zero bias) + packing
# ----------------------------------------------------------------------------
def orthogonal_(key, shape, gain):
    rows = shape[0]
    cols = 1
    for d in shape[1:]:
        cols *= d
    flat_shape = (max(rows, cols), min(rows, cols))
    a = jax.random.normal(key, flat_shape, dtype=jnp.float32)
    q, r = jnp.linalg.qr(a)
    q = q * jnp.sign(jnp.diagonal(r))[None, :]
    if rows < cols:
        q = q.T
    return (gain * q[:rows, :cols]).reshape(shape)


def pack_params(raw):
    """Pack torch-layout weights into kernel layouts (done once, at init)."""
    # conv1: (32,16,8,8) OIHW -> (8 taps=kh, 128=(kw,cin), 128=cout_pad)
    w1 = jnp.transpose(raw["conv1_w"], (2, 3, 1, 0))      # (kh, kw, cin, cout)
    w1 = w1.reshape(8, 128, 32)
    w1 = jnp.pad(w1, ((0, 0), (0, 0), (0, 96))).astype(jnp.bfloat16)
    b1 = jnp.pad(raw["conv1_b"], (0, 96)).reshape(1, 128).astype(jnp.float32)

    # conv2: (64,32,4,4) -> (16 taps=(kh,kw), 128=cin_pad, 128=cout_pad)
    w2 = jnp.transpose(raw["conv2_w"], (2, 3, 1, 0))      # (4, 4, 32, 64)
    w2 = jnp.pad(w2, ((0, 0), (0, 0), (0, 96), (0, 64)))
    w2 = w2.reshape(16, 128, 128).astype(jnp.bfloat16)
    b2 = jnp.pad(raw["conv2_b"], (0, 64)).reshape(1, 128).astype(jnp.float32)

    # conv3: (32,64,3,3) -> (9 taps=(kh,kw), 128=cin_pad, 128=cout_pad)
    w3 = jnp.transpose(raw["conv3_w"], (2, 3, 1, 0))      # (3, 3, 64, 32)
    w3 = jnp.pad(w3, ((0, 0), (0, 0), (0, 64), (0, 96)))
    w3 = w3.reshape(9, 128, 128).astype(jnp.bfloat16)
    b3 = jnp.pad(raw["conv3_b"], (0, 96)).reshape(1, 128).astype(jnp.float32)

    # fc1: (512, 1280=(c,h,w)) -> DENSE (40 taps=(h,w), 32=cin, 512)
    w4 = raw["fc1_w"].reshape(512, 32, 5, 8)
    w4 = jnp.transpose(w4, (2, 3, 1, 0))                  # (5, 8, 32, 512)
    w4 = w4.reshape(40, 32, 512).astype(jnp.bfloat16)
    b4 = raw["fc1_b"].reshape(1, 512).astype(jnp.float32)

    return {"w1": w1, "b1": b1, "w2": w2, "b2": b2,
            "w3": w3, "b3": b3, "w4": w4, "b4": b4}


def init_params(key):
    gain = jnp.sqrt(2.0)  # calculate_gain('relu')
    k1, k2, k3, k4 = jax.random.split(key, 4)
    raw = {
        "conv1_w": orthogonal_(k1, (32, 16, 8, 8), gain),
        "conv1_b": jnp.zeros((32,), jnp.float32),
        "conv2_w": orthogonal_(k2, (64, 32, 4, 4), gain),
        "conv2_b": jnp.zeros((64,), jnp.float32),
        "conv3_w": orthogonal_(k3, (32, 64, 3, 3), gain),
        "conv3_b": jnp.zeros((32,), jnp.float32),
        "fc1_w": orthogonal_(k4, (512, 32 * 5 * 8), gain),
        "fc1_b": jnp.zeros((512,), jnp.float32),
    }
    return pack_params(raw), raw


# ----------------------------------------------------------------------------
# Pure-JAX f32 reference (loose numerical sanity check; kernel uses bf16)
# ----------------------------------------------------------------------------
def reference_forward(raw, x):
    def conv(x, w, b, s):
        y = jax.lax.conv_general_dilated(
            x, w, window_strides=(s, s), padding="VALID",
            dimension_numbers=("NCHW", "OIHW", "NCHW"))
        return jax.nn.relu(y + b.reshape(1, -1, 1, 1))

    x = conv(x, raw["conv1_w"], raw["conv1_b"], 4)
    x = conv(x, raw["conv2_w"], raw["conv2_b"], 2)
    x = conv(x, raw["conv3_w"], raw["conv3_b"], 1)
    x = x.reshape(x.shape[0], 32 * 5 * 8)
    return jax.nn.relu(x @ raw["fc1_w"].T + raw["fc1_b"])


if __name__ == "__main__":
    key = jax.random.PRNGKey(0)
    kp, kx = jax.random.split(key)
    params, raw = init_params(kp)

    # Input spatial size must yield a 5x8 conv3 map so 32*5*8 matches fc1:
    # (68, 92) -> conv1 16x22 -> conv2 7x10 -> conv3 5x8.
    # Batch 12 exercises the pad-to-multiple-of-B path (pads to 16, grid=(2,)).
    x = jax.random.normal(kx, (12, 16, 68, 92), dtype=jnp.float32)

    out = jax.block_until_ready(deepmind_forward(params, x))
    assert out.shape == (12, 512), out.shape
    assert out.dtype == jnp.float32
    assert bool(jnp.all(out >= 0.0))  # ReLU output

    ref = reference_forward(raw, x)
    assert bool(jnp.allclose(out, ref, rtol=5e-2, atol=1e-1)), (
        float(jnp.max(jnp.abs(out - ref))))

    print("KERNEL_OK")
</pallas_src>

<mosaic_0001>
module attributes {stable_mosaic.version = 11 : i64} {
  func.func @_deepmind_kernel(%arg0: i32, %arg1: memref<1x68x176x128xbf16, #tpu.memory_space<vmem>>, %arg2: memref<8x128x128xbf16, #tpu.memory_space<vmem>>, %arg3: memref<1x128xf32, #tpu.memory_space<vmem>>, %arg4: memref<16x128x128xbf16, #tpu.memory_space<vmem>>, %arg5: memref<1x128xf32, #tpu.memory_space<vmem>>, %arg6: memref<9x128x128xbf16, #tpu.memory_space<vmem>>, %arg7: memref<1x128xf32, #tpu.memory_space<vmem>>, %arg8: memref<40x32x512xbf16, #tpu.memory_space<vmem>>, %arg9: memref<1x512xf32, #tpu.memory_space<vmem>>, %arg10: memref<1x8x512xf32, #tpu.memory_space<vmem>>, %arg11: memref<16x176x128xbf16, #tpu.memory_space<vmem>>, %arg12: memref<7x80x128xbf16, #tpu.memory_space<vmem>>) attributes {dimension_semantics = [#tpu.dimension_semantics<parallel>], iteration_bounds = array<i64: 2>, scalar_prefetch = 0 : i64, scratch_operands = 2 : i64, tpu.core_type = #tpu.core_type<tc>, window_params = [{transform_indices = @transform_0, window_bounds = array<i64: 1, 68, 176, 128>}, {pipeline_mode = #tpu.pipeline_mode<synchronous>, transform_indices = @transform_1, window_bounds = array<i64: 8, 128, 128>}, {pipeline_mode = #tpu.pipeline_mode<synchronous>, transform_indices = @transform_2, window_bounds = array<i64: 1, 128>}, {pipeline_mode = #tpu.pipeline_mode<synchronous>, transform_indices = @transform_3, window_bounds = array<i64: 16, 128, 128>}, {pipeline_mode = #tpu.pipeline_mode<synchronous>, transform_indices = @transform_4, window_bounds = array<i64: 1, 128>}, {pipeline_mode = #tpu.pipeline_mode<synchronous>, transform_indices = @transform_5, window_bounds = array<i64: 9, 128, 128>}, {pipeline_mode = #tpu.pipeline_mode<synchronous>, transform_indices = @transform_6, window_bounds = array<i64: 1, 128>}, {pipeline_mode = #tpu.pipeline_mode<synchronous>, transform_indices = @transform_7, window_bounds = array<i64: 40, 32, 512>}, {pipeline_mode = #tpu.pipeline_mode<synchronous>, transform_indices = @transform_8, window_bounds = array<i64: 1, 512>}, {transform_indices = @transform_9, window_bounds = array<i64: 1, 8, 512>}]} {
    %c0_i32 = arith.constant 0 : i32
    %c16_i32 = arith.constant 16 : i32
    %0 = arith.addi %c0_i32, %c16_i32 : i32
    %c1_i32 = arith.constant 1 : i32
    scf.for %arg13 = %c0_i32 to %0 step %c1_i32  : i32 {
      %cst_465 = arith.constant 0.000000e+00 : f32
      %521 = vector.broadcast %cst_465 : f32 to vector<176x128xf32>
      %c4_i32 = arith.constant 4 : i32
      %522 = arith.muli %c4_i32, %arg13 : i32
      %c0_i32_466 = arith.constant 0 : i32
      %523 = arith.addi %522, %c0_i32_466 : i32
      %c0_467 = arith.constant 0 : index
      %524 = arith.index_cast %523 : i32 to index
      %c0_468 = arith.constant 0 : index
      %c0_469 = arith.constant 0 : index
      %525 = vector.load %arg1[%c0_467, %524, %c0_468, %c0_469] : memref<1x68x176x128xbf16, #tpu.memory_space<vmem>>, vector<1x1x176x128xbf16>
      %526 = vector.shape_cast %525 : vector<1x1x176x128xbf16> to vector<176x128xbf16>
      %c0_470 = arith.constant 0 : index
      %c0_471 = arith.constant 0 : index
      %c0_472 = arith.constant 0 : index
      %527 = vector.load %arg2[%c0_470, %c0_471, %c0_472] : memref<8x128x128xbf16, #tpu.memory_space<vmem>>, vector<1x128x128xbf16>
      %528 = vector.shape_cast %527 : vector<1x128x128xbf16> to vector<128x128xbf16>
      %cst_473 = arith.constant dense<0.000000e+00> : vector<176x128xf32>
      %529 = tpu.matmul %526, %528, %cst_473 {dimension_numbers = #tpu.dot_dimension_numbers<[1], [0], [0], [1], [0, 0, 1, 1], [], []>} : vector<176x128xbf16>, vector<128x128xbf16>, vector<176x128xf32> -> vector<176x128xf32>
      %530 = arith.addf %521, %529 : vector<176x128xf32>
      %c4_i32_474 = arith.constant 4 : i32
      %531 = arith.muli %c4_i32_474, %arg13 : i32
      %c1_i32_475 = arith.constant 1 : i32
      %532 = arith.addi %531, %c1_i32_475 : i32
      %c0_476 = arith.constant 0 : index
      %533 = arith.index_cast %532 : i32 to index
      %c0_477 = arith.constant 0 : index
      %c0_478 = arith.constant 0 : index
      %534 = vector.load %arg1[%c0_476, %533, %c0_477, %c0_478] : memref<1x68x176x128xbf16, #tpu.memory_space<vmem>>, vector<1x1x176x128xbf16>
      %535 = vector.shape_cast %534 : vector<1x1x176x128xbf16> to vector<176x128xbf16>
      %c1_479 = arith.constant 1 : index
      %c0_480 = arith.constant 0 : index
      %c0_481 = arith.constant 0 : index
      %536 = vector.load %arg2[%c1_479, %c0_480, %c0_481] : memref<8x128x128xbf16, #tpu.memory_space<vmem>>, vector<1x128x128xbf16>
      %537 = vector.shape_cast %536 : vector<1x128x128xbf16> to vector<128x128xbf16>
      %cst_482 = arith.constant dense<0.000000e+00> : vector<176x128xf32>
      %538 = tpu.matmul %535, %537, %cst_482 {dimension_numbers = #tpu.dot_dimension_numbers<[1], [0], [0], [1], [0, 0, 1, 1], [], []>} : vector<176x128xbf16>, vector<128x128xbf16>, vector<176x128xf32> -> vector<176x128xf32>
      %539 = arith.addf %530, %538 : vector<176x128xf32>
      %c4_i32_483 = arith.constant 4 : i32
      %540 = arith.muli %c4_i32_483, %arg13 : i32
      %c2_i32 = arith.constant 2 : i32
      %541 = arith.addi %540, %c2_i32 : i32
      %c0_484 = arith.constant 0 : index
      %542 = arith.index_cast %541 : i32 to index
      %c0_485 = arith.constant 0 : index
      %c0_486 = arith.constant 0 : index
      %543 = vector.load %arg1[%c0_484, %542, %c0_485, %c0_486] : memref<1x68x176x128xbf16, #tpu.memory_space<vmem>>, vector<1x1x176x128xbf16>
      %544 = vector.shape_cast %543 : vector<1x1x176x128xbf16> to vector<176x128xbf16>
      %c2_487 = arith.constant 2 : index
      %c0_488 = arith.constant 0 : index
      %c0_489 = arith.constant 0 : index
      %545 = vector.load %arg2[%c2_487, %c0_488, %c0_489] : memref<8x128x128xbf16, #tpu.memory_space<vmem>>, vector<1x128x128xbf16>
      %546 = vector.shape_cast %545 : vector<1x128x128xbf16> to vector<128x128xbf16>
      %cst_490 = arith.constant dense<0.000000e+00> : vector<176x128xf32>
      %547 = tpu.matmul %544, %546, %cst_490 {dimension_numbers = #tpu.dot_dimension_numbers<[1], [0], [0], [1], [0, 0, 1, 1], [], []>} : vector<176x128xbf16>, vector<128x128xbf16>, vector<176x128xf32> -> vector<176x128xf32>
      %548 = arith.addf %539, %547 : vector<176x128xf32>
      %c4_i32_491 = arith.constant 4 : i32
      %549 = arith.muli %c4_i32_491, %arg13 : i32
      %c3_i32 = arith.constant 3 : i32
      %550 = arith.addi %549, %c3_i32 : i32
      %c0_492 = arith.constant 0 : index
      %551 = arith.index_cast %550 : i32 to index
      %c0_493 = arith.constant 0 : index
      %c0_494 = arith.constant 0 : index
      %552 = vector.load %arg1[%c0_492, %551, %c0_493, %c0_494] : memref<1x68x176x128xbf16, #tpu.memory_space<vmem>>, vector<1x1x176x128xbf16>
      %553 = vector.shape_cast %552 : vector<1x1x176x128xbf16> to vector<176x128xbf16>
      %c3_495 = arith.constant 3 : index
      %c0_496 = arith.constant 0 : index
      %c0_497 = arith.constant 0 : index
      %554 = vector.load %arg2[%c3_495, %c0_496, %c0_497] : memref<8x128x128xbf16, #tpu.memory_space<vmem>>, vector<1x128x128xbf16>
      %555 = vector.shape_cast %554 : vector<1x128x128xbf16> to vector<128x128xbf16>
      %cst_498 = arith.constant dense<0.000000e+00> : vector<176x128xf32>
      %556 = tpu.matmul %553, %555, %cst_498 {dimension_numbers = #tpu.dot_dimension_numbers<[1], [0], [0], [1], [0, 0, 1, 1], [], []>} : vector<176x128xbf16>, vector<128x128xbf16>, vector<176x128xf32> -> vector<176x128xf32>
      %557 = arith.addf %548, %556 : vector<176x128xf32>
      %c4_i32_499 = arith.constant 4 : i32
      %558 = arith.muli %c4_i32_499, %arg13 : i32
      %c4_i32_500 = arith.constant 4 : i32
      %559 = arith.addi %558, %c4_i32_500 : i32
      %c0_501 = arith.constant 0 : index
      %560 = arith.index_cast %559 : i32 to index
      %c0_502 = arith.constant 0 : index
      %c0_503 = arith.constant 0 : index
      %561 = vector.load %arg1[%c0_501, %560, %c0_502, %c0_503] : memref<1x68x176x128xbf16, #tpu.memory_space<vmem>>, vector<1x1x176x128xbf16>
      %562 = vector.shape_cast %561 : vector<1x1x176x128xbf16> to vector<176x128xbf16>
      %c4_504 = arith.constant 4 : index
      %c0_505 = arith.constant 0 : index
      %c0_506 = arith.constant 0 : index
      %563 = vector.load %arg2[%c4_504, %c0_505, %c0_506] : memref<8x128x128xbf16, #tpu.memory_space<vmem>>, vector<1x128x128xbf16>
      %564 = vector.shape_cast %563 : vector<1x128x128xbf16> to vector<128x128xbf16>
      %cst_507 = arith.constant dense<0.000000e+00> : vector<176x128xf32>
      %565 = tpu.matmul %562, %564, %cst_507 {dimension_numbers = #tpu.dot_dimension_numbers<[1], [0], [0], [1], [0, 0, 1, 1], [], []>} : vector<176x128xbf16>, vector<128x128xbf16>, vector<176x128xf32> -> vector<176x128xf32>
      %566 = arith.addf %557, %565 : vector<176x128xf32>
      %c4_i32_508 = arith.constant 4 : i32
      %567 = arith.muli %c4_i32_508, %arg13 : i32
      %c5_i32 = arith.constant 5 : i32
      %568 = arith.addi %567, %c5_i32 : i32
      %c0_509 = arith.constant 0 : index
      %569 = arith.index_cast %568 : i32 to index
      %c0_510 = arith.constant 0 : index
      %c0_511 = arith.constant 0 : index
      %570 = vector.load %arg1[%c0_509, %569, %c0_510, %c0_511] : memref<1x68x176x128xbf16, #tpu.memory_space<vmem>>, vector<1x1x176x128xbf16>
      %571 = vector.shape_cast %570 : vector<1x1x176x128xbf16> to vector<176x128xbf16>
      %c5_512 = arith.constant 5 : index
      %c0_513 = arith.constant 0 : index
      %c0_514 = arith.constant 0 : index
      %572 = vector.load %arg2[%c5_512, %c0_513, %c0_514] : memref<8x128x128xbf16, #tpu.memory_space<vmem>>, vector<1x128x128xbf16>
      %573 = vector.shape_cast %572 : vector<1x128x128xbf16> to vector<128x128xbf16>
      %cst_515 = arith.constant dense<0.000000e+00> : vector<176x128xf32>
      %574 = tpu.matmul %571, %573, %cst_515 {dimension_numbers = #tpu.dot_dimension_numbers<[1], [0], [0], [1], [0, 0, 1, 1], [], []>} : vector<176x128xbf16>, vector<128x128xbf16>, vector<176x128xf32> -> vector<176x128xf32>
      %575 = arith.addf %566, %574 : vector<176x128xf32>
      %c4_i32_516 = arith.constant 4 : i32
      %576 = arith.muli %c4_i32_516, %arg13 : i32
      %c6_i32 = arith.constant 6 : i32
      %577 = arith.addi %576, %c6_i32 : i32
      %c0_517 = arith.constant 0 : index
      %578 = arith.index_cast %577 : i32 to index
      %c0_518 = arith.constant 0 : index
      %c0_519 = arith.constant 0 : index
      %579 = vector.load %arg1[%c0_517, %578, %c0_518, %c0_519] : memref<1x68x176x128xbf16, #tpu.memory_space<vmem>>, vector<1x1x176x128xbf16>
      %580 = vector.shape_cast %579 : vector<1x1x176x128xbf16> to vector<176x128xbf16>
      %c6_520 = arith.constant 6 : index
      %c0_521 = arith.constant 0 : index
      %c0_522 = arith.constant 0 : index
      %581 = vector.load %arg2[%c6_520, %c0_521, %c0_522] : memref<8x128x128xbf16, #tpu.memory_space<vmem>>, vector<1x128x128xbf16>
      %582 = vector.shape_cast %581 : vector<1x128x128xbf16> to vector<128x128xbf16>
      %cst_523 = arith.constant dense<0.000000e+00> : vector<176x128xf32>
      %583 = tpu.matmul %580, %582, %cst_523 {dimension_numbers = #tpu.dot_dimension_numbers<[1], [0], [0], [1], [0, 0, 1, 1], [], []>} : vector<176x128xbf16>, vector<128x128xbf16>, vector<176x128xf32> -> vector<176x128xf32>
      %584 = arith.addf %575, %583 : vector<176x128xf32>
      %c4_i32_524 = arith.constant 4 : i32
      %585 = arith.muli %c4_i32_524, %arg13 : i32
      %c7_i32_525 = arith.constant 7 : i32
      %586 = arith.addi %585, %c7_i32_525 : i32
      %c0_526 = arith.constant 0 : index
      %587 = arith.index_cast %586 : i32 to index
      %c0_527 = arith.constant 0 : index
      %c0_528 = arith.constant 0 : index
      %588 = vector.load %arg1[%c0_526, %587, %c0_527, %c0_528] : memref<1x68x176x128xbf16, #tpu.memory_space<vmem>>, vector<1x1x176x128xbf16>
      %589 = vector.shape_cast %588 : vector<1x1x176x128xbf16> to vector<176x128xbf16>
      %c7_529 = arith.constant 7 : index
      %c0_530 = arith.constant 0 : index
      %c0_531 = arith.constant 0 : index
      %590 = vector.load %arg2[%c7_529, %c0_530, %c0_531] : memref<8x128x128xbf16, #tpu.memory_space<vmem>>, vector<1x128x128xbf16>
      %591 = vector.shape_cast %590 : vector<1x128x128xbf16> to vector<128x128xbf16>
      %cst_532 = arith.constant dense<0.000000e+00> : vector<176x128xf32>
      %592 = tpu.matmul %589, %591, %cst_532 {dimension_numbers = #tpu.dot_dimension_numbers<[1], [0], [0], [1], [0, 0, 1, 1], [], []>} : vector<176x128xbf16>, vector<128x128xbf16>, vector<176x128xf32> -> vector<176x128xf32>
      %593 = arith.addf %584, %592 : vector<176x128xf32>
      %c0_533 = arith.constant 0 : index
      %c0_534 = arith.constant 0 : index
      %594 = vector.load %arg3[%c0_533, %c0_534] : memref<1x128xf32, #tpu.memory_space<vmem>>, vector<1x128xf32>
      %595 = vector.broadcast %594 : vector<1x128xf32> to vector<176x128xf32>
      %596 = arith.addf %593, %595 : vector<176x128xf32>
      %cst_535 = arith.constant 0.000000e+00 : f32
      %597 = vector.broadcast %cst_535 : f32 to vector<176x128xf32>
      %598 = arith.maximumf %596, %597 : vector<176x128xf32>
      %599 = arith.truncf %598 : vector<176x128xf32> to vector<176x128xbf16>
      %600 = arith.index_cast %arg13 : i32 to index
      %c0_536 = arith.constant 0 : index
      %c0_537 = arith.constant 0 : index
      %601 = vector.load %arg11[%600, %c0_536, %c0_537] : memref<16x176x128xbf16, #tpu.memory_space<vmem>>, vector<1x176x128xbf16>
      %602 = vector.shape_cast %601 : vector<1x176x128xbf16> to vector<176x128xbf16>
      %603 = vector.shape_cast %599 : vector<176x128xbf16> to vector<1x176x128xbf16>
      tpu.vector_store %arg11[%600, %c0_536, %c0_537], %603 {strides = array<i32>} : memref<16x176x128xbf16, #tpu.memory_space<vmem>>, vector<1x176x128xbf16>,
    }
    %c16_i32_0 = arith.constant 16 : i32
    %c0_i32_1 = arith.constant 0 : i32
    %c7_i32 = arith.constant 7 : i32
    %1 = arith.addi %c0_i32_1, %c7_i32 : i32
    %c1_i32_2 = arith.constant 1 : i32
    scf.for %arg13 = %c0_i32_1 to %1 step %c1_i32_2  : i32 {
      %cst_465 = arith.constant 0.000000e+00 : f32
      %521 = vector.broadcast %cst_465 : f32 to vector<80x128xf32>
      %c2_i32 = arith.constant 2 : i32
      %522 = arith.muli %c2_i32, %arg13 : i32
      %c0_i32_466 = arith.constant 0 : i32
      %523 = arith.addi %522, %c0_i32_466 : i32
      %524 = arith.index_cast %523 : i32 to index
      %c0_467 = arith.constant 0 : index
      %c0_468 = arith.constant 0 : index
      %525 = vector.load %arg11[%524, %c0_467, %c0_468] : memref<16x176x128xbf16, #tpu.memory_space<vmem>>, vector<1x80x128xbf16>
      %526 = vector.shape_cast %525 : vector<1x80x128xbf16> to vector<80x128xbf16>
      %c0_469 = arith.constant 0 : index
      %c0_470 = arith.constant 0 : index
      %c0_471 = arith.constant 0 : index
      %527 = vector.load %arg4[%c0_469, %c0_470, %c0_471] : memref<16x128x128xbf16, #tpu.memory_space<vmem>>, vector<1x128x128xbf16>
      %528 = vector.shape_cast %527 : vector<1x128x128xbf16> to vector<128x128xbf16>
      %cst_472 = arith.constant dense<0.000000e+00> : vector<80x128xf32>
      %529 = tpu.matmul %526, %528, %cst_472 {dimension_numbers = #tpu.dot_dimension_numbers<[1], [0], [0], [1], [0, 0, 1, 1], [], []>} : vector<80x128xbf16>, vector<128x128xbf16>, vector<80x128xf32> -> vector<80x128xf32>
      %530 = arith.addf %521, %529 : vector<80x128xf32>
      %531 = arith.index_cast %523 : i32 to index
      %c88 = arith.constant 88 : index
      %c0_473 = arith.constant 0 : index
      %532 = vector.load %arg11[%531, %c88, %c0_473] : memref<16x176x128xbf16, #tpu.memory_space<vmem>>, vector<1x80x128xbf16>
      %533 = vector.shape_cast %532 : vector<1x80x128xbf16> to vector<80x128xbf16>
      %c1_474 = arith.constant 1 : index
      %c0_475 = arith.constant 0 : index
      %c0_476 = arith.constant 0 : index
      %534 = vector.load %arg4[%c1_474, %c0_475, %c0_476] : memref<16x128x128xbf16, #tpu.memory_space<vmem>>, vector<1x128x128xbf16>
      %535 = vector.shape_cast %534 : vector<1x128x128xbf16> to vector<128x128xbf16>
      %cst_477 = arith.constant dense<0.000000e+00> : vector<80x128xf32>
      %536 = tpu.matmul %533, %535, %cst_477 {dimension_numbers = #tpu.dot_dimension_numbers<[1], [0], [0], [1], [0, 0, 1, 1], [], []>} : vector<80x128xbf16>, vector<128x128xbf16>, vector<80x128xf32> -> vector<80x128xf32>
      %537 = arith.addf %530, %536 : vector<80x128xf32>
      %538 = arith.index_cast %523 : i32 to index
      %c8_478 = arith.constant 8 : index
      %c0_479 = arith.constant 0 : index
      %539 = vector.load %arg11[%538, %c8_478, %c0_479] : memref<16x176x128xbf16, #tpu.memory_space<vmem>>, vector<1x80x128xbf16>
      %540 = vector.shape_cast %539 : vector<1x80x128xbf16> to vector<80x128xbf16>
      %c2_480 = arith.constant 2 : index
      %c0_481 = arith.constant 0 : index
      %c0_482 = arith.constant 0 : index
      %541 = vector.load %arg4[%c2_480, %c0_481, %c0_482] : memref<16x128x128xbf16, #tpu.memory_space<vmem>>, vector<1x128x128xbf16>
      %542 = vector.shape_cast %541 : vector<1x128x128xbf16> to vector<128x128xbf16>
      %cst_483 = arith.constant dense<0.000000e+00> : vector<80x128xf32>
      %543 = tpu.matmul %540, %542, %cst_483 {dimension_numbers = #tpu.dot_dimension_numbers<[1], [0], [0], [1], [0, 0, 1, 1], [], []>} : vector<80x128xbf16>, vector<128x128xbf16>, vector<80x128xf32> -> vector<80x128xf32>
      %544 = arith.addf %537, %543 : vector<80x128xf32>
      %545 = arith.index_cast %523 : i32 to index
      %c96 = arith.constant 96 : index
      %c0_484 = arith.constant 0 : index
      %546 = vector.load %arg11[%545, %c96, %c0_484] : memref<16x176x128xbf16, #tpu.memory_space<vmem>>, vector<1x80x128xbf16>
      %547 = vector.shape_cast %546 : vector<1x80x128xbf16> to vector<80x128xbf16>
      %c3_485 = arith.constant 3 : index
      %c0_486 = arith.constant 0 : index
      %c0_487 = arith.constant 0 : index
      %548 = vector.load %arg4[%c3_485, %c0_486, %c0_487] : memref<16x128x128xbf16, #tpu.memory_space<vmem>>, vector<1x128x128xbf16>
      %549 = vector.shape_cast %548 : vector<1x128x128xbf16> to vector<128x128xbf16>
      %cst_488 = arith.constant dense<0.000000e+00> : vector<80x128xf32>
      %550 = tpu.matmul %547, %549, %cst_488 {dimension_numbers = #tpu.dot_dimension_numbers<[1], [0], [0], [1], [0, 0, 1, 1], [], []>} : vector<80x128xbf16>, vector<128x128xbf16>, vector<80x128xf32> -> vector<80x128xf32>
      %551 = arith.addf %544, %550 : vector<80x128xf32>
      %c2_i32_489 = arith.constant 2 : i32
      %552 = arith.muli %c2_i32_489, %arg13 : i32
      %c1_i32_490 = arith.constant 1 : i32
      %553 = arith.addi %552, %c1_i32_490 : i32
      %554 = arith.index_cast %553 : i32 to index
      %c0_491 = arith.constant 0 : index
      %c0_492 = arith.constant 0 : index
      %555 = vector.load %arg11[%554, %c0_491, %c0_492] : memref<16x176x128xbf16, #tpu.memory_space<vmem>>, vector<1x80x128xbf16>
      %556 = vector.shape_cast %555 : vector<1x80x128xbf16> to vector<80x128xbf16>
      %c4_493 = arith.constant 4 : index
      %c0_494 = arith.constant 0 : index
      %c0_495 = arith.constant 0 : index
      %557 = vector.load %arg4[%c4_493, %c0_494, %c0_495] : memref<16x128x128xbf16, #tpu.memory_space<vmem>>, vector<1x128x128xbf16>
      %558 = vector.shape_cast %557 : vector<1x128x128xbf16> to vector<128x128xbf16>
      %cst_496 = arith.constant dense<0.000000e+00> : vector<80x128xf32>
      %559 = tpu.matmul %556, %558, %cst_496 {dimension_numbers = #tpu.dot_dimension_numbers<[1], [0], [0], [1], [0, 0, 1, 1], [], []>} : vector<80x128xbf16>, vector<128x128xbf16>, vector<80x128xf32> -> vector<80x128xf32>
      %560 = arith.addf %551, %559 : vector<80x128xf32>
      %561 = arith.index_cast %553 : i32 to index
      %c88_497 = arith.constant 88 : index
      %c0_498 = arith.constant 0 : index
      %562 = vector.load %arg11[%561, %c88_497, %c0_498] : memref<16x176x128xbf16, #tpu.memory_space<vmem>>, vector<1x80x128xbf16>
      %563 = vector.shape_cast %562 : vector<1x80x128xbf16> to vector<80x128xbf16>
      %c5_499 = arith.constant 5 : index
      %c0_500 = arith.constant 0 : index
      %c0_501 = arith.constant 0 : index
      %564 = vector.load %arg4[%c5_499, %c0_500, %c0_501] : memref<16x128x128xbf16, #tpu.memory_space<vmem>>, vector<1x128x128xbf16>
      %565 = vector.shape_cast %564 : vector<1x128x128xbf16> to vector<128x128xbf16>
      %cst_502 = arith.constant dense<0.000000e+00> : vector<80x128xf32>
      %566 = tpu.matmul %563, %565, %cst_502 {dimension_numbers = #tpu.dot_dimension_numbers<[1], [0], [0], [1], [0, 0, 1, 1], [], []>} : vector<80x128xbf16>, vector<128x128xbf16>, vector<80x128xf32> -> vector<80x128xf32>
      %567 = arith.addf %560, %566 : vector<80x128xf32>
      %568 = arith.index_cast %553 : i32 to index
      %c8_503 = arith.constant 8 : index
      %c0_504 = arith.constant 0 : index
      %569 = vector.load %arg11[%568, %c8_503, %c0_504] : memref<16x176x128xbf16, #tpu.memory_space<vmem>>, vector<1x80x128xbf16>
      %570 = vector.shape_cast %569 : vector<1x80x128xbf16> to vector<80x128xbf16>
      %c6_505 = arith.constant 6 : index
      %c0_506 = arith.constant 0 : index
      %c0_507 = arith.constant 0 : index
      %571 = vector.load %arg4[%c6_505, %c0_506, %c0_507] : memref<16x128x128xbf16, #tpu.memory_space<vmem>>, vector<1x128x128xbf16>
      %572 = vector.shape_cast %571 : vector<1x128x128xbf16> to vector<128x128xbf16>
      %cst_508 = arith.constant dense<0.000000e+00> : vector<80x128xf32>
      %573 = tpu.matmul %570, %572, %cst_508 {dimension_numbers = #tpu.dot_dimension_numbers<[1], [0], [0], [1], [0, 0, 1, 1], [], []>} : vector<80x128xbf16>, vector<128x128xbf16>, vector<80x128xf32> -> vector<80x128xf32>
      %574 = arith.addf %567, %573 : vector<80x128xf32>
      %575 = arith.index_cast %553 : i32 to index
      %c96_509 = arith.constant 96 : index
      %c0_510 = arith.constant 0 : index
      %576 = vector.load %arg11[%575, %c96_509, %c0_510] : memref<16x176x128xbf16, #tpu.memory_space<vmem>>, vector<1x80x128xbf16>
      %577 = vector.shape_cast %576 : vector<1x80x128xbf16> to vector<80x128xbf16>
      %c7_511 = arith.constant 7 : index
      %c0_512 = arith.constant 0 : index
      %c0_513 = arith.constant 0 : index
      %578 = vector.load %arg4[%c7_511, %c0_512, %c0_513] : memref<16x128x128xbf16, #tpu.memory_space<vmem>>, vector<1x128x128xbf16>
      %579 = vector.shape_cast %578 : vector<1x128x128xbf16> to vector<128x128xbf16>
      %cst_514 = arith.constant dense<0.000000e+00> : vector<80x128xf32>
      %580 = tpu.matmul %577, %579, %cst_514 {dimension_numbers = #tpu.dot_dimension_numbers<[1], [0], [0], [1], [0, 0, 1, 1], [], []>} : vector<80x128xbf16>, vector<128x128xbf16>, vector<80x128xf32> -> vector<80x128xf32>
      %581 = arith.addf %574, %580 : vector<80x128xf32>
      %c2_i32_515 = arith.constant 2 : i32
      %582 = arith.muli %c2_i32_515, %arg13 : i32
      %c2_i32_516 = arith.constant 2 : i32
      %583 = arith.addi %582, %c2_i32_516 : i32
      %584 = arith.index_cast %583 : i32 to index
      %c0_517 = arith.constant 0 : index
      %c0_518 = arith.constant 0 : index
      %585 = vector.load %arg11[%584, %c0_517, %c0_518] : memref<16x176x128xbf16, #tpu.memory_space<vmem>>, vector<1x80x128xbf16>
      %586 = vector.shape_cast %585 : vector<1x80x128xbf16> to vector<80x128xbf16>
      %c8_519 = arith.constant 8 : index
      %c0_520 = arith.constant 0 : index
      %c0_521 = arith.constant 0 : index
      %587 = vector.load %arg4[%c8_519, %c0_520, %c0_521] : memref<16x128x128xbf16, #tpu.memory_space<vmem>>, vector<1x128x128xbf16>
      %588 = vector.shape_cast %587 : vector<1x128x128xbf16> to vector<128x128xbf16>
      %cst_522 = arith.constant dense<0.000000e+00> : vector<80x128xf32>
      %589 = tpu.matmul %586, %588, %cst_522 {dimension_numbers = #tpu.dot_dimension_numbers<[1], [0], [0], [1], [0, 0, 1, 1], [], []>} : vector<80x128xbf16>, vector<128x128xbf16>, vector<80x128xf32> -> vector<80x128xf32>
      %590 = arith.addf %581, %589 : vector<80x128xf32>
      %591 = arith.index_cast %583 : i32 to index
      %c88_523 = arith.constant 88 : index
      %c0_524 = arith.constant 0 : index
      %592 = vector.load %arg11[%591, %c88_523, %c0_524] : memref<16x176x128xbf16, #tpu.memory_space<vmem>>, vector<1x80x128xbf16>
      %593 = vector.shape_cast %592 : vector<1x80x128xbf16> to vector<80x128xbf16>
      %c9_525 = arith.constant 9 : index
      %c0_526 = arith.constant 0 : index
      %c0_527 = arith.constant 0 : index
      %594 = vector.load %arg4[%c9_525, %c0_526, %c0_527] : memref<16x128x128xbf16, #tpu.memory_space<vmem>>, vector<1x128x128xbf16>
      %595 = vector.shape_cast %594 : vector<1x128x128xbf16> to vector<128x128xbf16>
      %cst_528 = arith.constant dense<0.000000e+00> : vector<80x128xf32>
      %596 = tpu.matmul %593, %595, %cst_528 {dimension_numbers = #tpu.dot_dimension_numbers<[1], [0], [0], [1], [0, 0, 1, 1], [], []>} : vector<80x128xbf16>, vector<128x128xbf16>, vector<80x128xf32> -> vector<80x128xf32>
      %597 = arith.addf %590, %596 : vector<80x128xf32>
      %598 = arith.index_cast %583 : i32 to index
      %c8_529 = arith.constant 8 : index
      %c0_530 = arith.constant 0 : index
      %599 = vector.load %arg11[%598, %c8_529, %c0_530] : memref<16x176x128xbf16, #tpu.memory_space<vmem>>, vector<1x80x128xbf16>
      %600 = vector.shape_cast %599 : vector<1x80x128xbf16> to vector<80x128xbf16>
      %c10_531 = arith.constant 10 : index
      %c0_532 = arith.constant 0 : index
      %c0_533 = arith.constant 0 : index
      %601 = vector.load %arg4[%c10_531, %c0_532, %c0_533] : memref<16x128x128xbf16, #tpu.memory_space<vmem>>, vector<1x128x128xbf16>
      %602 = vector.shape_cast %601 : vector<1x128x128xbf16> to vector<128x128xbf16>
      %cst_534 = arith.constant dense<0.000000e+00> : vector<80x128xf32>
      %603 = tpu.matmul %600, %602, %cst_534 {dimension_numbers = #tpu.dot_dimension_numbers<[1], [0], [0], [1], [0, 0, 1, 1], [], []>} : vector<80x128xbf16>, vector<128x128xbf16>, vector<80x128xf32> -> vector<80x128xf32>
      %604 = arith.addf %597, %603 : vector<80x128xf32>
      %605 = arith.index_cast %583 : i32 to index
      %c96_535 = arith.constant 96 : index
      %c0_536 = arith.constant 0 : index
      %606 = vector.load %arg11[%605, %c96_535, %c0_536] : memref<16x176x128xbf16, #tpu.memory_space<vmem>>, vector<1x80x128xbf16>
      %607 = vector.shape_cast %606 : vector<1x80x128xbf16> to vector<80x128xbf16>
      %c11_537 = arith.constant 11 : index
      %c0_538 = arith.constant 0 : index
      %c0_539 = arith.constant 0 : index
      %608 = vector.load %arg4[%c11_537, %c0_538, %c0_539] : memref<16x128x128xbf16, #tpu.memory_space<vmem>>, vector<1x128x128xbf16>
      %609 = vector.shape_cast %608 : vector<1x128x128xbf16> to vector<128x128xbf16>
      %cst_540 = arith.constant dense<0.000000e+00> : vector<80x128xf32>
      %610 = tpu.matmul %607, %609, %cst_540 {dimension_numbers = #tpu.dot_dimension_numbers<[1], [0], [0], [1], [0, 0, 1, 1], [], []>} : vector<80x128xbf16>, vector<128x128xbf16>, vector<80x128xf32> -> vector<80x128xf32>
      %611 = arith.addf %604, %610 : vector<80x128xf32>
      %c2_i32_541 = arith.constant 2 : i32
      %612 = arith.muli %c2_i32_541, %arg13 : i32
      %c3_i32 = arith.constant 3 : i32
      %613 = arith.addi %612, %c3_i32 : i32
      %614 = arith.index_cast %613 : i32 to index
      %c0_542 = arith.constant 0 : index
      %c0_543 = arith.constant 0 : index
      %615 = vector.load %arg11[%614, %c0_542, %c0_543] : memref<16x176x128xbf16, #tpu.memory_space<vmem>>, vector<1x80x128xbf16>
      %616 = vector.shape_cast %615 : vector<1x80x128xbf16> to vector<80x128xbf16>
      %c12_544 = arith.constant 12 : index
      %c0_545 = arith.constant 0 : index
      %c0_546 = arith.constant 0 : index
      %617 = vector.load %arg4[%c12_544, %c0_545, %c0_546] : memref<16x128x128xbf16, #tpu.memory_space<vmem>>, vector<1x128x128xbf16>
      %618 = vector.shape_cast %617 : vector<1x128x128xbf16> to vector<128x128xbf16>
      %cst_547 = arith.constant dense<0.000000e+00> : vector<80x128xf32>
      %619 = tpu.matmul %616, %618, %cst_547 {dimension_numbers = #tpu.dot_dimension_numbers<[1], [0], [0], [1], [0, 0, 1, 1], [], []>} : vector<80x128xbf16>, vector<128x128xbf16>, vector<80x128xf32> -> vector<80x128xf32>
      %620 = arith.addf %611, %619 : vector<80x128xf32>
      %621 = arith.index_cast %613 : i32 to index
      %c88_548 = arith.constant 88 : index
      %c0_549 = arith.constant 0 : index
      %622 = vector.load %arg11[%621, %c88_548, %c0_549] : memref<16x176x128xbf16, #tpu.memory_space<vmem>>, vector<1x80x128xbf16>
      %623 = vector.shape_cast %622 : vector<1x80x128xbf16> to vector<80x128xbf16>
      %c13_550 = arith.constant 13 : index
      %c0_551 = arith.constant 0 : index
      %c0_552 = arith.constant 0 : index
      %624 = vector.load %arg4[%c13_550, %c0_551, %c0_552] : memref<16x128x128xbf16, #tpu.memory_space<vmem>>, vector<1x128x128xbf16>
      %625 = vector.shape_cast %624 : vector<1x128x128xbf16> to vector<128x128xbf16>
      %cst_553 = arith.constant dense<0.000000e+00> : vector<80x128xf32>
      %626 = tpu.matmul %623, %625, %cst_553 {dimension_numbers = #tpu.dot_dimension_numbers<[1], [0], [0], [1], [0, 0, 1, 1], [], []>} : vector<80x128xbf16>, vector<128x128xbf16>, vector<80x128xf32> -> vector<80x128xf32>
      %627 = arith.addf %620, %626 : vector<80x128xf32>
      %628 = arith.index_cast %613 : i32 to index
      %c8_554 = arith.constant 8 : index
      %c0_555 = arith.constant 0 : index
      %629 = vector.load %arg11[%628, %c8_554, %c0_555] : memref<16x176x128xbf16, #tpu.memory_space<vmem>>, vector<1x80x128xbf16>
      %630 = vector.shape_cast %629 : vector<1x80x128xbf16> to vector<80x128xbf16>
      %c14_556 = arith.constant 14 : index
      %c0_557 = arith.constant 0 : index
      %c0_558 = arith.constant 0 : index
      %631 = vector.load %arg4[%c14_556, %c0_557, %c0_558] : memref<16x128x128xbf16, #tpu.memory_space<vmem>>, vector<1x128x128xbf16>
      %632 = vector.shape_cast %631 : vector<1x128x128xbf16> to vector<128x128xbf16>
      %cst_559 = arith.constant dense<0.000000e+00> : vector<80x128xf32>
      %633 = tpu.matmul %630, %632, %cst_559 {dimension_numbers = #tpu.dot_dimension_numbers<[1], [0], [0], [1], [0, 0, 1, 1], [], []>} : vector<80x128xbf16>, vector<128x128xbf16>, vector<80x128xf32> -> vector<80x128xf32>
      %634 = arith.addf %627, %633 : vector<80x128xf32>
      %635 = arith.index_cast %613 : i32 to index
      %c96_560 = arith.constant 96 : index
      %c0_561 = arith.constant 0 : index
      %636 = vector.load %arg11[%635, %c96_560, %c0_561] : memref<16x176x128xbf16, #tpu.memory_space<vmem>>, vector<1x80x128xbf16>
      %637 = vector.shape_cast %636 : vector<1x80x128xbf16> to vector<80x128xbf16>
      %c15_562 = arith.constant 15 : index
      %c0_563 = arith.constant 0 : index
      %c0_564 = arith.constant 0 : index
      %638 = vector.load %arg4[%c15_562, %c0_563, %c0_564] : memref<16x128x128xbf16, #tpu.memory_space<vmem>>, vector<1x128x128xbf16>
      %639 = vector.shape_cast %638 : vector<1x128x128xbf16> to vector<128x128xbf16>
      %cst_565 = arith.constant dense<0.000000e+00> : vector<80x128xf32>
      %640 = tpu.matmul %637, %639, %cst_565 {dimension_numbers = #tpu.dot_dimension_numbers<[1], [0], [0], [1], [0, 0, 1, 1], [], []>} : vector<80x128xbf16>, vector<128x128xbf16>, vector<80x128xf32> -> vector<80x128xf32>
      %641 = arith.addf %634, %640 : vector<80x128xf32>
      %c0_566 = arith.constant 0 : index
      %c0_567 = arith.constant 0 : index
      %642 = vector.load %arg5[%c0_566, %c0_567] : memref<1x128xf32, #tpu.memory_space<vmem>>, vector<1x128xf32>
      %643 = vector.broadcast %642 : vector<1x128xf32> to vector<80x128xf32>
      %644 = arith.addf %641, %643 : vector<80x128xf32>
      %cst_568 = arith.constant 0.000000e+00 : f32
      %645 = vector.broadcast %cst_568 : f32 to vector<80x128xf32>
      %646 = arith.maximumf %644, %645 : vector<80x128xf32>
      %647 = arith.truncf %646 : vector<80x128xf32> to vector<80x128xbf16>
      %648 = arith.index_cast %arg13 : i32 to index
      %c0_569 = arith.constant 0 : index
      %c0_570 = arith.constant 0 : index
      %649 = vector.load %arg12[%648, %c0_569, %c0_570] : memref<7x80x128xbf16, #tpu.memory_space<vmem>>, vector<1x80x128xbf16>
      %650 = vector.shape_cast %649 : vector<1x80x128xbf16> to vector<80x128xbf16>
      %651 = vector.shape_cast %647 : vector<80x128xbf16> to vector<1x80x128xbf16>
      tpu.vector_store %arg12[%648, %c0_569, %c0_570], %651 {strides = array<i32>} : memref<7x80x128xbf16, #tpu.memory_space<vmem>>, vector<1x80x128xbf16>,
    }
    %c7_i32_3 = arith.constant 7 : i32
    %cst = arith.constant 0.000000e+00 : f32
    %2 = vector.broadcast %cst : f32 to vector<8x512xf32>
    %c0 = arith.constant 0 : index
    %c0_4 = arith.constant 0 : index
    %3 = vector.load %arg9[%c0, %c0_4] : memref<1x512xf32, #tpu.memory_space<vmem>>, vector<1x512xf32>
    %4 = vector.broadcast %3 : vector<1x512xf32> to vector<8x512xf32>
    %5 = arith.addf %2, %4 : vector<8x512xf32>
    %cst_5 = arith.constant 0.000000e+00 : f32
    %6 = vector.broadcast %cst_5 : f32 to vector<64x128xf32>
    %c0_6 = arith.constant 0 : index
    %c0_7 = arith.constant 0 : index
    %c0_8 = arith.constant 0 : index
    %7 = vector.load %arg12[%c0_6, %c0_7, %c0_8] : memref<7x80x128xbf16, #tpu.memory_space<vmem>>, vector<1x64x128xbf16>
    %8 = vector.shape_cast %7 : vector<1x64x128xbf16> to vector<64x128xbf16>
    %c0_9 = arith.constant 0 : index
    %c0_10 = arith.constant 0 : index
    %c0_11 = arith.constant 0 : index
    %9 = vector.load %arg6[%c0_9, %c0_10, %c0_11] : memref<9x128x128xbf16, #tpu.memory_space<vmem>>, vector<1x128x128xbf16>
    %10 = vector.shape_cast %9 : vector<1x128x128xbf16> to vector<128x128xbf16>
    %cst_12 = arith.constant dense<0.000000e+00> : vector<64x128xf32>
    %11 = tpu.matmul %8, %10, %cst_12 {dimension_numbers = #tpu.dot_dimension_numbers<[1], [0], [0], [1], [0, 0, 1, 1], [], []>} : vector<64x128xbf16>, vector<128x128xbf16>, vector<64x128xf32> -> vector<64x128xf32>
    %12 = arith.addf %6, %11 : vector<64x128xf32>
    %c0_13 = arith.constant 0 : index
    %c8 = arith.constant 8 : index
    %c0_14 = arith.constant 0 : index
    %13 = vector.load %arg12[%c0_13, %c8, %c0_14] : memref<7x80x128xbf16, #tpu.memory_space<vmem>>, vector<1x64x128xbf16>
    %14 = vector.shape_cast %13 : vector<1x64x128xbf16> to vector<64x128xbf16>
    %c1 = arith.constant 1 : index
    %c0_15 = arith.constant 0 : index
    %c0_16 = arith.constant 0 : index
    %15 = vector.load %arg6[%c1, %c0_15, %c0_16] : memref<9x128x128xbf16, #tpu.memory_space<vmem>>, vector<1x128x128xbf16>
    %16 = vector.shape_cast %15 : vector<1x128x128xbf16> to vector<128x128xbf16>
    %cst_17 = arith.constant dense<0.000000e+00> : vector<64x128xf32>
    %17 = tpu.matmul %14, %16, %cst_17 {dimension_numbers = #tpu.dot_dimension_numbers<[1], [0], [0], [1], [0, 0, 1, 1], [], []>} : vector<64x128xbf16>, vector<128x128xbf16>, vector<64x128xf32> -> vector<64x128xf32>
    %18 = arith.addf %12, %17 : vector<64x128xf32>
    %c0_18 = arith.constant 0 : index
    %c16 = arith.constant 16 : index
    %c0_19 = arith.constant 0 : index
    %19 = vector.load %arg12[%c0_18, %c16, %c0_19] : memref<7x80x128xbf16, #tpu.memory_space<vmem>>, vector<1x64x128xbf16>
    %20 = vector.shape_cast %19 : vector<1x64x128xbf16> to vector<64x128xbf16>
    %c2 = arith.constant 2 : index
    %c0_20 = arith.constant 0 : index
    %c0_21 = arith.constant 0 : index
    %21 = vector.load %arg6[%c2, %c0_20, %c0_21] : memref<9x128x128xbf16, #tpu.memory_space<vmem>>, vector<1x128x128xbf16>
    %22 = vector.shape_cast %21 : vector<1x128x128xbf16> to vector<128x128xbf16>
    %cst_22 = arith.constant dense<0.000000e+00> : vector<64x128xf32>
    %23 = tpu.matmul %20, %22, %cst_22 {dimension_numbers = #tpu.dot_dimension_numbers<[1], [0], [0], [1], [0, 0, 1, 1], [], []>} : vector<64x128xbf16>, vector<128x128xbf16>, vector<64x128xf32> -> vector<64x128xf32>
    %24 = arith.addf %18, %23 : vector<64x128xf32>
    %c1_23 = arith.constant 1 : index
    %c0_24 = arith.constant 0 : index
    %c0_25 = arith.constant 0 : index
    %25 = vector.load %arg12[%c1_23, %c0_24, %c0_25] : memref<7x80x128xbf16, #tpu.memory_space<vmem>>, vector<1x64x128xbf16>
    %26 = vector.shape_cast %25 : vector<1x64x128xbf16> to vector<64x128xbf16>
    %c3 = arith.constant 3 : index
    %c0_26 = arith.constant 0 : index
    %c0_27 = arith.constant 0 : index
    %27 = vector.load %arg6[%c3, %c0_26, %c0_27] : memref<9x128x128xbf16, #tpu.memory_space<vmem>>, vector<1x128x128xbf16>
    %28 = vector.shape_cast %27 : vector<1x128x128xbf16> to vector<128x128xbf16>
    %cst_28 = arith.constant dense<0.000000e+00> : vector<64x128xf32>
    %29 = tpu.matmul %26, %28, %cst_28 {dimension_numbers = #tpu.dot_dimension_numbers<[1], [0], [0], [1], [0, 0, 1, 1], [], []>} : vector<64x128xbf16>, vector<128x128xbf16>, vector<64x128xf32> -> vector<64x128xf32>
    %30 = arith.addf %24, %29 : vector<64x128xf32>
    %c1_29 = arith.constant 1 : index
    %c8_30 = arith.constant 8 : index
    %c0_31 = arith.constant 0 : index
    %31 = vector.load %arg12[%c1_29, %c8_30, %c0_31] : memref<7x80x128xbf16, #tpu.memory_space<vmem>>, vector<1x64x128xbf16>
    %32 = vector.shape_cast %31 : vector<1x64x128xbf16> to vector<64x128xbf16>
    %c4 = arith.constant 4 : index
    %c0_32 = arith.constant 0 : index
    %c0_33 = arith.constant 0 : index
    %33 = vector.load %arg6[%c4, %c0_32, %c0_33] : memref<9x128x128xbf16, #tpu.memory_space<vmem>>, vector<1x128x128xbf16>
    %34 = vector.shape_cast %33 : vector<1x128x128xbf16> to vector<128x128xbf16>
    %cst_34 = arith.constant dense<0.000000e+00> : vector<64x128xf32>
    %35 = tpu.matmul %32, %34, %cst_34 {dimension_numbers = #tpu.dot_dimension_numbers<[1], [0], [0], [1], [0, 0, 1, 1], [], []>} : vector<64x128xbf16>, vector<128x128xbf16>, vector<64x128xf32> -> vector<64x128xf32>
    %36 = arith.addf %30, %35 : vector<64x128xf32>
    %c1_35 = arith.constant 1 : index
    %c16_36 = arith.constant 16 : index
    %c0_37 = arith.constant 0 : index
    %37 = vector.load %arg12[%c1_35, %c16_36, %c0_37] : memref<7x80x128xbf16, #tpu.memory_space<vmem>>, vector<1x64x128xbf16>
    %38 = vector.shape_cast %37 : vector<1x64x128xbf16> to vector<64x128xbf16>
    %c5 = arith.constant 5 : index
    %c0_38 = arith.constant 0 : index
    %c0_39 = arith.constant 0 : index
    %39 = vector.load %arg6[%c5, %c0_38, %c0_39] : memref<9x128x128xbf16, #tpu.memory_space<vmem>>, vector<1x128x128xbf16>
    %40 = vector.shape_cast %39 : vector<1x128x128xbf16> to vector<128x128xbf16>
    %cst_40 = arith.constant dense<0.000000e+00> : vector<64x128xf32>
    %41 = tpu.matmul %38, %40, %cst_40 {dimension_numbers = #tpu.dot_dimension_numbers<[1], [0], [0], [1], [0, 0, 1, 1], [], []>} : vector<64x128xbf16>, vector<128x128xbf16>, vector<64x128xf32> -> vector<64x128xf32>
    %42 = arith.addf %36, %41 : vector<64x128xf32>
    %c2_41 = arith.constant 2 : index
    %c0_42 = arith.constant 0 : index
    %c0_43 = arith.constant 0 : index
    %43 = vector.load %arg12[%c2_41, %c0_42, %c0_43] : memref<7x80x128xbf16, #tpu.memory_space<vmem>>, vector<1x64x128xbf16>
    %44 = vector.shape_cast %43 : vector<1x64x128xbf16> to vector<64x128xbf16>
    %c6 = arith.constant 6 : index
    %c0_44 = arith.constant 0 : index
    %c0_45 = arith.constant 0 : index
    %45 = vector.load %arg6[%c6, %c0_44, %c0_45] : memref<9x128x128xbf16, #tpu.memory_space<vmem>>, vector<1x128x128xbf16>
    %46 = vector.shape_cast %45 : vector<1x128x128xbf16> to vector<128x128xbf16>
    %cst_46 = arith.constant dense<0.000000e+00> : vector<64x128xf32>
    %47 = tpu.matmul %44, %46, %cst_46 {dimension_numbers = #tpu.dot_dimension_numbers<[1], [0], [0], [1], [0, 0, 1, 1], [], []>} : vector<64x128xbf16>, vector<128x128xbf16>, vector<64x128xf32> -> vector<64x128xf32>
    %48 = arith.addf %42, %47 : vector<64x128xf32>
    %c2_47 = arith.constant 2 : index
    %c8_48 = arith.constant 8 : index
    %c0_49 = arith.constant 0 : index
    %49 = vector.load %arg12[%c2_47, %c8_48, %c0_49] : memref<7x80x128xbf16, #tpu.memory_space<vmem>>, vector<1x64x128xbf16>
    %50 = vector.shape_cast %49 : vector<1x64x128xbf16> to vector<64x128xbf16>
    %c7 = arith.constant 7 : index
    %c0_50 = arith.constant 0 : index
    %c0_51 = arith.constant 0 : index
    %51 = vector.load %arg6[%c7, %c0_50, %c0_51] : memref<9x128x128xbf16, #tpu.memory_space<vmem>>, vector<1x128x128xbf16>
    %52 = vector.shape_cast %51 : vector<1x128x128xbf16> to vector<128x128xbf16>
    %cst_52 = arith.constant dense<0.000000e+00> : vector<64x128xf32>
    %53 = tpu.matmul %50, %52, %cst_52 {dimension_numbers = #tpu.dot_dimension_numbers<[1], [0], [0], [1], [0, 0, 1, 1], [], []>} : vector<64x128xbf16>, vector<128x128xbf16>, vector<64x128xf32> -> vector<64x128xf32>
    %54 = arith.addf %48, %53 : vector<64x128xf32>
    %c2_53 = arith.constant 2 : index
    %c16_54 = arith.constant 16 : index
    %c0_55 = arith.constant 0 : index
    %55 = vector.load %arg12[%c2_53, %c16_54, %c0_55] : memref<7x80x128xbf16, #tpu.memory_space<vmem>>, vector<1x64x128xbf16>
    %56 = vector.shape_cast %55 : vector<1x64x128xbf16> to vector<64x128xbf16>
    %c8_56 = arith.constant 8 : index
    %c0_57 = arith.constant 0 : index
    %c0_58 = arith.constant 0 : index
    %57 = vector.load %arg6[%c8_56, %c0_57, %c0_58] : memref<9x128x128xbf16, #tpu.memory_space<vmem>>, vector<1x128x128xbf16>
    %58 = vector.shape_cast %57 : vector<1x128x128xbf16> to vector<128x128xbf16>
    %cst_59 = arith.constant dense<0.000000e+00> : vector<64x128xf32>
    %59 = tpu.matmul %56, %58, %cst_59 {dimension_numbers = #tpu.dot_dimension_numbers<[1], [0], [0], [1], [0, 0, 1, 1], [], []>} : vector<64x128xbf16>, vector<128x128xbf16>, vector<64x128xf32> -> vector<64x128xf32>
    %60 = arith.addf %54, %59 : vector<64x128xf32>
    %c0_60 = arith.constant 0 : index
    %c0_61 = arith.constant 0 : index
    %61 = vector.load %arg7[%c0_60, %c0_61] : memref<1x128xf32, #tpu.memory_space<vmem>>, vector<1x128xf32>
    %62 = vector.broadcast %61 : vector<1x128xf32> to vector<64x128xf32>
    %63 = arith.addf %60, %62 : vector<64x128xf32>
    %cst_62 = arith.constant 0.000000e+00 : f32
    %64 = vector.broadcast %cst_62 : f32 to vector<64x128xf32>
    %65 = arith.maximumf %63, %64 : vector<64x128xf32>
    %66 = arith.truncf %65 : vector<64x128xf32> to vector<64x128xbf16>
    %67 = vector.extract_strided_slice %66 {offsets = [0, 0], sizes = [64, 32], strides = [1, 1]} : vector<64x128xbf16> to vector<64x32xbf16>
    %68 = vector.extract_strided_slice %67 {offsets = [0, 0], sizes = [8, 32], strides = [1, 1]} : vector<64x32xbf16> to vector<8x32xbf16>
    %c0_63 = arith.constant 0 : index
    %c0_64 = arith.constant 0 : index
    %c0_65 = arith.constant 0 : index
    %69 = vector.load %arg8[%c0_63, %c0_64, %c0_65] : memref<40x32x512xbf16, #tpu.memory_space<vmem>>, vector<1x32x512xbf16>
    %70 = vector.shape_cast %69 : vector<1x32x512xbf16> to vector<32x512xbf16>
    %cst_66 = arith.constant dense<0.000000e+00> : vector<8x512xf32>
    %71 = tpu.matmul %68, %70, %cst_66 {dimension_numbers = #tpu.dot_dimension_numbers<[1], [0], [0], [1], [0, 0, 1, 1], [], []>} : vector<8x32xbf16>, vector<32x512xbf16>, vector<8x512xf32> -> vector<8x512xf32>
    %72 = arith.addf %5, %71 : vector<8x512xf32>
    %73 = vector.extract_strided_slice %67 {offsets = [8, 0], sizes = [8, 32], strides = [1, 1]} : vector<64x32xbf16> to vector<8x32xbf16>
    %c1_67 = arith.constant 1 : index
    %c0_68 = arith.constant 0 : index
    %c0_69 = arith.constant 0 : index
    %74 = vector.load %arg8[%c1_67, %c0_68, %c0_69] : memref<40x32x512xbf16, #tpu.memory_space<vmem>>, vector<1x32x512xbf16>
    %75 = vector.shape_cast %74 : vector<1x32x512xbf16> to vector<32x512xbf16>
    %cst_70 = arith.constant dense<0.000000e+00> : vector<8x512xf32>
    %76 = tpu.matmul %73, %75, %cst_70 {dimension_numbers = #tpu.dot_dimension_numbers<[1], [0], [0], [1], [0, 0, 1, 1], [], []>} : vector<8x32xbf16>, vector<32x512xbf16>, vector<8x512xf32> -> vector<8x512xf32>
    %77 = arith.addf %72, %76 : vector<8x512xf32>
    %78 = vector.extract_strided_slice %67 {offsets = [16, 0], sizes = [8, 32], strides = [1, 1]} : vector<64x32xbf16> to vector<8x32xbf16>
    %c2_71 = arith.constant 2 : index
    %c0_72 = arith.constant 0 : index
    %c0_73 = arith.constant 0 : index
    %79 = vector.load %arg8[%c2_71, %c0_72, %c0_73] : memref<40x32x512xbf16, #tpu.memory_space<vmem>>, vector<1x32x512xbf16>
    %80 = vector.shape_cast %79 : vector<1x32x512xbf16> to vector<32x512xbf16>
    %cst_74 = arith.constant dense<0.000000e+00> : vector<8x512xf32>
    %81 = tpu.matmul %78, %80, %cst_74 {dimension_numbers = #tpu.dot_dimension_numbers<[1], [0], [0], [1], [0, 0, 1, 1], [], []>} : vector<8x32xbf16>, vector<32x512xbf16>, vector<8x512xf32> -> vector<8x512xf32>
    %82 = arith.addf %77, %81 : vector<8x512xf32>
    %83 = vector.extract_strided_slice %67 {offsets = [24, 0], sizes = [8, 32], strides = [1, 1]} : vector<64x32xbf16> to vector<8x32xbf16>
    %c3_75 = arith.constant 3 : index
    %c0_76 = arith.constant 0 : index
    %c0_77 = arith.constant 0 : index
    %84 = vector.load %arg8[%c3_75, %c0_76, %c0_77] : memref<40x32x512xbf16, #tpu.memory_space<vmem>>, vector<1x32x512xbf16>
    %85 = vector.shape_cast %84 : vector<1x32x512xbf16> to vector<32x512xbf16>
    %cst_78 = arith.constant dense<0.000000e+00> : vector<8x512xf32>
    %86 = tpu.matmul %83, %85, %cst_78 {dimension_numbers = #tpu.dot_dimension_numbers<[1], [0], [0], [1], [0, 0, 1, 1], [], []>} : vector<8x32xbf16>, vector<32x512xbf16>, vector<8x512xf32> -> vector<8x512xf32>
    %87 = arith.addf %82, %86 : vector<8x512xf32>
    %88 = vector.extract_strided_slice %67 {offsets = [32, 0], sizes = [8, 32], strides = [1, 1]} : vector<64x32xbf16> to vector<8x32xbf16>
    %c4_79 = arith.constant 4 : index
    %c0_80 = arith.constant 0 : index
    %c0_81 = arith.constant 0 : index
    %89 = vector.load %arg8[%c4_79, %c0_80, %c0_81] : memref<40x32x512xbf16, #tpu.memory_space<vmem>>, vector<1x32x512xbf16>
    %90 = vector.shape_cast %89 : vector<1x32x512xbf16> to vector<32x512xbf16>
    %cst_82 = arith.constant dense<0.000000e+00> : vector<8x512xf32>
    %91 = tpu.matmul %88, %90, %cst_82 {dimension_numbers = #tpu.dot_dimension_numbers<[1], [0], [0], [1], [0, 0, 1, 1], [], []>} : vector<8x32xbf16>, vector<32x512xbf16>, vector<8x512xf32> -> vector<8x512xf32>
    %92 = arith.addf %87, %91 : vector<8x512xf32>
    %93 = vector.extract_strided_slice %67 {offsets = [40, 0], sizes = [8, 32], strides = [1, 1]} : vector<64x32xbf16> to vector<8x32xbf16>
    %c5_83 = arith.constant 5 : index
    %c0_84 = arith.constant 0 : index
    %c0_85 = arith.constant 0 : index
    %94 = vector.load %arg8[%c5_83, %c0_84, %c0_85] : memref<40x32x512xbf16, #tpu.memory_space<vmem>>, vector<1x32x512xbf16>
    %95 = vector.shape_cast %94 : vector<1x32x512xbf16> to vector<32x512xbf16>
    %cst_86 = arith.constant dense<0.000000e+00> : vector<8x512xf32>
    %96 = tpu.matmul %93, %95, %cst_86 {dimension_numbers = #tpu.dot_dimension_numbers<[1], [0], [0], [1], [0, 0, 1, 1], [], []>} : vector<8x32xbf16>, vector<32x512xbf16>, vector<8x512xf32> -> vector<8x512xf32>
    %97 = arith.addf %92, %96 : vector<8x512xf32>
    %98 = vector.extract_strided_slice %67 {offsets = [48, 0], sizes = [8, 32], strides = [1, 1]} : vector<64x32xbf16> to vector<8x32xbf16>
    %c6_87 = arith.constant 6 : index
    %c0_88 = arith.constant 0 : index
    %c0_89 = arith.constant 0 : index
    %99 = vector.load %arg8[%c6_87, %c0_88, %c0_89] : memref<40x32x512xbf16, #tpu.memory_space<vmem>>, vector<1x32x512xbf16>
    %100 = vector.shape_cast %99 : vector<1x32x512xbf16> to vector<32x512xbf16>
    %cst_90 = arith.constant dense<0.000000e+00> : vector<8x512xf32>
    %101 = tpu.matmul %98, %100, %cst_90 {dimension_numbers = #tpu.dot_dimension_numbers<[1], [0], [0], [1], [0, 0, 1, 1], [], []>} : vector<8x32xbf16>, vector<32x512xbf16>, vector<8x512xf32> -> vector<8x512xf32>
    %102 = arith.addf %97, %101 : vector<8x512xf32>
    %103 = vector.extract_strided_slice %67 {offsets = [56, 0], sizes = [8, 32], strides = [1, 1]} : vector<64x32xbf16> to vector<8x32xbf16>
    %c7_91 = arith.constant 7 : index
    %c0_92 = arith.constant 0 : index
    %c0_93 = arith.constant 0 : index
    %104 = vector.load %arg8[%c7_91, %c0_92, %c0_93] : memref<40x32x512xbf16, #tpu.memory_space<vmem>>, vector<1x32x512xbf16>
    %105 = vector.shape_cast %104 : vector<1x32x512xbf16> to vector<32x512xbf16>
    %cst_94 = arith.constant dense<0.000000e+00> : vector<8x512xf32>
    %106 = tpu.matmul %103, %105, %cst_94 {dimension_numbers = #tpu.dot_dimension_numbers<[1], [0], [0], [1], [0, 0, 1, 1], [], []>} : vector<8x32xbf16>, vector<32x512xbf16>, vector<8x512xf32> -> vector<8x512xf32>
    %107 = arith.addf %102, %106 : vector<8x512xf32>
    %cst_95 = arith.constant 0.000000e+00 : f32
    %108 = vector.broadcast %cst_95 : f32 to vector<64x128xf32>
    %c1_96 = arith.constant 1 : index
    %c0_97 = arith.constant 0 : index
    %c0_98 = arith.constant 0 : index
    %109 = vector.load %arg12[%c1_96, %c0_97, %c0_98] : memref<7x80x128xbf16, #tpu.memory_space<vmem>>, vector<1x64x128xbf16>
    %110 = vector.shape_cast %109 : vector<1x64x128xbf16> to vector<64x128xbf16>
    %c0_99 = arith.constant 0 : index
    %c0_100 = arith.constant 0 : index
    %c0_101 = arith.constant 0 : index
    %111 = vector.load %arg6[%c0_99, %c0_100, %c0_101] : memref<9x128x128xbf16, #tpu.memory_space<vmem>>, vector<1x128x128xbf16>
    %112 = vector.shape_cast %111 : vector<1x128x128xbf16> to vector<128x128xbf16>
    %cst_102 = arith.constant dense<0.000000e+00> : vector<64x128xf32>
    %113 = tpu.matmul %110, %112, %cst_102 {dimension_numbers = #tpu.dot_dimension_numbers<[1], [0], [0], [1], [0, 0, 1, 1], [], []>} : vector<64x128xbf16>, vector<128x128xbf16>, vector<64x128xf32> -> vector<64x128xf32>
    %114 = arith.addf %108, %113 : vector<64x128xf32>
    %c1_103 = arith.constant 1 : index
    %c8_104 = arith.constant 8 : index
    %c0_105 = arith.constant 0 : index
    %115 = vector.load %arg12[%c1_103, %c8_104, %c0_105] : memref<7x80x128xbf16, #tpu.memory_space<vmem>>, vector<1x64x128xbf16>
    %116 = vector.shape_cast %115 : vector<1x64x128xbf16> to vector<64x128xbf16>
    %c1_106 = arith.constant 1 : index
    %c0_107 = arith.constant 0 : index
    %c0_108 = arith.constant 0 : index
    %117 = vector.load %arg6[%c1_106, %c0_107, %c0_108] : memref<9x128x128xbf16, #tpu.memory_space<vmem>>, vector<1x128x128xbf16>
    %118 = vector.shape_cast %117 : vector<1x128x128xbf16> to vector<128x128xbf16>
    %cst_109 = arith.constant dense<0.000000e+00> : vector<64x128xf32>
    %119 = tpu.matmul %116, %118, %cst_109 {dimension_numbers = #tpu.dot_dimension_numbers<[1], [0], [0], [1], [0, 0, 1, 1], [], []>} : vector<64x128xbf16>, vector<128x128xbf16>, vector<64x128xf32> -> vector<64x128xf32>
    %120 = arith.addf %114, %119 : vector<64x128xf32>
    %c1_110 = arith.constant 1 : index
    %c16_111 = arith.constant 16 : index
    %c0_112 = arith.constant 0 : index
    %121 = vector.load %arg12[%c1_110, %c16_111, %c0_112] : memref<7x80x128xbf16, #tpu.memory_space<vmem>>, vector<1x64x128xbf16>
    %122 = vector.shape_cast %121 : vector<1x64x128xbf16> to vector<64x128xbf16>
    %c2_113 = arith.constant 2 : index
    %c0_114 = arith.constant 0 : index
    %c0_115 = arith.constant 0 : index
    %123 = vector.load %arg6[%c2_113, %c0_114, %c0_115] : memref<9x128x128xbf16, #tpu.memory_space<vmem>>, vector<1x128x128xbf16>
    %124 = vector.shape_cast %123 : vector<1x128x128xbf16> to vector<128x128xbf16>
    %cst_116 = arith.constant dense<0.000000e+00> : vector<64x128xf32>
    %125 = tpu.matmul %122, %124, %cst_116 {dimension_numbers = #tpu.dot_dimension_numbers<[1], [0], [0], [1], [0, 0, 1, 1], [], []>} : vector<64x128xbf16>, vector<128x128xbf16>, vector<64x128xf32> -> vector<64x128xf32>
    %126 = arith.addf %120, %125 : vector<64x128xf32>
    %c2_117 = arith.constant 2 : index
    %c0_118 = arith.constant 0 : index
    %c0_119 = arith.constant 0 : index
    %127 = vector.load %arg12[%c2_117, %c0_118, %c0_119] : memref<7x80x128xbf16, #tpu.memory_space<vmem>>, vector<1x64x128xbf16>
    %128 = vector.shape_cast %127 : vector<1x64x128xbf16> to vector<64x128xbf16>
    %c3_120 = arith.constant 3 : index
    %c0_121 = arith.constant 0 : index
    %c0_122 = arith.constant 0 : index
    %129 = vector.load %arg6[%c3_120, %c0_121, %c0_122] : memref<9x128x128xbf16, #tpu.memory_space<vmem>>, vector<1x128x128xbf16>
    %130 = vector.shape_cast %129 : vector<1x128x128xbf16> to vector<128x128xbf16>
    %cst_123 = arith.constant dense<0.000000e+00> : vector<64x128xf32>
    %131 = tpu.matmul %128, %130, %cst_123 {dimension_numbers = #tpu.dot_dimension_numbers<[1], [0], [0], [1], [0, 0, 1, 1], [], []>} : vector<64x128xbf16>, vector<128x128xbf16>, vector<64x128xf32> -> vector<64x128xf32>
    %132 = arith.addf %126, %131 : vector<64x128xf32>
    %c2_124 = arith.constant 2 : index
    %c8_125 = arith.constant 8 : index
    %c0_126 = arith.constant 0 : index
    %133 = vector.load %arg12[%c2_124, %c8_125, %c0_126] : memref<7x80x128xbf16, #tpu.memory_space<vmem>>, vector<1x64x128xbf16>
    %134 = vector.shape_cast %133 : vector<1x64x128xbf16> to vector<64x128xbf16>
    %c4_127 = arith.constant 4 : index
    %c0_128 = arith.constant 0 : index
    %c0_129 = arith.constant 0 : index
    %135 = vector.load %arg6[%c4_127, %c0_128, %c0_129] : memref<9x128x128xbf16, #tpu.memory_space<vmem>>, vector<1x128x128xbf16>
    %136 = vector.shape_cast %135 : vector<1x128x128xbf16> to vector<128x128xbf16>
    %cst_130 = arith.constant dense<0.000000e+00> : vector<64x128xf32>
    %137 = tpu.matmul %134, %136, %cst_130 {dimension_numbers = #tpu.dot_dimension_numbers<[1], [0], [0], [1], [0, 0, 1, 1], [], []>} : vector<64x128xbf16>, vector<128x128xbf16>, vector<64x128xf32> -> vector<64x128xf32>
    %138 = arith.addf %132, %137 : vector<64x128xf32>
    %c2_131 = arith.constant 2 : index
    %c16_132 = arith.constant 16 : index
    %c0_133 = arith.constant 0 : index
    %139 = vector.load %arg12[%c2_131, %c16_132, %c0_133] : memref<7x80x128xbf16, #tpu.memory_space<vmem>>, vector<1x64x128xbf16>
    %140 = vector.shape_cast %139 : vector<1x64x128xbf16> to vector<64x128xbf16>
    %c5_134 = arith.constant 5 : index
    %c0_135 = arith.constant 0 : index
    %c0_136 = arith.constant 0 : index
    %141 = vector.load %arg6[%c5_134, %c0_135, %c0_136] : memref<9x128x128xbf16, #tpu.memory_space<vmem>>, vector<1x128x128xbf16>
    %142 = vector.shape_cast %141 : vector<1x128x128xbf16> to vector<128x128xbf16>
    %cst_137 = arith.constant dense<0.000000e+00> : vector<64x128xf32>
    %143 = tpu.matmul %140, %142, %cst_137 {dimension_numbers = #tpu.dot_dimension_numbers<[1], [0], [0], [1], [0, 0, 1, 1], [], []>} : vector<64x128xbf16>, vector<128x128xbf16>, vector<64x128xf32> -> vector<64x128xf32>
    %144 = arith.addf %138, %143 : vector<64x128xf32>
    %c3_138 = arith.constant 3 : index
    %c0_139 = arith.constant 0 : index
    %c0_140 = arith.constant 0 : index
    %145 = vector.load %arg12[%c3_138, %c0_139, %c0_140] : memref<7x80x128xbf16, #tpu.memory_space<vmem>>, vector<1x64x128xbf16>
    %146 = vector.shape_cast %145 : vector<1x64x128xbf16> to vector<64x128xbf16>
    %c6_141 = arith.constant 6 : index
    %c0_142 = arith.constant 0 : index
    %c0_143 = arith.constant 0 : index
    %147 = vector.load %arg6[%c6_141, %c0_142, %c0_143] : memref<9x128x128xbf16, #tpu.memory_space<vmem>>, vector<1x128x128xbf16>
    %148 = vector.shape_cast %147 : vector<1x128x128xbf16> to vector<128x128xbf16>
    %cst_144 = arith.constant dense<0.000000e+00> : vector<64x128xf32>
    %149 = tpu.matmul %146, %148, %cst_144 {dimension_numbers = #tpu.dot_dimension_numbers<[1], [0], [0], [1], [0, 0, 1, 1], [], []>} : vector<64x128xbf16>, vector<128x128xbf16>, vector<64x128xf32> -> vector<64x128xf32>
    %150 = arith.addf %144, %149 : vector<64x128xf32>
    %c3_145 = arith.constant 3 : index
    %c8_146 = arith.constant 8 : index
    %c0_147 = arith.constant 0 : index
    %151 = vector.load %arg12[%c3_145, %c8_146, %c0_147] : memref<7x80x128xbf16, #tpu.memory_space<vmem>>, vector<1x64x128xbf16>
    %152 = vector.shape_cast %151 : vector<1x64x128xbf16> to vector<64x128xbf16>
    %c7_148 = arith.constant 7 : index
    %c0_149 = arith.constant 0 : index
    %c0_150 = arith.constant 0 : index
    %153 = vector.load %arg6[%c7_148, %c0_149, %c0_150] : memref<9x128x128xbf16, #tpu.memory_space<vmem>>, vector<1x128x128xbf16>
    %154 = vector.shape_cast %153 : vector<1x128x128xbf16> to vector<128x128xbf16>
    %cst_151 = arith.constant dense<0.000000e+00> : vector<64x128xf32>
    %155 = tpu.matmul %152, %154, %cst_151 {dimension_numbers = #tpu.dot_dimension_numbers<[1], [0], [0], [1], [0, 0, 1, 1], [], []>} : vector<64x128xbf16>, vector<128x128xbf16>, vector<64x128xf32> -> vector<64x128xf32>
    %156 = arith.addf %150, %155 : vector<64x128xf32>
    %c3_152 = arith.constant 3 : index
    %c16_153 = arith.constant 16 : index
    %c0_154 = arith.constant 0 : index
    %157 = vector.load %arg12[%c3_152, %c16_153, %c0_154] : memref<7x80x128xbf16, #tpu.memory_space<vmem>>, vector<1x64x128xbf16>
    %158 = vector.shape_cast %157 : vector<1x64x128xbf16> to vector<64x128xbf16>
    %c8_155 = arith.constant 8 : index
    %c0_156 = arith.constant 0 : index
    %c0_157 = arith.constant 0 : index
    %159 = vector.load %arg6[%c8_155, %c0_156, %c0_157] : memref<9x128x128xbf16, #tpu.memory_space<vmem>>, vector<1x128x128xbf16>
    %160 = vector.shape_cast %159 : vector<1x128x128xbf16> to vector<128x128xbf16>
    %cst_158 = arith.constant dense<0.000000e+00> : vector<64x128xf32>
    %161 = tpu.matmul %158, %160, %cst_158 {dimension_numbers = #tpu.dot_dimension_numbers<[1], [0], [0], [1], [0, 0, 1, 1], [], []>} : vector<64x128xbf16>, vector<128x128xbf16>, vector<64x128xf32> -> vector<64x128xf32>
    %162 = arith.addf %156, %161 : vector<64x128xf32>
    %c0_159 = arith.constant 0 : index
    %c0_160 = arith.constant 0 : index
    %163 = vector.load %arg7[%c0_159, %c0_160] : memref<1x128xf32, #tpu.memory_space<vmem>>, vector<1x128xf32>
    %164 = vector.broadcast %163 : vector<1x128xf32> to vector<64x128xf32>
    %165 = arith.addf %162, %164 : vector<64x128xf32>
    %cst_161 = arith.constant 0.000000e+00 : f32
    %166 = vector.broadcast %cst_161 : f32 to vector<64x128xf32>
    %167 = arith.maximumf %165, %166 : vector<64x128xf32>
    %168 = arith.truncf %167 : vector<64x128xf32> to vector<64x128xbf16>
    %169 = vector.extract_strided_slice %168 {offsets = [0, 0], sizes = [64, 32], strides = [1, 1]} : vector<64x128xbf16> to vector<64x32xbf16>
    %170 = vector.extract_strided_slice %169 {offsets = [0, 0], sizes = [8, 32], strides = [1, 1]} : vector<64x32xbf16> to vector<8x32xbf16>
    %c8_162 = arith.constant 8 : index
    %c0_163 = arith.constant 0 : index
    %c0_164 = arith.constant 0 : index
    %171 = vector.load %arg8[%c8_162, %c0_163, %c0_164] : memref<40x32x512xbf16, #tpu.memory_space<vmem>>, vector<1x32x512xbf16>
    %172 = vector.shape_cast %171 : vector<1x32x512xbf16> to vector<32x512xbf16>
    %cst_165 = arith.constant dense<0.000000e+00> : vector<8x512xf32>
    %173 = tpu.matmul %170, %172, %cst_165 {dimension_numbers = #tpu.dot_dimension_numbers<[1], [0], [0], [1], [0, 0, 1, 1], [], []>} : vector<8x32xbf16>, vector<32x512xbf16>, vector<8x512xf32> -> vector<8x512xf32>
    %174 = arith.addf %107, %173 : vector<8x512xf32>
    %175 = vector.extract_strided_slice %169 {offsets = [8, 0], sizes = [8, 32], strides = [1, 1]} : vector<64x32xbf16> to vector<8x32xbf16>
    %c9 = arith.constant 9 : index
    %c0_166 = arith.constant 0 : index
    %c0_167 = arith.constant 0 : index
    %176 = vector.load %arg8[%c9, %c0_166, %c0_167] : memref<40x32x512xbf16, #tpu.memory_space<vmem>>, vector<1x32x512xbf16>
    %177 = vector.shape_cast %176 : vector<1x32x512xbf16> to vector<32x512xbf16>
    %cst_168 = arith.constant dense<0.000000e+00> : vector<8x512xf32>
    %178 = tpu.matmul %175, %177, %cst_168 {dimension_numbers = #tpu.dot_dimension_numbers<[1], [0], [0], [1], [0, 0, 1, 1], [], []>} : vector<8x32xbf16>, vector<32x512xbf16>, vector<8x512xf32> -> vector<8x512xf32>
    %179 = arith.addf %174, %178 : vector<8x512xf32>
    %180 = vector.extract_strided_slice %169 {offsets = [16, 0], sizes = [8, 32], strides = [1, 1]} : vector<64x32xbf16> to vector<8x32xbf16>
    %c10 = arith.constant 10 : index
    %c0_169 = arith.constant 0 : index
    %c0_170 = arith.constant 0 : index
    %181 = vector.load %arg8[%c10, %c0_169, %c0_170] : memref<40x32x512xbf16, #tpu.memory_space<vmem>>, vector<1x32x512xbf16>
    %182 = vector.shape_cast %181 : vector<1x32x512xbf16> to vector<32x512xbf16>
    %cst_171 = arith.constant dense<0.000000e+00> : vector<8x512xf32>
    %183 = tpu.matmul %180, %182, %cst_171 {dimension_numbers = #tpu.dot_dimension_numbers<[1], [0], [0], [1], [0, 0, 1, 1], [], []>} : vector<8x32xbf16>, vector<32x512xbf16>, vector<8x512xf32> -> vector<8x512xf32>
    %184 = arith.addf %179, %183 : vector<8x512xf32>
    %185 = vector.extract_strided_slice %169 {offsets = [24, 0], sizes = [8, 32], strides = [1, 1]} : vector<64x32xbf16> to vector<8x32xbf16>
    %c11 = arith.constant 11 : index
    %c0_172 = arith.constant 0 : index
    %c0_173 = arith.constant 0 : index
    %186 = vector.load %arg8[%c11, %c0_172, %c0_173] : memref<40x32x512xbf16, #tpu.memory_space<vmem>>, vector<1x32x512xbf16>
    %187 = vector.shape_cast %186 : vector<1x32x512xbf16> to vector<32x512xbf16>
    %cst_174 = arith.constant dense<0.000000e+00> : vector<8x512xf32>
    %188 = tpu.matmul %185, %187, %cst_174 {dimension_numbers = #tpu.dot_dimension_numbers<[1], [0], [0], [1], [0, 0, 1, 1], [], []>} : vector<8x32xbf16>, vector<32x512xbf16>, vector<8x512xf32> -> vector<8x512xf32>
    %189 = arith.addf %184, %188 : vector<8x512xf32>
    %190 = vector.extract_strided_slice %169 {offsets = [32, 0], sizes = [8, 32], strides = [1, 1]} : vector<64x32xbf16> to vector<8x32xbf16>
    %c12 = arith.constant 12 : index
    %c0_175 = arith.constant 0 : index
    %c0_176 = arith.constant 0 : index
    %191 = vector.load %arg8[%c12, %c0_175, %c0_176] : memref<40x32x512xbf16, #tpu.memory_space<vmem>>, vector<1x32x512xbf16>
    %192 = vector.shape_cast %191 : vector<1x32x512xbf16> to vector<32x512xbf16>
    %cst_177 = arith.constant dense<0.000000e+00> : vector<8x512xf32>
    %193 = tpu.matmul %190, %192, %cst_177 {dimension_numbers = #tpu.dot_dimension_numbers<[1], [0], [0], [1], [0, 0, 1, 1], [], []>} : vector<8x32xbf16>, vector<32x512xbf16>, vector<8x512xf32> -> vector<8x512xf32>
    %194 = arith.addf %189, %193 : vector<8x512xf32>
    %195 = vector.extract_strided_slice %169 {offsets = [40, 0], sizes = [8, 32], strides = [1, 1]} : vector<64x32xbf16> to vector<8x32xbf16>
    %c13 = arith.constant 13 : index
    %c0_178 = arith.constant 0 : index
    %c0_179 = arith.constant 0 : index
    %196 = vector.load %arg8[%c13, %c0_178, %c0_179] : memref<40x32x512xbf16, #tpu.memory_space<vmem>>, vector<1x32x512xbf16>
    %197 = vector.shape_cast %196 : vector<1x32x512xbf16> to vector<32x512xbf16>
    %cst_180 = arith.constant dense<0.000000e+00> : vector<8x512xf32>
    %198 = tpu.matmul %195, %197, %cst_180 {dimension_numbers = #tpu.dot_dimension_numbers<[1], [0], [0], [1], [0, 0, 1, 1], [], []>} : vector<8x32xbf16>, vector<32x512xbf16>, vector<8x512xf32> -> vector<8x512xf32>
    %199 = arith.addf %194, %198 : vector<8x512xf32>
    %200 = vector.extract_strided_slice %169 {offsets = [48, 0], sizes = [8, 32], strides = [1, 1]} : vector<64x32xbf16> to vector<8x32xbf16>
    %c14 = arith.constant 14 : index
    %c0_181 = arith.constant 0 : index
    %c0_182 = arith.constant 0 : index
    %201 = vector.load %arg8[%c14, %c0_181, %c0_182] : memref<40x32x512xbf16, #tpu.memory_space<vmem>>, vector<1x32x512xbf16>
    %202 = vector.shape_cast %201 : vector<1x32x512xbf16> to vector<32x512xbf16>
    %cst_183 = arith.constant dense<0.000000e+00> : vector<8x512xf32>
    %203 = tpu.matmul %200, %202, %cst_183 {dimension_numbers = #tpu.dot_dimension_numbers<[1], [0], [0], [1], [0, 0, 1, 1], [], []>} : vector<8x32xbf16>, vector<32x512xbf16>, vector<8x512xf32> -> vector<8x512xf32>
    %204 = arith.addf %199, %203 : vector<8x512xf32>
    %205 = vector.extract_strided_slice %169 {offsets = [56, 0], sizes = [8, 32], strides = [1, 1]} : vector<64x32xbf16> to vector<8x32xbf16>
    %c15 = arith.constant 15 : index
    %c0_184 = arith.constant 0 : index
    %c0_185 = arith.constant 0 : index
    %206 = vector.load %arg8[%c15, %c0_184, %c0_185] : memref<40x32x512xbf16, #tpu.memory_space<vmem>>, vector<1x32x512xbf16>
    %207 = vector.shape_cast %206 : vector<1x32x512xbf16> to vector<32x512xbf16>
    %cst_186 = arith.constant dense<0.000000e+00> : vector<8x512xf32>
    %208 = tpu.matmul %205, %207, %cst_186 {dimension_numbers = #tpu.dot_dimension_numbers<[1], [0], [0], [1], [0, 0, 1, 1], [], []>} : vector<8x32xbf16>, vector<32x512xbf16>, vector<8x512xf32> -> vector<8x512xf32>
    %209 = arith.addf %204, %208 : vector<8x512xf32>
    %cst_187 = arith.constant 0.000000e+00 : f32
    %210 = vector.broadcast %cst_187 : f32 to vector<64x128xf32>
    %c2_188 = arith.constant 2 : index
    %c0_189 = arith.constant 0 : index
    %c0_190 = arith.constant 0 : index
    %211 = vector.load %arg12[%c2_188, %c0_189, %c0_190] : memref<7x80x128xbf16, #tpu.memory_space<vmem>>, vector<1x64x128xbf16>
    %212 = vector.shape_cast %211 : vector<1x64x128xbf16> to vector<64x128xbf16>
    %c0_191 = arith.constant 0 : index
    %c0_192 = arith.constant 0 : index
    %c0_193 = arith.constant 0 : index
    %213 = vector.load %arg6[%c0_191, %c0_192, %c0_193] : memref<9x128x128xbf16, #tpu.memory_space<vmem>>, vector<1x128x128xbf16>
    %214 = vector.shape_cast %213 : vector<1x128x128xbf16> to vector<128x128xbf16>
    %cst_194 = arith.constant dense<0.000000e+00> : vector<64x128xf32>
    %215 = tpu.matmul %212, %214, %cst_194 {dimension_numbers = #tpu.dot_dimension_numbers<[1], [0], [0], [1], [0, 0, 1, 1], [], []>} : vector<64x128xbf16>, vector<128x128xbf16>, vector<64x128xf32> -> vector<64x128xf32>
    %216 = arith.addf %210, %215 : vector<64x128xf32>
    %c2_195 = arith.constant 2 : index
    %c8_196 = arith.constant 8 : index
    %c0_197 = arith.constant 0 : index
    %217 = vector.load %arg12[%c2_195, %c8_196, %c0_197] : memref<7x80x128xbf16, #tpu.memory_space<vmem>>, vector<1x64x128xbf16>
    %218 = vector.shape_cast %217 : vector<1x64x128xbf16> to vector<64x128xbf16>
    %c1_198 = arith.constant 1 : index
    %c0_199 = arith.constant 0 : index
    %c0_200 = arith.constant 0 : index
    %219 = vector.load %arg6[%c1_198, %c0_199, %c0_200] : memref<9x128x128xbf16, #tpu.memory_space<vmem>>, vector<1x128x128xbf16>
    %220 = vector.shape_cast %219 : vector<1x128x128xbf16> to vector<128x128xbf16>
    %cst_201 = arith.constant dense<0.000000e+00> : vector<64x128xf32>
    %221 = tpu.matmul %218, %220, %cst_201 {dimension_numbers = #tpu.dot_dimension_numbers<[1], [0], [0], [1], [0, 0, 1, 1], [], []>} : vector<64x128xbf16>, vector<128x128xbf16>, vector<64x128xf32> -> vector<64x128xf32>
    %222 = arith.addf %216, %221 : vector<64x128xf32>
    %c2_202 = arith.constant 2 : index
    %c16_203 = arith.constant 16 : index
    %c0_204 = arith.constant 0 : index
    %223 = vector.load %arg12[%c2_202, %c16_203, %c0_204] : memref<7x80x128xbf16, #tpu.memory_space<vmem>>, vector<1x64x128xbf16>
    %224 = vector.shape_cast %223 : vector<1x64x128xbf16> to vector<64x128xbf16>
    %c2_205 = arith.constant 2 : index
    %c0_206 = arith.constant 0 : index
    %c0_207 = arith.constant 0 : index
    %225 = vector.load %arg6[%c2_205, %c0_206, %c0_207] : memref<9x128x128xbf16, #tpu.memory_space<vmem>>, vector<1x128x128xbf16>
    %226 = vector.shape_cast %225 : vector<1x128x128xbf16> to vector<128x128xbf16>
    %cst_208 = arith.constant dense<0.000000e+00> : vector<64x128xf32>
    %227 = tpu.matmul %224, %226, %cst_208 {dimension_numbers = #tpu.dot_dimension_numbers<[1], [0], [0], [1], [0, 0, 1, 1], [], []>} : vector<64x128xbf16>, vector<128x128xbf16>, vector<64x128xf32> -> vector<64x128xf32>
    %228 = arith.addf %222, %227 : vector<64x128xf32>
    %c3_209 = arith.constant 3 : index
    %c0_210 = arith.constant 0 : index
    %c0_211 = arith.constant 0 : index
    %229 = vector.load %arg12[%c3_209, %c0_210, %c0_211] : memref<7x80x128xbf16, #tpu.memory_space<vmem>>, vector<1x64x128xbf16>
    %230 = vector.shape_cast %229 : vector<1x64x128xbf16> to vector<64x128xbf16>
    %c3_212 = arith.constant 3 : index
    %c0_213 = arith.constant 0 : index
    %c0_214 = arith.constant 0 : index
    %231 = vector.load %arg6[%c3_212, %c0_213, %c0_214] : memref<9x128x128xbf16, #tpu.memory_space<vmem>>, vector<1x128x128xbf16>
    %232 = vector.shape_cast %231 : vector<1x128x128xbf16> to vector<128x128xbf16>
    %cst_215 = arith.constant dense<0.000000e+00> : vector<64x128xf32>
    %233 = tpu.matmul %230, %232, %cst_215 {dimension_numbers = #tpu.dot_dimension_numbers<[1], [0], [0], [1], [0, 0, 1, 1], [], []>} : vector<64x128xbf16>, vector<128x128xbf16>, vector<64x128xf32> -> vector<64x128xf32>
    %234 = arith.addf %228, %233 : vector<64x128xf32>
    %c3_216 = arith.constant 3 : index
    %c8_217 = arith.constant 8 : index
    %c0_218 = arith.constant 0 : index
    %235 = vector.load %arg12[%c3_216, %c8_217, %c0_218] : memref<7x80x128xbf16, #tpu.memory_space<vmem>>, vector<1x64x128xbf16>
    %236 = vector.shape_cast %235 : vector<1x64x128xbf16> to vector<64x128xbf16>
    %c4_219 = arith.constant 4 : index
    %c0_220 = arith.constant 0 : index
    %c0_221 = arith.constant 0 : index
    %237 = vector.load %arg6[%c4_219, %c0_220, %c0_221] : memref<9x128x128xbf16, #tpu.memory_space<vmem>>, vector<1x128x128xbf16>
    %238 = vector.shape_cast %237 : vector<1x128x128xbf16> to vector<128x128xbf16>
    %cst_222 = arith.constant dense<0.000000e+00> : vector<64x128xf32>
    %239 = tpu.matmul %236, %238, %cst_222 {dimension_numbers = #tpu.dot_dimension_numbers<[1], [0], [0], [1], [0, 0, 1, 1], [], []>} : vector<64x128xbf16>, vector<128x128xbf16>, vector<64x128xf32> -> vector<64x128xf32>
    %240 = arith.addf %234, %239 : vector<64x128xf32>
    %c3_223 = arith.constant 3 : index
    %c16_224 = arith.constant 16 : index
    %c0_225 = arith.constant 0 : index
    %241 = vector.load %arg12[%c3_223, %c16_224, %c0_225] : memref<7x80x128xbf16, #tpu.memory_space<vmem>>, vector<1x64x128xbf16>
    %242 = vector.shape_cast %241 : vector<1x64x128xbf16> to vector<64x128xbf16>
    %c5_226 = arith.constant 5 : index
    %c0_227 = arith.constant 0 : index
    %c0_228 = arith.constant 0 : index
    %243 = vector.load %arg6[%c5_226, %c0_227, %c0_228] : memref<9x128x128xbf16, #tpu.memory_space<vmem>>, vector<1x128x128xbf16>
    %244 = vector.shape_cast %243 : vector<1x128x128xbf16> to vector<128x128xbf16>
    %cst_229 = arith.constant dense<0.000000e+00> : vector<64x128xf32>
    %245 = tpu.matmul %242, %244, %cst_229 {dimension_numbers = #tpu.dot_dimension_numbers<[1], [0], [0], [1], [0, 0, 1, 1], [], []>} : vector<64x128xbf16>, vector<128x128xbf16>, vector<64x128xf32> -> vector<64x128xf32>
    %246 = arith.addf %240, %245 : vector<64x128xf32>
    %c4_230 = arith.constant 4 : index
    %c0_231 = arith.constant 0 : index
    %c0_232 = arith.constant 0 : index
    %247 = vector.load %arg12[%c4_230, %c0_231, %c0_232] : memref<7x80x128xbf16, #tpu.memory_space<vmem>>, vector<1x64x128xbf16>
    %248 = vector.shape_cast %247 : vector<1x64x128xbf16> to vector<64x128xbf16>
    %c6_233 = arith.constant 6 : index
    %c0_234 = arith.constant 0 : index
    %c0_235 = arith.constant 0 : index
    %249 = vector.load %arg6[%c6_233, %c0_234, %c0_235] : memref<9x128x128xbf16, #tpu.memory_space<vmem>>, vector<1x128x128xbf16>
    %250 = vector.shape_cast %249 : vector<1x128x128xbf16> to vector<128x128xbf16>
    %cst_236 = arith.constant dense<0.000000e+00> : vector<64x128xf32>
    %251 = tpu.matmul %248, %250, %cst_236 {dimension_numbers = #tpu.dot_dimension_numbers<[1], [0], [0], [1], [0, 0, 1, 1], [], []>} : vector<64x128xbf16>, vector<128x128xbf16>, vector<64x128xf32> -> vector<64x128xf32>
    %252 = arith.addf %246, %251 : vector<64x128xf32>
    %c4_237 = arith.constant 4 : index
    %c8_238 = arith.constant 8 : index
    %c0_239 = arith.constant 0 : index
    %253 = vector.load %arg12[%c4_237, %c8_238, %c0_239] : memref<7x80x128xbf16, #tpu.memory_space<vmem>>, vector<1x64x128xbf16>
    %254 = vector.shape_cast %253 : vector<1x64x128xbf16> to vector<64x128xbf16>
    %c7_240 = arith.constant 7 : index
    %c0_241 = arith.constant 0 : index
    %c0_242 = arith.constant 0 : index
    %255 = vector.load %arg6[%c7_240, %c0_241, %c0_242] : memref<9x128x128xbf16, #tpu.memory_space<vmem>>, vector<1x128x128xbf16>
    %256 = vector.shape_cast %255 : vector<1x128x128xbf16> to vector<128x128xbf16>
    %cst_243 = arith.constant dense<0.000000e+00> : vector<64x128xf32>
    %257 = tpu.matmul %254, %256, %cst_243 {dimension_numbers = #tpu.dot_dimension_numbers<[1], [0], [0], [1], [0, 0, 1, 1], [], []>} : vector<64x128xbf16>, vector<128x128xbf16>, vector<64x128xf32> -> vector<64x128xf32>
    %258 = arith.addf %252, %257 : vector<64x128xf32>
    %c4_244 = arith.constant 4 : index
    %c16_245 = arith.constant 16 : index
    %c0_246 = arith.constant 0 : index
    %259 = vector.load %arg12[%c4_244, %c16_245, %c0_246] : memref<7x80x128xbf16, #tpu.memory_space<vmem>>, vector<1x64x128xbf16>
    %260 = vector.shape_cast %259 : vector<1x64x128xbf16> to vector<64x128xbf16>
    %c8_247 = arith.constant 8 : index
    %c0_248 = arith.constant 0 : index
    %c0_249 = arith.constant 0 : index
    %261 = vector.load %arg6[%c8_247, %c0_248, %c0_249] : memref<9x128x128xbf16, #tpu.memory_space<vmem>>, vector<1x128x128xbf16>
    %262 = vector.shape_cast %261 : vector<1x128x128xbf16> to vector<128x128xbf16>
    %cst_250 = arith.constant dense<0.000000e+00> : vector<64x128xf32>
    %263 = tpu.matmul %260, %262, %cst_250 {dimension_numbers = #tpu.dot_dimension_numbers<[1], [0], [0], [1], [0, 0, 1, 1], [], []>} : vector<64x128xbf16>, vector<128x128xbf16>, vector<64x128xf32> -> vector<64x128xf32>
    %264 = arith.addf %258, %263 : vector<64x128xf32>
    %c0_251 = arith.constant 0 : index
    %c0_252 = arith.constant 0 : index
    %265 = vector.load %arg7[%c0_251, %c0_252] : memref<1x128xf32, #tpu.memory_space<vmem>>, vector<1x128xf32>
    %266 = vector.broadcast %265 : vector<1x128xf32> to vector<64x128xf32>
    %267 = arith.addf %264, %266 : vector<64x128xf32>
    %cst_253 = arith.constant 0.000000e+00 : f32
    %268 = vector.broadcast %cst_253 : f32 to vector<64x128xf32>
    %269 = arith.maximumf %267, %268 : vector<64x128xf32>
    %270 = arith.truncf %269 : vector<64x128xf32> to vector<64x128xbf16>
    %271 = vector.extract_strided_slice %270 {offsets = [0, 0], sizes = [64, 32], strides = [1, 1]} : vector<64x128xbf16> to vector<64x32xbf16>
    %272 = vector.extract_strided_slice %271 {offsets = [0, 0], sizes = [8, 32], strides = [1, 1]} : vector<64x32xbf16> to vector<8x32xbf16>
    %c16_254 = arith.constant 16 : index
    %c0_255 = arith.constant 0 : index
    %c0_256 = arith.constant 0 : index
    %273 = vector.load %arg8[%c16_254, %c0_255, %c0_256] : memref<40x32x512xbf16, #tpu.memory_space<vmem>>, vector<1x32x512xbf16>
    %274 = vector.shape_cast %273 : vector<1x32x512xbf16> to vector<32x512xbf16>
    %cst_257 = arith.constant dense<0.000000e+00> : vector<8x512xf32>
    %275 = tpu.matmul %272, %274, %cst_257 {dimension_numbers = #tpu.dot_dimension_numbers<[1], [0], [0], [1], [0, 0, 1, 1], [], []>} : vector<8x32xbf16>, vector<32x512xbf16>, vector<8x512xf32> -> vector<8x512xf32>
    %276 = arith.addf %209, %275 : vector<8x512xf32>
    %277 = vector.extract_strided_slice %271 {offsets = [8, 0], sizes = [8, 32], strides = [1, 1]} : vector<64x32xbf16> to vector<8x32xbf16>
    %c17 = arith.constant 17 : index
    %c0_258 = arith.constant 0 : index
    %c0_259 = arith.constant 0 : index
    %278 = vector.load %arg8[%c17, %c0_258, %c0_259] : memref<40x32x512xbf16, #tpu.memory_space<vmem>>, vector<1x32x512xbf16>
    %279 = vector.shape_cast %278 : vector<1x32x512xbf16> to vector<32x512xbf16>
    %cst_260 = arith.constant dense<0.000000e+00> : vector<8x512xf32>
    %280 = tpu.matmul %277, %279, %cst_260 {dimension_numbers = #tpu.dot_dimension_numbers<[1], [0], [0], [1], [0, 0, 1, 1], [], []>} : vector<8x32xbf16>, vector<32x512xbf16>, vector<8x512xf32> -> vector<8x512xf32>
    %281 = arith.addf %276, %280 : vector<8x512xf32>
    %282 = vector.extract_strided_slice %271 {offsets = [16, 0], sizes = [8, 32], strides = [1, 1]} : vector<64x32xbf16> to vector<8x32xbf16>
    %c18 = arith.constant 18 : index
    %c0_261 = arith.constant 0 : index
    %c0_262 = arith.constant 0 : index
    %283 = vector.load %arg8[%c18, %c0_261, %c0_262] : memref<40x32x512xbf16, #tpu.memory_space<vmem>>, vector<1x32x512xbf16>
    %284 = vector.shape_cast %283 : vector<1x32x512xbf16> to vector<32x512xbf16>
    %cst_263 = arith.constant dense<0.000000e+00> : vector<8x512xf32>
    %285 = tpu.matmul %282, %284, %cst_263 {dimension_numbers = #tpu.dot_dimension_numbers<[1], [0], [0], [1], [0, 0, 1, 1], [], []>} : vector<8x32xbf16>, vector<32x512xbf16>, vector<8x512xf32> -> vector<8x512xf32>
    %286 = arith.addf %281, %285 : vector<8x512xf32>
    %287 = vector.extract_strided_slice %271 {offsets = [24, 0], sizes = [8, 32], strides = [1, 1]} : vector<64x32xbf16> to vector<8x32xbf16>
    %c19 = arith.constant 19 : index
    %c0_264 = arith.constant 0 : index
    %c0_265 = arith.constant 0 : index
    %288 = vector.load %arg8[%c19, %c0_264, %c0_265] : memref<40x32x512xbf16, #tpu.memory_space<vmem>>, vector<1x32x512xbf16>
    %289 = vector.shape_cast %288 : vector<1x32x512xbf16> to vector<32x512xbf16>
    %cst_266 = arith.constant dense<0.000000e+00> : vector<8x512xf32>
    %290 = tpu.matmul %287, %289, %cst_266 {dimension_numbers = #tpu.dot_dimension_numbers<[1], [0], [0], [1], [0, 0, 1, 1], [], []>} : vector<8x32xbf16>, vector<32x512xbf16>, vector<8x512xf32> -> vector<8x512xf32>
    %291 = arith.addf %286, %290 : vector<8x512xf32>
    %292 = vector.extract_strided_slice %271 {offsets = [32, 0], sizes = [8, 32], strides = [1, 1]} : vector<64x32xbf16> to vector<8x32xbf16>
    %c20 = arith.constant 20 : index
    %c0_267 = arith.constant 0 : index
    %c0_268 = arith.constant 0 : index
    %293 = vector.load %arg8[%c20, %c0_267, %c0_268] : memref<40x32x512xbf16, #tpu.memory_space<vmem>>, vector<1x32x512xbf16>
    %294 = vector.shape_cast %293 : vector<1x32x512xbf16> to vector<32x512xbf16>
    %cst_269 = arith.constant dense<0.000000e+00> : vector<8x512xf32>
    %295 = tpu.matmul %292, %294, %cst_269 {dimension_numbers = #tpu.dot_dimension_numbers<[1], [0], [0], [1], [0, 0, 1, 1], [], []>} : vector<8x32xbf16>, vector<32x512xbf16>, vector<8x512xf32> -> vector<8x512xf32>
    %296 = arith.addf %291, %295 : vector<8x512xf32>
    %297 = vector.extract_strided_slice %271 {offsets = [40, 0], sizes = [8, 32], strides = [1, 1]} : vector<64x32xbf16> to vector<8x32xbf16>
    %c21 = arith.constant 21 : index
    %c0_270 = arith.constant 0 : index
    %c0_271 = arith.constant 0 : index
    %298 = vector.load %arg8[%c21, %c0_270, %c0_271] : memref<40x32x512xbf16, #tpu.memory_space<vmem>>, vector<1x32x512xbf16>
    %299 = vector.shape_cast %298 : vector<1x32x512xbf16> to vector<32x512xbf16>
    %cst_272 = arith.constant dense<0.000000e+00> : vector<8x512xf32>
    %300 = tpu.matmul %297, %299, %cst_272 {dimension_numbers = #tpu.dot_dimension_numbers<[1], [0], [0], [1], [0, 0, 1, 1], [], []>} : vector<8x32xbf16>, vector<32x512xbf16>, vector<8x512xf32> -> vector<8x512xf32>
    %301 = arith.addf %296, %300 : vector<8x512xf32>
    %302 = vector.extract_strided_slice %271 {offsets = [48, 0], sizes = [8, 32], strides = [1, 1]} : vector<64x32xbf16> to vector<8x32xbf16>
    %c22 = arith.constant 22 : index
    %c0_273 = arith.constant 0 : index
    %c0_274 = arith.constant 0 : index
    %303 = vector.load %arg8[%c22, %c0_273, %c0_274] : memref<40x32x512xbf16, #tpu.memory_space<vmem>>, vector<1x32x512xbf16>
    %304 = vector.shape_cast %303 : vector<1x32x512xbf16> to vector<32x512xbf16>
    %cst_275 = arith.constant dense<0.000000e+00> : vector<8x512xf32>
    %305 = tpu.matmul %302, %304, %cst_275 {dimension_numbers = #tpu.dot_dimension_numbers<[1], [0], [0], [1], [0, 0, 1, 1], [], []>} : vector<8x32xbf16>, vector<32x512xbf16>, vector<8x512xf32> -> vector<8x512xf32>
    %306 = arith.addf %301, %305 : vector<8x512xf32>
    %307 = vector.extract_strided_slice %271 {offsets = [56, 0], sizes = [8, 32], strides = [1, 1]} : vector<64x32xbf16> to vector<8x32xbf16>
    %c23 = arith.constant 23 : index
    %c0_276 = arith.constant 0 : index
    %c0_277 = arith.constant 0 : index
    %308 = vector.load %arg8[%c23, %c0_276, %c0_277] : memref<40x32x512xbf16, #tpu.memory_space<vmem>>, vector<1x32x512xbf16>
    %309 = vector.shape_cast %308 : vector<1x32x512xbf16> to vector<32x512xbf16>
    %cst_278 = arith.constant dense<0.000000e+00> : vector<8x512xf32>
    %310 = tpu.matmul %307, %309, %cst_278 {dimension_numbers = #tpu.dot_dimension_numbers<[1], [0], [0], [1], [0, 0, 1, 1], [], []>} : vector<8x32xbf16>, vector<32x512xbf16>, vector<8x512xf32> -> vector<8x512xf32>
    %311 = arith.addf %306, %310 : vector<8x512xf32>
    %cst_279 = arith.constant 0.000000e+00 : f32
    %312 = vector.broadcast %cst_279 : f32 to vector<64x128xf32>
    %c3_280 = arith.constant 3 : index
    %c0_281 = arith.constant 0 : index
    %c0_282 = arith.constant 0 : index
    %313 = vector.load %arg12[%c3_280, %c0_281, %c0_282] : memref<7x80x128xbf16, #tpu.memory_space<vmem>>, vector<1x64x128xbf16>
    %314 = vector.shape_cast %313 : vector<1x64x128xbf16> to vector<64x128xbf16>
    %c0_283 = arith.constant 0 : index
    %c0_284 = arith.constant 0 : index
    %c0_285 = arith.constant 0 : index
    %315 = vector.load %arg6[%c0_283, %c0_284, %c0_285] : memref<9x128x128xbf16, #tpu.memory_space<vmem>>, vector<1x128x128xbf16>
    %316 = vector.shape_cast %315 : vector<1x128x128xbf16> to vector<128x128xbf16>
    %cst_286 = arith.constant dense<0.000000e+00> : vector<64x128xf32>
    %317 = tpu.matmul %314, %316, %cst_286 {dimension_numbers = #tpu.dot_dimension_numbers<[1], [0], [0], [1], [0, 0, 1, 1], [], []>} : vector<64x128xbf16>, vector<128x128xbf16>, vector<64x128xf32> -> vector<64x128xf32>
    %318 = arith.addf %312, %317 : vector<64x128xf32>
    %c3_287 = arith.constant 3 : index
    %c8_288 = arith.constant 8 : index
    %c0_289 = arith.constant 0 : index
    %319 = vector.load %arg12[%c3_287, %c8_288, %c0_289] : memref<7x80x128xbf16, #tpu.memory_space<vmem>>, vector<1x64x128xbf16>
    %320 = vector.shape_cast %319 : vector<1x64x128xbf16> to vector<64x128xbf16>
    %c1_290 = arith.constant 1 : index
    %c0_291 = arith.constant 0 : index
    %c0_292 = arith.constant 0 : index
    %321 = vector.load %arg6[%c1_290, %c0_291, %c0_292] : memref<9x128x128xbf16, #tpu.memory_space<vmem>>, vector<1x128x128xbf16>
    %322 = vector.shape_cast %321 : vector<1x128x128xbf16> to vector<128x128xbf16>
    %cst_293 = arith.constant dense<0.000000e+00> : vector<64x128xf32>
    %323 = tpu.matmul %320, %322, %cst_293 {dimension_numbers = #tpu.dot_dimension_numbers<[1], [0], [0], [1], [0, 0, 1, 1], [], []>} : vector<64x128xbf16>, vector<128x128xbf16>, vector<64x128xf32> -> vector<64x128xf32>
    %324 = arith.addf %318, %323 : vector<64x128xf32>
    %c3_294 = arith.constant 3 : index
    %c16_295 = arith.constant 16 : index
    %c0_296 = arith.constant 0 : index
    %325 = vector.load %arg12[%c3_294, %c16_295, %c0_296] : memref<7x80x128xbf16, #tpu.memory_space<vmem>>, vector<1x64x128xbf16>
    %326 = vector.shape_cast %325 : vector<1x64x128xbf16> to vector<64x128xbf16>
    %c2_297 = arith.constant 2 : index
    %c0_298 = arith.constant 0 : index
    %c0_299 = arith.constant 0 : index
    %327 = vector.load %arg6[%c2_297, %c0_298, %c0_299] : memref<9x128x128xbf16, #tpu.memory_space<vmem>>, vector<1x128x128xbf16>
    %328 = vector.shape_cast %327 : vector<1x128x128xbf16> to vector<128x128xbf16>
    %cst_300 = arith.constant dense<0.000000e+00> : vector<64x128xf32>
    %329 = tpu.matmul %326, %328, %cst_300 {dimension_numbers = #tpu.dot_dimension_numbers<[1], [0], [0], [1], [0, 0, 1, 1], [], []>} : vector<64x128xbf16>, vector<128x128xbf16>, vector<64x128xf32> -> vector<64x128xf32>
    %330 = arith.addf %324, %329 : vector<64x128xf32>
    %c4_301 = arith.constant 4 : index
    %c0_302 = arith.constant 0 : index
    %c0_303 = arith.constant 0 : index
    %331 = vector.load %arg12[%c4_301, %c0_302, %c0_303] : memref<7x80x128xbf16, #tpu.memory_space<vmem>>, vector<1x64x128xbf16>
    %332 = vector.shape_cast %331 : vector<1x64x128xbf16> to vector<64x128xbf16>
    %c3_304 = arith.constant 3 : index
    %c0_305 = arith.constant 0 : index
    %c0_306 = arith.constant 0 : index
    %333 = vector.load %arg6[%c3_304, %c0_305, %c0_306] : memref<9x128x128xbf16, #tpu.memory_space<vmem>>, vector<1x128x128xbf16>
    %334 = vector.shape_cast %333 : vector<1x128x128xbf16> to vector<128x128xbf16>
    %cst_307 = arith.constant dense<0.000000e+00> : vector<64x128xf32>
    %335 = tpu.matmul %332, %334, %cst_307 {dimension_numbers = #tpu.dot_dimension_numbers<[1], [0], [0], [1], [0, 0, 1, 1], [], []>} : vector<64x128xbf16>, vector<128x128xbf16>, vector<64x128xf32> -> vector<64x128xf32>
    %336 = arith.addf %330, %335 : vector<64x128xf32>
    %c4_308 = arith.constant 4 : index
    %c8_309 = arith.constant 8 : index
    %c0_310 = arith.constant 0 : index
    %337 = vector.load %arg12[%c4_308, %c8_309, %c0_310] : memref<7x80x128xbf16, #tpu.memory_space<vmem>>, vector<1x64x128xbf16>
    %338 = vector.shape_cast %337 : vector<1x64x128xbf16> to vector<64x128xbf16>
    %c4_311 = arith.constant 4 : index
    %c0_312 = arith.constant 0 : index
    %c0_313 = arith.constant 0 : index
    %339 = vector.load %arg6[%c4_311, %c0_312, %c0_313] : memref<9x128x128xbf16, #tpu.memory_space<vmem>>, vector<1x128x128xbf16>
    %340 = vector.shape_cast %339 : vector<1x128x128xbf16> to vector<128x128xbf16>
    %cst_314 = arith.constant dense<0.000000e+00> : vector<64x128xf32>
    %341 = tpu.matmul %338, %340, %cst_314 {dimension_numbers = #tpu.dot_dimension_numbers<[1], [0], [0], [1], [0, 0, 1, 1], [], []>} : vector<64x128xbf16>, vector<128x128xbf16>, vector<64x128xf32> -> vector<64x128xf32>
    %342 = arith.addf %336, %341 : vector<64x128xf32>
    %c4_315 = arith.constant 4 : index
    %c16_316 = arith.constant 16 : index
    %c0_317 = arith.constant 0 : index
    %343 = vector.load %arg12[%c4_315, %c16_316, %c0_317] : memref<7x80x128xbf16, #tpu.memory_space<vmem>>, vector<1x64x128xbf16>
    %344 = vector.shape_cast %343 : vector<1x64x128xbf16> to vector<64x128xbf16>
    %c5_318 = arith.constant 5 : index
    %c0_319 = arith.constant 0 : index
    %c0_320 = arith.constant 0 : index
    %345 = vector.load %arg6[%c5_318, %c0_319, %c0_320] : memref<9x128x128xbf16, #tpu.memory_space<vmem>>, vector<1x128x128xbf16>
    %346 = vector.shape_cast %345 : vector<1x128x128xbf16> to vector<128x128xbf16>
    %cst_321 = arith.constant dense<0.000000e+00> : vector<64x128xf32>
    %347 = tpu.matmul %344, %346, %cst_321 {dimension_numbers = #tpu.dot_dimension_numbers<[1], [0], [0], [1], [0, 0, 1, 1], [], []>} : vector<64x128xbf16>, vector<128x128xbf16>, vector<64x128xf32> -> vector<64x128xf32>
    %348 = arith.addf %342, %347 : vector<64x128xf32>
    %c5_322 = arith.constant 5 : index
    %c0_323 = arith.constant 0 : index
    %c0_324 = arith.constant 0 : index
    %349 = vector.load %arg12[%c5_322, %c0_323, %c0_324] : memref<7x80x128xbf16, #tpu.memory_space<vmem>>, vector<1x64x128xbf16>
    %350 = vector.shape_cast %349 : vector<1x64x128xbf16> to vector<64x128xbf16>
    %c6_325 = arith.constant 6 : index
    %c0_326 = arith.constant 0 : index
    %c0_327 = arith.constant 0 : index
    %351 = vector.load %arg6[%c6_325, %c0_326, %c0_327] : memref<9x128x128xbf16, #tpu.memory_space<vmem>>, vector<1x128x128xbf16>
    %352 = vector.shape_cast %351 : vector<1x128x128xbf16> to vector<128x128xbf16>
    %cst_328 = arith.constant dense<0.000000e+00> : vector<64x128xf32>
    %353 = tpu.matmul %350, %352, %cst_328 {dimension_numbers = #tpu.dot_dimension_numbers<[1], [0], [0], [1], [0, 0, 1, 1], [], []>} : vector<64x128xbf16>, vector<128x128xbf16>, vector<64x128xf32> -> vector<64x128xf32>
    %354 = arith.addf %348, %353 : vector<64x128xf32>
    %c5_329 = arith.constant 5 : index
    %c8_330 = arith.constant 8 : index
    %c0_331 = arith.constant 0 : index
    %355 = vector.load %arg12[%c5_329, %c8_330, %c0_331] : memref<7x80x128xbf16, #tpu.memory_space<vmem>>, vector<1x64x128xbf16>
    %356 = vector.shape_cast %355 : vector<1x64x128xbf16> to vector<64x128xbf16>
    %c7_332 = arith.constant 7 : index
    %c0_333 = arith.constant 0 : index
    %c0_334 = arith.constant 0 : index
    %357 = vector.load %arg6[%c7_332, %c0_333, %c0_334] : memref<9x128x128xbf16, #tpu.memory_space<vmem>>, vector<1x128x128xbf16>
    %358 = vector.shape_cast %357 : vector<1x128x128xbf16> to vector<128x128xbf16>
    %cst_335 = arith.constant dense<0.000000e+00> : vector<64x128xf32>
    %359 = tpu.matmul %356, %358, %cst_335 {dimension_numbers = #tpu.dot_dimension_numbers<[1], [0], [0], [1], [0, 0, 1, 1], [], []>} : vector<64x128xbf16>, vector<128x128xbf16>, vector<64x128xf32> -> vector<64x128xf32>
    %360 = arith.addf %354, %359 : vector<64x128xf32>
    %c5_336 = arith.constant 5 : index
    %c16_337 = arith.constant 16 : index
    %c0_338 = arith.constant 0 : index
    %361 = vector.load %arg12[%c5_336, %c16_337, %c0_338] : memref<7x80x128xbf16, #tpu.memory_space<vmem>>, vector<1x64x128xbf16>
    %362 = vector.shape_cast %361 : vector<1x64x128xbf16> to vector<64x128xbf16>
    %c8_339 = arith.constant 8 : index
    %c0_340 = arith.constant 0 : index
    %c0_341 = arith.constant 0 : index
    %363 = vector.load %arg6[%c8_339, %c0_340, %c0_341] : memref<9x128x128xbf16, #tpu.memory_space<vmem>>, vector<1x128x128xbf16>
    %364 = vector.shape_cast %363 : vector<1x128x128xbf16> to vector<128x128xbf16>
    %cst_342 = arith.constant dense<0.000000e+00> : vector<64x128xf32>
    %365 = tpu.matmul %362, %364, %cst_342 {dimension_numbers = #tpu.dot_dimension_numbers<[1], [0], [0], [1], [0, 0, 1, 1], [], []>} : vector<64x128xbf16>, vector<128x128xbf16>, vector<64x128xf32> -> vector<64x128xf32>
    %366 = arith.addf %360, %365 : vector<64x128xf32>
    %c0_343 = arith.constant 0 : index
    %c0_344 = arith.constant 0 : index
    %367 = vector.load %arg7[%c0_343, %c0_344] : memref<1x128xf32, #tpu.memory_space<vmem>>, vector<1x128xf32>
    %368 = vector.broadcast %367 : vector<1x128xf32> to vector<64x128xf32>
    %369 = arith.addf %366, %368 : vector<64x128xf32>
    %cst_345 = arith.constant 0.000000e+00 : f32
    %370 = vector.broadcast %cst_345 : f32 to vector<64x128xf32>
    %371 = arith.maximumf %369, %370 : vector<64x128xf32>
    %372 = arith.truncf %371 : vector<64x128xf32> to vector<64x128xbf16>
    %373 = vector.extract_strided_slice %372 {offsets = [0, 0], sizes = [64, 32], strides = [1, 1]} : vector<64x128xbf16> to vector<64x32xbf16>
    %374 = vector.extract_strided_slice %373 {offsets = [0, 0], sizes = [8, 32], strides = [1, 1]} : vector<64x32xbf16> to vector<8x32xbf16>
    %c24 = arith.constant 24 : index
    %c0_346 = arith.constant 0 : index
    %c0_347 = arith.constant 0 : index
    %375 = vector.load %arg8[%c24, %c0_346, %c0_347] : memref<40x32x512xbf16, #tpu.memory_space<vmem>>, vector<1x32x512xbf16>
    %376 = vector.shape_cast %375 : vector<1x32x512xbf16> to vector<32x512xbf16>
    %cst_348 = arith.constant dense<0.000000e+00> : vector<8x512xf32>
    %377 = tpu.matmul %374, %376, %cst_348 {dimension_numbers = #tpu.dot_dimension_numbers<[1], [0], [0], [1], [0, 0, 1, 1], [], []>} : vector<8x32xbf16>, vector<32x512xbf16>, vector<8x512xf32> -> vector<8x512xf32>
    %378 = arith.addf %311, %377 : vector<8x512xf32>
    %379 = vector.extract_strided_slice %373 {offsets = [8, 0], sizes = [8, 32], strides = [1, 1]} : vector<64x32xbf16> to vector<8x32xbf16>
    %c25 = arith.constant 25 : index
    %c0_349 = arith.constant 0 : index
    %c0_350 = arith.constant 0 : index
    %380 = vector.load %arg8[%c25, %c0_349, %c0_350] : memref<40x32x512xbf16, #tpu.memory_space<vmem>>, vector<1x32x512xbf16>
    %381 = vector.shape_cast %380 : vector<1x32x512xbf16> to vector<32x512xbf16>
    %cst_351 = arith.constant dense<0.000000e+00> : vector<8x512xf32>
    %382 = tpu.matmul %379, %381, %cst_351 {dimension_numbers = #tpu.dot_dimension_numbers<[1], [0], [0], [1], [0, 0, 1, 1], [], []>} : vector<8x32xbf16>, vector<32x512xbf16>, vector<8x512xf32> -> vector<8x512xf32>
    %383 = arith.addf %378, %382 : vector<8x512xf32>
    %384 = vector.extract_strided_slice %373 {offsets = [16, 0], sizes = [8, 32], strides = [1, 1]} : vector<64x32xbf16> to vector<8x32xbf16>
    %c26 = arith.constant 26 : index
    %c0_352 = arith.constant 0 : index
    %c0_353 = arith.constant 0 : index
    %385 = vector.load %arg8[%c26, %c0_352, %c0_353] : memref<40x32x512xbf16, #tpu.memory_space<vmem>>, vector<1x32x512xbf16>
    %386 = vector.shape_cast %385 : vector<1x32x512xbf16> to vector<32x512xbf16>
    %cst_354 = arith.constant dense<0.000000e+00> : vector<8x512xf32>
    %387 = tpu.matmul %384, %386, %cst_354 {dimension_numbers = #tpu.dot_dimension_numbers<[1], [0], [0], [1], [0, 0, 1, 1], [], []>} : vector<8x32xbf16>, vector<32x512xbf16>, vector<8x512xf32> -> vector<8x512xf32>
    %388 = arith.addf %383, %387 : vector<8x512xf32>
    %389 = vector.extract_strided_slice %373 {offsets = [24, 0], sizes = [8, 32], strides = [1, 1]} : vector<64x32xbf16> to vector<8x32xbf16>
    %c27 = arith.constant 27 : index
    %c0_355 = arith.constant 0 : index
    %c0_356 = arith.constant 0 : index
    %390 = vector.load %arg8[%c27, %c0_355, %c0_356] : memref<40x32x512xbf16, #tpu.memory_space<vmem>>, vector<1x32x512xbf16>
    %391 = vector.shape_cast %390 : vector<1x32x512xbf16> to vector<32x512xbf16>
    %cst_357 = arith.constant dense<0.000000e+00> : vector<8x512xf32>
    %392 = tpu.matmul %389, %391, %cst_357 {dimension_numbers = #tpu.dot_dimension_numbers<[1], [0], [0], [1], [0, 0, 1, 1], [], []>} : vector<8x32xbf16>, vector<32x512xbf16>, vector<8x512xf32> -> vector<8x512xf32>
    %393 = arith.addf %388, %392 : vector<8x512xf32>
    %394 = vector.extract_strided_slice %373 {offsets = [32, 0], sizes = [8, 32], strides = [1, 1]} : vector<64x32xbf16> to vector<8x32xbf16>
    %c28 = arith.constant 28 : index
    %c0_358 = arith.constant 0 : index
    %c0_359 = arith.constant 0 : index
    %395 = vector.load %arg8[%c28, %c0_358, %c0_359] : memref<40x32x512xbf16, #tpu.memory_space<vmem>>, vector<1x32x512xbf16>
    %396 = vector.shape_cast %395 : vector<1x32x512xbf16> to vector<32x512xbf16>
    %cst_360 = arith.constant dense<0.000000e+00> : vector<8x512xf32>
    %397 = tpu.matmul %394, %396, %cst_360 {dimension_numbers = #tpu.dot_dimension_numbers<[1], [0], [0], [1], [0, 0, 1, 1], [], []>} : vector<8x32xbf16>, vector<32x512xbf16>, vector<8x512xf32> -> vector<8x512xf32>
    %398 = arith.addf %393, %397 : vector<8x512xf32>
    %399 = vector.extract_strided_slice %373 {offsets = [40, 0], sizes = [8, 32], strides = [1, 1]} : vector<64x32xbf16> to vector<8x32xbf16>
    %c29 = arith.constant 29 : index
    %c0_361 = arith.constant 0 : index
    %c0_362 = arith.constant 0 : index
    %400 = vector.load %arg8[%c29, %c0_361, %c0_362] : memref<40x32x512xbf16, #tpu.memory_space<vmem>>, vector<1x32x512xbf16>
    %401 = vector.shape_cast %400 : vector<1x32x512xbf16> to vector<32x512xbf16>
    %cst_363 = arith.constant dense<0.000000e+00> : vector<8x512xf32>
    %402 = tpu.matmul %399, %401, %cst_363 {dimension_numbers = #tpu.dot_dimension_numbers<[1], [0], [0], [1], [0, 0, 1, 1], [], []>} : vector<8x32xbf16>, vector<32x512xbf16>, vector<8x512xf32> -> vector<8x512xf32>
    %403 = arith.addf %398, %402 : vector<8x512xf32>
    %404 = vector.extract_strided_slice %373 {offsets = [48, 0], sizes = [8, 32], strides = [1, 1]} : vector<64x32xbf16> to vector<8x32xbf16>
    %c30 = arith.constant 30 : index
    %c0_364 = arith.constant 0 : index
    %c0_365 = arith.constant 0 : index
    %405 = vector.load %arg8[%c30, %c0_364, %c0_365] : memref<40x32x512xbf16, #tpu.memory_space<vmem>>, vector<1x32x512xbf16>
    %406 = vector.shape_cast %405 : vector<1x32x512xbf16> to vector<32x512xbf16>
    %cst_366 = arith.constant dense<0.000000e+00> : vector<8x512xf32>
    %407 = tpu.matmul %404, %406, %cst_366 {dimension_numbers = #tpu.dot_dimension_numbers<[1], [0], [0], [1], [0, 0, 1, 1], [], []>} : vector<8x32xbf16>, vector<32x512xbf16>, vector<8x512xf32> -> vector<8x512xf32>
    %408 = arith.addf %403, %407 : vector<8x512xf32>
    %409 = vector.extract_strided_slice %373 {offsets = [56, 0], sizes = [8, 32], strides = [1, 1]} : vector<64x32xbf16> to vector<8x32xbf16>
    %c31 = arith.constant 31 : index
    %c0_367 = arith.constant 0 : index
    %c0_368 = arith.constant 0 : index
    %410 = vector.load %arg8[%c31, %c0_367, %c0_368] : memref<40x32x512xbf16, #tpu.memory_space<vmem>>, vector<1x32x512xbf16>
    %411 = vector.shape_cast %410 : vector<1x32x512xbf16> to vector<32x512xbf16>
    %cst_369 = arith.constant dense<0.000000e+00> : vector<8x512xf32>
    %412 = tpu.matmul %409, %411, %cst_369 {dimension_numbers = #tpu.dot_dimension_numbers<[1], [0], [0], [1], [0, 0, 1, 1], [], []>} : vector<8x32xbf16>, vector<32x512xbf16>, vector<8x512xf32> -> vector<8x512xf32>
    %413 = arith.addf %408, %412 : vector<8x512xf32>
    %cst_370 = arith.constant 0.000000e+00 : f32
    %414 = vector.broadcast %cst_370 : f32 to vector<64x128xf32>
    %c4_371 = arith.constant 4 : index
    %c0_372 = arith.constant 0 : index
    %c0_373 = arith.constant 0 : index
    %415 = vector.load %arg12[%c4_371, %c0_372, %c0_373] : memref<7x80x128xbf16, #tpu.memory_space<vmem>>, vector<1x64x128xbf16>
    %416 = vector.shape_cast %415 : vector<1x64x128xbf16> to vector<64x128xbf16>
    %c0_374 = arith.constant 0 : index
    %c0_375 = arith.constant 0 : index
    %c0_376 = arith.constant 0 : index
    %417 = vector.load %arg6[%c0_374, %c0_375, %c0_376] : memref<9x128x128xbf16, #tpu.memory_space<vmem>>, vector<1x128x128xbf16>
    %418 = vector.shape_cast %417 : vector<1x128x128xbf16> to vector<128x128xbf16>
    %cst_377 = arith.constant dense<0.000000e+00> : vector<64x128xf32>
    %419 = tpu.matmul %416, %418, %cst_377 {dimension_numbers = #tpu.dot_dimension_numbers<[1], [0], [0], [1], [0, 0, 1, 1], [], []>} : vector<64x128xbf16>, vector<128x128xbf16>, vector<64x128xf32> -> vector<64x128xf32>
    %420 = arith.addf %414, %419 : vector<64x128xf32>
    %c4_378 = arith.constant 4 : index
    %c8_379 = arith.constant 8 : index
    %c0_380 = arith.constant 0 : index
    %421 = vector.load %arg12[%c4_378, %c8_379, %c0_380] : memref<7x80x128xbf16, #tpu.memory_space<vmem>>, vector<1x64x128xbf16>
    %422 = vector.shape_cast %421 : vector<1x64x128xbf16> to vector<64x128xbf16>
    %c1_381 = arith.constant 1 : index
    %c0_382 = arith.constant 0 : index
    %c0_383 = arith.constant 0 : index
    %423 = vector.load %arg6[%c1_381, %c0_382, %c0_383] : memref<9x128x128xbf16, #tpu.memory_space<vmem>>, vector<1x128x128xbf16>
    %424 = vector.shape_cast %423 : vector<1x128x128xbf16> to vector<128x128xbf16>
    %cst_384 = arith.constant dense<0.000000e+00> : vector<64x128xf32>
    %425 = tpu.matmul %422, %424, %cst_384 {dimension_numbers = #tpu.dot_dimension_numbers<[1], [0], [0], [1], [0, 0, 1, 1], [], []>} : vector<64x128xbf16>, vector<128x128xbf16>, vector<64x128xf32> -> vector<64x128xf32>
    %426 = arith.addf %420, %425 : vector<64x128xf32>
    %c4_385 = arith.constant 4 : index
    %c16_386 = arith.constant 16 : index
    %c0_387 = arith.constant 0 : index
    %427 = vector.load %arg12[%c4_385, %c16_386, %c0_387] : memref<7x80x128xbf16, #tpu.memory_space<vmem>>, vector<1x64x128xbf16>
    %428 = vector.shape_cast %427 : vector<1x64x128xbf16> to vector<64x128xbf16>
    %c2_388 = arith.constant 2 : index
    %c0_389 = arith.constant 0 : index
    %c0_390 = arith.constant 0 : index
    %429 = vector.load %arg6[%c2_388, %c0_389, %c0_390] : memref<9x128x128xbf16, #tpu.memory_space<vmem>>, vector<1x128x128xbf16>
    %430 = vector.shape_cast %429 : vector<1x128x128xbf16> to vector<128x128xbf16>
    %cst_391 = arith.constant dense<0.000000e+00> : vector<64x128xf32>
    %431 = tpu.matmul %428, %430, %cst_391 {dimension_numbers = #tpu.dot_dimension_numbers<[1], [0], [0], [1], [0, 0, 1, 1], [], []>} : vector<64x128xbf16>, vector<128x128xbf16>, vector<64x128xf32> -> vector<64x128xf32>
    %432 = arith.addf %426, %431 : vector<64x128xf32>
    %c5_392 = arith.constant 5 : index
    %c0_393 = arith.constant 0 : index
    %c0_394 = arith.constant 0 : index
    %433 = vector.load %arg12[%c5_392, %c0_393, %c0_394] : memref<7x80x128xbf16, #tpu.memory_space<vmem>>, vector<1x64x128xbf16>
    %434 = vector.shape_cast %433 : vector<1x64x128xbf16> to vector<64x128xbf16>
    %c3_395 = arith.constant 3 : index
    %c0_396 = arith.constant 0 : index
    %c0_397 = arith.constant 0 : index
    %435 = vector.load %arg6[%c3_395, %c0_396, %c0_397] : memref<9x128x128xbf16, #tpu.memory_space<vmem>>, vector<1x128x128xbf16>
    %436 = vector.shape_cast %435 : vector<1x128x128xbf16> to vector<128x128xbf16>
    %cst_398 = arith.constant dense<0.000000e+00> : vector<64x128xf32>
    %437 = tpu.matmul %434, %436, %cst_398 {dimension_numbers = #tpu.dot_dimension_numbers<[1], [0], [0], [1], [0, 0, 1, 1], [], []>} : vector<64x128xbf16>, vector<128x128xbf16>, vector<64x128xf32> -> vector<64x128xf32>
    %438 = arith.addf %432, %437 : vector<64x128xf32>
    %c5_399 = arith.constant 5 : index
    %c8_400 = arith.constant 8 : index
    %c0_401 = arith.constant 0 : index
    %439 = vector.load %arg12[%c5_399, %c8_400, %c0_401] : memref<7x80x128xbf16, #tpu.memory_space<vmem>>, vector<1x64x128xbf16>
    %440 = vector.shape_cast %439 : vector<1x64x128xbf16> to vector<64x128xbf16>
    %c4_402 = arith.constant 4 : index
    %c0_403 = arith.constant 0 : index
    %c0_404 = arith.constant 0 : index
    %441 = vector.load %arg6[%c4_402, %c0_403, %c0_404] : memref<9x128x128xbf16, #tpu.memory_space<vmem>>, vector<1x128x128xbf16>
    %442 = vector.shape_cast %441 : vector<1x128x128xbf16> to vector<128x128xbf16>
    %cst_405 = arith.constant dense<0.000000e+00> : vector<64x128xf32>
    %443 = tpu.matmul %440, %442, %cst_405 {dimension_numbers = #tpu.dot_dimension_numbers<[1], [0], [0], [1], [0, 0, 1, 1], [], []>} : vector<64x128xbf16>, vector<128x128xbf16>, vector<64x128xf32> -> vector<64x128xf32>
    %444 = arith.addf %438, %443 : vector<64x128xf32>
    %c5_406 = arith.constant 5 : index
    %c16_407 = arith.constant 16 : index
    %c0_408 = arith.constant 0 : index
    %445 = vector.load %arg12[%c5_406, %c16_407, %c0_408] : memref<7x80x128xbf16, #tpu.memory_space<vmem>>, vector<1x64x128xbf16>
    %446 = vector.shape_cast %445 : vector<1x64x128xbf16> to vector<64x128xbf16>
    %c5_409 = arith.constant 5 : index
    %c0_410 = arith.constant 0 : index
    %c0_411 = arith.constant 0 : index
    %447 = vector.load %arg6[%c5_409, %c0_410, %c0_411] : memref<9x128x128xbf16, #tpu.memory_space<vmem>>, vector<1x128x128xbf16>
    %448 = vector.shape_cast %447 : vector<1x128x128xbf16> to vector<128x128xbf16>
    %cst_412 = arith.constant dense<0.000000e+00> : vector<64x128xf32>
    %449 = tpu.matmul %446, %448, %cst_412 {dimension_numbers = #tpu.dot_dimension_numbers<[1], [0], [0], [1], [0, 0, 1, 1], [], []>} : vector<64x128xbf16>, vector<128x128xbf16>, vector<64x128xf32> -> vector<64x128xf32>
    %450 = arith.addf %444, %449 : vector<64x128xf32>
    %c6_413 = arith.constant 6 : index
    %c0_414 = arith.constant 0 : index
    %c0_415 = arith.constant 0 : index
    %451 = vector.load %arg12[%c6_413, %c0_414, %c0_415] : memref<7x80x128xbf16, #tpu.memory_space<vmem>>, vector<1x64x128xbf16>
    %452 = vector.shape_cast %451 : vector<1x64x128xbf16> to vector<64x128xbf16>
    %c6_416 = arith.constant 6 : index
    %c0_417 = arith.constant 0 : index
    %c0_418 = arith.constant 0 : index
    %453 = vector.load %arg6[%c6_416, %c0_417, %c0_418] : memref<9x128x128xbf16, #tpu.memory_space<vmem>>, vector<1x128x128xbf16>
    %454 = vector.shape_cast %453 : vector<1x128x128xbf16> to vector<128x128xbf16>
    %cst_419 = arith.constant dense<0.000000e+00> : vector<64x128xf32>
    %455 = tpu.matmul %452, %454, %cst_419 {dimension_numbers = #tpu.dot_dimension_numbers<[1], [0], [0], [1], [0, 0, 1, 1], [], []>} : vector<64x128xbf16>, vector<128x128xbf16>, vector<64x128xf32> -> vector<64x128xf32>
    %456 = arith.addf %450, %455 : vector<64x128xf32>
    %c6_420 = arith.constant 6 : index
    %c8_421 = arith.constant 8 : index
    %c0_422 = arith.constant 0 : index
    %457 = vector.load %arg12[%c6_420, %c8_421, %c0_422] : memref<7x80x128xbf16, #tpu.memory_space<vmem>>, vector<1x64x128xbf16>
    %458 = vector.shape_cast %457 : vector<1x64x128xbf16> to vector<64x128xbf16>
    %c7_423 = arith.constant 7 : index
    %c0_424 = arith.constant 0 : index
    %c0_425 = arith.constant 0 : index
    %459 = vector.load %arg6[%c7_423, %c0_424, %c0_425] : memref<9x128x128xbf16, #tpu.memory_space<vmem>>, vector<1x128x128xbf16>
    %460 = vector.shape_cast %459 : vector<1x128x128xbf16> to vector<128x128xbf16>
    %cst_426 = arith.constant dense<0.000000e+00> : vector<64x128xf32>
    %461 = tpu.matmul %458, %460, %cst_426 {dimension_numbers = #tpu.dot_dimension_numbers<[1], [0], [0], [1], [0, 0, 1, 1], [], []>} : vector<64x128xbf16>, vector<128x128xbf16>, vector<64x128xf32> -> vector<64x128xf32>
    %462 = arith.addf %456, %461 : vector<64x128xf32>
    %c6_427 = arith.constant 6 : index
    %c16_428 = arith.constant 16 : index
    %c0_429 = arith.constant 0 : index
    %463 = vector.load %arg12[%c6_427, %c16_428, %c0_429] : memref<7x80x128xbf16, #tpu.memory_space<vmem>>, vector<1x64x128xbf16>
    %464 = vector.shape_cast %463 : vector<1x64x128xbf16> to vector<64x128xbf16>
    %c8_430 = arith.constant 8 : index
    %c0_431 = arith.constant 0 : index
    %c0_432 = arith.constant 0 : index
    %465 = vector.load %arg6[%c8_430, %c0_431, %c0_432] : memref<9x128x128xbf16, #tpu.memory_space<vmem>>, vector<1x128x128xbf16>
    %466 = vector.shape_cast %465 : vector<1x128x128xbf16> to vector<128x128xbf16>
    %cst_433 = arith.constant dense<0.000000e+00> : vector<64x128xf32>
    %467 = tpu.matmul %464, %466, %cst_433 {dimension_numbers = #tpu.dot_dimension_numbers<[1], [0], [0], [1], [0, 0, 1, 1], [], []>} : vector<64x128xbf16>, vector<128x128xbf16>, vector<64x128xf32> -> vector<64x128xf32>
    %468 = arith.addf %462, %467 : vector<64x128xf32>
    %c0_434 = arith.constant 0 : index
    %c0_435 = arith.constant 0 : index
    %469 = vector.load %arg7[%c0_434, %c0_435] : memref<1x128xf32, #tpu.memory_space<vmem>>, vector<1x128xf32>
    %470 = vector.broadcast %469 : vector<1x128xf32> to vector<64x128xf32>
    %471 = arith.addf %468, %470 : vector<64x128xf32>
    %cst_436 = arith.constant 0.000000e+00 : f32
    %472 = vector.broadcast %cst_436 : f32 to vector<64x128xf32>
    %473 = arith.maximumf %471, %472 : vector<64x128xf32>
    %474 = arith.truncf %473 : vector<64x128xf32> to vector<64x128xbf16>
    %475 = vector.extract_strided_slice %474 {offsets = [0, 0], sizes = [64, 32], strides = [1, 1]} : vector<64x128xbf16> to vector<64x32xbf16>
    %476 = vector.extract_strided_slice %475 {offsets = [0, 0], sizes = [8, 32], strides = [1, 1]} : vector<64x32xbf16> to vector<8x32xbf16>
    %c32 = arith.constant 32 : index
    %c0_437 = arith.constant 0 : index
    %c0_438 = arith.constant 0 : index
    %477 = vector.load %arg8[%c32, %c0_437, %c0_438] : memref<40x32x512xbf16, #tpu.memory_space<vmem>>, vector<1x32x512xbf16>
    %478 = vector.shape_cast %477 : vector<1x32x512xbf16> to vector<32x512xbf16>
    %cst_439 = arith.constant dense<0.000000e+00> : vector<8x512xf32>
    %479 = tpu.matmul %476, %478, %cst_439 {dimension_numbers = #tpu.dot_dimension_numbers<[1], [0], [0], [1], [0, 0, 1, 1], [], []>} : vector<8x32xbf16>, vector<32x512xbf16>, vector<8x512xf32> -> vector<8x512xf32>
    %480 = arith.addf %413, %479 : vector<8x512xf32>
    %481 = vector.extract_strided_slice %475 {offsets = [8, 0], sizes = [8, 32], strides = [1, 1]} : vector<64x32xbf16> to vector<8x32xbf16>
    %c33 = arith.constant 33 : index
    %c0_440 = arith.constant 0 : index
    %c0_441 = arith.constant 0 : index
    %482 = vector.load %arg8[%c33, %c0_440, %c0_441] : memref<40x32x512xbf16, #tpu.memory_space<vmem>>, vector<1x32x512xbf16>
    %483 = vector.shape_cast %482 : vector<1x32x512xbf16> to vector<32x512xbf16>
    %cst_442 = arith.constant dense<0.000000e+00> : vector<8x512xf32>
    %484 = tpu.matmul %481, %483, %cst_442 {dimension_numbers = #tpu.dot_dimension_numbers<[1], [0], [0], [1], [0, 0, 1, 1], [], []>} : vector<8x32xbf16>, vector<32x512xbf16>, vector<8x512xf32> -> vector<8x512xf32>
    %485 = arith.addf %480, %484 : vector<8x512xf32>
    %486 = vector.extract_strided_slice %475 {offsets = [16, 0], sizes = [8, 32], strides = [1, 1]} : vector<64x32xbf16> to vector<8x32xbf16>
    %c34 = arith.constant 34 : index
    %c0_443 = arith.constant 0 : index
    %c0_444 = arith.constant 0 : index
    %487 = vector.load %arg8[%c34, %c0_443, %c0_444] : memref<40x32x512xbf16, #tpu.memory_space<vmem>>, vector<1x32x512xbf16>
    %488 = vector.shape_cast %487 : vector<1x32x512xbf16> to vector<32x512xbf16>
    %cst_445 = arith.constant dense<0.000000e+00> : vector<8x512xf32>
    %489 = tpu.matmul %486, %488, %cst_445 {dimension_numbers = #tpu.dot_dimension_numbers<[1], [0], [0], [1], [0, 0, 1, 1], [], []>} : vector<8x32xbf16>, vector<32x512xbf16>, vector<8x512xf32> -> vector<8x512xf32>
    %490 = arith.addf %485, %489 : vector<8x512xf32>
    %491 = vector.extract_strided_slice %475 {offsets = [24, 0], sizes = [8, 32], strides = [1, 1]} : vector<64x32xbf16> to vector<8x32xbf16>
    %c35 = arith.constant 35 : index
    %c0_446 = arith.constant 0 : index
    %c0_447 = arith.constant 0 : index
    %492 = vector.load %arg8[%c35, %c0_446, %c0_447] : memref<40x32x512xbf16, #tpu.memory_space<vmem>>, vector<1x32x512xbf16>
    %493 = vector.shape_cast %492 : vector<1x32x512xbf16> to vector<32x512xbf16>
    %cst_448 = arith.constant dense<0.000000e+00> : vector<8x512xf32>
    %494 = tpu.matmul %491, %493, %cst_448 {dimension_numbers = #tpu.dot_dimension_numbers<[1], [0], [0], [1], [0, 0, 1, 1], [], []>} : vector<8x32xbf16>, vector<32x512xbf16>, vector<8x512xf32> -> vector<8x512xf32>
    %495 = arith.addf %490, %494 : vector<8x512xf32>
    %496 = vector.extract_strided_slice %475 {offsets = [32, 0], sizes = [8, 32], strides = [1, 1]} : vector<64x32xbf16> to vector<8x32xbf16>
    %c36 = arith.constant 36 : index
    %c0_449 = arith.constant 0 : index
    %c0_450 = arith.constant 0 : index
    %497 = vector.load %arg8[%c36, %c0_449, %c0_450] : memref<40x32x512xbf16, #tpu.memory_space<vmem>>, vector<1x32x512xbf16>
    %498 = vector.shape_cast %497 : vector<1x32x512xbf16> to vector<32x512xbf16>
    %cst_451 = arith.constant dense<0.000000e+00> : vector<8x512xf32>
    %499 = tpu.matmul %496, %498, %cst_451 {dimension_numbers = #tpu.dot_dimension_numbers<[1], [0], [0], [1], [0, 0, 1, 1], [], []>} : vector<8x32xbf16>, vector<32x512xbf16>, vector<8x512xf32> -> vector<8x512xf32>
    %500 = arith.addf %495, %499 : vector<8x512xf32>
    %501 = vector.extract_strided_slice %475 {offsets = [40, 0], sizes = [8, 32], strides = [1, 1]} : vector<64x32xbf16> to vector<8x32xbf16>
    %c37 = arith.constant 37 : index
    %c0_452 = arith.constant 0 : index
    %c0_453 = arith.constant 0 : index
    %502 = vector.load %arg8[%c37, %c0_452, %c0_453] : memref<40x32x512xbf16, #tpu.memory_space<vmem>>, vector<1x32x512xbf16>
    %503 = vector.shape_cast %502 : vector<1x32x512xbf16> to vector<32x512xbf16>
    %cst_454 = arith.constant dense<0.000000e+00> : vector<8x512xf32>
    %504 = tpu.matmul %501, %503, %cst_454 {dimension_numbers = #tpu.dot_dimension_numbers<[1], [0], [0], [1], [0, 0, 1, 1], [], []>} : vector<8x32xbf16>, vector<32x512xbf16>, vector<8x512xf32> -> vector<8x512xf32>
    %505 = arith.addf %500, %504 : vector<8x512xf32>
    %506 = vector.extract_strided_slice %475 {offsets = [48, 0], sizes = [8, 32], strides = [1, 1]} : vector<64x32xbf16> to vector<8x32xbf16>
    %c38 = arith.constant 38 : index
    %c0_455 = arith.constant 0 : index
    %c0_456 = arith.constant 0 : index
    %507 = vector.load %arg8[%c38, %c0_455, %c0_456] : memref<40x32x512xbf16, #tpu.memory_space<vmem>>, vector<1x32x512xbf16>
    %508 = vector.shape_cast %507 : vector<1x32x512xbf16> to vector<32x512xbf16>
    %cst_457 = arith.constant dense<0.000000e+00> : vector<8x512xf32>
    %509 = tpu.matmul %506, %508, %cst_457 {dimension_numbers = #tpu.dot_dimension_numbers<[1], [0], [0], [1], [0, 0, 1, 1], [], []>} : vector<8x32xbf16>, vector<32x512xbf16>, vector<8x512xf32> -> vector<8x512xf32>
    %510 = arith.addf %505, %509 : vector<8x512xf32>
    %511 = vector.extract_strided_slice %475 {offsets = [56, 0], sizes = [8, 32], strides = [1, 1]} : vector<64x32xbf16> to vector<8x32xbf16>
    %c39 = arith.constant 39 : index
    %c0_458 = arith.constant 0 : index
    %c0_459 = arith.constant 0 : index
    %512 = vector.load %arg8[%c39, %c0_458, %c0_459] : memref<40x32x512xbf16, #tpu.memory_space<vmem>>, vector<1x32x512xbf16>
    %513 = vector.shape_cast %512 : vector<1x32x512xbf16> to vector<32x512xbf16>
    %cst_460 = arith.constant dense<0.000000e+00> : vector<8x512xf32>
    %514 = tpu.matmul %511, %513, %cst_460 {dimension_numbers = #tpu.dot_dimension_numbers<[1], [0], [0], [1], [0, 0, 1, 1], [], []>} : vector<8x32xbf16>, vector<32x512xbf16>, vector<8x512xf32> -> vector<8x512xf32>
    %515 = arith.addf %510, %514 : vector<8x512xf32>
    %cst_461 = arith.constant 0.000000e+00 : f32
    %516 = vector.broadcast %cst_461 : f32 to vector<8x512xf32>
    %517 = arith.maximumf %515, %516 : vector<8x512xf32>
    %c0_462 = arith.constant 0 : index
    %c0_463 = arith.constant 0 : index
    %c0_464 = arith.constant 0 : index
    %518 = vector.load %arg10[%c0_462, %c0_463, %c0_464] : memref<1x8x512xf32, #tpu.memory_space<vmem>>, vector<1x8x512xf32>
    %519 = vector.shape_cast %518 : vector<1x8x512xf32> to vector<8x512xf32>
    %520 = vector.shape_cast %517 : vector<8x512xf32> to vector<1x8x512xf32>
    tpu.vector_store %arg10[%c0_462, %c0_463, %c0_464], %520 {strides = array<i32>} : memref<1x8x512xf32, #tpu.memory_space<vmem>>, vector<1x8x512xf32>,
    return
  }
  func.func @transform_0(%arg0: i32) -> (i32, i32, i32, i32) {
    %c0_i32 = arith.constant 0 : i32
    %c0_i32_0 = arith.constant 0 : i32
    %c0_i32_1 = arith.constant 0 : i32
    %c0_i32_2 = arith.constant 0 : i32
    return %arg0, %c0_i32, %c0_i32_0, %c0_i32_1 : i32, i32, i32, i32
  }
  func.func @transform_1(%arg0: i32) -> (i32, i32, i32) {
    %c0_i32 = arith.constant 0 : i32
    %c0_i32_0 = arith.constant 0 : i32
    %c0_i32_1 = arith.constant 0 : i32
    %c0_i32_2 = arith.constant 0 : i32
    return %c0_i32, %c0_i32_0, %c0_i32_1 : i32, i32, i32
  }
  func.func @transform_2(%arg0: i32) -> (i32, i32) {
    %c0_i32 = arith.constant 0 : i32
    %c0_i32_0 = arith.constant 0 : i32
    %c0_i32_1 = arith.constant 0 : i32
    return %c0_i32, %c0_i32_0 : i32, i32
  }
  func.func @transform_3(%arg0: i32) -> (i32, i32, i32) {
    %c0_i32 = arith.constant 0 : i32
    %c0_i32_0 = arith.constant 0 : i32
    %c0_i32_1 = arith.constant 0 : i32
    %c0_i32_2 = arith.constant 0 : i32
    return %c0_i32, %c0_i32_0, %c0_i32_1 : i32, i32, i32
  }
  func.func @transform_4(%arg0: i32) -> (i32, i32) {
    %c0_i32 = arith.constant 0 : i32
    %c0_i32_0 = arith.constant 0 : i32
    %c0_i32_1 = arith.constant 0 : i32
    return %c0_i32, %c0_i32_0 : i32, i32
  }
  func.func @transform_5(%arg0: i32) -> (i32, i32, i32) {
    %c0_i32 = arith.constant 0 : i32
    %c0_i32_0 = arith.constant 0 : i32
    %c0_i32_1 = arith.constant 0 : i32
    %c0_i32_2 = arith.constant 0 : i32
    return %c0_i32, %c0_i32_0, %c0_i32_1 : i32, i32, i32
  }
  func.func @transform_6(%arg0: i32) -> (i32, i32) {
    %c0_i32 = arith.constant 0 : i32
    %c0_i32_0 = arith.constant 0 : i32
    %c0_i32_1 = arith.constant 0 : i32
    return %c0_i32, %c0_i32_0 : i32, i32
  }
  func.func @transform_7(%arg0: i32) -> (i32, i32, i32) {
    %c0_i32 = arith.constant 0 : i32
    %c0_i32_0 = arith.constant 0 : i32
    %c0_i32_1 = arith.constant 0 : i32
    %c0_i32_2 = arith.constant 0 : i32
    return %c0_i32, %c0_i32_0, %c0_i32_1 : i32, i32, i32
  }
  func.func @transform_8(%arg0: i32) -> (i32, i32) {
    %c0_i32 = arith.constant 0 : i32
    %c0_i32_0 = arith.constant 0 : i32
    %c0_i32_1 = arith.constant 0 : i32
    return %c0_i32, %c0_i32_0 : i32, i32
  }
  func.func @transform_9(%arg0: i32) -> (i32, i32, i32) {
    %c0_i32 = arith.constant 0 : i32
    %c0_i32_0 = arith.constant 0 : i32
    %c0_i32_1 = arith.constant 0 : i32
    return %arg0, %c0_i32, %c0_i32_0 : i32, i32, i32
  }
}

</mosaic_0001>

<bundles_post_ra>
// kernel: deepmind_forward.1
= control target key start
LH: loop header
LB: loop body
LE: loop exit
PB: predicated region body
PF: predicated region fallthrough
CT: control target
= control target key end

     0   :  { %14 = vsyncpa [#allocation5], 0  ;;  %s26813_s0 = inlined_call_operand.vmem [shape: bf16[2,68,176,128], index: 0, kind: input, shape index: {}]   ;;  %s26814_s1 = inlined_call_operand.vmem [shape: bf16[8,128,128], index: 1, kind: input, shape index: {}]   ;;  %s26815_s2 = inlined_call_operand.vmem [shape: f32[1,128], index: 2, kind: input, shape index: {}]   ;;  %s26816_s3 = inlined_call_operand.vmem [shape: bf16[16,128,128], index: 3, kind: input, shape index: {}]   ;;  %s26817_s4 = inlined_call_operand.vmem [shape: f32[1,128], index: 4, kind: input, shape index: {}]   ;;  %s26818_s5 = inlined_call_operand.vmem [shape: bf16[9,128,128], index: 5, kind: input, shape index: {}]   ;;  %s26819_s6 = inlined_call_operand.vmem [shape: f32[1,128], index: 6, kind: input, shape index: {}]   ;;  %s26820_s7 = inlined_call_operand.vmem [shape: bf16[40,32,512], index: 7, kind: input, shape index: {}]   ;;  %s26821_s8 = inlined_call_operand.vmem [shape: f32[1,512], index: 8, kind: input, shape index: {}]   ;;  %s26822_s9 = inlined_call_operand.hbm [shape: f32[2,8,512], index: 9, kind: output, shape index: {}]  }
   0x1   :  { %16 = vsyncpa [#allocation5 + $0x1], 0  ;;  %s21945_s30 = smov 0   ;;  %s21947_s10 = smov 0  }
   0x2   :  { %s21949_s11 = smov 0   ;;  %s21951_s12 = smov 0  }
   0x3 LB: > { %s21966_s13 = sadd.s32 4294967295, %s21879_s12   ;;  %s15249_s14 = sadd.s32 4294967294, %s21879_s12   ;;  %s21879_s12 = sphi %s21951_s12, %s26909_s12   ;;  %s21875_s11 = sphi %s21949_s11, %s26908_s11   ;;  %s21871_s10 = sphi %s21947_s10, %s26907_s10   ;;  %s21867_s30 = sphi %s21945_s30, %s26906_s30  }
   0x4   : > { %s21970_s15 = sadd.s32 1, %s21879_s12   ;;  %s223_s16 = sadd.s32 1, %s21875_s11 }
   0x5   : > { %s220_s17 = ssub.s32 %s21879_s12, %s21970_s15  ;;  %p233_p0 = scmp.ne.s32.totalorder %s21875_s11, %s21871_s10 }
   0x6   : > { %p221_p1 = scmp.eq.s32.totalorder %s220_s17, 0  ;;  %p234_p2 = scmp.eq.s32.totalorder %s21966_s13, 1 }
   0x7   : > { %p239_p3 = scmp.ne.s32.totalorder %s21871_s10, %s21867_s30  ;;  %p240_p4 = scmp.eq.s32.totalorder %s15249_s14, 1 }
   0x8   : > { %s21981_s18 = scalar_select %p221_p1, %s21875_s11, %s223_s16  }
   0x9   : > { %p21983_p5 = por %p234_p2, %p233_p0  ;;  %p21987_p6 = por %p240_p4, %p239_p3 }
   0xa   : > { %p15252_p7 = scmp.ge.s32.totalorder %s21879_s12, 1  ;;  %p290_p8 = scmp.lt.s32.totalorder %s21879_s12, 3 }
   0xc   : > { %p291_p9 = pnand %p15252_p7, %p290_p8 }
   0xe   : > { %294 = sbr.rel (%p291_p9) target bundleno = 3644 (0xe3c), region = 56 }
  0x15   : > { %s26823_s21 = sand.u32 1, %s21871_s10   ;;  %p326_p10 = scmp.lt.s32.totalorder %s21966_s13, 1 }
  0x16   : > { %s15253_s22 = sshll.u32 %s26823_s21, 5  ;;  %s22005_s29 = smov 0  }
  0x17   : > { %s327_s23 = scalar_select %p326_p10, %s21966_s13, 1 }
  0x18   : > { %s22003_s28 = scalar_lea.vmem [#allocation4], %s15253_s22 }
  0x19   : > { %s20716_s24 = smul.u32 5984, %s327_s23 }
  0x1b   : > { %s22001_s27 = scalar_lea.vmem %s26813_s0, %s20716_s24 }
  0x1c LB: >> { %v20777_v0 = vld [vmem:[%s26814_s1 + $0x40] sm:$0xff]   ;;  %v21889_v1 = vmov 0.0   ;;  %v20779_v3 = vld [vmem:[%s26814_s1 + $0x48] sm:$0xff]   ;;  %vm21890_vm0 = vmmov 0   ;;  %v20781_v5 = vld [vmem:[%s26814_s1 + $0x50] sm:$0xff]   ;;  %s17043_s14 = smul.u32 352, %s21883_s29  ;;  %s21883_s29 = sphi %s22005_s29, %s337_s29  }
  0x1d   : >> { %17948 = vmatprep.subr.bf16.mxu0 %v21889_v1  ;;  %18008 = vmatprep.subr.bf16.mxu1 %v21889_v1  ;;  %v20778_v2 = vld [vmem:[%s26814_s1] sm:$0xff]   ;;  %v20780_v4 = vld [vmem:[%s26814_s1 + $0x8] sm:$0xff]   ;;  %v20782_v6 = vld [vmem:[%s26814_s1 + $0x10] sm:$0xff]   ;;  %s17044_s21 = smul.u32 88, %s21883_s29  ;;  %s337_s29 = sadd.s32 1, %s21883_s29  }
  0x1e   : >> { %17949 = vmatpush3.bf16.msra.mxu0 %v20777_v0  ;;  %17964 = vmatprep.mubr.msk.bf16.mxu0 %vm21890_vm0, %v21889_v1  ;;  %v20783_v7 = vld [vmem:[%s26814_s1 + $0x58] sm:$0xff]   ;;  %v20785_v9 = vld [vmem:[%s26814_s1 + $0x60] sm:$0xff]   ;;  %s22055_s24 = scalar_lea.vmem %s22001_s27, %s17043_s14  ;;  %v20787_v11 = vld [vmem:[%s26814_s1 + $0x68] sm:$0xff]   ;;  %p334_p11 = scmp.ge.s32.totalorder %s337_s29, 16  }
  0x1f   : >> { %18009 = vmatpush3.bf16.msra.mxu1 %v20778_v2  ;;  %17950 = vmatprep.subr.bf16.mxu0 %v21889_v1  ;;  %v20784_v8 = vld [vmem:[%s26814_s1 + $0x18] sm:$0xff]   ;;  %v20786_v10 = vld [vmem:[%s26814_s1 + $0x20] sm:$0xff]   ;;  %v20788_v12 = vld [vmem:[%s26814_s1 + $0x28] sm:$0xff]   ;;  %s22722_s17 = scalar_lea.vmem [#allocation2], %s17044_s21  ;;  %s22776_s14 = smov (%p334_p11), 0  }
  0x20   : >> { %18010 = vmatprep.subr.bf16.mxu1 %v21889_v1  ;;  %18024 = vmatprep.mubr.msk.bf16.mxu1 %vm21890_vm0, %v21889_v1  ;;  %v20789_v13 = vld [vmem:[%s26814_s1 + $0x70] sm:$0xff]   ;;  %v20791_v15 = vld [vmem:[%s26814_s1 + $0x78] sm:$0xff]   ;;  %v20794_v18 = vld [vmem:[%s22055_s24] sm:$0xff]  }
  0x21   : >> { %v20790_v14 = vld [vmem:[%s26814_s1 + $0x30] sm:$0xff]   ;;  %v20792_v16 = vld [vmem:[%s26814_s1 + $0x38] sm:$0xff]   ;;  %v20795_v19 = vld [vmem:[%s26814_s1 + $0x80] sm:$0xff]  }
  0x22   : >> { %17951 = vmatpush3.bf16.msra.mxu0 %v20779_v3  ;;  %v20793_v17 = vld [vmem:[%s22055_s24 + $0x58] sm:$0xff]   ;;  %v20796_v20 = vld [vmem:[%s26814_s1 + $0xc0] sm:$0xff]   ;;  %v20799_v21 = vld [vmem:[%s26814_s1 + $0x88] sm:$0xff]  }
  0x23   : >> { %18011 = vmatpush3.bf16.msra.mxu1 %v20780_v4  ;;  %17952 = vmatprep.subr.bf16.mxu0 %v21889_v1  ;;  %v20800_v22 = vld [vmem:[%s26814_s1 + $0xc8] sm:$0xff]   ;;  %v20797_v23 = vld [vmem:[%s22055_s24 + $0x60] sm:$0xff]   ;;  %v20803_v25 = vld [vmem:[%s26814_s1 + $0x90] sm:$0xff]  }
  0x24   : >> { %18012 = vmatprep.subr.bf16.mxu1 %v21889_v1  ;;  %v20798_v24 = vld [vmem:[%s22055_s24 + $0x8] sm:$0xff]   ;;  %v20806_v26 = vld [vmem:[%s26814_s1 + $0xd0] sm:$0xff]   ;;  %v20809_v27 = vld [vmem:[%s26814_s1 + $0x98] sm:$0xff]  }
  0x25   : >> { %v20810_v28 = vld [vmem:[%s26814_s1 + $0xd8] sm:$0xff]   ;;  %v20801_v29 = vld [vmem:[%s22055_s24 + $0x68] sm:$0xff]   ;;  %v20802_v30 = vld [vmem:[%s22055_s24 + $0x10] sm:$0xff]  }
  0x26   : >> { %17953 = vmatpush3.bf16.msra.mxu0 %v20781_v5  ;;  %v20813_v31 = vld [vmem:[%s26814_s1 + $0xa0] sm:$0xff]   ;;  %v20819_v33 = vld [vmem:[%s26814_s1 + $0xa8] sm:$0xff]   ;;  %v20804_v35 = vld [vmem:[%s22055_s24 + $0x70] sm:$0xff]  }
  0x27   : >> { %18013 = vmatpush3.bf16.msra.mxu1 %v20782_v6  ;;  %17954 = vmatprep.subr.bf16.mxu0 %v21889_v1  ;;  %v20814_v32 = vld [vmem:[%s26814_s1 + $0xe0] sm:$0xff]   ;;  %v20820_v34 = vld [vmem:[%s26814_s1 + $0xe8] sm:$0xff]   ;;  %v20805_v36 = vld [vmem:[%s22055_s24 + $0x18] sm:$0xff]  }
  0x28   : >> { %18014 = vmatprep.subr.bf16.mxu1 %v21889_v1  ;;  %v20823_v37 = vld [vmem:[%s26814_s1 + $0xb0] sm:$0xff]   ;;  %v20827_v39 = vld [vmem:[%s26814_s1 + $0xb8] sm:$0xff]   ;;  %v20808_v42 = vld [vmem:[%s22055_s24 + $0x20] sm:$0xff]  }
  0x29   : >> { %v20824_v38 = vld [vmem:[%s26814_s1 + $0xf0] sm:$0xff]   ;;  %v20830_v40 = vld [vmem:[%s26814_s1 + $0xf8] sm:$0xff]   ;;  %v20811_v43 = vld [vmem:[%s22055_s24 + $0x80] sm:$0xff]  }
  0x2a   : >> { %17955 = vmatpush3.bf16.msra.mxu0 %v20783_v7  ;;  %v20807_v41 = vld [vmem:[%s22055_s24 + $0x78] sm:$0xff]   ;;  %v20812_v44 = vld [vmem:[%s22055_s24 + $0x28] sm:$0xff]   ;;  %v20816_v46 = vld [vmem:[%s22055_s24 + $0x30] sm:$0xff]  }
  0x2b   : >> { %18015 = vmatpush3.bf16.msra.mxu1 %v20784_v8  ;;  %17956 = vmatprep.subr.bf16.mxu0 %v21889_v1  ;;  %v20815_v45 = vld [vmem:[%s22055_s24 + $0x88] sm:$0xff]   ;;  %v20817_v47 = vld [vmem:[%s22055_s24 + $0x90] sm:$0xff]   ;;  %v20818_v48 = vld [vmem:[%s22055_s24 + $0x38] sm:$0xff]  }
  0x2c   : >> { %18016 = vmatprep.subr.bf16.mxu1 %v21889_v1  ;;  %v20821_v49 = vld [vmem:[%s22055_s24 + $0x98] sm:$0xff]   ;;  %v20822_v50 = vld [vmem:[%s22055_s24 + $0x40] sm:$0xff]   ;;  %v20826_v52 = vld [vmem:[%s22055_s24 + $0x48] sm:$0xff]  }
  0x2d   : >> { %v20825_v51 = vld [vmem:[%s22055_s24 + $0xa0] sm:$0xff]   ;;  %v20828_v53 = vld [vmem:[%s22055_s24 + $0xa8] sm:$0xff]   ;;  %v20829_v54 = vld [vmem:[%s22055_s24 + $0x50] sm:$0xff]  }
  0x2e   : >> { %17957 = vmatpush3.bf16.msra.mxu0 %v20785_v9  ;;  %v20831_v55 = vld [vmem:[%s22055_s24 + $0xb0] sm:$0xff]   ;;  %v20832_v56 = vld [vmem:[%s22055_s24 + $0x108] sm:$0xff]   ;;  %v20833_v57 = vld [vmem:[%s26814_s1 + $0x100] sm:$0xff]  }
  0x2f   : >> { %18017 = vmatpush3.bf16.msra.mxu1 %v20786_v10  ;;  %17958 = vmatprep.subr.bf16.mxu0 %v21889_v1  ;;  %v20834_v58 = vld [vmem:[%s26814_s1 + $0x140] sm:$0xff]   ;;  %v20837_v59 = vld [vmem:[%s26814_s1 + $0x108] sm:$0xff]   ;;  %v20835_v61 = vld [vmem:[%s22055_s24 + $0xb8] sm:$0xff]  }
  0x30   : >> { %18018 = vmatprep.subr.bf16.mxu1 %v21889_v1  ;;  %v20838_v60 = vld [vmem:[%s26814_s1 + $0x148] sm:$0xff]   ;;  %v20836_v62 = vld [vmem:[%s22055_s24 + $0x110] sm:$0xff]   ;;  %v20847_v2 = vld [vmem:[%s26814_s1 + $0x118] sm:$0xff]  }
  0x31   : >> { %v20841_v63 = vld [vmem:[%s26814_s1 + $0x110] sm:$0xff]   ;;  %v20848_v3 = vld [vmem:[%s26814_s1 + $0x158] sm:$0xff]   ;;  %v20839_v4 = vld [vmem:[%s22055_s24 + $0xc0] sm:$0xff]  }
  0x32   : >> { %17959 = vmatpush3.bf16.msra.mxu0 %v20787_v11  ;;  %v20844_v0 = vld [vmem:[%s26814_s1 + $0x150] sm:$0xff]   ;;  %v20840_v5 = vld [vmem:[%s22055_s24 + $0x118] sm:$0xff]   ;;  %v20851_v6 = vld [vmem:[%s26814_s1 + $0x120] sm:$0xff]  }
  0x33   : >> { %18019 = vmatpush3.bf16.msra.mxu1 %v20788_v12  ;;  %17960 = vmatprep.subr.bf16.mxu0 %v21889_v1  ;;  %v20852_v7 = vld [vmem:[%s26814_s1 + $0x160] sm:$0xff]   ;;  %v20857_v8 = vld [vmem:[%s26814_s1 + $0x128] sm:$0xff]   ;;  %v20861_v12 = vld [vmem:[%s26814_s1 + $0x130] sm:$0xff]  }
  0x34   : >> { %18020 = vmatprep.subr.bf16.mxu1 %v21889_v1  ;;  %v20858_v9 = vld [vmem:[%s26814_s1 + $0x168] sm:$0xff]   ;;  %v20843_v11 = vld [vmem:[%s22055_s24 + $0x120] sm:$0xff]  }
  0x35   : >> { %v20842_v10 = vld [vmem:[%s22055_s24 + $0xc8] sm:$0xff]  }
  0x36   : >> { %17961 = vmatpush3.bf16.msra.mxu0 %v20789_v13  ;;  %v20862_v13 = vld [vmem:[%s26814_s1 + $0x170] sm:$0xff]  }
  0x37   : >> { %18021 = vmatpush3.bf16.msra.mxu1 %v20790_v14  ;;  %17962 = vmatprep.subr.bf16.mxu0 %v21889_v1  ;;  %v20865_v14 = vld [vmem:[%s26814_s1 + $0x138] sm:$0xff]  }
  0x38   : >> { %18022 = vmatprep.subr.bf16.mxu1 %v21889_v1 }
  0x3a   : >> { %17963 = vmatpush3.bf16.msra.mxu0 %v20791_v15  ;;  %v20868_v15 = vld [vmem:[%s26814_s1 + $0x178] sm:$0xff]  }
  0x3b   : >> { %18023 = vmatpush3.bf16.msra.mxu1 %v20792_v16  ;;  %18068 = vmatprep.subr.bf16.mxu0 %v21889_v1  ;;  %v20845_v16 = vld [vmem:[%s22055_s24 + $0xd0] sm:$0xff]  }
  0x3c   : >> { %18128 = vmatprep.subr.bf16.mxu1 %v21889_v1 }
  0x3d   : >> { %17965 = vmatmul.mubr.bf16.vlgmr.msra.gmra.mrb[0].mxu0 %v20793_v17  ;;  %v20846_v17 = vld [vmem:[%s22055_s24 + $0x128] sm:$0xff]  }
  0x3e   : >> { %18025 = vmatmul.mubr.bf16.vlgmr.msra.gmra.mrb[0].mxu1 %v20794_v18  ;;  %18069 = vmatpush3.bf16.msra.mxu0 %v20795_v19  ;;  %v20849_v18 = vld [vmem:[%s22055_s24 + $0xd8] sm:$0xff]   ;;  %v20850_v19 = vld [vmem:[%s22055_s24 + $0x130] sm:$0xff]  }
  0x3f   : >> { %18129 = vmatpush3.bf16.msra.mxu1 %v20796_v20  ;;  %17968 = vmatprep.mubr.msk.bf16.mxu0 %vm21890_vm0, %v21889_v1  ;;  %v20853_v20 = vld [vmem:[%s22055_s24 + $0xe0] sm:$0xff]  }
  0x40   : >> { %18028 = vmatprep.mubr.msk.bf16.mxu1 %vm21890_vm0, %v21889_v1  ;;  %18070 = vmatprep.subr.bf16.mxu0 %v21889_v1 }
  0x41   : >> { %18130 = vmatprep.subr.bf16.mxu1 %v21889_v1 }
  0x42   : >> { %18071 = vmatpush3.bf16.msra.mxu0 %v20799_v21  ;;  %v20854_v21 = vld [vmem:[%s22055_s24 + $0x138] sm:$0xff]  }
  0x43   : >> { %18131 = vmatpush3.bf16.msra.mxu1 %v20800_v22  ;;  %18072 = vmatprep.subr.bf16.mxu0 %v21889_v1  ;;  %v20855_v22 = vld [vmem:[%s22055_s24 + $0xe8] sm:$0xff]  }
  0x44   : >> { %18132 = vmatprep.subr.bf16.mxu1 %v21889_v1 }
  0x45   : >> { %17969 = vmatmul.mubr.bf16.gmra.mrb[4].mxu0 %v20797_v23  ;;  %v20856_v23 = vld [vmem:[%s22055_s24 + $0x140] sm:$0xff]  }
  0x46   : >> { %18029 = vmatmul.mubr.bf16.gmra.mrb[4].mxu1 %v20798_v24  ;;  %17972 = vmatprep.mubr.msk.bf16.mxu0 %vm21890_vm0, %v21889_v1  ;;  %v20859_v24 = vld [vmem:[%s22055_s24 + $0xf0] sm:$0xff]  }
  0x47   : >> { %18032 = vmatprep.mubr.msk.bf16.mxu1 %vm21890_vm0, %v21889_v1  ;;  %18073 = vmatpush3.bf16.msra.mxu0 %v20803_v25  ;;  %v20860_v25 = vld [vmem:[%s22055_s24 + $0x148] sm:$0xff]  }
  0x48   : >> { %18133 = vmatpush3.bf16.msra.mxu1 %v20806_v26  ;;  %18074 = vmatprep.subr.bf16.mxu0 %v21889_v1  ;;  %v20863_v26 = vld [vmem:[%s22055_s24 + $0xf8] sm:$0xff]  }
  0x49   : >> { %18134 = vmatprep.subr.bf16.mxu1 %v21889_v1 }
  0x4b   : >> { %18075 = vmatpush3.bf16.msra.mxu0 %v20809_v27  ;;  %v20864_v27 = vld [vmem:[%s22055_s24 + $0x150] sm:$0xff]  }
  0x4c   : >> { %18135 = vmatpush3.bf16.msra.mxu1 %v20810_v28  ;;  %18076 = vmatprep.subr.bf16.mxu0 %v21889_v1  ;;  %v20866_v28 = vld [vmem:[%s22055_s24 + $0x100] sm:$0xff]  }
  0x4d   : >> { %17973 = vmatmul.mubr.bf16.gmra.mrb[8].mxu0 %v20801_v29  ;;  %18136 = vmatprep.subr.bf16.mxu1 %v21889_v1  ;;  %v20867_v29 = vld [vmem:[%s22055_s24 + $0x158] sm:$0xff]  }
  0x4e   : >> { %18033 = vmatmul.mubr.bf16.gmra.mrb[8].mxu1 %v20802_v30  ;;  %17976 = vmatprep.mubr.msk.bf16.mxu0 %vm21890_vm0, %v21889_v1  ;;  %v20869_v30 = vld [vmem:[%s22055_s24 + $0x160] sm:$0xff]  }
  0x4f   : >> { %18036 = vmatprep.mubr.msk.bf16.mxu1 %vm21890_vm0, %v21889_v1  ;;  %18077 = vmatpush3.bf16.msra.mxu0 %v20813_v31  ;;  %v20870_v31 = vld [vmem:[%s22055_s24 + $0x1b8] sm:$0xff]  }
  0x50   : >> { %18137 = vmatpush3.bf16.msra.mxu1 %v20814_v32  ;;  %18078 = vmatprep.subr.bf16.mxu0 %v21889_v1  ;;  %v20871_v32 = vld [vmem:[%s26814_s1 + $0x180] sm:$0xff]  }
  0x51   : >> { %18138 = vmatprep.subr.bf16.mxu1 %v21889_v1 }
  0x53   : >> { %18079 = vmatpush3.bf16.msra.mxu0 %v20819_v33  ;;  %v20872_v33 = vld [vmem:[%s26814_s1 + $0x1c0] sm:$0xff]  }
  0x54   : >> { %18139 = vmatpush3.bf16.msra.mxu1 %v20820_v34  ;;  %18080 = vmatprep.subr.bf16.mxu0 %v21889_v1  ;;  %v20875_v34 = vld [vmem:[%s26814_s1 + $0x188] sm:$0xff]  }
  0x55   : >> { %17977 = vmatmul.mubr.bf16.gmra.mrb[12].mxu0 %v20804_v35  ;;  %18140 = vmatprep.subr.bf16.mxu1 %v21889_v1  ;;  %v20876_v35 = vld [vmem:[%s26814_s1 + $0x1c8] sm:$0xff]  }
  0x56   : >> { %18037 = vmatmul.mubr.bf16.gmra.mrb[12].mxu1 %v20805_v36  ;;  %17980 = vmatprep.mubr.msk.bf16.mxu0 %vm21890_vm0, %v21889_v1  ;;  %v20873_v36 = vld [vmem:[%s22055_s24 + $0x168] sm:$0xff]  }
  0x57   : >> { %18040 = vmatprep.mubr.msk.bf16.mxu1 %vm21890_vm0, %v21889_v1  ;;  %18081 = vmatpush3.bf16.msra.mxu0 %v20823_v37  ;;  %v20874_v37 = vld [vmem:[%s22055_s24 + $0x1c0] sm:$0xff]  }
  0x58   : >> { %18141 = vmatpush3.bf16.msra.mxu1 %v20824_v38  ;;  %18082 = vmatprep.subr.bf16.mxu0 %v21889_v1  ;;  %v20879_v38 = vld [vmem:[%s26814_s1 + $0x190] sm:$0xff]  }
  0x59   : >> { %18142 = vmatprep.subr.bf16.mxu1 %v21889_v1 }
  0x5b   : >> { %18083 = vmatpush3.bf16.msra.mxu0 %v20827_v39  ;;  %v20882_v39 = vld [vmem:[%s26814_s1 + $0x1d0] sm:$0xff]  }
  0x5c   : >> { %18143 = vmatpush3.bf16.msra.mxu1 %v20830_v40  ;;  %18188 = vmatprep.subr.bf16.mxu0 %v21889_v1  ;;  %v20885_v40 = vld [vmem:[%s26814_s1 + $0x198] sm:$0xff]  }
  0x5d   : >> { %17981 = vmatmul.mubr.bf16.gmra.mrb[16].mxu0 %v20807_v41  ;;  %18248 = vmatprep.subr.bf16.mxu1 %v21889_v1  ;;  %v20886_v41 = vld [vmem:[%s26814_s1 + $0x1d8] sm:$0xff]  }
  0x5e   : >> { %18041 = vmatmul.mubr.bf16.gmra.mrb[16].mxu1 %v20808_v42  ;;  %17984 = vmatprep.mubr.msk.bf16.mxu0 %vm21890_vm0, %v21889_v1  ;;  %v20877_v42 = vld [vmem:[%s22055_s24 + $0x170] sm:$0xff]  }
  0x5f   : >> { %18044 = vmatprep.mubr.msk.bf16.mxu1 %vm21890_vm0, %v21889_v1 }
  0x65   : >> { %17985 = vmatmul.mubr.bf16.gmra.mrb[20].mxu0 %v20811_v43  ;;  %v20878_v43 = vld [vmem:[%s22055_s24 + $0x1c8] sm:$0xff]  }
  0x66   : >> { %18045 = vmatmul.mubr.bf16.gmra.mrb[20].mxu1 %v20812_v44  ;;  %17988 = vmatprep.mubr.msk.bf16.mxu0 %vm21890_vm0, %v21889_v1  ;;  %v20889_v44 = vld [vmem:[%s26814_s1 + $0x1a0] sm:$0xff]  }
  0x67   : >> { %18048 = vmatprep.mubr.msk.bf16.mxu1 %vm21890_vm0, %v21889_v1 }
  0x6d   : >> { %17989 = vmatmul.mubr.bf16.gmra.mrb[24].mxu0 %v20815_v45  ;;  %v20890_v45 = vld [vmem:[%s26814_s1 + $0x1e0] sm:$0xff]  }
  0x6e   : >> { %18049 = vmatmul.mubr.bf16.gmra.mrb[24].mxu1 %v20816_v46  ;;  %17992 = vmatprep.mubr.msk.bf16.mxu0 %vm21890_vm0, %v21889_v1  ;;  %v20895_v46 = vld [vmem:[%s26814_s1 + $0x1a8] sm:$0xff]  }
  0x6f   : >> { %18052 = vmatprep.mubr.msk.bf16.mxu1 %vm21890_vm0, %v21889_v1 }
  0x75   : >> { %17993 = vmatmul.mubr.bf16.gmra.mrb[28].mxu0 %v20817_v47  ;;  %v20896_v47 = vld [vmem:[%s26814_s1 + $0x1e8] sm:$0xff]  }
  0x76   : >> { %18053 = vmatmul.mubr.bf16.gmra.mrb[28].mxu1 %v20818_v48  ;;  %17996 = vmatprep.mubr.msk.bf16.mxu0 %vm21890_vm0, %v21889_v1  ;;  %v20880_v48 = vld [vmem:[%s22055_s24 + $0x178] sm:$0xff]  }
  0x77   : >> { %18056 = vmatprep.mubr.msk.bf16.mxu1 %vm21890_vm0, %v21889_v1 }
  0x7d   : >> { %17997 = vmatmul.mubr.bf16.gmra.mrb[32].mxu0 %v20821_v49  ;;  %v20881_v49 = vld [vmem:[%s22055_s24 + $0x1d0] sm:$0xff]  }
  0x7e   : >> { %18057 = vmatmul.mubr.bf16.gmra.mrb[32].mxu1 %v20822_v50  ;;  %18000 = vmatprep.mubr.msk.bf16.mxu0 %vm21890_vm0, %v21889_v1  ;;  %v20899_v50 = vld [vmem:[%s26814_s1 + $0x1b0] sm:$0xff]  }
  0x7f   : >> { %18060 = vmatprep.mubr.msk.bf16.mxu1 %vm21890_vm0, %v21889_v1 }
  0x85   : >> { %18001 = vmatmul.mubr.bf16.gmra.mrb[36].mxu0 %v20825_v51  ;;  %v20900_v51 = vld [vmem:[%s26814_s1 + $0x1f0] sm:$0xff]  }
  0x86   : >> { %18061 = vmatmul.mubr.bf16.gmra.mrb[36].mxu1 %v20826_v52  ;;  %18004 = vmatprep.mubr.msk.bf16.mxu0 %vm21890_vm0, %v21889_v1  ;;  %v20903_v52 = vld [vmem:[%s26814_s1 + $0x1b8] sm:$0xff]  }
  0x87   : >> { %18064 = vmatprep.mubr.msk.bf16.mxu1 %vm21890_vm0, %v21889_v1 }
  0x8d   : >> { %18005 = vmatmul.mubr.bf16.gmra.mrb[40].mxu0 %v20828_v53  ;;  %v20906_v53 = vld [vmem:[%s26814_s1 + $0x1f8] sm:$0xff]  }
  0x8e   : >> { %18065 = vmatmul.mubr.bf16.gmra.mrb[40].mxu1 %v20829_v54  ;;  %18084 = vmatprep.mubr.msk.bf16.mxu0 %vm21890_vm0, %v21889_v1  ;;  %v20883_v54 = vld [vmem:[%s22055_s24 + $0x180] sm:$0xff]  }
  0x8f   : >> { %18144 = vmatprep.mubr.msk.bf16.mxu1 %vm21890_vm0, %v21889_v1 }
  0x95   : >> { %18085 = vmatmul.mubr.bf16.vlgmr.msra.gmra.mrb[44].mxu0 %v20831_v55  ;;  %v20884_v55 = vld [vmem:[%s22055_s24 + $0x1d8] sm:$0xff]  }
  0x96   : >> { %18145 = vmatmul.mubr.bf16.vlgmr.msra.gmra.mrb[44].mxu1 %v20832_v56  ;;  %18189 = vmatpush3.bf16.msra.mxu0 %v20833_v57 }
  0x97   : >> { %18249 = vmatpush3.bf16.msra.mxu1 %v20834_v58  ;;  %18088 = vmatprep.mubr.msk.bf16.mxu0 %vm21890_vm0, %v21889_v1 }
  0x98   : >> { %18148 = vmatprep.mubr.msk.bf16.mxu1 %vm21890_vm0, %v21889_v1  ;;  %18190 = vmatprep.subr.bf16.mxu0 %v21889_v1 }
  0x99   : >> { %18250 = vmatprep.subr.bf16.mxu1 %v21889_v1 }
  0x9a   : >> { %18191 = vmatpush3.bf16.msra.mxu0 %v20837_v59  ;;  %v20887_v59 = vld [vmem:[%s22055_s24 + $0x188] sm:$0xff]  }
  0x9b   : >> { %18251 = vmatpush3.bf16.msra.mxu1 %v20838_v60  ;;  %18192 = vmatprep.subr.bf16.mxu0 %v21889_v1 }
  0x9c   : >> { %18252 = vmatprep.subr.bf16.mxu1 %v21889_v1 }
  0x9d   : >> { %18089 = vmatmul.mubr.bf16.gmra.mrb[48].mxu0 %v20835_v61 }
  0x9e   : >> { %18149 = vmatmul.mubr.bf16.gmra.mrb[48].mxu1 %v20836_v62  ;;  %18092 = vmatprep.mubr.msk.bf16.mxu0 %vm21890_vm0, %v21889_v1 }
  0x9f   : >> { %18152 = vmatprep.mubr.msk.bf16.mxu1 %vm21890_vm0, %v21889_v1  ;;  %18193 = vmatpush3.bf16.msra.mxu0 %v20841_v63  ;;  %v20888_v63 = vld [vmem:[%s22055_s24 + $0x1e0] sm:$0xff]  }
  0xa0   : >> { %18253 = vmatpush3.bf16.msra.mxu1 %v20844_v0  ;;  %18194 = vmatprep.subr.bf16.mxu0 %v21889_v1 }
  0xa1   : >> { %18254 = vmatprep.subr.bf16.mxu1 %v21889_v1 }
  0xa3   : >> { %18195 = vmatpush3.bf16.msra.mxu0 %v20847_v2 }
  0xa4   : >> { %18255 = vmatpush3.bf16.msra.mxu1 %v20848_v3  ;;  %18196 = vmatprep.subr.bf16.mxu0 %v21889_v1 }
  0xa5   : >> { %18093 = vmatmul.mubr.bf16.gmra.mrb[52].mxu0 %v20839_v4  ;;  %18256 = vmatprep.subr.bf16.mxu1 %v21889_v1 }
  0xa6   : >> { %18153 = vmatmul.mubr.bf16.gmra.mrb[52].mxu1 %v20840_v5  ;;  %18096 = vmatprep.mubr.msk.bf16.mxu0 %vm21890_vm0, %v21889_v1 }
  0xa7   : >> { %18156 = vmatprep.mubr.msk.bf16.mxu1 %vm21890_vm0, %v21889_v1  ;;  %18197 = vmatpush3.bf16.msra.mxu0 %v20851_v6 }
  0xa8   : >> { %18257 = vmatpush3.bf16.msra.mxu1 %v20852_v7  ;;  %18198 = vmatprep.subr.bf16.mxu0 %v21889_v1 }
  0xa9   : >> { %18258 = vmatprep.subr.bf16.mxu1 %v21889_v1 }
  0xab   : >> { %18199 = vmatpush3.bf16.msra.mxu0 %v20857_v8  ;;  %v20891_v8 = vld [vmem:[%s22055_s24 + $0x190] sm:$0xff]  }
  0xac   : >> { %18259 = vmatpush3.bf16.msra.mxu1 %v20858_v9  ;;  %18200 = vmatprep.subr.bf16.mxu0 %v21889_v1 }
  0xad   : >> { %18097 = vmatmul.mubr.bf16.gmra.mrb[56].mxu0 %v20842_v10  ;;  %18260 = vmatprep.subr.bf16.mxu1 %v21889_v1 }
  0xae   : >> { %18157 = vmatmul.mubr.bf16.gmra.mrb[56].mxu1 %v20843_v11  ;;  %18100 = vmatprep.mubr.msk.bf16.mxu0 %vm21890_vm0, %v21889_v1 }
  0xaf   : >> { %18160 = vmatprep.mubr.msk.bf16.mxu1 %vm21890_vm0, %v21889_v1  ;;  %18201 = vmatpush3.bf16.msra.mxu0 %v20861_v12  ;;  %v20892_v12 = vld [vmem:[%s22055_s24 + $0x1e8] sm:$0xff]  }
  0xb0   : >> { %18261 = vmatpush3.bf16.msra.mxu1 %v20862_v13  ;;  %18202 = vmatprep.subr.bf16.mxu0 %v21889_v1 }
  0xb1   : >> { %18262 = vmatprep.subr.bf16.mxu1 %v21889_v1 }
  0xb3   : >> { %18203 = vmatpush3.bf16.msra.mxu0 %v20865_v14 }
  0xb4   : >> { %18263 = vmatpush3.bf16.msra.mxu1 %v20868_v15  ;;  %18308 = vmatprep.subr.bf16.mxu0 %v21889_v1 }
  0xb5   : >> { %18101 = vmatmul.mubr.bf16.gmra.mrb[60].mxu0 %v20845_v16  ;;  %18368 = vmatprep.subr.bf16.mxu1 %v21889_v1 }
  0xb6   : >> { %18161 = vmatmul.mubr.bf16.gmra.mrb[60].mxu1 %v20846_v17  ;;  %18104 = vmatprep.mubr.msk.bf16.mxu0 %vm21890_vm0, %v21889_v1 }
  0xb7   : >> { %18164 = vmatprep.mubr.msk.bf16.mxu1 %vm21890_vm0, %v21889_v1 }
  0xbd   : >> { %18105 = vmatmul.mubr.bf16.gmra.mrb[64].mxu0 %v20849_v18 }
  0xbe   : >> { %18165 = vmatmul.mubr.bf16.gmra.mrb[64].mxu1 %v20850_v19  ;;  %18108 = vmatprep.mubr.msk.bf16.mxu0 %vm21890_vm0, %v21889_v1 }
  0xbf   : >> { %18168 = vmatprep.mubr.msk.bf16.mxu1 %vm21890_vm0, %v21889_v1 }
  0xc5   : >> { %18109 = vmatmul.mubr.bf16.gmra.mrb[68].mxu0 %v20853_v20  ;;  %v20893_v20 = vld [vmem:[%s22055_s24 + $0x198] sm:$0xff]  }
  0xc6   : >> { %18169 = vmatmul.mubr.bf16.gmra.mrb[68].mxu1 %v20854_v21  ;;  %18112 = vmatprep.mubr.msk.bf16.mxu0 %vm21890_vm0, %v21889_v1 }
  0xc7   : >> { %18172 = vmatprep.mubr.msk.bf16.mxu1 %vm21890_vm0, %v21889_v1 }
  0xcd   : >> { %18113 = vmatmul.mubr.bf16.gmra.mrb[72].mxu0 %v20855_v22 }
  0xce   : >> { %18173 = vmatmul.mubr.bf16.gmra.mrb[72].mxu1 %v20856_v23  ;;  %18116 = vmatprep.mubr.msk.bf16.mxu0 %vm21890_vm0, %v21889_v1 }
  0xcf   : >> { %18176 = vmatprep.mubr.msk.bf16.mxu1 %vm21890_vm0, %v21889_v1 }
  0xd5   : >> { %18117 = vmatmul.mubr.bf16.gmra.mrb[76].mxu0 %v20859_v24  ;;  %v20894_v24 = vld [vmem:[%s22055_s24 + $0x1f0] sm:$0xff]  }
  0xd6   : >> { %18177 = vmatmul.mubr.bf16.gmra.mrb[76].mxu1 %v20860_v25  ;;  %18120 = vmatprep.mubr.msk.bf16.mxu0 %vm21890_vm0, %v21889_v1 }
  0xd7   : >> { %18180 = vmatprep.mubr.msk.bf16.mxu1 %vm21890_vm0, %v21889_v1 }
  0xdd   : >> { %18121 = vmatmul.mubr.bf16.gmra.mrb[80].mxu0 %v20863_v26 }
  0xde   : >> { %18181 = vmatmul.mubr.bf16.gmra.mrb[80].mxu1 %v20864_v27  ;;  %18124 = vmatprep.mubr.msk.bf16.mxu0 %vm21890_vm0, %v21889_v1 }
  0xdf   : >> { %18184 = vmatprep.mubr.msk.bf16.mxu1 %vm21890_vm0, %v21889_v1 }
  0xe5   : >> { %18125 = vmatmul.mubr.bf16.gmra.mrb[84].mxu0 %v20866_v28 }
  0xe6   : >> { %18185 = vmatmul.mubr.bf16.gmra.mrb[84].mxu1 %v20867_v29  ;;  %18204 = vmatprep.mubr.msk.bf16.mxu0 %vm21890_vm0, %v21889_v1 }
  0xe7   : >> { %18264 = vmatprep.mubr.msk.bf16.mxu1 %vm21890_vm0, %v21889_v1 }
  0xed   : >> { %18205 = vmatmul.mubr.bf16.vlgmr.msra.gmra.mrb[88].mxu0 %v20869_v30 }
  0xee   : >> { %18265 = vmatmul.mubr.bf16.vlgmr.msra.gmra.mrb[88].mxu1 %v20870_v31  ;;  %18309 = vmatpush3.bf16.msra.mxu0 %v20871_v32  ;;  %v20897_v32 = vld [vmem:[%s22055_s24 + $0x1a0] sm:$0xff]  }
  0xef   : >> { %18369 = vmatpush3.bf16.msra.mxu1 %v20872_v33  ;;  %18208 = vmatprep.mubr.msk.bf16.mxu0 %vm21890_vm0, %v21889_v1 }
  0xf0   : >> { %18268 = vmatprep.mubr.msk.bf16.mxu1 %vm21890_vm0, %v21889_v1  ;;  %18310 = vmatprep.subr.bf16.mxu0 %v21889_v1 }
  0xf1   : >> { %18370 = vmatprep.subr.bf16.mxu1 %v21889_v1 }
  0xf2   : >> { %18311 = vmatpush3.bf16.msra.mxu0 %v20875_v34 }
  0xf3   : >> { %18371 = vmatpush3.bf16.msra.mxu1 %v20876_v35  ;;  %18312 = vmatprep.subr.bf16.mxu0 %v21889_v1 }
  0xf4   : >> { %18372 = vmatprep.subr.bf16.mxu1 %v21889_v1 }
  0xf5   : >> { %18209 = vmatmul.mubr.bf16.gmra.mrb[92].mxu0 %v20873_v36  ;;  %v20898_v36 = vld [vmem:[%s22055_s24 + $0x1f8] sm:$0xff]  }
  0xf6   : >> { %18269 = vmatmul.mubr.bf16.gmra.mrb[92].mxu1 %v20874_v37  ;;  %18212 = vmatprep.mubr.msk.bf16.mxu0 %vm21890_vm0, %v21889_v1 }
  0xf7   : >> { %18272 = vmatprep.mubr.msk.bf16.mxu1 %vm21890_vm0, %v21889_v1  ;;  %18313 = vmatpush3.bf16.msra.mxu0 %v20879_v38 }
  0xf8   : >> { %18373 = vmatpush3.bf16.msra.mxu1 %v20882_v39  ;;  %18314 = vmatprep.subr.bf16.mxu0 %v21889_v1 }
  0xf9   : >> { %18374 = vmatprep.subr.bf16.mxu1 %v21889_v1 }
  0xfb   : >> { %18315 = vmatpush3.bf16.msra.mxu0 %v20885_v40 }
  0xfc   : >> { %18375 = vmatpush3.bf16.msra.mxu1 %v20886_v41  ;;  %18316 = vmatprep.subr.bf16.mxu0 %v21889_v1 }
  0xfd   : >> { %18213 = vmatmul.mubr.bf16.gmra.mrb[96].mxu0 %v20877_v42  ;;  %18376 = vmatprep.subr.bf16.mxu1 %v21889_v1 }
  0xfe   : >> { %18273 = vmatmul.mubr.bf16.gmra.mrb[96].mxu1 %v20878_v43  ;;  %18216 = vmatprep.mubr.msk.bf16.mxu0 %vm21890_vm0, %v21889_v1 }
  0xff   : >> { %18276 = vmatprep.mubr.msk.bf16.mxu1 %vm21890_vm0, %v21889_v1  ;;  %18317 = vmatpush3.bf16.msra.mxu0 %v20889_v44  ;;  %v20901_v44 = vld [vmem:[%s22055_s24 + $0x1a8] sm:$0xff]  }
 0x100   : >> { %18377 = vmatpush3.bf16.msra.mxu1 %v20890_v45  ;;  %18318 = vmatprep.subr.bf16.mxu0 %v21889_v1 }
 0x101   : >> { %18378 = vmatprep.subr.bf16.mxu1 %v21889_v1 }
 0x103   : >> { %18319 = vmatpush3.bf16.msra.mxu0 %v20895_v46 }
 0x104   : >> { %18379 = vmatpush3.bf16.msra.mxu1 %v20896_v47  ;;  %18320 = vmatprep.subr.bf16.mxu0 %v21889_v1 }
 0x105   : >> { %18217 = vmatmul.mubr.bf16.gmra.mrb[100].mxu0 %v20880_v48  ;;  %18380 = vmatprep.subr.bf16.mxu1 %v21889_v1  ;;  %v20902_v48 = vld [vmem:[%s22055_s24 + $0x200] sm:$0xff]  }
 0x106   : >> { %18277 = vmatmul.mubr.bf16.gmra.mrb[100].mxu1 %v20881_v49  ;;  %18220 = vmatprep.mubr.msk.bf16.mxu0 %vm21890_vm0, %v21889_v1 }
 0x107   : >> { %18280 = vmatprep.mubr.msk.bf16.mxu1 %vm21890_vm0, %v21889_v1  ;;  %18321 = vmatpush3.bf16.msra.mxu0 %v20899_v50 }
 0x108   : >> { %18381 = vmatpush3.bf16.msra.mxu1 %v20900_v51  ;;  %18322 = vmatprep.subr.bf16.mxu0 %v21889_v1 }
 0x109   : >> { %18382 = vmatprep.subr.bf16.mxu1 %v21889_v1 }
 0x10b   : >> { %18323 = vmatpush3.bf16.msra.mxu0 %v20903_v52 }
 0x10c   : >> { %18383 = vmatpush3.bf16.msra.mxu1 %v20906_v53 }
 0x10d   : >> { %18221 = vmatmul.mubr.bf16.gmra.mrb[104].mxu0 %v20883_v54 }
 0x10e   : >> { %18281 = vmatmul.mubr.bf16.gmra.mrb[104].mxu1 %v20884_v55  ;;  %18224 = vmatprep.mubr.msk.bf16.mxu0 %vm21890_vm0, %v21889_v1 }
 0x10f   : >> { %18284 = vmatprep.mubr.msk.bf16.mxu1 %vm21890_vm0, %v21889_v1 }
 0x110   : >> { %v571_v56 = vpop.f32.mrb[0].mxu0 }
 0x111   : >> { %v806_v57 = vpop.f32.mrb[0].mxu1  ;;  %v17966_v58 = vpop.f32.mrb[1].mxu0 }
 0x112   : >> { %v22437_v60 = vadd.f32 %v806_v57, %v571_v56  ;;  %v18026_v61 = vpop.f32.mrb[1].mxu1  ;;  %v574_v62 = vpop.f32.mrb[2].mxu0  ;;  %v20904_v56 = vld [vmem:[%s22055_s24 + $0x1b0] sm:$0xff]  }
 0x113   : >> { %v809_v0 = vpop.f32.mrb[2].mxu1  ;;  %v17967_v2 = vpop.f32.mrb[3].mxu0  ;;  %v20905_v61 = vld [vmem:[%s22055_s24 + $0x208] sm:$0xff]  }
 0x114   : >> { %v22440_v3 = vadd.f32 %v809_v0, %v574_v62  ;;  %v18027_v4 = vpop.f32.mrb[3].mxu1 }
 0x115   : >> { %18225 = vmatmul.mubr.bf16.gmra.mrb[108].mxu0 %v20887_v59 }
 0x116   : >> { %18285 = vmatmul.mubr.bf16.gmra.mrb[108].mxu1 %v20888_v63  ;;  %18228 = vmatprep.mubr.msk.bf16.mxu0 %vm21890_vm0, %v21889_v1 }
 0x117   : >> { %18288 = vmatprep.mubr.msk.bf16.mxu1 %vm21890_vm0, %v21889_v1 }
 0x118   : >> { %v579_v5 = vpop.f32.mrb[4].mxu0 }
 0x119   : >> { %v814_v6 = vpop.f32.mrb[4].mxu1  ;;  %v17970_v7 = vpop.f32.mrb[5].mxu0 }
 0x11a   : >> { %v22447_v9 = vadd.f32 %v814_v6, %v579_v5  ;;  %v18030_v10 = vpop.f32.mrb[5].mxu1  ;;  %v582_v11 = vpop.f32.mrb[6].mxu0  ;;  %v20907_v7 = vld [vmem:[%s22055_s24 + $0x210] sm:$0xff]  }
 0x11b   : >> { %v817_v13 = vpop.f32.mrb[6].mxu1  ;;  %v17971_v14 = vpop.f32.mrb[7].mxu0 }
 0x11c   : >> { %v22450_v15 = vadd.f32 %v817_v13, %v582_v11  ;;  %v18031_v16 = vpop.f32.mrb[7].mxu1 }
 0x11d   : >> { %18229 = vmatmul.mubr.bf16.gmra.mrb[112].mxu0 %v20891_v8 }
 0x11e   : >> { %18289 = vmatmul.mubr.bf16.gmra.mrb[112].mxu1 %v20892_v12  ;;  %18232 = vmatprep.mubr.msk.bf16.mxu0 %vm21890_vm0, %v21889_v1  ;;  %v20908_v12 = vld [vmem:[%s22055_s24 + $0x268] sm:$0xff]  }
 0x11f   : >> { %18292 = vmatprep.mubr.msk.bf16.mxu1 %vm21890_vm0, %v21889_v1 }
 0x120   : >> { %v587_v17 = vpop.f32.mrb[8].mxu0 }
 0x121   : >> { %v822_v18 = vpop.f32.mrb[8].mxu1  ;;  %v17974_v19 = vpop.f32.mrb[9].mxu0 }
 0x122   : >> { %v22457_v21 = vadd.f32 %v822_v18, %v587_v17  ;;  %v18034_v22 = vpop.f32.mrb[9].mxu1  ;;  %v590_v23 = vpop.f32.mrb[10].mxu0 }
 0x123   : >> { %v825_v25 = vpop.f32.mrb[10].mxu1  ;;  %v17975_v26 = vpop.f32.mrb[11].mxu0  ;;  %v20909_v22 = vld [vmem:[%s22055_s24 + $0x218] sm:$0xff]  }
 0x124   : >> { %v22460_v27 = vadd.f32 %v825_v25, %v590_v23  ;;  %v18035_v28 = vpop.f32.mrb[11].mxu1  ;;  %v20910_v26 = vld [vmem:[%s22055_s24 + $0x270] sm:$0xff]  }
 0x125   : >> { %18233 = vmatmul.mubr.bf16.gmra.mrb[116].mxu0 %v20893_v20 }
 0x126   : >> { %18293 = vmatmul.mubr.bf16.gmra.mrb[116].mxu1 %v20894_v24  ;;  %18236 = vmatprep.mubr.msk.bf16.mxu0 %vm21890_vm0, %v21889_v1 }
 0x127   : >> { %18296 = vmatprep.mubr.msk.bf16.mxu1 %vm21890_vm0, %v21889_v1 }
 0x128   : >> { %v595_v29 = vpop.f32.mrb[12].mxu0 }
 0x129   : >> { %v830_v30 = vpop.f32.mrb[12].mxu1  ;;  %v17978_v31 = vpop.f32.mrb[13].mxu0 }
 0x12a   : >> { %v22467_v33 = vadd.f32 %v830_v30, %v595_v29  ;;  %v18038_v34 = vpop.f32.mrb[13].mxu1  ;;  %v598_v35 = vpop.f32.mrb[14].mxu0 }
 0x12b   : >> { %v833_v37 = vpop.f32.mrb[14].mxu1  ;;  %v17979_v38 = vpop.f32.mrb[15].mxu0 }
 0x12c   : >> { %v22470_v39 = vadd.f32 %v833_v37, %v598_v35  ;;  %v18039_v40 = vpop.f32.mrb[15].mxu1 }
 0x12d   : >> { %18237 = vmatmul.mubr.bf16.gmra.mrb[120].mxu0 %v20897_v32 }
 0x12e   : >> { %18297 = vmatmul.mubr.bf16.gmra.mrb[120].mxu1 %v20898_v36  ;;  %18240 = vmatprep.mubr.msk.bf16.mxu0 %vm21890_vm0, %v21889_v1  ;;  %v20911_v36 = vld [vmem:[%s22055_s24 + $0x220] sm:$0xff]  }
 0x12f   : >> { %18300 = vmatprep.mubr.msk.bf16.mxu1 %vm21890_vm0, %v21889_v1 }
 0x130   : >> { %v603_v41 = vpop.f32.mrb[16].mxu0 }
 0x131   : >> { %v838_v42 = vpop.f32.mrb[16].mxu1  ;;  %v17982_v43 = vpop.f32.mrb[17].mxu0 }
 0x132   : >> { %v22477_v45 = vadd.f32 %v838_v42, %v603_v41  ;;  %v18042_v46 = vpop.f32.mrb[17].mxu1  ;;  %v606_v47 = vpop.f32.mrb[18].mxu0  ;;  %v20912_v41 = vld [vmem:[%s22055_s24 + $0x278] sm:$0xff]  }
 0x133   : >> { %v841_v49 = vpop.f32.mrb[18].mxu1  ;;  %v17983_v50 = vpop.f32.mrb[19].mxu0 }
 0x134   : >> { %v22480_v51 = vadd.f32 %v841_v49, %v606_v47  ;;  %v18043_v52 = vpop.f32.mrb[19].mxu1  ;;  %v20913_v50 = vld [vmem:[%s22055_s24 + $0x228] sm:$0xff]  }
 0x135   : >> { %18241 = vmatmul.mubr.bf16.gmra.mrb[124].mxu0 %v20901_v44 }
 0x136   : >> { %18301 = vmatmul.mubr.bf16.gmra.mrb[124].mxu1 %v20902_v48  ;;  %18244 = vmatprep.mubr.msk.bf16.mxu0 %vm21890_vm0, %v21889_v1 }
 0x137   : >> { %18304 = vmatprep.mubr.msk.bf16.mxu1 %vm21890_vm0, %v21889_v1 }
 0x138   : >> { %v611_v53 = vpop.f32.mrb[20].mxu0 }
 0x139   : >> { %v846_v54 = vpop.f32.mrb[20].mxu1  ;;  %v17986_v55 = vpop.f32.mrb[21].mxu0 }
 0x13a   : >> { %v22487_v57 = vadd.f32 %v846_v54, %v611_v53  ;;  %v18046_v58 = vpop.f32.mrb[21].mxu1  ;;  %v614_v59 = vpop.f32.mrb[22].mxu0  ;;  %v20914_v55 = vld [vmem:[%s22055_s24 + $0x280] sm:$0xff]  }
 0x13b   : >> { %v849_v62 = vpop.f32.mrb[22].mxu1  ;;  %v17987_v63 = vpop.f32.mrb[23].mxu0 }
 0x13c   : >> { %v22490_v0 = vadd.f32 %v849_v62, %v614_v59  ;;  %v18047_v2 = vpop.f32.mrb[23].mxu1 }
 0x13d   : >> { %18245 = vmatmul.mubr.bf16.gmra.mrb[128].mxu0 %v20904_v56 }
 0x13e   : >> { %18305 = vmatmul.mubr.bf16.gmra.mrb[128].mxu1 %v20905_v61  ;;  %18324 = vmatprep.mubr.msk.bf16.mxu0 %vm21890_vm0, %v21889_v1 }
 0x13f   : >> { %18384 = vmatprep.mubr.msk.bf16.mxu1 %vm21890_vm0, %v21889_v1 }
 0x140   : >> { %v619_v4 = vpop.f32.mrb[24].mxu0 }
 0x141   : >> { %v854_v5 = vpop.f32.mrb[24].mxu1  ;;  %v17990_v6 = vpop.f32.mrb[25].mxu0 }
 0x142   : >> { %v22497_v8 = vadd.f32 %v854_v5, %v619_v4  ;;  %v18050_v10 = vpop.f32.mrb[25].mxu1  ;;  %v622_v11 = vpop.f32.mrb[26].mxu0  ;;  %v20915_v4 = vld [vmem:[%s22055_s24 + $0x230] sm:$0xff]  }
 0x143   : >> { %v857_v13 = vpop.f32.mrb[26].mxu1  ;;  %v17991_v14 = vpop.f32.mrb[27].mxu0  ;;  %v20916_v10 = vld [vmem:[%s22055_s24 + $0x288] sm:$0xff]  }
 0x144   : >> { %v22500_v16 = vadd.f32 %v857_v13, %v622_v11  ;;  %v18051_v17 = vpop.f32.mrb[27].mxu1 }
 0x145   : >> { %18325 = vmatmul.mubr.bf16.vlgmr.msra.gmra.mrb[132].mxu0 %v20907_v7 }
 0x146   : >> { %18385 = vmatmul.mubr.bf16.vlgmr.msra.gmra.mrb[132].mxu1 %v20908_v12  ;;  %18328 = vmatprep.mubr.msk.bf16.mxu0 %vm21890_vm0, %v21889_v1 }
 0x147   : >> { %18388 = vmatprep.mubr.msk.bf16.mxu1 %vm21890_vm0, %v21889_v1 }
 0x148   : >> { %v627_v18 = vpop.f32.mrb[28].mxu0 }
 0x149   : >> { %v862_v19 = vpop.f32.mrb[28].mxu1  ;;  %v17994_v20 = vpop.f32.mrb[29].mxu0 }
 0x14a   : >> { %v22507_v23 = vadd.f32 %v862_v19, %v627_v18  ;;  %v18054_v24 = vpop.f32.mrb[29].mxu1  ;;  %v630_v25 = vpop.f32.mrb[30].mxu0 }
 0x14b   : >> { %v865_v28 = vpop.f32.mrb[30].mxu1  ;;  %v17995_v29 = vpop.f32.mrb[31].mxu0 }
 0x14c   : >> { %v22510_v30 = vadd.f32 %v865_v28, %v630_v25  ;;  %v18055_v31 = vpop.f32.mrb[31].mxu1 }
 0x14d   : >> { %18329 = vmatmul.mubr.bf16.gmra.mrb[136].mxu0 %v20909_v22  ;;  %v20917_v22 = vld [vmem:[%s22055_s24 + $0x238] sm:$0xff]  }
 0x14e   : >> { %18389 = vmatmul.mubr.bf16.gmra.mrb[136].mxu1 %v20910_v26  ;;  %18332 = vmatprep.mubr.msk.bf16.mxu0 %vm21890_vm0, %v21889_v1  ;;  %v20918_v26 = vld [vmem:[%s22055_s24 + $0x290] sm:$0xff]  }
 0x14f   : >> { %18392 = vmatprep.mubr.msk.bf16.mxu1 %vm21890_vm0, %v21889_v1 }
 0x150   : >> { %v635_v32 = vpop.f32.mrb[32].mxu0 }
 0x151   : >> { %v870_v34 = vpop.f32.mrb[32].mxu1  ;;  %v17998_v35 = vpop.f32.mrb[33].mxu0 }
 0x152   : >> { %v22517_v37 = vadd.f32 %v870_v34, %v635_v32  ;;  %v18058_v38 = vpop.f32.mrb[33].mxu1  ;;  %v638_v40 = vpop.f32.mrb[34].mxu0 }
 0x153   : >> { %v873_v42 = vpop.f32.mrb[34].mxu1  ;;  %v17999_v43 = vpop.f32.mrb[35].mxu0 }
 0x154   : >> { %v22520_v44 = vadd.f32 %v873_v42, %v638_v40  ;;  %v18059_v46 = vpop.f32.mrb[35].mxu1  ;;  %v20920_v43 = vld [vmem:[%s22055_s24 + $0x298] sm:$0xff]  }
 0x155   : >> { %18333 = vmatmul.mubr.bf16.gmra.mrb[140].mxu0 %v20911_v36 }
 0x156   : >> { %18393 = vmatmul.mubr.bf16.gmra.mrb[140].mxu1 %v20912_v41  ;;  %18336 = vmatprep.mubr.msk.bf16.mxu0 %vm21890_vm0, %v21889_v1 }
 0x157   : >> { %18396 = vmatprep.mubr.msk.bf16.mxu1 %vm21890_vm0, %v21889_v1 }
 0x158   : >> { %v643_v47 = vpop.f32.mrb[36].mxu0 }
 0x159   : >> { %v878_v48 = vpop.f32.mrb[36].mxu1  ;;  %v18002_v49 = vpop.f32.mrb[37].mxu0 }
 0x15a   : >> { %v22527_v52 = vadd.f32 %v878_v48, %v643_v47  ;;  %v18062_v53 = vpop.f32.mrb[37].mxu1  ;;  %v646_v54 = vpop.f32.mrb[38].mxu0 }
 0x15b   : >> { %v881_v56 = vpop.f32.mrb[38].mxu1  ;;  %v18003_v58 = vpop.f32.mrb[39].mxu0 }
 0x15c   : >> { %v22530_v59 = vadd.f32 %v881_v56, %v646_v54  ;;  %v18063_v61 = vpop.f32.mrb[39].mxu1 }
 0x15d   : >> { %18337 = vmatmul.mubr.bf16.gmra.mrb[144].mxu0 %v20913_v50 }
 0x15e   : >> { %18397 = vmatmul.mubr.bf16.gmra.mrb[144].mxu1 %v20914_v55  ;;  %18340 = vmatprep.mubr.msk.bf16.mxu0 %vm21890_vm0, %v21889_v1 }
 0x15f   : >> { %18400 = vmatprep.mubr.msk.bf16.mxu1 %vm21890_vm0, %v21889_v1 }
 0x160   : >> { %v651_v62 = vpop.f32.mrb[40].mxu0 }
 0x161   : >> { %v886_v63 = vpop.f32.mrb[40].mxu1  ;;  %v18006_v2 = vpop.f32.mrb[41].mxu0 }
 0x162   : >> { %v22537_v5 = vadd.f32 %v886_v63, %v651_v62  ;;  %v18066_v6 = vpop.f32.mrb[41].mxu1  ;;  %v654_v7 = vpop.f32.mrb[42].mxu0  ;;  %v20922_v62 = vld [vmem:[%s22055_s24 + $0x2a0] sm:$0xff]  }
 0x163   : >> { %v889_v11 = vpop.f32.mrb[42].mxu1  ;;  %v18007_v12 = vpop.f32.mrb[43].mxu0 }
 0x164   : >> { %v22540_v13 = vadd.f32 %v889_v11, %v654_v7  ;;  %v18067_v14 = vpop.f32.mrb[43].mxu1 }
 0x165   : >> { %18341 = vmatmul.mubr.bf16.gmra.mrb[148].mxu0 %v20915_v4 }
 0x166   : >> { %18401 = vmatmul.mubr.bf16.gmra.mrb[148].mxu1 %v20916_v10  ;;  %18344 = vmatprep.mubr.msk.bf16.mxu0 %vm21890_vm0, %v21889_v1 }
 0x167   : >> { %18404 = vmatprep.mubr.msk.bf16.mxu1 %vm21890_vm0, %v21889_v1 }
 0x168   : >> { %v1084_v17 = vpop.f32.mrb[44].mxu0 }
 0x169   : >> { %v1171_v18 = vadd.f32 %v1084_v17, %v22437_v60  ;;  %v1384_v19 = vpop.f32.mrb[44].mxu1  ;;  %v18086_v20 = vpop.f32.mrb[45].mxu0 }
 0x16a   : >> { %v18146_v24 = vpop.f32.mrb[45].mxu1  ;;  %v1087_v25 = vpop.f32.mrb[46].mxu0 }
 0x16b   : >> { %v22549_v28 = vadd.f32 %v1384_v19, %v1171_v18  ;;  %v1172_v29 = vadd.f32 %v1087_v25, %v22440_v3  ;;  %v1387_v31 = vpop.f32.mrb[46].mxu1  ;;  %v18087_v32 = vpop.f32.mrb[47].mxu0  ;;  %v20919_v3 = vld [vmem:[%s22055_s24 + $0x240] sm:$0xff]   ;;  %v20924_v19 = vld [vmem:[%s22055_s24 + $0x2a8] sm:$0xff]  }
 0x16c   : >> { %v18147_v34 = vpop.f32.mrb[47].mxu1 }
 0x16d   : >> { %v22552_v35 = vadd.f32 %v1387_v31, %v1172_v29  ;;  %18345 = vmatmul.mubr.bf16.gmra.mrb[152].mxu0 %v20917_v22 }
 0x16e   : >> { %18405 = vmatmul.mubr.bf16.gmra.mrb[152].mxu1 %v20918_v26  ;;  %18348 = vmatprep.mubr.msk.bf16.mxu0 %vm21890_vm0, %v21889_v1 }
 0x16f   : >> { %18408 = vmatprep.mubr.msk.bf16.mxu1 %vm21890_vm0, %v21889_v1 }
 0x170   : >> { %v1092_v60 = vpop.f32.mrb[48].mxu0 }
 0x171   : >> { %v1173_v36 = vadd.f32 %v1092_v60, %v22447_v9  ;;  %v1392_v38 = vpop.f32.mrb[48].mxu1  ;;  %v18090_v40 = vpop.f32.mrb[49].mxu0 }
 0x172   : >> { %v18150_v41 = vpop.f32.mrb[49].mxu1  ;;  %v1095_v42 = vpop.f32.mrb[50].mxu0 }
 0x173   : >> { %v22561_v46 = vadd.f32 %v1392_v38, %v1173_v36  ;;  %v1174_v47 = vadd.f32 %v1095_v42, %v22450_v15  ;;  %v1395_v48 = vpop.f32.mrb[50].mxu1  ;;  %v18091_v49 = vpop.f32.mrb[51].mxu0  ;;  %v20921_v15 = vld [vmem:[%s22055_s24 + $0x248] sm:$0xff]   ;;  %v20926_v38 = vld [vmem:[%s22055_s24 + $0x2b0] sm:$0xff]  }
 0x174   : >> { %v18151_v50 = vpop.f32.mrb[51].mxu1 }
 0x175   : >> { %v22564_v53 = vadd.f32 %v1395_v48, %v1174_v47  ;;  %18349 = vmatmul.mubr.bf16.gmra.mrb[156].mxu0 %v20919_v3 }
 0x176   : >> { %18409 = vmatmul.mubr.bf16.gmra.mrb[156].mxu1 %v20920_v43  ;;  %18352 = vmatprep.mubr.msk.bf16.mxu0 %vm21890_vm0, %v21889_v1 }
 0x177   : >> { %18412 = vmatprep.mubr.msk.bf16.mxu1 %vm21890_vm0, %v21889_v1 }
 0x178   : >> { %v1100_v9 = vpop.f32.mrb[52].mxu0 }
 0x179   : >> { %v1175_v54 = vadd.f32 %v1100_v9, %v22457_v21  ;;  %v1400_v55 = vpop.f32.mrb[52].mxu1  ;;  %v18094_v56 = vpop.f32.mrb[53].mxu0 }
 0x17a   : >> { %v18154_v58 = vpop.f32.mrb[53].mxu1  ;;  %v1103_v61 = vpop.f32.mrb[54].mxu0 }
 0x17b   : >> { %v22573_v63 = vadd.f32 %v1400_v55, %v1175_v54  ;;  %v1176_v2 = vadd.f32 %v1103_v61, %v22460_v27  ;;  %v1403_v4 = vpop.f32.mrb[54].mxu1  ;;  %v18095_v6 = vpop.f32.mrb[55].mxu0  ;;  %v20923_v27 = vld [vmem:[%s22055_s24 + $0x250] sm:$0xff]   ;;  %v20928_v55 = vld [vmem:[%s22055_s24 + $0x2b8] sm:$0xff]  }
 0x17c   : >> { %v18155_v7 = vpop.f32.mrb[55].mxu1 }
 0x17d   : >> { %v22576_v10 = vadd.f32 %v1403_v4, %v1176_v2  ;;  %18353 = vmatmul.mubr.bf16.gmra.mrb[160].mxu0 %v20921_v15 }
 0x17e   : >> { %18413 = vmatmul.mubr.bf16.gmra.mrb[160].mxu1 %v20922_v62  ;;  %18356 = vmatprep.mubr.msk.bf16.mxu0 %vm21890_vm0, %v21889_v1 }
 0x17f   : >> { %18416 = vmatprep.mubr.msk.bf16.mxu1 %vm21890_vm0, %v21889_v1 }
 0x180   : >> { %v1108_v21 = vpop.f32.mrb[56].mxu0 }
 0x181   : >> { %v1177_v11 = vadd.f32 %v1108_v21, %v22467_v33  ;;  %v1408_v12 = vpop.f32.mrb[56].mxu1  ;;  %v18098_v14 = vpop.f32.mrb[57].mxu0 }
 0x182   : >> { %v18158_v17 = vpop.f32.mrb[57].mxu1  ;;  %v1111_v18 = vpop.f32.mrb[58].mxu0 }
 0x183   : >> { %v22585_v20 = vadd.f32 %v1408_v12, %v1177_v11  ;;  %v1178_v22 = vadd.f32 %v1111_v18, %v22470_v39  ;;  %v1411_v24 = vpop.f32.mrb[58].mxu1  ;;  %v18099_v25 = vpop.f32.mrb[59].mxu0  ;;  %v20925_v39 = vld [vmem:[%s22055_s24 + $0x258] sm:$0xff]  }
 0x184   : >> { %v18159_v26 = vpop.f32.mrb[59].mxu1 }
 0x185   : >> { %v22588_v29 = vadd.f32 %v1411_v24, %v1178_v22  ;;  %18357 = vmatmul.mubr.bf16.gmra.mrb[164].mxu0 %v20923_v27 }
 0x186   : >> { %18417 = vmatmul.mubr.bf16.gmra.mrb[164].mxu1 %v20924_v19  ;;  %18360 = vmatprep.mubr.msk.bf16.mxu0 %vm21890_vm0, %v21889_v1 }
 0x187   : >> { %18420 = vmatprep.mubr.msk.bf16.mxu1 %vm21890_vm0, %v21889_v1 }
 0x188   : >> { %v1116_v33 = vpop.f32.mrb[60].mxu0 }
 0x189   : >> { %v1179_v31 = vadd.f32 %v1116_v33, %v22477_v45  ;;  %v1416_v32 = vpop.f32.mrb[60].mxu1  ;;  %v18102_v34 = vpop.f32.mrb[61].mxu0 }
 0x18a   : >> { %v18162_v60 = vpop.f32.mrb[61].mxu1  ;;  %v1119_v36 = vpop.f32.mrb[62].mxu0 }
 0x18b   : >> { %v22597_v40 = vadd.f32 %v1416_v32, %v1179_v31  ;;  %v1180_v3 = vadd.f32 %v1119_v36, %v22480_v51  ;;  %v1419_v41 = vpop.f32.mrb[62].mxu1  ;;  %v18103_v42 = vpop.f32.mrb[63].mxu0  ;;  %v20927_v51 = vld [vmem:[%s22055_s24 + $0x260] sm:$0xff]  }
 0x18c   : >> { %v18163_v43 = vpop.f32.mrb[63].mxu1 }
 0x18d   : >> { %v22600_v47 = vadd.f32 %v1419_v41, %v1180_v3  ;;  %18361 = vmatmul.mubr.bf16.gmra.mrb[168].mxu0 %v20925_v39 }
 0x18e   : >> { %18421 = vmatmul.mubr.bf16.gmra.mrb[168].mxu1 %v20926_v38  ;;  %18364 = vmatprep.mubr.msk.bf16.mxu0 %vm21890_vm0, %v21889_v1 }
 0x18f   : >> { %18424 = vmatprep.mubr.msk.bf16.mxu1 %vm21890_vm0, %v21889_v1 }
 0x190   : >> { %v1124_v45 = vpop.f32.mrb[64].mxu0 }
 0x191   : >> { %v1181_v48 = vadd.f32 %v1124_v45, %v22487_v57  ;;  %v1424_v49 = vpop.f32.mrb[64].mxu1  ;;  %v18106_v50 = vpop.f32.mrb[65].mxu0 }
 0x192   : >> { %v18166_v9 = vpop.f32.mrb[65].mxu1  ;;  %v1127_v54 = vpop.f32.mrb[66].mxu0 }
 0x193   : >> { %v22609_v56 = vadd.f32 %v1424_v49, %v1181_v48  ;;  %v1182_v15 = vadd.f32 %v1127_v54, %v22490_v0  ;;  %v1427_v58 = vpop.f32.mrb[66].mxu1  ;;  %v18107_v61 = vpop.f32.mrb[67].mxu0 }
 0x194   : >> { %v18167_v62 = vpop.f32.mrb[67].mxu1 }
 0x195   : >> { %v22612_v2 = vadd.f32 %v1427_v58, %v1182_v15  ;;  %18365 = vmatmul.mubr.bf16.gmra.mrb[172].mxu0 %v20927_v51 }
 0x196   : >> { %18425 = vmatmul.mubr.bf16.gmra.mrb[172].mxu1 %v20928_v55 }
 0x198   : >> { %v1132_v1 = vpop.f32.mrb[68].mxu0 }
 0x199   : >> { %v1183_v57 = vadd.f32 %v1132_v1, %v22497_v8  ;;  %v1432_v4 = vpop.f32.mrb[68].mxu1  ;;  %v18110_v6 = vpop.f32.mrb[69].mxu0 }
 0x19a   : >> { %v18170_v7 = vpop.f32.mrb[69].mxu1  ;;  %v1135_v21 = vpop.f32.mrb[70].mxu0 }
 0x19b   : >> { %v22615_v11 = vadd.f32 %v1432_v4, %v1183_v57  ;;  %v1184_v12 = vadd.f32 %v1135_v21, %v22500_v16  ;;  %v1435_v14 = vpop.f32.mrb[70].mxu1  ;;  %v18111_v0 = vpop.f32.mrb[71].mxu0 }
 0x19c   : >> { %v18171_v27 = vpop.f32.mrb[71].mxu1 }
 0x19d   : >> { %v22618_v17 = vadd.f32 %v1435_v14, %v1184_v12 }
 0x1a0   : >> { %v1140_v18 = vpop.f32.mrb[72].mxu0 }
 0x1a1   : >> { %v1185_v19 = vadd.f32 %v1140_v18, %v22507_v23  ;;  %v1440_v22 = vpop.f32.mrb[72].mxu1  ;;  %v18114_v24 = vpop.f32.mrb[73].mxu0 }
 0x1a2   : >> { %v18174_v25 = vpop.f32.mrb[73].mxu1  ;;  %v1143_v8 = vpop.f32.mrb[74].mxu0 }
 0x1a3   : >> { %v22621_v26 = vadd.f32 %v1440_v22, %v1185_v19  ;;  %v1186_v33 = vadd.f32 %v1143_v8, %v22510_v30  ;;  %v1443_v31 = vpop.f32.mrb[74].mxu1  ;;  %v18115_v32 = vpop.f32.mrb[75].mxu0 }
 0x1a4   : >> { %v18175_v34 = vpop.f32.mrb[75].mxu1 }
 0x1a5   : >> { %v22624_v16 = vadd.f32 %v1443_v31, %v1186_v33 }
 0x1a8   : >> { %v1148_v39 = vpop.f32.mrb[76].mxu0 }
 0x1a9   : >> { %v1187_v60 = vadd.f32 %v1148_v39, %v22517_v37  ;;  %v1448_v36 = vpop.f32.mrb[76].mxu1  ;;  %v18118_v38 = vpop.f32.mrb[77].mxu0 }
 0x1aa   : >> { %v18178_v3 = vpop.f32.mrb[77].mxu1  ;;  %v1151_v23 = vpop.f32.mrb[78].mxu0 }
 0x1ab   : >> { %v22627_v41 = vadd.f32 %v1448_v36, %v1187_v60  ;;  %v1188_v42 = vadd.f32 %v1151_v23, %v22520_v44  ;;  %v1451_v43 = vpop.f32.mrb[78].mxu1  ;;  %v18119_v45 = vpop.f32.mrb[79].mxu0 }
 0x1ac   : >> { %v18179_v48 = vpop.f32.mrb[79].mxu1 }
 0x1ad   : >> { %v22630_v30 = vadd.f32 %v1451_v43, %v1188_v42 }
 0x1b0   : >> { %v1156_v49 = vpop.f32.mrb[80].mxu0 }
 0x1b1   : >> { %v1189_v50 = vadd.f32 %v1156_v49, %v22527_v52  ;;  %v1456_v51 = vpop.f32.mrb[80].mxu1  ;;  %v18122_v9 = vpop.f32.mrb[81].mxu0 }
 0x1b2   : >> { %v18182_v54 = vpop.f32.mrb[81].mxu1  ;;  %v1159_v37 = vpop.f32.mrb[82].mxu0 }
 0x1b3   : >> { %v22633_v55 = vadd.f32 %v1456_v51, %v1189_v50  ;;  %v1190_v15 = vadd.f32 %v1159_v37, %v22530_v59  ;;  %v1459_v58 = vpop.f32.mrb[82].mxu1  ;;  %v18123_v61 = vpop.f32.mrb[83].mxu0 }
 0x1b4   : >> { %v18183_v62 = vpop.f32.mrb[83].mxu1 }
 0x1b5   : >> { %v22636_v44 = vadd.f32 %v1459_v58, %v1190_v15 }
 0x1b8   : >> { %v1164_v1 = vpop.f32.mrb[84].mxu0 }
 0x1b9   : >> { %v1191_v57 = vadd.f32 %v1164_v1, %v22537_v5  ;;  %v1464_v4 = vpop.f32.mrb[84].mxu1  ;;  %v18126_v6 = vpop.f32.mrb[85].mxu0 }
 0x1ba   : >> { %v18186_v7 = vpop.f32.mrb[85].mxu1  ;;  %v1167_v52 = vpop.f32.mrb[86].mxu0 }
 0x1bb   : >> { %v22639_v21 = vadd.f32 %v1464_v4, %v1191_v57  ;;  %v1192_v12 = vadd.f32 %v1167_v52, %v22540_v13  ;;  %v1467_v14 = vpop.f32.mrb[86].mxu1  ;;  %v18127_v0 = vpop.f32.mrb[87].mxu0 }
 0x1bc   : >> { %v18187_v27 = vpop.f32.mrb[87].mxu1 }
 0x1bd   : >> { %v22642_v59 = vadd.f32 %v1467_v14, %v1192_v12 }
 0x1c0   : >> { %v1684_v18 = vpop.f32.mrb[88].mxu0 }
 0x1c1   : >> { %v1771_v19 = vadd.f32 %v1684_v18, %v22549_v28  ;;  %v1984_v22 = vpop.f32.mrb[88].mxu1  ;;  %v18206_v24 = vpop.f32.mrb[89].mxu0 }
 0x1c2   : >> { %v18266_v25 = vpop.f32.mrb[89].mxu1  ;;  %v1687_v5 = vpop.f32.mrb[90].mxu0 }
 0x1c3   : >> { %v22645_v8 = vadd.f32 %v1984_v22, %v1771_v19  ;;  %v1772_v33 = vadd.f32 %v1687_v5, %v22552_v35  ;;  %v1987_v31 = vpop.f32.mrb[90].mxu1  ;;  %v18207_v32 = vpop.f32.mrb[91].mxu0 }
 0x1c4   : >> { %v18267_v34 = vpop.f32.mrb[91].mxu1 }
 0x1c5   : >> { %v22648_v13 = vadd.f32 %v1987_v31, %v1772_v33 }
 0x1c8   : >> { %v1692_v39 = vpop.f32.mrb[92].mxu0 }
 0x1c9   : >> { %v1773_v60 = vadd.f32 %v1692_v39, %v22561_v46  ;;  %v1992_v36 = vpop.f32.mrb[92].mxu1  ;;  %v18210_v38 = vpop.f32.mrb[93].mxu0 }
 0x1ca   : >> { %v18270_v3 = vpop.f32.mrb[93].mxu1  ;;  %v1695_v28 = vpop.f32.mrb[94].mxu0 }
 0x1cb   : >> { %v22651_v23 = vadd.f32 %v1992_v36, %v1773_v60  ;;  %v1774_v42 = vadd.f32 %v1695_v28, %v22564_v53  ;;  %v1995_v43 = vpop.f32.mrb[94].mxu1  ;;  %v18211_v45 = vpop.f32.mrb[95].mxu0 }
 0x1cc   : >> { %v18271_v48 = vpop.f32.mrb[95].mxu1 }
 0x1cd   : >> { %v22654_v35 = vadd.f32 %v1995_v43, %v1774_v42 }
 0x1d0   : >> { %v1700_v49 = vpop.f32.mrb[96].mxu0 }
 0x1d1   : >> { %v1775_v50 = vadd.f32 %v1700_v49, %v22573_v63  ;;  %v2000_v51 = vpop.f32.mrb[96].mxu1  ;;  %v18214_v9 = vpop.f32.mrb[97].mxu0 }
 0x1d2   : >> { %v18274_v54 = vpop.f32.mrb[97].mxu1  ;;  %v1703_v46 = vpop.f32.mrb[98].mxu0 }
 0x1d3   : >> { %v22657_v37 = vadd.f32 %v2000_v51, %v1775_v50  ;;  %v1776_v15 = vadd.f32 %v1703_v46, %v22576_v10  ;;  %v2003_v58 = vpop.f32.mrb[98].mxu1  ;;  %v18215_v61 = vpop.f32.mrb[99].mxu0 }
 0x1d4   : >> { %v18275_v62 = vpop.f32.mrb[99].mxu1 }
 0x1d5   : >> { %v22660_v53 = vadd.f32 %v2003_v58, %v1776_v15 }
 0x1d8   : >> { %v1708_v1 = vpop.f32.mrb[100].mxu0 }
 0x1d9   : >> { %v1777_v57 = vadd.f32 %v1708_v1, %v22585_v20  ;;  %v2008_v4 = vpop.f32.mrb[100].mxu1  ;;  %v18218_v6 = vpop.f32.mrb[101].mxu0 }
 0x1da   : >> { %v18278_v7 = vpop.f32.mrb[101].mxu1  ;;  %v1711_v63 = vpop.f32.mrb[102].mxu0 }
 0x1db   : >> { %v22663_v52 = vadd.f32 %v2008_v4, %v1777_v57  ;;  %v1778_v12 = vadd.f32 %v1711_v63, %v22588_v29  ;;  %v2011_v14 = vpop.f32.mrb[102].mxu1  ;;  %v18219_v0 = vpop.f32.mrb[103].mxu0 }
 0x1dc   : >> { %v18279_v27 = vpop.f32.mrb[103].mxu1 }
 0x1dd   : >> { %v22666_v10 = vadd.f32 %v2011_v14, %v1778_v12 }
 0x1e0   : >> { %v1716_v18 = vpop.f32.mrb[104].mxu0 }
 0x1e1   : >> { %v1779_v19 = vadd.f32 %v1716_v18, %v22597_v40  ;;  %v2016_v22 = vpop.f32.mrb[104].mxu1  ;;  %v18222_v24 = vpop.f32.mrb[105].mxu0 }
 0x1e2   : >> { %v18282_v25 = vpop.f32.mrb[105].mxu1  ;;  %v1719_v20 = vpop.f32.mrb[106].mxu0 }
 0x1e3   : >> { %v22669_v5 = vadd.f32 %v2016_v22, %v1779_v19  ;;  %v1780_v33 = vadd.f32 %v1719_v20, %v22600_v47  ;;  %v2019_v31 = vpop.f32.mrb[106].mxu1  ;;  %v18223_v32 = vpop.f32.mrb[107].mxu0 }
 0x1e4   : >> { %v18283_v34 = vpop.f32.mrb[107].mxu1 }
 0x1e5   : >> { %v22672_v29 = vadd.f32 %v2019_v31, %v1780_v33 }
 0x1e8   : >> { %v1724_v39 = vpop.f32.mrb[108].mxu0 }
 0x1e9   : >> { %v1781_v60 = vadd.f32 %v1724_v39, %v22609_v56  ;;  %v2024_v36 = vpop.f32.mrb[108].mxu1  ;;  %v18226_v38 = vpop.f32.mrb[109].mxu0 }
 0x1ea   : >> { %v18286_v3 = vpop.f32.mrb[109].mxu1  ;;  %v1727_v40 = vpop.f32.mrb[110].mxu0 }
 0x1eb   : >> { %v22675_v28 = vadd.f32 %v2024_v36, %v1781_v60  ;;  %v1782_v42 = vadd.f32 %v1727_v40, %v22612_v2  ;;  %v2027_v43 = vpop.f32.mrb[110].mxu1  ;;  %v18227_v45 = vpop.f32.mrb[111].mxu0 }
 0x1ec   : >> { %v18287_v48 = vpop.f32.mrb[111].mxu1 }
 0x1ed   : >> { %v22678_v47 = vadd.f32 %v2027_v43, %v1782_v42 }
 0x1f0   : >> { %v1732_v49 = vpop.f32.mrb[112].mxu0 }
 0x1f1   : >> { %v1783_v50 = vadd.f32 %v1732_v49, %v22615_v11  ;;  %v2032_v51 = vpop.f32.mrb[112].mxu1  ;;  %v18230_v9 = vpop.f32.mrb[113].mxu0 }
 0x1f2   : >> { %v18290_v54 = vpop.f32.mrb[113].mxu1  ;;  %v1735_v56 = vpop.f32.mrb[114].mxu0 }
 0x1f3   : >> { %v22681_v46 = vadd.f32 %v2032_v51, %v1783_v50  ;;  %v1784_v15 = vadd.f32 %v1735_v56, %v22618_v17  ;;  %v2035_v58 = vpop.f32.mrb[114].mxu1  ;;  %v18231_v61 = vpop.f32.mrb[115].mxu0 }
 0x1f4   : >> { %v18291_v62 = vpop.f32.mrb[115].mxu1 }
 0x1f5   : >> { %v22684_v2 = vadd.f32 %v2035_v58, %v1784_v15 }
 0x1f8   : >> { %v1740_v1 = vpop.f32.mrb[116].mxu0 }
 0x1f9   : >> { %v1785_v57 = vadd.f32 %v1740_v1, %v22621_v26  ;;  %v2040_v4 = vpop.f32.mrb[116].mxu1  ;;  %v18234_v6 = vpop.f32.mrb[117].mxu0 }
 0x1fa   : >> { %v18294_v7 = vpop.f32.mrb[117].mxu1  ;;  %v1743_v11 = vpop.f32.mrb[118].mxu0 }
 0x1fb   : >> { %v22687_v63 = vadd.f32 %v2040_v4, %v1785_v57  ;;  %v1786_v12 = vadd.f32 %v1743_v11, %v22624_v16  ;;  %v2043_v14 = vpop.f32.mrb[118].mxu1  ;;  %v18235_v0 = vpop.f32.mrb[119].mxu0 }
 0x1fc   : >> { %v18295_v27 = vpop.f32.mrb[119].mxu1 }
 0x1fd   : >> { %v22690_v17 = vadd.f32 %v2043_v14, %v1786_v12 }
 0x200   : >> { %v1748_v18 = vpop.f32.mrb[120].mxu0 }
 0x201   : >> { %v1787_v19 = vadd.f32 %v1748_v18, %v22627_v41  ;;  %v2048_v22 = vpop.f32.mrb[120].mxu1  ;;  %v18238_v24 = vpop.f32.mrb[121].mxu0 }
 0x202   : >> { %v18298_v25 = vpop.f32.mrb[121].mxu1  ;;  %v1751_v26 = vpop.f32.mrb[122].mxu0 }
 0x203   : >> { %v22693_v20 = vadd.f32 %v2048_v22, %v1787_v19  ;;  %v1788_v33 = vadd.f32 %v1751_v26, %v22630_v30  ;;  %v2051_v31 = vpop.f32.mrb[122].mxu1  ;;  %v18239_v32 = vpop.f32.mrb[123].mxu0 }
 0x204   : >> { %v18299_v34 = vpop.f32.mrb[123].mxu1 }
 0x205   : >> { %v22696_v16 = vadd.f32 %v2051_v31, %v1788_v33 }
 0x208   : >> { %v1756_v39 = vpop.f32.mrb[124].mxu0 }
 0x209   : >> { %v1789_v60 = vadd.f32 %v1756_v39, %v22633_v55  ;;  %v2056_v36 = vpop.f32.mrb[124].mxu1  ;;  %v18242_v38 = vpop.f32.mrb[125].mxu0 }
 0x20a   : >> { %v18302_v3 = vpop.f32.mrb[125].mxu1  ;;  %v1759_v41 = vpop.f32.mrb[126].mxu0 }
 0x20b   : >> { %v22699_v40 = vadd.f32 %v2056_v36, %v1789_v60  ;;  %v1790_v42 = vadd.f32 %v1759_v41, %v22636_v44  ;;  %v2059_v43 = vpop.f32.mrb[126].mxu1  ;;  %v18243_v45 = vpop.f32.mrb[127].mxu0 }
 0x20c   : >> { %v18303_v48 = vpop.f32.mrb[127].mxu1 }
 0x20d   : >> { %v22702_v30 = vadd.f32 %v2059_v43, %v1790_v42 }
 0x210   : >> { %v1764_v49 = vpop.f32.mrb[128].mxu0 }
 0x211   : >> { %v1791_v50 = vadd.f32 %v1764_v49, %v22639_v21  ;;  %v2064_v51 = vpop.f32.mrb[128].mxu1  ;;  %v18246_v9 = vpop.f32.mrb[129].mxu0  ;;  %v22714_v21 = vld [vmem:[%s26815_s2] ss:$0 sm:$0xff] }
 0x212   : >> { %v18306_v54 = vpop.f32.mrb[129].mxu1  ;;  %v1767_v55 = vpop.f32.mrb[130].mxu0 }
 0x213   : >> { %v22705_v56 = vadd.f32 %v2064_v51, %v1791_v50  ;;  %v1792_v15 = vadd.f32 %v1767_v55, %v22642_v59  ;;  %v2067_v58 = vpop.f32.mrb[130].mxu1  ;;  %v18247_v61 = vpop.f32.mrb[131].mxu0 }
 0x214   : >> { %v18307_v62 = vpop.f32.mrb[131].mxu1 }
 0x215   : >> { %v22708_v44 = vadd.f32 %v2067_v58, %v1792_v15 }
 0x218   : >> { %v2284_v1 = vpop.f32.mrb[132].mxu0 }
 0x219   : >> { %v2371_v57 = vadd.f32 %v2284_v1, %v22645_v8  ;;  %v2584_v4 = vpop.f32.mrb[132].mxu1  ;;  %v18326_v6 = vpop.f32.mrb[133].mxu0 }
 0x21a   : >> { %v18386_v7 = vpop.f32.mrb[133].mxu1  ;;  %v2287_v11 = vpop.f32.mrb[134].mxu0 }
 0x21b   : >> { %v2671_v12 = vadd.f32 %v2584_v4, %v2371_v57  ;;  %v2372_v59 = vadd.f32 %v2287_v11, %v22648_v13  ;;  %v2587_v14 = vpop.f32.mrb[134].mxu1  ;;  %v18327_v0 = vpop.f32.mrb[135].mxu0 }
 0x21c   : >> { %v18387_v27 = vpop.f32.mrb[135].mxu1 }
 0x21d   : >> { %v2700_v18 = vadd.f32 %v22714_v21, %v2671_v12  ;;  %v2672_v19 = vadd.f32 %v2587_v14, %v2372_v59 }
 0x21f   : >> { %v2701_v8 = vadd.f32 %v22714_v21, %v2672_v19  ;;  %v2722_v24 = vmax.f32 %v2700_v18, 0.0 }
 0x220   : >> { %v2292_v22 = vpop.f32.mrb[136].mxu0 }
 0x221   : >> { %v2723_v25 = vmax.f32 %v2701_v8, 0.0  ;;  %v2373_v26 = vadd.f32 %v2292_v22, %v22651_v23  ;;  %v2592_v33 = vpop.f32.mrb[136].mxu1  ;;  %v18330_v31 = vpop.f32.mrb[137].mxu0 }
 0x222   : >> { %v18390_v32 = vpop.f32.mrb[137].mxu1  ;;  %v2295_v34 = vpop.f32.mrb[138].mxu0 }
 0x223   : >> { %v2744_v39 = vpack.c.bf16 %v2723_v25, %v2722_v24  ;;  %v2673_v13 = vadd.f32 %v2592_v33, %v2373_v26  ;;  %v2374_v60 = vadd.f32 %v2295_v34, %v22654_v35  ;;  %v2595_v36 = vpop.f32.mrb[138].mxu1  ;;  %v18331_v38 = vpop.f32.mrb[139].mxu0 }
 0x224   : >> { %v18391_v3 = vpop.f32.mrb[139].mxu1 }
 0x225   : >> { %2758 = vst [vmem:[%s22722_s17] sm:$0xff] %v2744_v39  ;;  %v2702_v41 = vadd.f32 %v22714_v21, %v2673_v13  ;;  %v2674_v42 = vadd.f32 %v2595_v36, %v2374_v60 }
 0x227   : >> { %v2703_v23 = vadd.f32 %v22714_v21, %v2674_v42  ;;  %v2724_v45 = vmax.f32 %v2702_v41, 0.0 }
 0x228   : >> { %v2300_v43 = vpop.f32.mrb[140].mxu0 }
 0x229   : >> { %v2725_v48 = vmax.f32 %v2703_v23, 0.0  ;;  %v2375_v49 = vadd.f32 %v2300_v43, %v22657_v37  ;;  %v2600_v50 = vpop.f32.mrb[140].mxu1  ;;  %v18334_v35 = vpop.f32.mrb[141].mxu0 }
 0x22a   : >> { %v18394_v51 = vpop.f32.mrb[141].mxu1  ;;  %v2303_v9 = vpop.f32.mrb[142].mxu0 }
 0x22b   : >> { %v2745_v54 = vpack.c.bf16 %v2725_v48, %v2724_v45  ;;  %v2675_v55 = vadd.f32 %v2600_v50, %v2375_v49  ;;  %v2376_v15 = vadd.f32 %v2303_v9, %v22660_v53  ;;  %v2603_v58 = vpop.f32.mrb[142].mxu1  ;;  %v18335_v61 = vpop.f32.mrb[143].mxu0 }
 0x22c   : >> { %v18395_v62 = vpop.f32.mrb[143].mxu1 }
 0x22d   : >> { %2759 = vst [vmem:[%s22722_s17 + $0x8] sm:$0xff] %v2745_v54  ;;  %v2704_v1 = vadd.f32 %v22714_v21, %v2675_v55  ;;  %v2676_v57 = vadd.f32 %v2603_v58, %v2376_v15 }
 0x22f   : >> { %v2705_v4 = vadd.f32 %v22714_v21, %v2676_v57  ;;  %v2726_v37 = vmax.f32 %v2704_v1, 0.0 }
 0x230   : >> { %v2308_v6 = vpop.f32.mrb[144].mxu0 }
 0x231   : >> { %v2727_v7 = vmax.f32 %v2705_v4, 0.0  ;;  %v2377_v11 = vadd.f32 %v2308_v6, %v22663_v52  ;;  %v2608_v12 = vpop.f32.mrb[144].mxu1  ;;  %v18338_v59 = vpop.f32.mrb[145].mxu0 }
 0x232   : >> { %v18398_v14 = vpop.f32.mrb[145].mxu1  ;;  %v2311_v0 = vpop.f32.mrb[146].mxu0 }
 0x233   : >> { %v2746_v53 = vpack.c.bf16 %v2727_v7, %v2726_v37  ;;  %v2677_v27 = vadd.f32 %v2608_v12, %v2377_v11  ;;  %v2378_v18 = vadd.f32 %v2311_v0, %v22666_v10  ;;  %v2611_v19 = vpop.f32.mrb[146].mxu1  ;;  %v18339_v8 = vpop.f32.mrb[147].mxu0 }
 0x234   : >> { %v18399_v22 = vpop.f32.mrb[147].mxu1 }
 0x235   : >> { %2760 = vst [vmem:[%s22722_s17 + $0x10] sm:$0xff] %v2746_v53  ;;  %v2706_v24 = vadd.f32 %v22714_v21, %v2677_v27  ;;  %v2678_v25 = vadd.f32 %v2611_v19, %v2378_v18 }
 0x237   : >> { %v2707_v26 = vadd.f32 %v22714_v21, %v2678_v25  ;;  %v2728_v52 = vmax.f32 %v2706_v24, 0.0 }
 0x238   : >> { %v2316_v33 = vpop.f32.mrb[148].mxu0 }
 0x239   : >> { %v2729_v31 = vmax.f32 %v2707_v26, 0.0  ;;  %v2379_v32 = vadd.f32 %v2316_v33, %v22669_v5  ;;  %v2616_v34 = vpop.f32.mrb[148].mxu1  ;;  %v18342_v39 = vpop.f32.mrb[149].mxu0 }
 0x23a   : >> { %v18402_v13 = vpop.f32.mrb[149].mxu1  ;;  %v2319_v60 = vpop.f32.mrb[150].mxu0 }
 0x23b   : >> { %v2747_v10 = vpack.c.bf16 %v2729_v31, %v2728_v52  ;;  %v2679_v36 = vadd.f32 %v2616_v34, %v2379_v32  ;;  %v2380_v38 = vadd.f32 %v2319_v60, %v22672_v29  ;;  %v2619_v3 = vpop.f32.mrb[150].mxu1  ;;  %v18343_v41 = vpop.f32.mrb[151].mxu0 }
 0x23c   : >> { %v18403_v42 = vpop.f32.mrb[151].mxu1 }
 0x23d   : >> { %2761 = vst [vmem:[%s22722_s17 + $0x18] sm:$0xff] %v2747_v10  ;;  %v2708_v23 = vadd.f32 %v22714_v21, %v2679_v36  ;;  %v2680_v43 = vadd.f32 %v2619_v3, %v2380_v38 }
 0x23f   : >> { %v2709_v45 = vadd.f32 %v22714_v21, %v2680_v43  ;;  %v2730_v5 = vmax.f32 %v2708_v23, 0.0 }
 0x240   : >> { %v2324_v48 = vpop.f32.mrb[152].mxu0 }
 0x241   : >> { %v2731_v49 = vmax.f32 %v2709_v45, 0.0  ;;  %v2381_v50 = vadd.f32 %v2324_v48, %v22675_v28  ;;  %v2624_v35 = vpop.f32.mrb[152].mxu1  ;;  %v18346_v51 = vpop.f32.mrb[153].mxu0 }
 0x242   : >> { %v18406_v9 = vpop.f32.mrb[153].mxu1  ;;  %v2327_v54 = vpop.f32.mrb[154].mxu0 }
 0x243   : >> { %v2748_v29 = vpack.c.bf16 %v2731_v49, %v2730_v5  ;;  %v2681_v55 = vadd.f32 %v2624_v35, %v2381_v50  ;;  %v2382_v15 = vadd.f32 %v2327_v54, %v22678_v47  ;;  %v2627_v58 = vpop.f32.mrb[154].mxu1  ;;  %v18347_v61 = vpop.f32.mrb[155].mxu0 }
 0x244   : >> { %v18407_v62 = vpop.f32.mrb[155].mxu1 }
 0x245   : >> { %2762 = vst [vmem:[%s22722_s17 + $0x20] sm:$0xff] %v2748_v29  ;;  %v2710_v1 = vadd.f32 %v22714_v21, %v2681_v55  ;;  %v2682_v57 = vadd.f32 %v2627_v58, %v2382_v15 }
 0x247   : >> { %v2711_v4 = vadd.f32 %v22714_v21, %v2682_v57  ;;  %v2732_v28 = vmax.f32 %v2710_v1, 0.0 }
 0x248   : >> { %v2332_v6 = vpop.f32.mrb[156].mxu0 }
 0x249   : >> { %v2733_v37 = vmax.f32 %v2711_v4, 0.0  ;;  %v2383_v7 = vadd.f32 %v2332_v6, %v22681_v46  ;;  %v2632_v11 = vpop.f32.mrb[156].mxu1  ;;  %v18350_v12 = vpop.f32.mrb[157].mxu0 }
 0x24a   : >> { %v18410_v59 = vpop.f32.mrb[157].mxu1  ;;  %v2335_v14 = vpop.f32.mrb[158].mxu0 }
 0x24b   : >> { %v2749_v47 = vpack.c.bf16 %v2733_v37, %v2732_v28  ;;  %v2683_v0 = vadd.f32 %v2632_v11, %v2383_v7  ;;  %v2384_v53 = vadd.f32 %v2335_v14, %v22684_v2  ;;  %v2635_v27 = vpop.f32.mrb[158].mxu1  ;;  %v18351_v18 = vpop.f32.mrb[159].mxu0 }
 0x24c   : >> { %v18411_v19 = vpop.f32.mrb[159].mxu1 }
 0x24d   : >> { %2763 = vst [vmem:[%s22722_s17 + $0x28] sm:$0xff] %v2749_v47  ;;  %v2712_v8 = vadd.f32 %v22714_v21, %v2683_v0  ;;  %v2684_v22 = vadd.f32 %v2635_v27, %v2384_v53 }
 0x24f   : >> { %v2713_v24 = vadd.f32 %v22714_v21, %v2684_v22  ;;  %v2734_v46 = vmax.f32 %v2712_v8, 0.0 }
 0x250   : >> { %v2340_v25 = vpop.f32.mrb[160].mxu0 }
 0x251   : >> { %v2735_v26 = vmax.f32 %v2713_v24, 0.0  ;;  %v2385_v33 = vadd.f32 %v2340_v25, %v22687_v63  ;;  %v2640_v52 = vpop.f32.mrb[160].mxu1  ;;  %v18354_v31 = vpop.f32.mrb[161].mxu0 }
 0x252   : >> { %v18414_v32 = vpop.f32.mrb[161].mxu1  ;;  %v2343_v34 = vpop.f32.mrb[162].mxu0 }
 0x253   : >> { %v2750_v2 = vpack.c.bf16 %v2735_v26, %v2734_v46  ;;  %v2685_v39 = vadd.f32 %v2640_v52, %v2385_v33  ;;  %v2386_v13 = vadd.f32 %v2343_v34, %v22690_v17  ;;  %v2643_v60 = vpop.f32.mrb[162].mxu1  ;;  %v18355_v10 = vpop.f32.mrb[163].mxu0 }
 0x254   : >> { %v18415_v36 = vpop.f32.mrb[163].mxu1 }
 0x255   : >> { %2764 = vst [vmem:[%s22722_s17 + $0x30] sm:$0xff] %v2750_v2  ;;  %v2714_v38 = vadd.f32 %v22714_v21, %v2685_v39  ;;  %v2686_v3 = vadd.f32 %v2643_v60, %v2386_v13 }
 0x257   : >> { %v2715_v41 = vadd.f32 %v22714_v21, %v2686_v3  ;;  %v2736_v63 = vmax.f32 %v2714_v38, 0.0 }
 0x258   : >> { %v2348_v42 = vpop.f32.mrb[164].mxu0 }
 0x259   : >> { %v2737_v23 = vmax.f32 %v2715_v41, 0.0  ;;  %v2387_v43 = vadd.f32 %v2348_v42, %v22693_v20  ;;  %v2648_v45 = vpop.f32.mrb[164].mxu1  ;;  %v18358_v48 = vpop.f32.mrb[165].mxu0 }
 0x25a   : >> { %v18418_v5 = vpop.f32.mrb[165].mxu1  ;;  %v2351_v49 = vpop.f32.mrb[166].mxu0 }
 0x25b   : >> { %v2751_v17 = vpack.c.bf16 %v2737_v23, %v2736_v63  ;;  %v2687_v50 = vadd.f32 %v2648_v45, %v2387_v43  ;;  %v2388_v35 = vadd.f32 %v2351_v49, %v22696_v16  ;;  %v2651_v51 = vpop.f32.mrb[166].mxu1  ;;  %v18359_v9 = vpop.f32.mrb[167].mxu0 }
 0x25c   : >> { %v18419_v54 = vpop.f32.mrb[167].mxu1 }
 0x25d   : >> { %2765 = vst [vmem:[%s22722_s17 + $0x38] sm:$0xff] %v2751_v17  ;;  %v2716_v29 = vadd.f32 %v22714_v21, %v2687_v50  ;;  %v2688_v55 = vadd.f32 %v2651_v51, %v2388_v35 }
 0x25f   : >> { %v2717_v15 = vadd.f32 %v22714_v21, %v2688_v55  ;;  %v2738_v20 = vmax.f32 %v2716_v29, 0.0 }
 0x260   : >> { %v2356_v58 = vpop.f32.mrb[168].mxu0 }
 0x261   : >> { %v2739_v61 = vmax.f32 %v2717_v15, 0.0  ;;  %v2389_v62 = vadd.f32 %v2356_v58, %v22699_v40  ;;  %v2656_v1 = vpop.f32.mrb[168].mxu1  ;;  %v18362_v57 = vpop.f32.mrb[169].mxu0 }
 0x262   : >> { %v18422_v4 = vpop.f32.mrb[169].mxu1  ;;  %v2359_v6 = vpop.f32.mrb[170].mxu0 }
 0x263   : >> { %v2752_v16 = vpack.c.bf16 %v2739_v61, %v2738_v20  ;;  %v2689_v28 = vadd.f32 %v2656_v1, %v2389_v62  ;;  %v2390_v37 = vadd.f32 %v2359_v6, %v22702_v30  ;;  %v2659_v7 = vpop.f32.mrb[170].mxu1  ;;  %v18363_v11 = vpop.f32.mrb[171].mxu0 }
 0x264   : >> { %v18423_v12 = vpop.f32.mrb[171].mxu1 }
 0x265   : >> { %2766 = vst [vmem:[%s22722_s17 + $0x40] sm:$0xff] %v2752_v16  ;;  %v2718_v59 = vadd.f32 %v22714_v21, %v2689_v28  ;;  %v2690_v14 = vadd.f32 %v2659_v7, %v2390_v37 }
 0x267   : >> { %v2719_v47 = vadd.f32 %v22714_v21, %v2690_v14  ;;  %v2740_v40 = vmax.f32 %v2718_v59, 0.0 }
 0x268   : >> { %v2364_v0 = vpop.f32.mrb[172].mxu0 }
 0x269   : >> { %v2741_v53 = vmax.f32 %v2719_v47, 0.0  ;;  %v2391_v27 = vadd.f32 %v2364_v0, %v22705_v56  ;;  %v2664_v18 = vpop.f32.mrb[172].mxu1  ;;  %v18366_v19 = vpop.f32.mrb[173].mxu0 }
 0x26a   : >> { %v18426_v8 = vpop.f32.mrb[173].mxu1  ;;  %v2367_v30 = vpop.f32.mrb[174].mxu0 }
 0x26b   : >> { %v2753_v22 = vpack.c.bf16 %v2741_v53, %v2740_v40  ;;  %v2691_v24 = vadd.f32 %v2664_v18, %v2391_v27  ;;  %v2392_v25 = vadd.f32 %v2367_v30, %v22708_v44  ;;  %v2667_v46 = vpop.f32.mrb[174].mxu1  ;;  %v18367_v26 = vpop.f32.mrb[175].mxu0 }
 0x26c   : >> { %v18427_v33 = vpop.f32.mrb[175].mxu1 }
 0x26d   : >> { %2767 = vst [vmem:[%s22722_s17 + $0x48] sm:$0xff] %v2753_v22  ;;  %v2720_v52 = vadd.f32 %v22714_v21, %v2691_v24  ;;  %v2692_v31 = vadd.f32 %v2667_v46, %v2392_v25 }
 0x26f   : >> { %v2721_v32 = vadd.f32 %v22714_v21, %v2692_v31  ;;  %v2742_v34 = vmax.f32 %v2720_v52, 0.0  ;;  %336 = sbr.rel (!%p334_p11) target bundleno = 28 (0x1c), region = 194 }
 0x271   : >> { %v2743_v56 = vmax.f32 %v2721_v32, 0.0 }
 0x273   : >> { %v2754_v2 = vpack.c.bf16 %v2743_v56, %v2742_v34 }
 0x275   : >> { %2768 = vst [vmem:[%s22722_s17 + $0x50] sm:$0xff] %v2754_v2 }
 0x276 LB: >> { %v20929_v44 = vld [vmem:[%s26816_s3 + $0x40] sm:$0xff]   ;;  %v21891_v21 = vmov 0.0   ;;  %v20931_v13 = vld [vmem:[%s26816_s3 + $0x48] sm:$0xff]   ;;  %vm21892_vm1 = vmmov 0   ;;  %v20933_v10 = vld [vmem:[%s26816_s3 + $0x50] sm:$0xff]   ;;  %s17045_s23 = smul.u32 176, %s21887_s14  ;;  %s21887_s14 = sphi %s22776_s14, %s2774_s14  }
 0x277   : >> { %18428 = vmatprep.subr.bf16.mxu0 %v21891_v21  ;;  %18464 = vmatprep.subr.bf16.mxu1 %v21891_v21  ;;  %v20930_v39 = vld [vmem:[%s26816_s3] sm:$0xff]   ;;  %v20932_v60 = vld [vmem:[%s26816_s3 + $0x8] sm:$0xff]   ;;  %v20934_v36 = vld [vmem:[%s26816_s3 + $0x10] sm:$0xff]   ;;  %vm2829_vm2 = vcmask 1043456   ;;  %s17046_s27 = smul.u32 40, %s21887_s14  ;;  %s2774_s14 = sadd.s32 1, %s21887_s14  }
 0x278   : >> { %18429 = vmatpush3.bf16.msra.mxu0 %v20929_v44  ;;  %18444 = vmatprep.mubr.msk.bf16.mxu0 %vm21892_vm1, %v21891_v21  ;;  %v20935_v38 = vld [vmem:[%s26816_s3 + $0x58] sm:$0xff]   ;;  %v20937_v41 = vld [vmem:[%s26816_s3 + $0x60] sm:$0xff]   ;;  %v20939_v63 = vld [vmem:[%s26816_s3 + $0x68] sm:$0xff]   ;;  %s22840_s17 = scalar_lea.vmem [#allocation2], %s17045_s23  ;;  %p2771_p12 = scmp.ge.s32.totalorder %s2774_s14, 7  }
 0x279   : >> { %18465 = vmatpush3.bf16.msra.mxu1 %v20930_v39  ;;  %18430 = vmatprep.subr.bf16.mxu0 %v21891_v21  ;;  %v20936_v3 = vld [vmem:[%s26816_s3 + $0x18] sm:$0xff]   ;;  %v20938_v42 = vld [vmem:[%s26816_s3 + $0x20] sm:$0xff]   ;;  %v20940_v23 = vld [vmem:[%s26816_s3 + $0x28] sm:$0xff]   ;;  %s23775_s29 = scalar_lea.vmem [#allocation3], %s17046_s27  ;;  %vm6837_vm3 = vcmask (%p2771_p12), 261120   ;;  %s17047_s23 = sshll.u32 (%p2771_p12), %s21966_s13, 9 }
 0x27a   : >> { %18466 = vmatprep.subr.bf16.mxu1 %v21891_v21  ;;  %18480 = vmatprep.mubr.msk.bf16.mxu1 %vm21892_vm1, %v21891_v21  ;;  %v20941_v43 = vld [vmem:[%s26816_s3 + $0x70] sm:$0xff]   ;;  %v20943_v49 = vld [vmem:[%s26816_s3 + $0x78] sm:$0xff]   ;;  %v20945_v9 = vld [vmem:[%s26816_s3 + $0x80] sm:$0xff]   ;;  %s26767_s27 = scalar_lea.hbm (%p2771_p12), %s26822_s9, %s17047_s23  ;;  %s21894_s16 = smov (%p2771_p12), [#allocation4]  }
 0x27b   : >> { %v20942_v45 = vld [vmem:[%s26816_s3 + $0x30] sm:$0xff]   ;;  %v20944_v35 = vld [vmem:[%s26816_s3 + $0x38] sm:$0xff]   ;;  %v20946_v29 = vld [vmem:[%s26816_s3 + $0xc0] sm:$0xff]   ;;  %s21813_s21 = sshll.u32 (%p2771_p12), %s21894_s16, 4  ;;  %s21814_s21 = int_to_ptr.vmem [resolvable:$false] %s21813_s21 }
 0x27c   : >> { %18431 = vmatpush3.bf16.msra.mxu0 %v20931_v13  ;;  %v2800_v48 = vld [vmem:[%s22840_s17 + $0x28] sm:$0xf0]  ;;  %v22845_v5 = vld [vmem:[%s22840_s17 + $0x30] sm:$0xff]  ;;  %v2779_v51 = vld [vmem:[%s22840_s17] sm:$0xff]  ;;  %s21815_s22 = scalar_lea.vmem (%p2771_p12), %s21814_s21, 1024 }
 0x27d   : >> { %18467 = vmatpush3.bf16.msra.mxu1 %v20932_v60  ;;  %18432 = vmatprep.subr.bf16.mxu0 %v21891_v21  ;;  %v2830_v17 = vrot.slane %v2800_v48, 4  ;;  %v2831_v50 = vrot.slane %v22845_v5, 4  ;;  %v22867_v55 = vld [vmem:[%s22840_s17 + $0x38] sm:$0xff]  ;;  %v20947_v15 = vld [vmem:[%s26816_s3 + $0x88] sm:$0xff]   ;;  %v20949_v62 = vld [vmem:[%s26816_s3 + $0x90] sm:$0xff]  }
 0x27e   : >> { %18468 = vmatprep.subr.bf16.mxu1 %v21891_v21  ;;  %v2833_v58 = vrot.slane %v22867_v55, 4  ;;  %v20948_v20 = vld [vmem:[%s26816_s3 + $0xc8] sm:$0xff]   ;;  %v20950_v57 = vld [vmem:[%s26816_s3 + $0xd0] sm:$0xff]   ;;  %v22895_v4 = vld [vmem:[%s22840_s17 + $0x40] sm:$0xff] }
 0x27f   : >> { %v2832_v54 = vsel %vm2829_vm2, %v2830_v17, %v2831_v50  ;;  %v22884_v61 = vld [vmem:[%s22840_s17 + $0x8] sm:$0xff]  ;;  %v2835_v6 = vrot.slane %v22895_v4, 4  ;;  %v20951_v16 = vld [vmem:[%s26816_s3 + $0x98] sm:$0xff]   ;;  %v22912_v37 = vld [vmem:[%s22840_s17 + $0x10] sm:$0xff] }
 0x280   : >> { %18433 = vmatpush3.bf16.msra.mxu0 %v20933_v10  ;;  %v2834_v1 = vsel %vm2829_vm2, %v2831_v50, %v2833_v58  ;;  %v20952_v28 = vld [vmem:[%s26816_s3 + $0xd8] sm:$0xff]   ;;  %v20953_v11 = vld [vmem:[%s26816_s3 + $0xa0] sm:$0xff]   ;;  %v22921_v12 = vld [vmem:[%s22840_s17 + $0x48] sm:$0xff]  ;;  %v3118_v33 = vrot.slane %v22884_v61, 4  ;;  %v3120_v56 = vrot.slane %v22912_v37, 4 }
 0x281   : >> { %18469 = vmatpush3.bf16.msra.mxu1 %v20934_v36  ;;  %18434 = vmatprep.subr.bf16.mxu0 %v21891_v21  ;;  %v2836_v7 = vsel %vm2829_vm2, %v2833_v58, %v2835_v6  ;;  %v20954_v59 = vld [vmem:[%s26816_s3 + $0xe0] sm:$0xff]   ;;  %v2837_v14 = vrot.slane %v22921_v12, 4  ;;  %v20955_v47 = vld [vmem:[%s26816_s3 + $0xa8] sm:$0xff]   ;;  %v22941_v40 = vld [vmem:[%s22840_s17 + $0x18] sm:$0xff] }
 0x282   : >> { %18470 = vmatprep.subr.bf16.mxu1 %v21891_v21  ;;  %v20956_v0 = vld [vmem:[%s26816_s3 + $0xe8] sm:$0xff]   ;;  %v20957_v27 = vld [vmem:[%s26816_s3 + $0xb0] sm:$0xff]   ;;  %v20959_v30 = vld [vmem:[%s26816_s3 + $0xb8] sm:$0xff]   ;;  %v3121_v44 = vsel %vm2829_vm2, %v3118_v33, %v3120_v56  ;;  %v3122_v60 = vrot.slane %v22941_v40, 4 }
 0x283   : >> { %v2838_v53 = vsel %vm2829_vm2, %v2835_v6, %v2837_v14  ;;  %v2805_v18 = vld [vmem:[%s22840_s17 + $0x50] sm:$0xf]  ;;  %v20960_v22 = vld [vmem:[%s26816_s3 + $0xf8] sm:$0xff]   ;;  %v22969_v25 = vld [vmem:[%s22840_s17 + $0x20] sm:$0xff] }
 0x284   : >> { %18435 = vmatpush3.bf16.msra.mxu0 %v20935_v38  ;;  %v20958_v19 = vld [vmem:[%s26816_s3 + $0xf0] sm:$0xff]   ;;  %v2839_v8 = vrot.slane %v2805_v18, 4  ;;  %v3088_v46 = vld [vmem:[%s22840_s17] sm:$0xf0]  ;;  %v20963_v34 = vld [vmem:[%s26816_s3 + $0x108] sm:$0xff]   ;;  %v3123_v38 = vsel %vm2829_vm2, %v3120_v56, %v3122_v60 }
 0x285   : >> { %18471 = vmatpush3.bf16.msra.mxu1 %v20936_v3  ;;  %18436 = vmatprep.subr.bf16.mxu0 %v21891_v21  ;;  %v3117_v26 = vrot.slane %v3088_v46, 4  ;;  %v20961_v31 = vld [vmem:[%s26816_s3 + $0x100] sm:$0xff]   ;;  %v20964_v2 = vld [vmem:[%s26816_s3 + $0x148] sm:$0xff]   ;;  %v20965_v39 = vld [vmem:[%s26816_s3 + $0x110] sm:$0xff]  }
 0x286   : >> { %18472 = vmatprep.subr.bf16.mxu1 %v21891_v21  ;;  %v2840_v24 = vsel %vm2829_vm2, %v2837_v14, %v2839_v8  ;;  %v20962_v32 = vld [vmem:[%s26816_s3 + $0x140] sm:$0xff]   ;;  %v20966_v13 = vld [vmem:[%s26816_s3 + $0x150] sm:$0xff]   ;;  %v20967_v10 = vld [vmem:[%s26816_s3 + $0x118] sm:$0xff]  }
 0x287   : >> { %v3119_v52 = vsel %vm2829_vm2, %v3117_v26, %v3118_v33  ;;  %v20968_v36 = vld [vmem:[%s26816_s3 + $0x158] sm:$0xff]   ;;  %v20969_v3 = vld [vmem:[%s26816_s3 + $0x120] sm:$0xff]   ;;  %v3093_v48 = vld [vmem:[%s22840_s17 + $0x28] sm:$0xf] }
 0x288   : >> { %18437 = vmatpush3.bf16.msra.mxu0 %v20937_v41  ;;  %v20970_v41 = vld [vmem:[%s26816_s3 + $0x160] sm:$0xff]   ;;  %v20975_v17 = vld [vmem:[%s26816_s3 + $0x138] sm:$0xff]   ;;  %v23136_v14 = vld [vmem:[%s22840_s17 + $0x68] sm:$0xff] }
 0x289   : >> { %18473 = vmatpush3.bf16.msra.mxu1 %v20938_v42  ;;  %18438 = vmatprep.subr.bf16.mxu0 %v21891_v21  ;;  %v3124_v42 = vrot.slane %v22969_v25, 4  ;;  %v20976_v50 = vld [vmem:[%s26816_s3 + $0x178] sm:$0xff]   ;;  %v20977_v58 = vld [vmem:[%s26816_s3 + $0x180] sm:$0xff]   ;;  %v23165_v8 = vld [vmem:[%s22840_s17 + $0x70] sm:$0xff] }
 0x28a   : >> { %18474 = vmatprep.subr.bf16.mxu1 %v21891_v21  ;;  %v23107_v6 = vld [vmem:[%s22840_s17 + $0x60] sm:$0xff]  ;;  %v20991_v26 = vld [vmem:[%s26816_s3 + $0x1b8] sm:$0xff]  }
 0x28b   : >> { %v20992_v33 = vld [vmem:[%s26816_s3 + $0x1f8] sm:$0xff]   ;;  %v3776_v56 = vrot.slane %v23107_v6, 4 }
 0x28c   : >> { %18439 = vmatpush3.bf16.msra.mxu0 %v20939_v63  ;;  %v20971_v63 = vld [vmem:[%s26816_s3 + $0x128] sm:$0xff]  }
 0x28d   : >> { %18475 = vmatpush3.bf16.msra.mxu1 %v20940_v23  ;;  %18440 = vmatprep.subr.bf16.mxu0 %v21891_v21  ;;  %v20972_v23 = vld [vmem:[%s26816_s3 + $0x168] sm:$0xff]  }
 0x28e   : >> { %18476 = vmatprep.subr.bf16.mxu1 %v21891_v21 }
 0x290   : >> { %18441 = vmatpush3.bf16.msra.mxu0 %v20941_v43  ;;  %v3125_v43 = vsel %vm2829_vm2, %v3122_v60, %v3124_v42  ;;  %v3778_v60 = vrot.slane %v23136_v14, 4 }
 0x291   : >> { %18477 = vmatpush3.bf16.msra.mxu1 %v20942_v45  ;;  %18442 = vmatprep.subr.bf16.mxu0 %v21891_v21  ;;  %v20973_v45 = vld [vmem:[%s26816_s3 + $0x130] sm:$0xff]  }
 0x292   : >> { %18478 = vmatprep.subr.bf16.mxu1 %v21891_v21 }
 0x294   : >> { %18443 = vmatpush3.bf16.msra.mxu0 %v20943_v49  ;;  %v3126_v49 = vrot.slane %v3093_v48, 4 }
 0x295   : >> { %18479 = vmatpush3.bf16.msra.mxu1 %v20944_v35  ;;  %18500 = vmatprep.subr.bf16.mxu0 %v21891_v21 }
 0x296   : >> { %18536 = vmatprep.subr.bf16.mxu1 %v21891_v21  ;;  %v3127_v35 = vsel %vm2829_vm2, %v3124_v42, %v3126_v49  ;;  %v20999_v42 = vld [vmem:[%s26816_s3 + $0x218] sm:$0xff]   ;;  %v21004_v49 = vld [vmem:[%s26816_s3 + $0x268] sm:$0xff]  }
 0x297   : >> { %18445 = vmatmul.mubr.bf16.vlgmr.msra.gmra.mrb[0].mxu0 %v2832_v54  ;;  %v23074_v54 = vld [vmem:[%s22840_s17 + $0x88] sm:$0xff] }
 0x298   : >> { %18481 = vmatmul.mubr.bf16.vlgmr.msra.gmra.mrb[0].mxu1 %v2779_v51  ;;  %18501 = vmatpush3.bf16.msra.mxu0 %v20945_v9  ;;  %v3264_v51 = vld [vmem:[%s22840_s17 + $0x50] sm:$0xff]  ;;  %v15806_v9 = vld [vmem:[%s22840_s17 + $0x80] sm:$0xf0] }
 0x299   : >> { %18537 = vmatpush3.bf16.msra.mxu1 %v20946_v29  ;;  %18502 = vmatprep.subr.bf16.mxu0 %v21891_v21  ;;  %v3599_v29 = vrot.slane %v15806_v9, 4 }
 0x29a   : >> { %18448 = vmatprep.mubr.msk.bf16.mxu0 %vm21892_vm1, %v21891_v21  ;;  %18484 = vmatprep.mubr.msk.bf16.mxu1 %vm21892_vm1, %v21891_v21 }
 0x29b   : >> { %18538 = vmatprep.subr.bf16.mxu1 %v21891_v21 }
 0x29c   : >> { %18503 = vmatpush3.bf16.msra.mxu0 %v20947_v15  ;;  %v15777_v15 = vld [vmem:[%s22840_s17 + $0x58] sm:$0xff] }
 0x29d   : >> { %18539 = vmatpush3.bf16.msra.mxu1 %v20948_v20  ;;  %18504 = vmatprep.subr.bf16.mxu0 %v21891_v21  ;;  %v20978_v20 = vld [vmem:[%s26816_s3 + $0x1c0] sm:$0xff]  }
 0x29e   : >> { %18540 = vmatprep.subr.bf16.mxu1 %v21891_v21 }
 0x29f   : >> { %18449 = vmatmul.mubr.bf16.gmra.mrb[4].mxu0 %v2834_v1  ;;  %v20979_v1 = vld [vmem:[%s26816_s3 + $0x188] sm:$0xff]  }
 0x2a0   : >> { %18485 = vmatmul.mubr.bf16.gmra.mrb[4].mxu1 %v22884_v61  ;;  %18505 = vmatpush3.bf16.msra.mxu0 %v20949_v62  ;;  %v23092_v62 = vld [vmem:[%s22840_s17 + $0x90] sm:$0xff] }
 0x2a1   : >> { %18541 = vmatpush3.bf16.msra.mxu1 %v20950_v57  ;;  %18452 = vmatprep.mubr.msk.bf16.mxu0 %vm21892_vm1, %v21891_v21  ;;  %v3602_v57 = vrot.slane %v23092_v62, 4 }
 0x2a2   : >> { %18488 = vmatprep.mubr.msk.bf16.mxu1 %vm21892_vm1, %v21891_v21  ;;  %18506 = vmatprep.subr.bf16.mxu0 %v21891_v21 }
 0x2a3   : >> { %18542 = vmatprep.subr.bf16.mxu1 %v21891_v21 }
 0x2a4   : >> { %18507 = vmatpush3.bf16.msra.mxu0 %v20951_v16  ;;  %v20981_v16 = vld [vmem:[%s26816_s3 + $0x190] sm:$0xff]  }
 0x2a5   : >> { %18543 = vmatpush3.bf16.msra.mxu1 %v20952_v28  ;;  %18508 = vmatprep.subr.bf16.mxu0 %v21891_v21  ;;  %v20982_v28 = vld [vmem:[%s26816_s3 + $0x1d0] sm:$0xff]  }
 0x2a6   : >> { %18544 = vmatprep.subr.bf16.mxu1 %v21891_v21 }
 0x2a7   : >> { %18453 = vmatmul.mubr.bf16.gmra.mrb[8].mxu0 %v2836_v7  ;;  %v23119_v7 = vld [vmem:[%s22840_s17 + $0x98] sm:$0xff] }
 0x2a8   : >> { %18489 = vmatmul.mubr.bf16.gmra.mrb[8].mxu1 %v22912_v37  ;;  %18509 = vmatpush3.bf16.msra.mxu0 %v20953_v11  ;;  %v3604_v11 = vrot.slane %v23119_v7, 4 }
 0x2a9   : >> { %18456 = vmatprep.mubr.msk.bf16.mxu0 %vm21892_vm1, %v21891_v21  ;;  %18492 = vmatprep.mubr.msk.bf16.mxu1 %vm21892_vm1, %v21891_v21 }
 0x2aa   : >> { %18545 = vmatpush3.bf16.msra.mxu1 %v20954_v59  ;;  %18510 = vmatprep.subr.bf16.mxu0 %v21891_v21  ;;  %v20984_v59 = vld [vmem:[%s26816_s3 + $0x1d8] sm:$0xff]  }
 0x2ab   : >> { %18546 = vmatprep.subr.bf16.mxu1 %v21891_v21 }
 0x2ac   : >> { %18511 = vmatpush3.bf16.msra.mxu0 %v20955_v47  ;;  %v20985_v47 = vld [vmem:[%s26816_s3 + $0x1a0] sm:$0xff]  }
 0x2ad   : >> { %18512 = vmatprep.subr.bf16.mxu0 %v21891_v21 }
 0x2ae   : >> { %18547 = vmatpush3.bf16.msra.mxu1 %v20956_v0  ;;  %v3605_v0 = vsel %vm2829_vm2, %v3602_v57, %v3604_v11 }
 0x2af   : >> { %18457 = vmatmul.mubr.bf16.gmra.mrb[12].mxu0 %v2838_v53  ;;  %18548 = vmatprep.subr.bf16.mxu1 %v21891_v21  ;;  %v20986_v53 = vld [vmem:[%s26816_s3 + $0x1e0] sm:$0xff]  }
 0x2b0   : >> { %18493 = vmatmul.mubr.bf16.gmra.mrb[12].mxu1 %v22941_v40  ;;  %18460 = vmatprep.mubr.msk.bf16.mxu0 %vm21892_vm1, %v21891_v21  ;;  %v23145_v40 = vld [vmem:[%s22840_s17 + $0xa0] sm:$0xff] }
 0x2b1   : >> { %18496 = vmatprep.mubr.msk.bf16.mxu1 %vm21892_vm1, %v21891_v21  ;;  %18513 = vmatpush3.bf16.msra.mxu0 %v20957_v27  ;;  %v20987_v27 = vld [vmem:[%s26816_s3 + $0x1a8] sm:$0xff]   ;;  %v3606_v18 = vrot.slane %v23145_v40, 4 }
 0x2b2   : >> { %18549 = vmatpush3.bf16.msra.mxu1 %v20958_v19  ;;  %18514 = vmatprep.subr.bf16.mxu0 %v21891_v21  ;;  %v20988_v19 = vld [vmem:[%s26816_s3 + $0x1e8] sm:$0xff]  }
 0x2b3   : >> { %18550 = vmatprep.subr.bf16.mxu1 %v21891_v21 }
 0x2b5   : >> { %18515 = vmatpush3.bf16.msra.mxu0 %v20959_v30  ;;  %v20989_v30 = vld [vmem:[%s26816_s3 + $0x1b0] sm:$0xff]  }
 0x2b6   : >> { %18551 = vmatpush3.bf16.msra.mxu1 %v20960_v22  ;;  %18572 = vmatprep.subr.bf16.mxu0 %v21891_v21  ;;  %v3607_v22 = vsel %vm2829_vm2, %v3604_v11, %v3606_v18  ;;  %v23332_v11 = vld [vmem:[%s22840_s17 + $0xb8] sm:$0xff] }
 0x2b7   : >> { %18461 = vmatmul.mubr.bf16.gmra.mrb[16].mxu0 %v2840_v24  ;;  %18608 = vmatprep.subr.bf16.mxu1 %v21891_v21  ;;  %v15811_v24 = vld [vmem:[%s22840_s17 + $0xa8] sm:$0xf] }
 0x2b8   : >> { %18497 = vmatmul.mubr.bf16.gmra.mrb[16].mxu1 %v22969_v25  ;;  %18516 = vmatprep.mubr.msk.bf16.mxu0 %vm21892_vm1, %v21891_v21  ;;  %v20990_v25 = vld [vmem:[%s26816_s3 + $0x1f0] sm:$0xff]   ;;  %v3608_v46 = vrot.slane %v15811_v24, 4 }
 0x2b9   : >> { %18552 = vmatprep.mubr.msk.bf16.mxu1 %vm21892_vm1, %v21891_v21 }
 0x2bf   : >> { %18517 = vmatmul.mubr.bf16.vlgmr.msra.gmra.mrb[20].mxu0 %v3119_v52  ;;  %v23192_v52 = vld [vmem:[%s22840_s17 + $0x78] sm:$0xff] }
 0x2c0   : >> { %18553 = vmatmul.mubr.bf16.vlgmr.msra.gmra.mrb[20].mxu1 %v22845_v5  ;;  %18573 = vmatpush3.bf16.msra.mxu0 %v20961_v31  ;;  %v20974_v5 = vld [vmem:[%s26816_s3 + $0x170] sm:$0xff]   ;;  %v3609_v31 = vsel %vm2829_vm2, %v3606_v18, %v3608_v46  ;;  %v3782_v48 = vrot.slane %v23192_v52, 4  ;;  %v21017_v18 = vld [vmem:[%s26816_s3 + $0x2a0] sm:$0xff]   ;;  %v23390_v46 = vld [vmem:[%s22840_s17 + $0xc8] sm:$0xff] }
 0x2c1   : >> { %18609 = vmatpush3.bf16.msra.mxu1 %v20962_v32  ;;  %18574 = vmatprep.subr.bf16.mxu0 %v21891_v21  ;;  %v15836_v32 = vld [vmem:[%s22840_s17 + $0x58] sm:$0xf0] }
 0x2c2   : >> { %18520 = vmatprep.mubr.msk.bf16.mxu0 %vm21892_vm1, %v21891_v21  ;;  %18556 = vmatprep.mubr.msk.bf16.mxu1 %vm21892_vm1, %v21891_v21 }
 0x2c3   : >> { %18610 = vmatprep.subr.bf16.mxu1 %v21891_v21 }
 0x2c4   : >> { %18575 = vmatpush3.bf16.msra.mxu0 %v20963_v34  ;;  %v3775_v34 = vrot.slane %v15836_v32, 4 }
 0x2c5   : >> { %18611 = vmatpush3.bf16.msra.mxu1 %v20964_v2  ;;  %18576 = vmatprep.subr.bf16.mxu0 %v21891_v21 }
 0x2c6   : >> { %18612 = vmatprep.subr.bf16.mxu1 %v21891_v21  ;;  %v3777_v2 = vsel %vm2829_vm2, %v3775_v34, %v3776_v56  ;;  %v21023_v34 = vld [vmem:[%s26816_s3 + $0x2b8] sm:$0xff]  }
 0x2c7   : >> { %18521 = vmatmul.mubr.bf16.gmra.mrb[24].mxu0 %v3121_v44  ;;  %v20993_v44 = vld [vmem:[%s26816_s3 + $0x200] sm:$0xff]  }
 0x2c8   : >> { %18557 = vmatmul.mubr.bf16.gmra.mrb[24].mxu1 %v22867_v55  ;;  %18577 = vmatpush3.bf16.msra.mxu0 %v20965_v39  ;;  %v3600_v55 = vrot.slane %v23074_v54, 4  ;;  %v20994_v39 = vld [vmem:[%s26816_s3 + $0x240] sm:$0xff]  }
 0x2c9   : >> { %18613 = vmatpush3.bf16.msra.mxu1 %v20966_v13  ;;  %18524 = vmatprep.mubr.msk.bf16.mxu0 %vm21892_vm1, %v21891_v21  ;;  %v20995_v13 = vld [vmem:[%s26816_s3 + $0x208] sm:$0xff]  }
 0x2ca   : >> { %18560 = vmatprep.mubr.msk.bf16.mxu1 %vm21892_vm1, %v21891_v21  ;;  %18578 = vmatprep.subr.bf16.mxu0 %v21891_v21  ;;  %v3601_v61 = vsel %vm2829_vm2, %v3599_v29, %v3600_v55  ;;  %v3603_v37 = vsel %vm2829_vm2, %v3600_v55, %v3602_v57  ;;  %v21008_v29 = vld [vmem:[%s26816_s3 + $0x278] sm:$0xff]   ;;  %v21009_v57 = vld [vmem:[%s26816_s3 + $0x280] sm:$0xff]  }
 0x2cb   : >> { %18614 = vmatprep.subr.bf16.mxu1 %v21891_v21 }
 0x2cc   : >> { %18579 = vmatpush3.bf16.msra.mxu0 %v20967_v10  ;;  %v20996_v10 = vld [vmem:[%s26816_s3 + $0x248] sm:$0xff]  }
 0x2cd   : >> { %18615 = vmatpush3.bf16.msra.mxu1 %v20968_v36  ;;  %18580 = vmatprep.subr.bf16.mxu0 %v21891_v21  ;;  %v3779_v36 = vsel %vm2829_vm2, %v3776_v56, %v3778_v60  ;;  %v21024_v56 = vld [vmem:[%s26816_s3 + $0x2f8] sm:$0xff]  }
 0x2ce   : >> { %18616 = vmatprep.subr.bf16.mxu1 %v21891_v21 }
 0x2cf   : >> { %18525 = vmatmul.mubr.bf16.gmra.mrb[28].mxu0 %v3123_v38  ;;  %v20997_v38 = vld [vmem:[%s26816_s3 + $0x210] sm:$0xff]  }
 0x2d0   : >> { %18561 = vmatmul.mubr.bf16.gmra.mrb[28].mxu1 %v22895_v4  ;;  %18581 = vmatpush3.bf16.msra.mxu0 %v20969_v3  ;;  %v20980_v4 = vld [vmem:[%s26816_s3 + $0x1c8] sm:$0xff]   ;;  %v20998_v3 = vld [vmem:[%s26816_s3 + $0x250] sm:$0xff]  }
 0x2d1   : >> { %18528 = vmatprep.mubr.msk.bf16.mxu0 %vm21892_vm1, %v21891_v21  ;;  %18564 = vmatprep.mubr.msk.bf16.mxu1 %vm21892_vm1, %v21891_v21 }
 0x2d2   : >> { %18617 = vmatpush3.bf16.msra.mxu1 %v20970_v41  ;;  %18582 = vmatprep.subr.bf16.mxu0 %v21891_v21  ;;  %v3780_v41 = vrot.slane %v23165_v8, 4 }
 0x2d3   : >> { %18618 = vmatprep.subr.bf16.mxu1 %v21891_v21 }
 0x2d4   : >> { %18583 = vmatpush3.bf16.msra.mxu0 %v20971_v63  ;;  %v21000_v63 = vld [vmem:[%s26816_s3 + $0x258] sm:$0xff]  }
 0x2d5   : >> { %18584 = vmatprep.subr.bf16.mxu0 %v21891_v21 }
 0x2d6   : >> { %18619 = vmatpush3.bf16.msra.mxu1 %v20972_v23  ;;  %v3781_v23 = vsel %vm2829_vm2, %v3778_v60, %v3780_v41  ;;  %v4434_v60 = vrot.slane %v23332_v11, 4 }
 0x2d7   : >> { %18529 = vmatmul.mubr.bf16.gmra.mrb[32].mxu0 %v3125_v43  ;;  %18620 = vmatprep.subr.bf16.mxu1 %v21891_v21  ;;  %v21001_v43 = vld [vmem:[%s26816_s3 + $0x220] sm:$0xff]  }
 0x2d8   : >> { %18565 = vmatmul.mubr.bf16.gmra.mrb[32].mxu1 %v22921_v12  ;;  %18532 = vmatprep.mubr.msk.bf16.mxu0 %vm21892_vm1, %v21891_v21  ;;  %v20983_v12 = vld [vmem:[%s26816_s3 + $0x198] sm:$0xff]  }
 0x2d9   : >> { %18568 = vmatprep.mubr.msk.bf16.mxu1 %vm21892_vm1, %v21891_v21  ;;  %18585 = vmatpush3.bf16.msra.mxu0 %v20973_v45  ;;  %v21002_v45 = vld [vmem:[%s26816_s3 + $0x260] sm:$0xff]  }
 0x2da   : >> { %18621 = vmatpush3.bf16.msra.mxu1 %v20974_v5  ;;  %18586 = vmatprep.subr.bf16.mxu0 %v21891_v21  ;;  %v21003_v5 = vld [vmem:[%s26816_s3 + $0x228] sm:$0xff]  }
 0x2db   : >> { %18622 = vmatprep.subr.bf16.mxu1 %v21891_v21 }
 0x2dd   : >> { %18587 = vmatpush3.bf16.msra.mxu0 %v20975_v17  ;;  %v3783_v17 = vsel %vm2829_vm2, %v3780_v41, %v3782_v48 }
 0x2de   : >> { %18623 = vmatpush3.bf16.msra.mxu1 %v20976_v50  ;;  %18644 = vmatprep.subr.bf16.mxu0 %v21891_v21  ;;  %v21005_v50 = vld [vmem:[%s26816_s3 + $0x230] sm:$0xff]  }
 0x2df   : >> { %18533 = vmatmul.mubr.bf16.gmra.mrb[36].mxu0 %v3127_v35  ;;  %18680 = vmatprep.subr.bf16.mxu1 %v21891_v21  ;;  %v15841_v35 = vld [vmem:[%s22840_s17 + $0x80] sm:$0xf] }
 0x2e0   : >> { %18569 = vmatmul.mubr.bf16.gmra.mrb[36].mxu1 %v3264_v51  ;;  %18588 = vmatprep.mubr.msk.bf16.mxu0 %vm21892_vm1, %v21891_v21  ;;  %v21006_v51 = vld [vmem:[%s26816_s3 + $0x270] sm:$0xff]   ;;  %v3784_v9 = vrot.slane %v15841_v35, 4 }
 0x2e1   : >> { %18624 = vmatprep.mubr.msk.bf16.mxu1 %vm21892_vm1, %v21891_v21 }
 0x2e2   : >> { %v3785_v55 = vsel %vm2829_vm2, %v3782_v48, %v3784_v9  ;;  %v21031_v48 = vld [vmem:[%s26816_s3 + $0x318] sm:$0xff]  }
 0x2e7   : >> { %18589 = vmatmul.mubr.bf16.vlgmr.msra.gmra.mrb[40].mxu0 %v15777_v15  ;;  %v15866_v15 = vld [vmem:[%s22840_s17 + $0xa8] sm:$0xff] }
 0x2e8   : >> { %18625 = vmatmul.mubr.bf16.vlgmr.msra.gmra.mrb[40].mxu1 %v3601_v61  ;;  %18645 = vmatpush3.bf16.msra.mxu0 %v20977_v58  ;;  %v15922_v58 = vld [vmem:[%s22840_s17 + $0xd8] sm:$0xf0] }
 0x2e9   : >> { %18681 = vmatpush3.bf16.msra.mxu1 %v20978_v20  ;;  %18646 = vmatprep.subr.bf16.mxu0 %v21891_v21  ;;  %v23298_v20 = vld [vmem:[%s22840_s17 + $0xe0] sm:$0xff]  ;;  %v4257_v61 = vrot.slane %v15922_v58, 4 }
 0x2ea   : >> { %18592 = vmatprep.mubr.msk.bf16.mxu0 %vm21892_vm1, %v21891_v21  ;;  %18628 = vmatprep.mubr.msk.bf16.mxu1 %vm21892_vm1, %v21891_v21 }
 0x2eb   : >> { %18682 = vmatprep.subr.bf16.mxu1 %v21891_v21 }
 0x2ec   : >> { %18647 = vmatpush3.bf16.msra.mxu0 %v20979_v1  ;;  %v15893_v1 = vld [vmem:[%s22840_s17 + $0xb0] sm:$0xff] }
 0x2ed   : >> { %18683 = vmatpush3.bf16.msra.mxu1 %v20980_v4  ;;  %18648 = vmatprep.subr.bf16.mxu0 %v21891_v21 }
 0x2ee   : >> { %18684 = vmatprep.subr.bf16.mxu1 %v21891_v21 }
 0x2ef   : >> { %18593 = vmatmul.mubr.bf16.gmra.mrb[44].mxu0 %v23107_v6  ;;  %v21010_v6 = vld [vmem:[%s26816_s3 + $0x2c0] sm:$0xff]  }
 0x2f0   : >> { %18629 = vmatmul.mubr.bf16.gmra.mrb[44].mxu1 %v3603_v37  ;;  %18649 = vmatpush3.bf16.msra.mxu0 %v20981_v16  ;;  %v23316_v16 = vld [vmem:[%s22840_s17 + $0xe8] sm:$0xff] }
 0x2f1   : >> { %18685 = vmatpush3.bf16.msra.mxu1 %v20982_v28  ;;  %18596 = vmatprep.mubr.msk.bf16.mxu0 %vm21892_vm1, %v21891_v21  ;;  %v21011_v28 = vld [vmem:[%s26816_s3 + $0x288] sm:$0xff]   ;;  %v4260_v37 = vrot.slane %v23316_v16, 4 }
 0x2f2   : >> { %18632 = vmatprep.mubr.msk.bf16.mxu1 %vm21892_vm1, %v21891_v21  ;;  %18650 = vmatprep.subr.bf16.mxu0 %v21891_v21 }
 0x2f3   : >> { %18686 = vmatprep.subr.bf16.mxu1 %v21891_v21 }
 0x2f4   : >> { %18651 = vmatpush3.bf16.msra.mxu0 %v20983_v12  ;;  %v21013_v12 = vld [vmem:[%s26816_s3 + $0x290] sm:$0xff]  }
 0x2f5   : >> { %18687 = vmatpush3.bf16.msra.mxu1 %v20984_v59  ;;  %18652 = vmatprep.subr.bf16.mxu0 %v21891_v21 }
 0x2f6   : >> { %18688 = vmatprep.subr.bf16.mxu1 %v21891_v21 }
 0x2f7   : >> { %18597 = vmatmul.mubr.bf16.gmra.mrb[48].mxu0 %v23136_v14  ;;  %v21014_v14 = vld [vmem:[%s26816_s3 + $0x2d0] sm:$0xff]  }
 0x2f8   : >> { %18633 = vmatmul.mubr.bf16.gmra.mrb[48].mxu1 %v3605_v0  ;;  %18653 = vmatpush3.bf16.msra.mxu0 %v20985_v47  ;;  %v23344_v47 = vld [vmem:[%s22840_s17 + $0xf0] sm:$0xff]  ;;  %v21015_v0 = vld [vmem:[%s26816_s3 + $0x298] sm:$0xff]  }
 0x2f9   : >> { %18600 = vmatprep.mubr.msk.bf16.mxu0 %vm21892_vm1, %v21891_v21  ;;  %18636 = vmatprep.mubr.msk.bf16.mxu1 %vm21892_vm1, %v21891_v21 }
 0x2fa   : >> { %18689 = vmatpush3.bf16.msra.mxu1 %v20986_v53  ;;  %18654 = vmatprep.subr.bf16.mxu0 %v21891_v21  ;;  %v21016_v53 = vld [vmem:[%s26816_s3 + $0x2d8] sm:$0xff]  }
 0x2fb   : >> { %18690 = vmatprep.subr.bf16.mxu1 %v21891_v21 }
 0x2fc   : >> { %18655 = vmatpush3.bf16.msra.mxu0 %v20987_v27  ;;  %v23361_v27 = vld [vmem:[%s22840_s17 + $0xc0] sm:$0xff] }
 0x2fd   : >> { %18656 = vmatprep.subr.bf16.mxu0 %v21891_v21  ;;  %v4436_v41 = vrot.slane %v23361_v27, 4 }
 0x2fe   : >> { %18691 = vmatpush3.bf16.msra.mxu1 %v20988_v19 }
 0x2ff   : >> { %18601 = vmatmul.mubr.bf16.gmra.mrb[52].mxu0 %v23165_v8  ;;  %18692 = vmatprep.subr.bf16.mxu1 %v21891_v21  ;;  %v21018_v8 = vld [vmem:[%s26816_s3 + $0x2e0] sm:$0xff]  }
 0x300   : >> { %18637 = vmatmul.mubr.bf16.gmra.mrb[52].mxu1 %v3607_v22  ;;  %18604 = vmatprep.mubr.msk.bf16.mxu0 %vm21892_vm1, %v21891_v21  ;;  %v21019_v22 = vld [vmem:[%s26816_s3 + $0x2a8] sm:$0xff]  }
 0x301   : >> { %18640 = vmatprep.mubr.msk.bf16.mxu1 %vm21892_vm1, %v21891_v21  ;;  %18657 = vmatpush3.bf16.msra.mxu0 %v20989_v30  ;;  %v23373_v30 = vld [vmem:[%s22840_s17 + $0xf8] sm:$0xff] }
 0x302   : >> { %18693 = vmatpush3.bf16.msra.mxu1 %v20990_v25  ;;  %18658 = vmatprep.subr.bf16.mxu0 %v21891_v21  ;;  %v4264_v24 = vrot.slane %v23373_v30, 4  ;;  %v21020_v25 = vld [vmem:[%s26816_s3 + $0x2e8] sm:$0xff]  }
 0x303   : >> { %18694 = vmatprep.subr.bf16.mxu1 %v21891_v21 }
 0x305   : >> { %18659 = vmatpush3.bf16.msra.mxu0 %v20991_v26 }
 0x306   : >> { %18695 = vmatpush3.bf16.msra.mxu1 %v20992_v33  ;;  %18716 = vmatprep.subr.bf16.mxu0 %v21891_v21  ;;  %v21021_v33 = vld [vmem:[%s26816_s3 + $0x2b0] sm:$0xff]  }
 0x307   : >> { %18605 = vmatmul.mubr.bf16.gmra.mrb[56].mxu0 %v23192_v52  ;;  %18752 = vmatprep.subr.bf16.mxu1 %v21891_v21  ;;  %v15927_v52 = vld [vmem:[%s22840_s17 + $0x100] sm:$0xf] }
 0x308   : >> { %18641 = vmatmul.mubr.bf16.gmra.mrb[56].mxu1 %v3609_v31  ;;  %18660 = vmatprep.mubr.msk.bf16.mxu0 %vm21892_vm1, %v21891_v21  ;;  %v21022_v31 = vld [vmem:[%s26816_s3 + $0x2f0] sm:$0xff]   ;;  %v4266_v32 = vrot.slane %v15927_v52, 4 }
 0x309   : >> { %18696 = vmatprep.mubr.msk.bf16.mxu1 %vm21892_vm1, %v21891_v21 }
 0x30f   : >> { %18661 = vmatmul.mubr.bf16.vlgmr.msra.gmra.mrb[60].mxu0 %v3777_v2  ;;  %v23416_v2 = vld [vmem:[%s22840_s17 + $0xd0] sm:$0xff] }
 0x310   : >> { %18697 = vmatmul.mubr.bf16.vlgmr.msra.gmra.mrb[60].mxu1 %v23074_v54  ;;  %18717 = vmatpush3.bf16.msra.mxu0 %v20993_v44  ;;  %v21007_v54 = vld [vmem:[%s26816_s3 + $0x238] sm:$0xff]   ;;  %v4267_v44 = vsel %vm2829_vm2, %v4264_v24, %v4266_v32 }
 0x311   : >> { %18753 = vmatpush3.bf16.msra.mxu1 %v20994_v39  ;;  %18718 = vmatprep.subr.bf16.mxu0 %v21891_v21  ;;  %v15952_v39 = vld [vmem:[%s22840_s17 + $0xb0] sm:$0xf0] }
 0x312   : >> { %18664 = vmatprep.mubr.msk.bf16.mxu0 %vm21892_vm1, %v21891_v21  ;;  %18700 = vmatprep.mubr.msk.bf16.mxu1 %vm21892_vm1, %v21891_v21 }
 0x313   : >> { %18754 = vmatprep.subr.bf16.mxu1 %v21891_v21 }
 0x314   : >> { %18719 = vmatpush3.bf16.msra.mxu0 %v20995_v13  ;;  %v4433_v13 = vrot.slane %v15952_v39, 4 }
 0x315   : >> { %18755 = vmatpush3.bf16.msra.mxu1 %v20996_v10  ;;  %18720 = vmatprep.subr.bf16.mxu0 %v21891_v21 }
 0x316   : >> { %18756 = vmatprep.subr.bf16.mxu1 %v21891_v21  ;;  %v4435_v10 = vsel %vm2829_vm2, %v4433_v13, %v4434_v60 }
 0x317   : >> { %18665 = vmatmul.mubr.bf16.gmra.mrb[64].mxu0 %v3779_v36  ;;  %v21025_v36 = vld [vmem:[%s26816_s3 + $0x300] sm:$0xff]  }
 0x318   : >> { %18701 = vmatmul.mubr.bf16.gmra.mrb[64].mxu1 %v23092_v62  ;;  %18721 = vmatpush3.bf16.msra.mxu0 %v20997_v38  ;;  %v4258_v62 = vrot.slane %v23298_v20, 4  ;;  %v21026_v38 = vld [vmem:[%s26816_s3 + $0x340] sm:$0xff]  }
 0x319   : >> { %18757 = vmatpush3.bf16.msra.mxu1 %v20998_v3  ;;  %18668 = vmatprep.mubr.msk.bf16.mxu0 %vm21892_vm1, %v21891_v21  ;;  %v21027_v3 = vld [vmem:[%s26816_s3 + $0x308] sm:$0xff]  }
 0x31a   : >> { %18704 = vmatprep.mubr.msk.bf16.mxu1 %vm21892_vm1, %v21891_v21  ;;  %18722 = vmatprep.subr.bf16.mxu0 %v21891_v21  ;;  %v4259_v4 = vsel %vm2829_vm2, %v4257_v61, %v4258_v62  ;;  %v4261_v59 = vsel %vm2829_vm2, %v4258_v62, %v4260_v37  ;;  %v21034_v61 = vld [vmem:[%s26816_s3 + $0x360] sm:$0xff]   ;;  %v4440_v62 = vrot.slane %v23416_v2, 4 }
 0x31b   : >> { %18758 = vmatprep.subr.bf16.mxu1 %v21891_v21 }
 0x31c   : >> { %18723 = vmatpush3.bf16.msra.mxu0 %v20999_v42  ;;  %v21028_v42 = vld [vmem:[%s26816_s3 + $0x348] sm:$0xff]  }
 0x31d   : >> { %18759 = vmatpush3.bf16.msra.mxu1 %v21000_v63  ;;  %18724 = vmatprep.subr.bf16.mxu0 %v21891_v21  ;;  %v4437_v63 = vsel %vm2829_vm2, %v4434_v60, %v4436_v41 }
 0x31e   : >> { %18760 = vmatprep.subr.bf16.mxu1 %v21891_v21 }
 0x31f   : >> { %18669 = vmatmul.mubr.bf16.gmra.mrb[68].mxu0 %v3781_v23  ;;  %v21029_v23 = vld [vmem:[%s26816_s3 + $0x310] sm:$0xff]  }
 0x320   : >> { %18705 = vmatmul.mubr.bf16.gmra.mrb[68].mxu1 %v23119_v7  ;;  %18725 = vmatpush3.bf16.msra.mxu0 %v21001_v43  ;;  %v21012_v7 = vld [vmem:[%s26816_s3 + $0x2c8] sm:$0xff]   ;;  %v21030_v43 = vld [vmem:[%s26816_s3 + $0x350] sm:$0xff]  }
 0x321   : >> { %18672 = vmatprep.mubr.msk.bf16.mxu0 %vm21892_vm1, %v21891_v21  ;;  %18708 = vmatprep.mubr.msk.bf16.mxu1 %vm21892_vm1, %v21891_v21 }
 0x322   : >> { %18761 = vmatpush3.bf16.msra.mxu1 %v21002_v45  ;;  %18726 = vmatprep.subr.bf16.mxu0 %v21891_v21  ;;  %v4438_v45 = vrot.slane %v23390_v46, 4 }
 0x323   : >> { %18762 = vmatprep.subr.bf16.mxu1 %v21891_v21 }
 0x324   : >> { %18727 = vmatpush3.bf16.msra.mxu0 %v21003_v5  ;;  %v21032_v5 = vld [vmem:[%s26816_s3 + $0x358] sm:$0xff]  }
 0x325   : >> { %18728 = vmatprep.subr.bf16.mxu0 %v21891_v21 }
 0x326   : >> { %18763 = vmatpush3.bf16.msra.mxu1 %v21004_v49 }
 0x327   : >> { %18673 = vmatmul.mubr.bf16.gmra.mrb[72].mxu0 %v3783_v17  ;;  %18764 = vmatprep.subr.bf16.mxu1 %v21891_v21 }
 0x328   : >> { %18709 = vmatmul.mubr.bf16.gmra.mrb[72].mxu1 %v23145_v40  ;;  %18676 = vmatprep.mubr.msk.bf16.mxu0 %vm21892_vm1, %v21891_v21  ;;  %v4262_v40 = vrot.slane %v23344_v47, 4 }
 0x329   : >> { %18712 = vmatprep.mubr.msk.bf16.mxu1 %vm21892_vm1, %v21891_v21  ;;  %18729 = vmatpush3.bf16.msra.mxu0 %v21005_v50 }
 0x32a   : >> { %18765 = vmatpush3.bf16.msra.mxu1 %v21006_v51  ;;  %18730 = vmatprep.subr.bf16.mxu0 %v21891_v21  ;;  %v4263_v19 = vsel %vm2829_vm2, %v4260_v37, %v4262_v40  ;;  %v4265_v26 = vsel %vm2829_vm2, %v4262_v40, %v4264_v24 }
 0x32b   : >> { %18766 = vmatprep.subr.bf16.mxu1 %v21891_v21 }
 0x32d   : >> { %18731 = vmatpush3.bf16.msra.mxu0 %v21007_v54  ;;  %v4439_v54 = vsel %vm2829_vm2, %v4436_v41, %v4438_v45  ;;  %v16009_v41 = vld [vmem:[%s22840_s17 + $0x108] sm:$0xff] }
 0x32e   : >> { %18767 = vmatpush3.bf16.msra.mxu1 %v21008_v29  ;;  %18788 = vmatprep.subr.bf16.mxu0 %v21891_v21  ;;  %v21033_v29 = vld [vmem:[%s26816_s3 + $0x320] sm:$0xff]  }
 0x32f   : >> { %18677 = vmatmul.mubr.bf16.gmra.mrb[76].mxu0 %v3785_v55  ;;  %18824 = vmatprep.subr.bf16.mxu1 %v21891_v21 }
 0x330   : >> { %18713 = vmatmul.mubr.bf16.gmra.mrb[76].mxu1 %v15866_v15  ;;  %18732 = vmatprep.mubr.msk.bf16.mxu0 %vm21892_vm1, %v21891_v21 }
 0x331   : >> { %18768 = vmatprep.mubr.msk.bf16.mxu1 %vm21892_vm1, %v21891_v21 }
 0x337   : >> { %18733 = vmatmul.mubr.bf16.vlgmr.msra.gmra.mrb[80].mxu0 %v15893_v1  ;;  %v21035_v1 = vld [vmem:[%s26816_s3 + $0x328] sm:$0xff]  }
 0x338   : >> { %18769 = vmatmul.mubr.bf16.vlgmr.msra.gmra.mrb[80].mxu1 %v4259_v4  ;;  %18789 = vmatpush3.bf16.msra.mxu0 %v21009_v57  ;;  %v21036_v4 = vld [vmem:[%s26816_s3 + $0x368] sm:$0xff]  }
 0x339   : >> { %18825 = vmatpush3.bf16.msra.mxu1 %v21010_v6  ;;  %18790 = vmatprep.subr.bf16.mxu0 %v21891_v21 }
 0x33a   : >> { %18736 = vmatprep.mubr.msk.bf16.mxu0 %vm21892_vm1, %v21891_v21  ;;  %18772 = vmatprep.mubr.msk.bf16.mxu1 %vm21892_vm1, %v21891_v21 }
 0x33b   : >> { %18826 = vmatprep.subr.bf16.mxu1 %v21891_v21 }
 0x33c   : >> { %18791 = vmatpush3.bf16.msra.mxu0 %v21011_v28 }
 0x33d   : >> { %18827 = vmatpush3.bf16.msra.mxu1 %v21012_v7  ;;  %18792 = vmatprep.subr.bf16.mxu0 %v21891_v21 }
 0x33e   : >> { %18828 = vmatprep.subr.bf16.mxu1 %v21891_v21 }
 0x33f   : >> { %18737 = vmatmul.mubr.bf16.gmra.mrb[84].mxu0 %v23332_v11  ;;  %v4441_v11 = vsel %vm2829_vm2, %v4438_v45, %v4440_v62  ;;  %v21042_v45 = vld [vmem:[%s26816_s3 + $0x3c0] sm:$0xff]  }
 0x340   : >> { %18773 = vmatmul.mubr.bf16.gmra.mrb[84].mxu1 %v4261_v59  ;;  %18793 = vmatpush3.bf16.msra.mxu0 %v21013_v12 }
 0x341   : >> { %18829 = vmatpush3.bf16.msra.mxu1 %v21014_v14  ;;  %18740 = vmatprep.mubr.msk.bf16.mxu0 %vm21892_vm1, %v21891_v21  ;;  %v21037_v14 = vld [vmem:[%s26816_s3 + $0x330] sm:$0xff]  }
 0x342   : >> { %18776 = vmatprep.mubr.msk.bf16.mxu1 %vm21892_vm1, %v21891_v21  ;;  %18794 = vmatprep.subr.bf16.mxu0 %v21891_v21 }
 0x343   : >> { %18830 = vmatprep.subr.bf16.mxu1 %v21891_v21 }
 0x344   : >> { %18795 = vmatpush3.bf16.msra.mxu0 %v21015_v0 }
 0x345   : >> { %18831 = vmatpush3.bf16.msra.mxu1 %v21016_v53  ;;  %18796 = vmatprep.subr.bf16.mxu0 %v21891_v21  ;;  %v21038_v53 = vld [vmem:[%s26816_s3 + $0x370] sm:$0xff]  }
 0x346   : >> { %18832 = vmatprep.subr.bf16.mxu1 %v21891_v21 }
 0x347   : >> { %18741 = vmatmul.mubr.bf16.gmra.mrb[88].mxu0 %v23361_v27 }
 0x348   : >> { %18777 = vmatmul.mubr.bf16.gmra.mrb[88].mxu1 %v4263_v19  ;;  %18797 = vmatpush3.bf16.msra.mxu0 %v21017_v18  ;;  %v21039_v18 = vld [vmem:[%s26816_s3 + $0x338] sm:$0xff]  }
 0x349   : >> { %18744 = vmatprep.mubr.msk.bf16.mxu0 %vm21892_vm1, %v21891_v21  ;;  %18780 = vmatprep.mubr.msk.bf16.mxu1 %vm21892_vm1, %v21891_v21 }
 0x34a   : >> { %18833 = vmatpush3.bf16.msra.mxu1 %v21018_v8  ;;  %18798 = vmatprep.subr.bf16.mxu0 %v21891_v21  ;;  %v21040_v8 = vld [vmem:[%s26816_s3 + $0x378] sm:$0xff]  }
 0x34b   : >> { %18834 = vmatprep.subr.bf16.mxu1 %v21891_v21 }
 0x34c   : >> { %18799 = vmatpush3.bf16.msra.mxu0 %v21019_v22 }
 0x34d   : >> { %18800 = vmatprep.subr.bf16.mxu0 %v21891_v21 }
 0x34e   : >> { %18835 = vmatpush3.bf16.msra.mxu1 %v21020_v25 }
 0x34f   : >> { %18745 = vmatmul.mubr.bf16.gmra.mrb[92].mxu0 %v23390_v46  ;;  %18836 = vmatprep.subr.bf16.mxu1 %v21891_v21 }
 0x350   : >> { %18781 = vmatmul.mubr.bf16.gmra.mrb[92].mxu1 %v4265_v26  ;;  %18748 = vmatprep.mubr.msk.bf16.mxu0 %vm21892_vm1, %v21891_v21 }
 0x351   : >> { %18784 = vmatprep.mubr.msk.bf16.mxu1 %vm21892_vm1, %v21891_v21  ;;  %18801 = vmatpush3.bf16.msra.mxu0 %v21021_v33 }
 0x352   : >> { %18837 = vmatpush3.bf16.msra.mxu1 %v21022_v31  ;;  %18802 = vmatprep.subr.bf16.mxu0 %v21891_v21  ;;  %v15982_v31 = vld [vmem:[%s22840_s17 + $0x100] sm:$0xff] }
 0x353   : >> { %18838 = vmatprep.subr.bf16.mxu1 %v21891_v21 }
 0x355   : >> { %18803 = vmatpush3.bf16.msra.mxu0 %v21023_v34 }
 0x356   : >> { %18839 = vmatpush3.bf16.msra.mxu1 %v21024_v56  ;;  %18860 = vmatprep.subr.bf16.mxu0 %v21891_v21  ;;  %v16038_v56 = vld [vmem:[%s22840_s17 + $0x130] sm:$0xf0] }
 0x357   : >> { %18749 = vmatmul.mubr.bf16.gmra.mrb[96].mxu0 %v23416_v2  ;;  %18896 = vmatprep.subr.bf16.mxu1 %v21891_v21  ;;  %v23534_v2 = vld [vmem:[%s22840_s17 + $0x138] sm:$0xff] }
 0x358   : >> { %18785 = vmatmul.mubr.bf16.gmra.mrb[96].mxu1 %v4267_v44  ;;  %18804 = vmatprep.mubr.msk.bf16.mxu0 %vm21892_vm1, %v21891_v21  ;;  %v4915_v44 = vrot.slane %v16038_v56, 4  ;;  %v4916_v39 = vrot.slane %v23534_v2, 4 }
 0x359   : >> { %18840 = vmatprep.mubr.msk.bf16.mxu1 %vm21892_vm1, %v21891_v21 }
 0x35f   : >> { %18805 = vmatmul.mubr.bf16.vlgmr.msra.gmra.mrb[100].mxu0 %v4435_v10 }
 0x360   : >> { %18841 = vmatmul.mubr.bf16.vlgmr.msra.gmra.mrb[100].mxu1 %v23298_v20  ;;  %18861 = vmatpush3.bf16.msra.mxu0 %v21025_v36 }
 0x361   : >> { %18897 = vmatpush3.bf16.msra.mxu1 %v21026_v38  ;;  %18862 = vmatprep.subr.bf16.mxu0 %v21891_v21 }
 0x362   : >> { %18808 = vmatprep.mubr.msk.bf16.mxu0 %vm21892_vm1, %v21891_v21  ;;  %18844 = vmatprep.mubr.msk.bf16.mxu1 %vm21892_vm1, %v21891_v21 }
 0x363   : >> { %18898 = vmatprep.subr.bf16.mxu1 %v21891_v21 }
 0x364   : >> { %18863 = vmatpush3.bf16.msra.mxu0 %v21027_v3 }
 0x365   : >> { %18899 = vmatpush3.bf16.msra.mxu1 %v21028_v42  ;;  %18864 = vmatprep.subr.bf16.mxu0 %v21891_v21  ;;  %v21041_v42 = vld [vmem:[%s26816_s3 + $0x380] sm:$0xff]  }
 0x366   : >> { %18900 = vmatprep.subr.bf16.mxu1 %v21891_v21 }
 0x367   : >> { %18809 = vmatmul.mubr.bf16.gmra.mrb[104].mxu0 %v4437_v63 }
 0x368   : >> { %18845 = vmatmul.mubr.bf16.gmra.mrb[104].mxu1 %v23316_v16  ;;  %18865 = vmatpush3.bf16.msra.mxu0 %v21029_v23 }
 0x369   : >> { %18901 = vmatpush3.bf16.msra.mxu1 %v21030_v43  ;;  %18812 = vmatprep.mubr.msk.bf16.mxu0 %vm21892_vm1, %v21891_v21  ;;  %v4917_v43 = vsel %vm2829_vm2, %v4915_v44, %v4916_v39  ;;  %v21052_v44 = vld [vmem:[%s26816_s3 + $0x3e8] sm:$0xff]  }
 0x36a   : >> { %v2928_v49 = vpop.f32.mrb[0].mxu0  ;;  %18848 = vmatprep.mubr.msk.bf16.mxu1 %vm21892_vm1, %v21891_v21  ;;  %18866 = vmatprep.subr.bf16.mxu0 %v21891_v21 }
 0x36b   : >> { %v3049_v17 = vpop.f32.mrb[0].mxu1  ;;  %v18446_v50 = vpop.f32.mrb[1].mxu0  ;;  %18902 = vmatprep.subr.bf16.mxu1 %v21891_v21 }
 0x36c   : >> { %v23472_v35 = vadd.f32 %v3049_v17, %v2928_v49  ;;  %v18482_v51 = vpop.f32.mrb[1].mxu1  ;;  %v2931_v9 = vpop.f32.mrb[2].mxu0  ;;  %18867 = vmatpush3.bf16.msra.mxu0 %v21031_v48  ;;  %v23556_v49 = vld [vmem:[%s22840_s17 + $0x140] sm:$0xff]  ;;  %v21043_v17 = vld [vmem:[%s26816_s3 + $0x388] sm:$0xff]  }
 0x36d   : >> { %v3052_v55 = vpop.f32.mrb[2].mxu1  ;;  %v18447_v15 = vpop.f32.mrb[3].mxu0  ;;  %18903 = vmatpush3.bf16.msra.mxu1 %v21032_v5  ;;  %18868 = vmatprep.subr.bf16.mxu0 %v21891_v21  ;;  %v4918_v50 = vrot.slane %v23556_v49, 4  ;;  %v21044_v51 = vld [vmem:[%s26816_s3 + $0x3c8] sm:$0xff]  }
 0x36e   : >> { %v23479_v58 = vadd.f32 %v3052_v55, %v2931_v9  ;;  %v18483_v20 = vpop.f32.mrb[3].mxu1  ;;  %18904 = vmatprep.subr.bf16.mxu1 %v21891_v21 }
 0x36f   : >> { %18813 = vmatmul.mubr.bf16.gmra.mrb[108].mxu0 %v4439_v54 }
 0x370   : >> { %18849 = vmatmul.mubr.bf16.gmra.mrb[108].mxu1 %v23344_v47  ;;  %18869 = vmatpush3.bf16.msra.mxu0 %v21033_v29  ;;  %v15957_v47 = vld [vmem:[%s22840_s17 + $0xd8] sm:$0xf] }
 0x371   : >> { %18816 = vmatprep.mubr.msk.bf16.mxu0 %vm21892_vm1, %v21891_v21  ;;  %18852 = vmatprep.mubr.msk.bf16.mxu1 %vm21892_vm1, %v21891_v21  ;;  %v4442_v27 = vrot.slane %v15957_v47, 4 }
 0x372   : >> { %v2936_v57 = vpop.f32.mrb[4].mxu0  ;;  %18905 = vmatpush3.bf16.msra.mxu1 %v21034_v61  ;;  %18870 = vmatprep.subr.bf16.mxu0 %v21891_v21  ;;  %v23574_v61 = vld [vmem:[%s22840_s17 + $0x110] sm:$0xff] }
 0x373   : >> { %v3057_v6 = vpop.f32.mrb[4].mxu1  ;;  %v18450_v16 = vpop.f32.mrb[5].mxu0  ;;  %18906 = vmatprep.subr.bf16.mxu1 %v21891_v21  ;;  %v4443_v26 = vsel %vm2829_vm2, %v4440_v62, %v4442_v27  ;;  %v21045_v62 = vld [vmem:[%s26816_s3 + $0x390] sm:$0xff]  }
 0x374   : >> { %v23499_v28 = vadd.f32 %v3057_v6, %v2936_v57  ;;  %v18486_v37 = vpop.f32.mrb[5].mxu1  ;;  %v2939_v7 = vpop.f32.mrb[6].mxu0  ;;  %18871 = vmatpush3.bf16.msra.mxu0 %v21035_v1  ;;  %v21046_v6 = vld [vmem:[%s26816_s3 + $0x3d0] sm:$0xff]  }
 0x375   : >> { %v3060_v12 = vpop.f32.mrb[6].mxu1  ;;  %v18451_v59 = vpop.f32.mrb[7].mxu0  ;;  %18872 = vmatprep.subr.bf16.mxu0 %v21891_v21 }
 0x376   : >> { %v23507_v0 = vadd.f32 %v3060_v12, %v2939_v7  ;;  %v18487_v40 = vpop.f32.mrb[7].mxu1  ;;  %18907 = vmatpush3.bf16.msra.mxu1 %v21036_v4  ;;  %v4919_v4 = vsel %vm2829_vm2, %v4916_v39, %v4918_v50  ;;  %v23588_v7 = vld [vmem:[%s22840_s17 + $0x148] sm:$0xff]  ;;  %v21048_v59 = vld [vmem:[%s26816_s3 + $0x3d8] sm:$0xff]  }
 0x377   : >> { %18817 = vmatmul.mubr.bf16.gmra.mrb[112].mxu0 %v4441_v11  ;;  %18908 = vmatprep.subr.bf16.mxu1 %v21891_v21  ;;  %v21047_v11 = vld [vmem:[%s26816_s3 + $0x398] sm:$0xff]   ;;  %v4920_v12 = vrot.slane %v23588_v7, 4 }
 0x378   : >> { %18853 = vmatmul.mubr.bf16.gmra.mrb[112].mxu1 %v23373_v30  ;;  %18820 = vmatprep.mubr.msk.bf16.mxu0 %vm21892_vm1, %v21891_v21 }
 0x379   : >> { %18856 = vmatprep.mubr.msk.bf16.mxu1 %vm21892_vm1, %v21891_v21  ;;  %18873 = vmatpush3.bf16.msra.mxu0 %v21037_v14 }
 0x37a   : >> { %v2944_v19 = vpop.f32.mrb[8].mxu0  ;;  %18909 = vmatpush3.bf16.msra.mxu1 %v21038_v53  ;;  %18874 = vmatprep.subr.bf16.mxu0 %v21891_v21 }
 0x37b   : >> { %v3065_v30 = vpop.f32.mrb[8].mxu1  ;;  %v18454_v22 = vpop.f32.mrb[9].mxu0  ;;  %18910 = vmatprep.subr.bf16.mxu1 %v21891_v21 }
 0x37c   : >> { %v23526_v24 = vadd.f32 %v3065_v30, %v2944_v19  ;;  %v18490_v25 = vpop.f32.mrb[9].mxu1  ;;  %v2947_v46 = vpop.f32.mrb[10].mxu0  ;;  %v23606_v19 = vld [vmem:[%s22840_s17 + $0x118] sm:$0xff] }
 0x37d   : >> { %v3068_v33 = vpop.f32.mrb[10].mxu1  ;;  %v18455_v52 = vpop.f32.mrb[11].mxu0  ;;  %18875 = vmatpush3.bf16.msra.mxu0 %v21039_v18 }
 0x37e   : >> { %v23530_v32 = vadd.f32 %v3068_v33, %v2947_v46  ;;  %v18491_v34 = vpop.f32.mrb[11].mxu1  ;;  %18911 = vmatpush3.bf16.msra.mxu1 %v21040_v8  ;;  %18932 = vmatprep.subr.bf16.mxu0 %v21891_v21  ;;  %v21049_v8 = vld [vmem:[%s26816_s3 + $0x3a0] sm:$0xff]   ;;  %v4921_v46 = vsel %vm2829_vm2, %v4918_v50, %v4920_v12  ;;  %v23621_v52 = vld [vmem:[%s22840_s17 + $0x150] sm:$0xff] }
 0x37f   : >> { %18821 = vmatmul.mubr.bf16.gmra.mrb[116].mxu0 %v4443_v26  ;;  %18968 = vmatprep.subr.bf16.mxu1 %v21891_v21  ;;  %v21050_v33 = vld [vmem:[%s26816_s3 + $0x3e0] sm:$0xff]   ;;  %v4922_v34 = vrot.slane %v23621_v52, 4 }
 0x380   : >> { %18857 = vmatmul.mubr.bf16.gmra.mrb[116].mxu1 %v15982_v31  ;;  %18876 = vmatprep.mubr.msk.bf16.mxu0 %vm21892_vm1, %v21891_v21 }
 0x381   : >> { %18912 = vmatprep.mubr.msk.bf16.mxu1 %vm21892_vm1, %v21891_v21 }
 0x382   : >> { %v2952_v13 = vpop.f32.mrb[12].mxu0 }
 0x383   : >> { %v3073_v60 = vpop.f32.mrb[12].mxu1  ;;  %v18458_v10 = vpop.f32.mrb[13].mxu0 }
 0x384   : >> { %v23543_v36 = vadd.f32 %v3073_v60, %v2952_v13  ;;  %v18494_v38 = vpop.f32.mrb[13].mxu1  ;;  %v2955_v3 = vpop.f32.mrb[14].mxu0 }
 0x385   : >> { %v3076_v63 = vpop.f32.mrb[14].mxu1  ;;  %v18459_v23 = vpop.f32.mrb[15].mxu0 }
 0x386   : >> { %v23553_v48 = vadd.f32 %v3076_v63, %v2955_v3  ;;  %v18495_v5 = vpop.f32.mrb[15].mxu1  ;;  %v23641_v3 = vld [vmem:[%s22840_s17 + $0x120] sm:$0xff] }
 0x387   : >> { %18877 = vmatmul.mubr.bf16.vlgmr.msra.gmra.mrb[120].mxu0 %v16009_v41  ;;  %v16043_v5 = vld [vmem:[%s22840_s17 + $0x158] sm:$0xf] }
 0x388   : >> { %18913 = vmatmul.mubr.bf16.vlgmr.msra.gmra.mrb[120].mxu1 %v4917_v43  ;;  %18933 = vmatpush3.bf16.msra.mxu0 %v21041_v42  ;;  %v4923_v43 = vsel %vm2829_vm2, %v4920_v12, %v4922_v34 }
 0x389   : >> { %18969 = vmatpush3.bf16.msra.mxu1 %v21042_v45  ;;  %18934 = vmatprep.subr.bf16.mxu0 %v21891_v21 }
 0x38a   : >> { %v2960_v9 = vpop.f32.mrb[16].mxu0  ;;  %18880 = vmatprep.mubr.msk.bf16.mxu0 %vm21892_vm1, %v21891_v21  ;;  %18916 = vmatprep.mubr.msk.bf16.mxu1 %vm21892_vm1, %v21891_v21 }
 0x38b   : >> { %v3081_v54 = vpop.f32.mrb[16].mxu1  ;;  %v18462_v29 = vpop.f32.mrb[17].mxu0  ;;  %18970 = vmatprep.subr.bf16.mxu1 %v21891_v21 }
 0x38c   : >> { %v23571_v55 = vadd.f32 %v3081_v54, %v2960_v9  ;;  %v18498_v15 = vpop.f32.mrb[17].mxu1  ;;  %v2963_v20 = vpop.f32.mrb[18].mxu0  ;;  %18935 = vmatpush3.bf16.msra.mxu0 %v21043_v17  ;;  %v21054_v17 = vld [vmem:[%s26816_s3 + $0x3f0] sm:$0xff]   ;;  %v21056_v54 = vld [vmem:[%s26816_s3 + $0x3f8] sm:$0xff]  }
 0x38d   : >> { %v3084_v1 = vpop.f32.mrb[18].mxu1  ;;  %v18463_v57 = vpop.f32.mrb[19].mxu0  ;;  %18971 = vmatpush3.bf16.msra.mxu1 %v21044_v51  ;;  %18936 = vmatprep.subr.bf16.mxu0 %v21891_v21  ;;  %v21055_v51 = vld [vmem:[%s26816_s3 + $0x3b8] sm:$0xff]  }
 0x38e   : >> { %v23584_v16 = vadd.f32 %v3084_v1, %v2963_v20  ;;  %v18499_v37 = vpop.f32.mrb[19].mxu1  ;;  %18972 = vmatprep.subr.bf16.mxu1 %v21891_v21  ;;  %v23673_v57 = vld [vmem:[%s22840_s17 + $0x128] sm:$0xff] }
 0x38f   : >> { %18881 = vmatmul.mubr.bf16.gmra.mrb[124].mxu0 %v23574_v61 }
 0x390   : >> { %18917 = vmatmul.mubr.bf16.gmra.mrb[124].mxu1 %v4919_v4  ;;  %18937 = vmatpush3.bf16.msra.mxu0 %v21045_v62 }
 0x391   : >> { %18973 = vmatpush3.bf16.msra.mxu1 %v21046_v6  ;;  %18884 = vmatprep.mubr.msk.bf16.mxu0 %vm21892_vm1, %v21891_v21 }
 0x392   : >> { %v3215_v14 = vpop.f32.mrb[20].mxu0  ;;  %18920 = vmatprep.mubr.msk.bf16.mxu1 %vm21892_vm1, %v21891_v21  ;;  %18938 = vmatprep.subr.bf16.mxu0 %v21891_v21 }
 0x393   : >> { %v3254_v47 = vadd.f32 %v3215_v14, %v23472_v35  ;;  %v3364_v40 = vpop.f32.mrb[20].mxu1  ;;  %v18518_v53 = vpop.f32.mrb[21].mxu0  ;;  %18974 = vmatprep.subr.bf16.mxu1 %v21891_v21 }
 0x394   : >> { %v18554_v27 = vpop.f32.mrb[21].mxu1  ;;  %v3218_v18 = vpop.f32.mrb[22].mxu0  ;;  %18939 = vmatpush3.bf16.msra.mxu0 %v21047_v11 }
 0x395   : >> { %v23611_v30 = vadd.f32 %v3364_v40, %v3254_v47  ;;  %v3255_v22 = vadd.f32 %v3218_v18, %v23479_v58  ;;  %v3367_v25 = vpop.f32.mrb[22].mxu1  ;;  %v18519_v35 = vpop.f32.mrb[23].mxu0  ;;  %18975 = vmatpush3.bf16.msra.mxu1 %v21048_v59  ;;  %18940 = vmatprep.subr.bf16.mxu0 %v21891_v21  ;;  %v21051_v58 = vld [vmem:[%s26816_s3 + $0x3a8] sm:$0xff]   ;;  %v5092_v40 = vrot.slane %v23574_v61, 4 }
 0x396   : >> { %v18555_v26 = vpop.f32.mrb[23].mxu1  ;;  %18976 = vmatprep.subr.bf16.mxu1 %v21891_v21  ;;  %v16068_v59 = vld [vmem:[%s22840_s17 + $0x108] sm:$0xf0] }
 0x397   : >> { %v23623_v31 = vadd.f32 %v3367_v25, %v3255_v22  ;;  %18885 = vmatmul.mubr.bf16.gmra.mrb[128].mxu0 %v23606_v19  ;;  %v5091_v47 = vrot.slane %v16068_v59, 4  ;;  %v16073_v59 = vld [vmem:[%s22840_s17 + $0x130] sm:$0xf] }
 0x398   : >> { %18921 = vmatmul.mubr.bf16.gmra.mrb[128].mxu1 %v4921_v46  ;;  %18941 = vmatpush3.bf16.msra.mxu0 %v21049_v8 }
 0x399   : >> { %18888 = vmatprep.mubr.msk.bf16.mxu0 %vm21892_vm1, %v21891_v21  ;;  %18924 = vmatprep.mubr.msk.bf16.mxu1 %vm21892_vm1, %v21891_v21  ;;  %v5093_v25 = vsel %vm2829_vm2, %v5091_v47, %v5092_v40 }
 0x39a   : >> { %v3223_v56 = vpop.f32.mrb[24].mxu0  ;;  %18977 = vmatpush3.bf16.msra.mxu1 %v21050_v33  ;;  %18942 = vmatprep.subr.bf16.mxu0 %v21891_v21 }
 0x39b   : >> { %v3256_v39 = vadd.f32 %v3223_v56, %v23499_v28  ;;  %v3372_v13 = vpop.f32.mrb[24].mxu1  ;;  %v18522_v60 = vpop.f32.mrb[25].mxu0  ;;  %18978 = vmatprep.subr.bf16.mxu1 %v21891_v21  ;;  %v21053_v28 = vld [vmem:[%s26816_s3 + $0x3b0] sm:$0xff]  }
 0x39c   : >> { %v18558_v10 = vpop.f32.mrb[25].mxu1  ;;  %v3226_v38 = vpop.f32.mrb[26].mxu0  ;;  %18943 = vmatpush3.bf16.msra.mxu0 %v21051_v58 }
 0x39d   : >> { %v23643_v41 = vadd.f32 %v3372_v13, %v3256_v39  ;;  %v3257_v42 = vadd.f32 %v3226_v38, %v23507_v0  ;;  %v3375_v63 = vpop.f32.mrb[26].mxu1  ;;  %v18523_v23 = vpop.f32.mrb[27].mxu0  ;;  %18944 = vmatprep.subr.bf16.mxu0 %v21891_v21  ;;  %v4924_v0 = vrot.slane %v16043_v5, 4 }
 0x39e   : >> { %v18559_v45 = vpop.f32.mrb[27].mxu1  ;;  %18979 = vmatpush3.bf16.msra.mxu1 %v21052_v44 }
 0x39f   : >> { %v23655_v50 = vadd.f32 %v3375_v63, %v3257_v42  ;;  %18889 = vmatmul.mubr.bf16.gmra.mrb[132].mxu0 %v23641_v3  ;;  %18980 = vmatprep.subr.bf16.mxu1 %v21891_v21  ;;  %v4925_v12 = vsel %vm2829_vm2, %v4922_v34, %v4924_v0 }
 0x3a0   : >> { %18925 = vmatmul.mubr.bf16.gmra.mrb[132].mxu1 %v4923_v43  ;;  %18892 = vmatprep.mubr.msk.bf16.mxu0 %vm21892_vm1, %v21891_v21 }
 0x3a1   : >> { %18928 = vmatprep.mubr.msk.bf16.mxu1 %vm21892_vm1, %v21891_v21  ;;  %18945 = vmatpush3.bf16.msra.mxu0 %v21053_v28 }
 0x3a2   : >> { %v3231_v9 = vpop.f32.mrb[28].mxu0  ;;  %18981 = vmatpush3.bf16.msra.mxu1 %v21054_v17  ;;  %18946 = vmatprep.subr.bf16.mxu0 %v21891_v21 }
 0x3a3   : >> { %v3258_v29 = vadd.f32 %v3231_v9, %v23526_v24  ;;  %v3380_v15 = vpop.f32.mrb[28].mxu1  ;;  %v18526_v20 = vpop.f32.mrb[29].mxu0  ;;  %18982 = vmatprep.subr.bf16.mxu1 %v21891_v21 }
 0x3a4   : >> { %v18562_v62 = vpop.f32.mrb[29].mxu1  ;;  %v3234_v1 = vpop.f32.mrb[30].mxu0 }
 0x3a5   : >> { %v23675_v4 = vadd.f32 %v3380_v15, %v3258_v29  ;;  %v3259_v6 = vadd.f32 %v3234_v1, %v23530_v32  ;;  %v3383_v37 = vpop.f32.mrb[30].mxu1  ;;  %v18527_v11 = vpop.f32.mrb[31].mxu0  ;;  %18947 = vmatpush3.bf16.msra.mxu0 %v21055_v51 }
 0x3a6   : >> { %v18563_v14 = vpop.f32.mrb[31].mxu1  ;;  %18983 = vmatpush3.bf16.msra.mxu1 %v21056_v54 }
 0x3a7   : >> { %v23680_v24 = vadd.f32 %v3383_v37, %v3259_v6  ;;  %18893 = vmatmul.mubr.bf16.gmra.mrb[136].mxu0 %v23673_v57 }
 0x3a8   : >> { %18929 = vmatmul.mubr.bf16.gmra.mrb[136].mxu1 %v4925_v12  ;;  %18948 = vmatprep.mubr.msk.bf16.mxu0 %vm21892_vm1, %v21891_v21 }
 0x3a9   : >> { %18984 = vmatprep.mubr.msk.bf16.mxu1 %vm21892_vm1, %v21891_v21 }
 0x3aa   : >> { %v3239_v32 = vpop.f32.mrb[32].mxu0 }
 0x3ab   : >> { %v3260_v53 = vadd.f32 %v3239_v32, %v23543_v36  ;;  %v3388_v27 = vpop.f32.mrb[32].mxu1  ;;  %v18530_v18 = vpop.f32.mrb[33].mxu0  ;;  %v5094_v36 = vrot.slane %v23606_v19, 4 }
 0x3ac   : >> { %v18566_v8 = vpop.f32.mrb[33].mxu1  ;;  %v3242_v22 = vpop.f32.mrb[34].mxu0 }
 0x3ad   : >> { %v23690_v35 = vadd.f32 %v3388_v27, %v3260_v53  ;;  %v3261_v46 = vadd.f32 %v3242_v22, %v23553_v48  ;;  %v3391_v26 = vpop.f32.mrb[34].mxu1  ;;  %v18531_v33 = vpop.f32.mrb[35].mxu0  ;;  %v5095_v60 = vsel %vm2829_vm2, %v5092_v40, %v5094_v36 }
 0x3ae   : >> { %v18567_v58 = vpop.f32.mrb[35].mxu1 }
 0x3af   : >> { %v23693_v61 = vadd.f32 %v3391_v26, %v3261_v46  ;;  %18949 = vmatmul.mubr.bf16.vlgmr.msra.gmra.mrb[140].mxu0 %v5093_v25  ;;  %v16098_v46 = vld [vmem:[%s22840_s17 + $0x158] sm:$0xff]  ;;  %s15132_s17 = sshll.u32 (%p2771_p12), %s22003_s28, 4  ;;  %s26769_s17 = int_to_ptr.vmem [resolvable:$true] %s15132_s17 }
 0x3b0   : >> { %18985 = vmatmul.mubr.bf16.vlgmr.msra.gmra.mrb[140].mxu1 %v23534_v2  ;;  %18952 = vmatprep.mubr.msk.bf16.mxu0 %vm21892_vm1, %v21891_v21  ;;  %s21809_s24 = scalar_lea.vmem (%p2771_p12), %s26769_s17, 512  ;;  %p21816_p2 = scmp.lt.s32.totalorder (%p2771_p12), %s26769_s17, %s21814_s21 }
 0x3b1   : >> { %18988 = vmatprep.mubr.msk.bf16.mxu1 %vm21892_vm1, %v21891_v21  ;;  %p21810_p13 = scmp.ne.s32.totalorder (%p2771_p12), %s26769_s17, %s21809_s24  ;;  %p21817_p3 = scmp.lt.s32.totalorder (%p2771_p12), %s21815_s22, %s21809_s24 }
 0x3b2   : >> { %v3247_v34 = vpop.f32.mrb[36].mxu0 }
 0x3b3   : >> { %v3262_v56 = vadd.f32 %v3247_v34, %v23571_v55  ;;  %v3396_v48 = vpop.f32.mrb[36].mxu1  ;;  %v18534_v44 = vpop.f32.mrb[37].mxu0  ;;  %v5096_v55 = vrot.slane %v23641_v3, 4  ;;  %p21811_p0 = pnand (%p2771_p12), %p21810_p13, %p21983_p5  ;;  %p21818_p4 = por (%p2771_p12), %p21817_p3, %p21816_p2 }
 0x3b4   : >> { %v18570_v39 = vpop.f32.mrb[37].mxu1  ;;  %v3250_v13 = vpop.f32.mrb[38].mxu0 }
 0x3b5   : >> { %v23703_v10 = vadd.f32 %v3396_v48, %v3262_v56  ;;  %v3263_v2 = vadd.f32 %v3250_v13, %v23584_v16  ;;  %v3399_v38 = vpop.f32.mrb[38].mxu1  ;;  %v18535_v42 = vpop.f32.mrb[39].mxu0  ;;  %v5097_v17 = vsel %vm2829_vm2, %v5094_v36, %v5096_v55  ;;  %p21812_p1 = pneg (%p2771_p12), %p21811_p0 }
 0x3b6   : >> { %v18571_v63 = vpop.f32.mrb[39].mxu1 }
 0x3b7   : >> { %v23706_v19 = vadd.f32 %v3399_v38, %v3263_v2  ;;  %18953 = vmatmul.mubr.bf16.gmra.mrb[144].mxu0 %v5095_v60  ;;  %p21819_p7 = pnand (%p2771_p12), %p21818_p4, %p21812_p1 }
 0x3b8   : >> { %18989 = vmatmul.mubr.bf16.gmra.mrb[144].mxu1 %v23556_v49  ;;  %18956 = vmatprep.mubr.msk.bf16.mxu0 %vm21892_vm1, %v21891_v21 }
 0x3b9   : >> { %18992 = vmatprep.mubr.msk.bf16.mxu1 %vm21892_vm1, %v21891_v21 }
 0x3ba   : >> { %v3521_v23 = vpop.f32.mrb[40].mxu0 }
 0x3bb   : >> { %v3560_v43 = vadd.f32 %v3521_v23, %v23611_v30  ;;  %v3697_v16 = vpop.f32.mrb[40].mxu1  ;;  %v18590_v28 = vpop.f32.mrb[41].mxu0  ;;  %v5098_v30 = vrot.slane %v23673_v57, 4 }
 0x3bc   : >> { %v18626_v45 = vpop.f32.mrb[41].mxu1  ;;  %v3524_v5 = vpop.f32.mrb[42].mxu0 }
 0x3bd   : >> { %v23716_v0 = vadd.f32 %v3697_v16, %v3560_v43  ;;  %v3561_v49 = vadd.f32 %v3524_v5, %v23623_v31  ;;  %v3700_v51 = vpop.f32.mrb[42].mxu1  ;;  %v18591_v9 = vpop.f32.mrb[43].mxu0  ;;  %v5099_v6 = vsel %vm2829_vm2, %v5096_v55, %v5098_v30 }
 0x3be   : >> { %v18627_v54 = vpop.f32.mrb[43].mxu1 }
 0x3bf   : >> { %v23719_v3 = vadd.f32 %v3700_v51, %v3561_v49  ;;  %18957 = vmatmul.mubr.bf16.gmra.mrb[148].mxu0 %v5097_v17 }
 0x3c0   : >> { %18993 = vmatmul.mubr.bf16.gmra.mrb[148].mxu1 %v23588_v7  ;;  %18960 = vmatprep.mubr.msk.bf16.mxu0 %vm21892_vm1, %v21891_v21 }
 0x3c1   : >> { %18996 = vmatprep.mubr.msk.bf16.mxu1 %vm21892_vm1, %v21891_v21 }
 0x3c2   : >> { %v3529_v29 = vpop.f32.mrb[44].mxu0 }
 0x3c3   : >> { %v3562_v31 = vadd.f32 %v3529_v29, %v23643_v41  ;;  %v3705_v15 = vpop.f32.mrb[44].mxu1  ;;  %v18594_v20 = vpop.f32.mrb[45].mxu0  ;;  %v5100_v41 = vrot.slane %v16073_v59, 4 }
 0x3c4   : >> { %v18630_v62 = vpop.f32.mrb[45].mxu1  ;;  %v3532_v1 = vpop.f32.mrb[46].mxu0 }
 0x3c5   : >> { %v23729_v37 = vadd.f32 %v3705_v15, %v3562_v31  ;;  %v3563_v7 = vadd.f32 %v3532_v1, %v23655_v50  ;;  %v3708_v11 = vpop.f32.mrb[46].mxu1  ;;  %v18595_v12 = vpop.f32.mrb[47].mxu0  ;;  %v5101_v18 = vsel %vm2829_vm2, %v5098_v30, %v5100_v41 }
 0x3c6   : >> { %v18631_v57 = vpop.f32.mrb[47].mxu1 }
 0x3c7   : >> { %v23733_v14 = vadd.f32 %v3708_v11, %v3563_v7  ;;  %18961 = vmatmul.mubr.bf16.gmra.mrb[152].mxu0 %v5099_v6 }
 0x3c8   : >> { %18997 = vmatmul.mubr.bf16.gmra.mrb[152].mxu1 %v23621_v52  ;;  %18964 = vmatprep.mubr.msk.bf16.mxu0 %vm21892_vm1, %v21891_v21 }
 0x3c9   : >> { %19000 = vmatprep.mubr.msk.bf16.mxu1 %vm21892_vm1, %v21891_v21 }
 0x3ca   : >> { %v3537_v47 = vpop.f32.mrb[48].mxu0 }
 0x3cb   : >> { %v3564_v50 = vadd.f32 %v3537_v47, %v23675_v4  ;;  %v3713_v40 = vpop.f32.mrb[48].mxu1  ;;  %v18598_v32 = vpop.f32.mrb[49].mxu0 }
 0x3cc   : >> { %v18634_v53 = vpop.f32.mrb[49].mxu1  ;;  %v3540_v27 = vpop.f32.mrb[50].mxu0 }
 0x3cd   : >> { %v3740_v8 = vadd.f32 %v3713_v40, %v3564_v50  ;;  %v3565_v22 = vadd.f32 %v3540_v27, %v23680_v24  ;;  %v3716_v52 = vpop.f32.mrb[50].mxu1  ;;  %v18599_v25 = vpop.f32.mrb[51].mxu0 }
 0x3ce   : >> { %v18635_v26 = vpop.f32.mrb[51].mxu1 }
 0x3cf   : >> { %v3741_v33 = vadd.f32 %v3716_v52, %v3565_v22  ;;  %18965 = vmatmul.mubr.bf16.gmra.mrb[156].mxu0 %v5101_v18 }
 0x3d0   : >> { %19001 = vmatmul.mubr.bf16.gmra.mrb[156].mxu1 %v16098_v46 }
 0x3d2   : >> { %v3545_v21 = vpop.f32.mrb[52].mxu0 }
 0x3d3   : >> { %v3566_v58 = vadd.f32 %v3545_v21, %v23690_v35  ;;  %v3721_v4 = vpop.f32.mrb[52].mxu1  ;;  %v18602_v36 = vpop.f32.mrb[53].mxu0 }
 0x3d4   : >> { %v18638_v34 = vpop.f32.mrb[53].mxu1  ;;  %v3548_v56 = vpop.f32.mrb[54].mxu0 }
 0x3d5   : >> { %v3742_v48 = vadd.f32 %v3721_v4, %v3566_v58  ;;  %v3567_v44 = vadd.f32 %v3548_v56, %v23693_v61  ;;  %v3724_v39 = vpop.f32.mrb[54].mxu1  ;;  %v18603_v13 = vpop.f32.mrb[55].mxu0 }
 0x3d6   : >> { %v18639_v24 = vpop.f32.mrb[55].mxu1 }
 0x3d7   : >> { %v3743_v60 = vadd.f32 %v3724_v39, %v3567_v44 }
 0x3da   : >> { %v3553_v2 = vpop.f32.mrb[56].mxu0 }
 0x3db   : >> { %v3568_v38 = vadd.f32 %v3553_v2, %v23703_v10  ;;  %v3729_v42 = vpop.f32.mrb[56].mxu1  ;;  %v18606_v63 = vpop.f32.mrb[57].mxu0 }
 0x3dc   : >> { %v18642_v55 = vpop.f32.mrb[57].mxu1  ;;  %v3556_v23 = vpop.f32.mrb[58].mxu0 }
 0x3dd   : >> { %v3744_v43 = vadd.f32 %v3729_v42, %v3568_v38  ;;  %v3569_v35 = vadd.f32 %v3556_v23, %v23706_v19  ;;  %v3732_v16 = vpop.f32.mrb[58].mxu1  ;;  %v18607_v28 = vpop.f32.mrb[59].mxu0 }
 0x3de   : >> { %v18643_v45 = vpop.f32.mrb[59].mxu1 }
 0x3df   : >> { %v3745_v5 = vadd.f32 %v3732_v16, %v3569_v35 }
 0x3e2   : >> { %v3873_v17 = vpop.f32.mrb[60].mxu0 }
 0x3e3   : >> { %v3912_v61 = vadd.f32 %v3873_v17, %v23716_v0  ;;  %v4022_v49 = vpop.f32.mrb[60].mxu1  ;;  %v18662_v51 = vpop.f32.mrb[61].mxu0 }
 0x3e4   : >> { %v18698_v9 = vpop.f32.mrb[61].mxu1  ;;  %v3876_v54 = vpop.f32.mrb[62].mxu0 }
 0x3e5   : >> { %v4061_v30 = vadd.f32 %v4022_v49, %v3912_v61  ;;  %v3913_v10 = vadd.f32 %v3876_v54, %v23719_v3  ;;  %v4025_v29 = vpop.f32.mrb[62].mxu1  ;;  %v18663_v31 = vpop.f32.mrb[63].mxu0 }
 0x3e6   : >> { %v18699_v15 = vpop.f32.mrb[63].mxu1 }
 0x3e7   : >> { %v4062_v20 = vadd.f32 %v4025_v29, %v3913_v10 }
 0x3ea   : >> { %v3881_v62 = vpop.f32.mrb[64].mxu0 }
 0x3eb   : >> { %v3914_v19 = vadd.f32 %v3881_v62, %v23729_v37  ;;  %v4030_v1 = vpop.f32.mrb[64].mxu1  ;;  %v18666_v6 = vpop.f32.mrb[65].mxu0 }
 0x3ec   : >> { %v18702_v7 = vpop.f32.mrb[65].mxu1  ;;  %v3884_v11 = vpop.f32.mrb[66].mxu0 }
 0x3ed   : >> { %v4063_v12 = vadd.f32 %v4030_v1, %v3914_v19  ;;  %v3915_v0 = vadd.f32 %v3884_v11, %v23733_v14  ;;  %v4033_v59 = vpop.f32.mrb[66].mxu1  ;;  %v18667_v57 = vpop.f32.mrb[67].mxu0 }
 0x3ee   : >> { %v18703_v41 = vpop.f32.mrb[67].mxu1 }
 0x3ef   : >> { %v4064_v47 = vadd.f32 %v4033_v59, %v3915_v0 }
 0x3f2   : >> { %v3889_v50 = vpop.f32.mrb[68].mxu0 }
 0x3f3   : >> { %v3916_v3 = vadd.f32 %v3889_v50, %v3740_v8  ;;  %v4038_v40 = vpop.f32.mrb[68].mxu1  ;;  %v18670_v32 = vpop.f32.mrb[69].mxu0 }
 0x3f4   : >> { %v18706_v53 = vpop.f32.mrb[69].mxu1  ;;  %v3892_v27 = vpop.f32.mrb[70].mxu0 }
 0x3f5   : >> { %v4065_v18 = vadd.f32 %v4038_v40, %v3916_v3  ;;  %v3917_v22 = vadd.f32 %v3892_v27, %v3741_v33  ;;  %v4041_v37 = vpop.f32.mrb[70].mxu1  ;;  %v18671_v52 = vpop.f32.mrb[71].mxu0 }
 0x3f6   : >> { %v18707_v25 = vpop.f32.mrb[71].mxu1 }
 0x3f7   : >> { %v4066_v46 = vadd.f32 %v4041_v37, %v3917_v22 }
 0x3fa   : >> { %v3897_v26 = vpop.f32.mrb[72].mxu0 }
 0x3fb   : >> { %v3918_v21 = vadd.f32 %v3897_v26, %v3742_v48  ;;  %v4046_v58 = vpop.f32.mrb[72].mxu1  ;;  %v18674_v14 = vpop.f32.mrb[73].mxu0 }
 0x3fc   : >> { %v18710_v4 = vpop.f32.mrb[73].mxu1  ;;  %v3900_v36 = vpop.f32.mrb[74].mxu0 }
 0x3fd   : >> { %v4067_v34 = vadd.f32 %v4046_v58, %v3918_v21  ;;  %v3919_v56 = vadd.f32 %v3900_v36, %v3743_v60  ;;  %v4049_v44 = vpop.f32.mrb[74].mxu1  ;;  %v18675_v8 = vpop.f32.mrb[75].mxu0 }
 0x3fe   : >> { %v18711_v39 = vpop.f32.mrb[75].mxu1 }
 0x3ff   : >> { %v4068_v13 = vadd.f32 %v4049_v44, %v3919_v56 }
 0x402   : >> { %v3905_v24 = vpop.f32.mrb[76].mxu0 }
 0x403   : >> { %v3920_v2 = vadd.f32 %v3905_v24, %v3744_v43  ;;  %v4054_v38 = vpop.f32.mrb[76].mxu1  ;;  %v18678_v33 = vpop.f32.mrb[77].mxu0 }
 0x404   : >> { %v18714_v42 = vpop.f32.mrb[77].mxu1  ;;  %v3908_v63 = vpop.f32.mrb[78].mxu0 }
 0x405   : >> { %v4069_v55 = vadd.f32 %v4054_v38, %v3920_v2  ;;  %v3921_v23 = vadd.f32 %v3908_v63, %v3745_v5  ;;  %v4057_v35 = vpop.f32.mrb[78].mxu1  ;;  %v18679_v48 = vpop.f32.mrb[79].mxu0 }
 0x406   : >> { %v18715_v16 = vpop.f32.mrb[79].mxu1 }
 0x407   : >> { %v4070_v28 = vadd.f32 %v4057_v35, %v3921_v23 }
 0x40a   : >> { %v4179_v45 = vpop.f32.mrb[80].mxu0 }
 0x40b   : >> { %v4218_v17 = vadd.f32 %v4179_v45, %v4061_v30  ;;  %v4355_v61 = vpop.f32.mrb[80].mxu1  ;;  %v18734_v60 = vpop.f32.mrb[81].mxu0 }
 0x40c   : >> { %v18770_v49 = vpop.f32.mrb[81].mxu1  ;;  %v4182_v51 = vpop.f32.mrb[82].mxu0 }
 0x40d   : >> { %v4394_v9 = vadd.f32 %v4355_v61, %v4218_v17  ;;  %v4219_v54 = vadd.f32 %v4182_v51, %v4062_v20  ;;  %v4358_v10 = vpop.f32.mrb[82].mxu1  ;;  %v18735_v43 = vpop.f32.mrb[83].mxu0 }
 0x40e   : >> { %v18771_v29 = vpop.f32.mrb[83].mxu1 }
 0x40f   : >> { %v4395_v31 = vadd.f32 %v4358_v10, %v4219_v54 }
 0x412   : >> { %v4187_v15 = vpop.f32.mrb[84].mxu0 }
 0x413   : >> { %v4220_v62 = vadd.f32 %v4187_v15, %v4063_v12  ;;  %v4363_v19 = vpop.f32.mrb[84].mxu1  ;;  %v18738_v5 = vpop.f32.mrb[85].mxu0 }
 0x414   : >> { %v18774_v1 = vpop.f32.mrb[85].mxu1  ;;  %v4190_v6 = vpop.f32.mrb[86].mxu0 }
 0x415   : >> { %v4396_v7 = vadd.f32 %v4363_v19, %v4220_v62  ;;  %v4221_v11 = vadd.f32 %v4190_v6, %v4064_v47  ;;  %v4366_v0 = vpop.f32.mrb[86].mxu1  ;;  %v18739_v30 = vpop.f32.mrb[87].mxu0 }
 0x416   : >> { %v18775_v59 = vpop.f32.mrb[87].mxu1 }
 0x417   : >> { %v4397_v57 = vadd.f32 %v4366_v0, %v4221_v11 }
 0x41a   : >> { %v4195_v41 = vpop.f32.mrb[88].mxu0 }
 0x41b   : >> { %v4222_v50 = vadd.f32 %v4195_v41, %v4065_v18  ;;  %v4371_v3 = vpop.f32.mrb[88].mxu1  ;;  %v18742_v20 = vpop.f32.mrb[89].mxu0 }
 0x41c   : >> { %v18778_v40 = vpop.f32.mrb[89].mxu1  ;;  %v4198_v32 = vpop.f32.mrb[90].mxu0 }
 0x41d   : >> { %v4398_v53 = vadd.f32 %v4371_v3, %v4222_v50  ;;  %v4223_v27 = vadd.f32 %v4198_v32, %v4066_v46  ;;  %v4374_v22 = vpop.f32.mrb[90].mxu1  ;;  %v18743_v12 = vpop.f32.mrb[91].mxu0 }
 0x41e   : >> { %v18779_v37 = vpop.f32.mrb[91].mxu1 }
 0x41f   : >> { %v4399_v52 = vadd.f32 %v4374_v22, %v4223_v27 }
 0x422   : >> { %v4203_v25 = vpop.f32.mrb[92].mxu0 }
 0x423   : >> { %v4224_v26 = vadd.f32 %v4203_v25, %v4067_v34  ;;  %v4379_v21 = vpop.f32.mrb[92].mxu1  ;;  %v18746_v47 = vpop.f32.mrb[93].mxu0 }
 0x424   : >> { %v18782_v58 = vpop.f32.mrb[93].mxu1  ;;  %v4206_v14 = vpop.f32.mrb[94].mxu0 }
 0x425   : >> { %v4400_v4 = vadd.f32 %v4379_v21, %v4224_v26  ;;  %v4225_v36 = vadd.f32 %v4206_v14, %v4068_v13  ;;  %v4382_v56 = vpop.f32.mrb[94].mxu1  ;;  %v18747_v18 = vpop.f32.mrb[95].mxu0 }
 0x426   : >> { %v18783_v44 = vpop.f32.mrb[95].mxu1 }
 0x427   : >> { %v4401_v8 = vadd.f32 %v4382_v56, %v4225_v36 }
 0x42a   : >> { %v4211_v39 = vpop.f32.mrb[96].mxu0 }
 0x42b   : >> { %v4226_v24 = vadd.f32 %v4211_v39, %v4069_v55  ;;  %v4387_v2 = vpop.f32.mrb[96].mxu1  ;;  %v18750_v46 = vpop.f32.mrb[97].mxu0 }
 0x42c   : >> { %v18786_v38 = vpop.f32.mrb[97].mxu1  ;;  %v4214_v33 = vpop.f32.mrb[98].mxu0 }
 0x42d   : >> { %v4402_v42 = vadd.f32 %v4387_v2, %v4226_v24  ;;  %v4227_v63 = vadd.f32 %v4214_v33, %v4070_v28  ;;  %v4390_v23 = vpop.f32.mrb[98].mxu1  ;;  %v18751_v34 = vpop.f32.mrb[99].mxu0 }
 0x42e   : >> { %v18787_v35 = vpop.f32.mrb[99].mxu1 }
 0x42f   : >> { %v4403_v48 = vadd.f32 %v4390_v23, %v4227_v63 }
 0x432   : >> { %v4531_v16 = vpop.f32.mrb[100].mxu0 }
 0x433   : >> { %v4570_v45 = vadd.f32 %v4531_v16, %v4394_v9  ;;  %v4680_v17 = vpop.f32.mrb[100].mxu1  ;;  %v18806_v13 = vpop.f32.mrb[101].mxu0 }
 0x434   : >> { %v18842_v61 = vpop.f32.mrb[101].mxu1  ;;  %v4534_v60 = vpop.f32.mrb[102].mxu0 }
 0x435   : >> { %v4719_v49 = vadd.f32 %v4680_v17, %v4570_v45  ;;  %v4571_v51 = vadd.f32 %v4534_v60, %v4395_v31  ;;  %v4683_v54 = vpop.f32.mrb[102].mxu1  ;;  %v18807_v55 = vpop.f32.mrb[103].mxu0 }
 0x436   : >> { %v18843_v10 = vpop.f32.mrb[103].mxu1 }
 0x437   : >> { %v4720_v43 = vadd.f32 %v4683_v54, %v4571_v51 }
 0x43a   : >> { %v4539_v29 = vpop.f32.mrb[104].mxu0 }
 0x43b   : >> { %v4572_v15 = vadd.f32 %v4539_v29, %v4396_v7  ;;  %v4688_v62 = vpop.f32.mrb[104].mxu1  ;;  %v18810_v28 = vpop.f32.mrb[105].mxu0 }
 0x43c   : >> { %v18846_v19 = vpop.f32.mrb[105].mxu1  ;;  %v4542_v5 = vpop.f32.mrb[106].mxu0 }
 0x43d   : >> { %v4721_v1 = vadd.f32 %v4688_v62, %v4572_v15  ;;  %v4573_v6 = vadd.f32 %v4542_v5, %v4397_v57  ;;  %v4691_v11 = vpop.f32.mrb[106].mxu1  ;;  %v18811_v9 = vpop.f32.mrb[107].mxu0 }
 0x43e   : >> { %v18847_v0 = vpop.f32.mrb[107].mxu1 }
 0x43f   : >> { %v4722_v30 = vadd.f32 %v4691_v11, %v4573_v6 }
 0x442   : >> { %v4547_v59 = vpop.f32.mrb[108].mxu0 }
 0x443   : >> { %v4574_v41 = vadd.f32 %v4547_v59, %v4398_v53  ;;  %v4696_v50 = vpop.f32.mrb[108].mxu1  ;;  %v18814_v31 = vpop.f32.mrb[109].mxu0 }
 0x444   : >> { %v18850_v3 = vpop.f32.mrb[109].mxu1  ;;  %v4550_v20 = vpop.f32.mrb[110].mxu0 }
 0x445   : >> { %v4723_v40 = vadd.f32 %v4696_v50, %v4574_v41  ;;  %v4575_v32 = vadd.f32 %v4550_v20, %v4399_v52  ;;  %v4699_v27 = vpop.f32.mrb[110].mxu1  ;;  %v18815_v7 = vpop.f32.mrb[111].mxu0 }
 0x446   : >> { %v18851_v22 = vpop.f32.mrb[111].mxu1 }
 0x447   : >> { %v4724_v12 = vadd.f32 %v4699_v27, %v4575_v32 }
 0x44a   : >> { %v4555_v37 = vpop.f32.mrb[112].mxu0 }
 0x44b   : >> { %v4576_v25 = vadd.f32 %v4555_v37, %v4400_v4  ;;  %v4704_v26 = vpop.f32.mrb[112].mxu1  ;;  %v18818_v57 = vpop.f32.mrb[113].mxu0 }
 0x44c   : >> { %v18854_v21 = vpop.f32.mrb[113].mxu1  ;;  %v4558_v47 = vpop.f32.mrb[114].mxu0 }
 0x44d   : >> { %v4725_v58 = vadd.f32 %v4704_v26, %v4576_v25  ;;  %v4577_v14 = vadd.f32 %v4558_v47, %v4401_v8  ;;  %v4707_v36 = vpop.f32.mrb[114].mxu1  ;;  %v18819_v53 = vpop.f32.mrb[115].mxu0 }
 0x44e   : >> { %v18855_v56 = vpop.f32.mrb[115].mxu1 }
 0x44f   : >> { %v4726_v18 = vadd.f32 %v4707_v36, %v4577_v14 }
 0x452   : >> { %v4563_v44 = vpop.f32.mrb[116].mxu0 }
 0x453   : >> { %v4578_v39 = vadd.f32 %v4563_v44, %v4402_v42  ;;  %v4712_v24 = vpop.f32.mrb[116].mxu1  ;;  %v18822_v52 = vpop.f32.mrb[117].mxu0 }
 0x454   : >> { %v18858_v2 = vpop.f32.mrb[117].mxu1  ;;  %v4566_v46 = vpop.f32.mrb[118].mxu0 }
 0x455   : >> { %v4727_v38 = vadd.f32 %v4712_v24, %v4578_v39  ;;  %v4579_v33 = vadd.f32 %v4566_v46, %v4403_v48  ;;  %v4715_v63 = vpop.f32.mrb[118].mxu1  ;;  %v18823_v4 = vpop.f32.mrb[119].mxu0 }
 0x456   : >> { %v18859_v23 = vpop.f32.mrb[119].mxu1 }
 0x457   : >> { %v4728_v34 = vadd.f32 %v4715_v63, %v4579_v33 }
 0x45a   : >> { %v4837_v35 = vpop.f32.mrb[120].mxu0 }
 0x45b   : >> { %v4876_v16 = vadd.f32 %v4837_v35, %v4719_v49  ;;  %v5013_v45 = vpop.f32.mrb[120].mxu1  ;;  %v18878_v8 = vpop.f32.mrb[121].mxu0 }
 0x45c   : >> { %v18914_v17 = vpop.f32.mrb[121].mxu1  ;;  %v4840_v13 = vpop.f32.mrb[122].mxu0 }
 0x45d   : >> { %v5052_v61 = vadd.f32 %v5013_v45, %v4876_v16  ;;  %v4877_v60 = vadd.f32 %v4840_v13, %v4720_v43  ;;  %v5016_v51 = vpop.f32.mrb[122].mxu1  ;;  %v18879_v42 = vpop.f32.mrb[123].mxu0 }
 0x45e   : >> { %v18915_v54 = vpop.f32.mrb[123].mxu1 }
 0x45f   : >> { %v5053_v55 = vadd.f32 %v5016_v51, %v4877_v60 }
 0x462   : >> { %v4845_v10 = vpop.f32.mrb[124].mxu0 }
 0x463   : >> { %v4878_v29 = vadd.f32 %v4845_v10, %v4721_v1  ;;  %v5021_v15 = vpop.f32.mrb[124].mxu1  ;;  %v18882_v48 = vpop.f32.mrb[125].mxu0 }
 0x464   : >> { %v18918_v62 = vpop.f32.mrb[125].mxu1  ;;  %v4848_v28 = vpop.f32.mrb[126].mxu0 }
 0x465   : >> { %v5054_v19 = vadd.f32 %v5021_v15, %v4878_v29  ;;  %v4879_v5 = vadd.f32 %v4848_v28, %v4722_v30  ;;  %v5024_v6 = vpop.f32.mrb[126].mxu1  ;;  %v18883_v49 = vpop.f32.mrb[127].mxu0 }
 0x466   : >> { %v18919_v11 = vpop.f32.mrb[127].mxu1 }
 0x467   : >> { %v23752_v9 = vadd.f32 %v5024_v6, %v4879_v5 }
 0x46a   : >> { %v4853_v0 = vpop.f32.mrb[128].mxu0 }
 0x46b   : >> { %v4880_v59 = vadd.f32 %v4853_v0, %v4723_v40  ;;  %v5029_v43 = vpop.f32.mrb[128].mxu1  ;;  %v18886_v41 = vpop.f32.mrb[129].mxu0 }
 0x46c   : >> { %v18922_v50 = vpop.f32.mrb[129].mxu1  ;;  %v4856_v31 = vpop.f32.mrb[130].mxu0 }
 0x46d   : >> { %v23754_v3 = vadd.f32 %v5029_v43, %v4880_v59  ;;  %v4881_v1 = vadd.f32 %v4856_v31, %v4724_v12  ;;  %v5032_v20 = vpop.f32.mrb[130].mxu1  ;;  %v18887_v32 = vpop.f32.mrb[131].mxu0 }
 0x46e   : >> { %v18923_v27 = vpop.f32.mrb[131].mxu1 }
 0x46f   : >> { %v23756_v7 = vadd.f32 %v5032_v20, %v4881_v1 }
 0x472   : >> { %v4861_v30 = vpop.f32.mrb[132].mxu0 }
 0x473   : >> { %v4882_v22 = vadd.f32 %v4861_v30, %v4725_v58  ;;  %v5037_v37 = vpop.f32.mrb[132].mxu1  ;;  %v18890_v25 = vpop.f32.mrb[133].mxu0 }
 0x474   : >> { %v18926_v26 = vpop.f32.mrb[133].mxu1  ;;  %v4864_v57 = vpop.f32.mrb[134].mxu0 }
 0x475   : >> { %v23758_v21 = vadd.f32 %v5037_v37, %v4882_v22  ;;  %v4883_v40 = vadd.f32 %v4864_v57, %v4726_v18  ;;  %v5040_v47 = vpop.f32.mrb[134].mxu1  ;;  %v18891_v14 = vpop.f32.mrb[135].mxu0 }
 0x476   : >> { %v18927_v36 = vpop.f32.mrb[135].mxu1 }
 0x477   : >> { %v23760_v53 = vadd.f32 %v5040_v47, %v4883_v40 }
 0x47a   : >> { %v4869_v12 = vpop.f32.mrb[136].mxu0 }
 0x47b   : >> { %v4884_v56 = vadd.f32 %v4869_v12, %v4727_v38  ;;  %v5045_v44 = vpop.f32.mrb[136].mxu1  ;;  %v18894_v39 = vpop.f32.mrb[137].mxu0  ;;  %v23769_v38 = vld [vmem:[%s26817_s4] ss:$0 sm:$0xff] }
 0x47c   : >> { %v18930_v24 = vpop.f32.mrb[137].mxu1  ;;  %v4872_v52 = vpop.f32.mrb[138].mxu0 }
 0x47d   : >> { %v23762_v2 = vadd.f32 %v5045_v44, %v4884_v56  ;;  %v4885_v58 = vadd.f32 %v4872_v52, %v4728_v34  ;;  %v5048_v46 = vpop.f32.mrb[138].mxu1  ;;  %v18895_v33 = vpop.f32.mrb[139].mxu0 }
 0x47e   : >> { %v18931_v63 = vpop.f32.mrb[139].mxu1 }
 0x47f   : >> { %v23764_v4 = vadd.f32 %v5048_v46, %v4885_v58 }
 0x482   : >> { %v5189_v18 = vpop.f32.mrb[140].mxu0 }
 0x483   : >> { %v5228_v23 = vadd.f32 %v5189_v18, %v5052_v61  ;;  %v5338_v35 = vpop.f32.mrb[140].mxu1  ;;  %v18950_v16 = vpop.f32.mrb[141].mxu0 }
 0x484   : >> { %v18986_v45 = vpop.f32.mrb[141].mxu1  ;;  %v5192_v8 = vpop.f32.mrb[142].mxu0 }
 0x485   : >> { %v5377_v17 = vadd.f32 %v5338_v35, %v5228_v23  ;;  %v5229_v13 = vadd.f32 %v5192_v8, %v5053_v55  ;;  %v5341_v34 = vpop.f32.mrb[142].mxu1  ;;  %v18951_v60 = vpop.f32.mrb[143].mxu0 }
 0x486   : >> { %v18987_v51 = vpop.f32.mrb[143].mxu1 }
 0x487   : >> { %v5394_v42 = vadd.f32 %v23769_v38, %v5377_v17  ;;  %v5378_v54 = vadd.f32 %v5341_v34, %v5229_v13 }
 0x489   : >> { %v5395_v61 = vadd.f32 %v23769_v38, %v5378_v54  ;;  %v5404_v29 = vmax.f32 %v5394_v42, 0.0 }
 0x48a   : >> { %v5197_v10 = vpop.f32.mrb[144].mxu0 }
 0x48b   : >> { %v5405_v15 = vmax.f32 %v5395_v61, 0.0  ;;  %v5230_v48 = vadd.f32 %v5197_v10, %v5054_v19  ;;  %v5346_v62 = vpop.f32.mrb[144].mxu1  ;;  %v18954_v28 = vpop.f32.mrb[145].mxu0 }
 0x48c   : >> { %v18990_v5 = vpop.f32.mrb[145].mxu1  ;;  %v5200_v6 = vpop.f32.mrb[146].mxu0 }
 0x48d   : >> { %v5414_v49 = vpack.c.bf16 %v5405_v15, %v5404_v29  ;;  %v5379_v11 = vadd.f32 %v5346_v62, %v5230_v48  ;;  %v5231_v55 = vadd.f32 %v5200_v6, %v23752_v9  ;;  %v5349_v0 = vpop.f32.mrb[146].mxu1  ;;  %v18955_v59 = vpop.f32.mrb[147].mxu0 }
 0x48e   : >> { %v18991_v43 = vpop.f32.mrb[147].mxu1 }
 0x48f   : >> { %5422 = vst [vmem:[%s23775_s29] sm:$0xff] %v5414_v49  ;;  %v5396_v41 = vadd.f32 %v23769_v38, %v5379_v11  ;;  %v5380_v50 = vadd.f32 %v5349_v0, %v5231_v55  ;;  %v21058_v11 = vld [vmem:[%s26818_s5 + $0x48] sm:$0xff] (%p2771_p12)   ;;  %v21060_v55 = vld [vmem:[%s26818_s5 + $0x58] sm:$0xff] (%p2771_p12)  }
 0x491   : >> { %v5397_v19 = vadd.f32 %v23769_v38, %v5380_v50  ;;  %v5406_v1 = vmax.f32 %v5396_v41, 0.0 }
 0x492   : >> { %v5205_v31 = vpop.f32.mrb[148].mxu0 }
 0x493   : >> { %v5407_v20 = vmax.f32 %v5397_v19, 0.0  ;;  %v5232_v32 = vadd.f32 %v5205_v31, %v23754_v3  ;;  %v5354_v27 = vpop.f32.mrb[148].mxu1  ;;  %v18958_v9 = vpop.f32.mrb[149].mxu0  ;;  %v21061_v19 = vld [vmem:[%s26818_s5 + $0x60] sm:$0xff] (%p2771_p12)   ;;  %v21062_v31 = vld [vmem:[%s26818_s5 + $0x68] sm:$0xff] (%p2771_p12)  }
 0x494   : >> { %v18994_v30 = vpop.f32.mrb[149].mxu1  ;;  %v5208_v22 = vpop.f32.mrb[150].mxu0 }
 0x495   : >> { %v5415_v37 = vpack.c.bf16 %v5407_v20, %v5406_v1  ;;  %v5381_v25 = vadd.f32 %v5354_v27, %v5232_v32  ;;  %v5233_v26 = vadd.f32 %v5208_v22, %v23756_v7  ;;  %v5357_v57 = vpop.f32.mrb[150].mxu1  ;;  %v18959_v40 = vpop.f32.mrb[151].mxu0  ;;  %v21063_v1 = vld [vmem:[%s26818_s5 + $0x70] sm:$0xff] (%p2771_p12)   ;;  %v21064_v20 = vld [vmem:[%s26818_s5 + $0x78] sm:$0xff] (%p2771_p12)   ;;  %v21065_v30 = vld [vmem:[%s26818_s5] sm:$0xff] (%p2771_p12)  }
 0x496   : >> { %v18995_v47 = vpop.f32.mrb[151].mxu1 }
 0x497   : >> { %5423 = vst [vmem:[%s23775_s29 + $0x8] sm:$0xff] %v5415_v37  ;;  %v5398_v14 = vadd.f32 %v23769_v38, %v5381_v25  ;;  %v5382_v36 = vadd.f32 %v5357_v57, %v5233_v26  ;;  %v21066_v25 = vld [vmem:[%s26818_s5 + $0x8] sm:$0xff] (%p2771_p12)   ;;  %v21067_v47 = vld [vmem:[%s26818_s5 + $0x10] sm:$0xff] (%p2771_p12)  }
 0x499   : >> { %v5399_v12 = vadd.f32 %v23769_v38, %v5382_v36  ;;  %v5408_v3 = vmax.f32 %v5398_v14, 0.0  ;;  %v21068_v14 = vld [vmem:[%s26818_s5 + $0x18] sm:$0xff] (%p2771_p12)  }
 0x49a   : >> { %v5213_v56 = vpop.f32.mrb[152].mxu0 }
 0x49b   : >> { %v5409_v44 = vmax.f32 %v5399_v12, 0.0  ;;  %v5234_v39 = vadd.f32 %v5213_v56, %v23758_v21  ;;  %v5362_v24 = vpop.f32.mrb[152].mxu1  ;;  %v18962_v52 = vpop.f32.mrb[153].mxu0  ;;  %v21069_v56 = vld [vmem:[%s26818_s5 + $0x20] sm:$0xff] (%p2771_p12)  }
 0x49c   : >> { %v18998_v58 = vpop.f32.mrb[153].mxu1  ;;  %v5216_v46 = vpop.f32.mrb[154].mxu0  ;;  %v21074_v52 = vld [vmem:[%s26818_s5 + $0x88] sm:$0xff] (%p2771_p12)  }
 0x49d   : >> { %v5416_v7 = vpack.c.bf16 %v5409_v44, %v5408_v3  ;;  %v5383_v33 = vadd.f32 %v5362_v24, %v5234_v39  ;;  %v5235_v63 = vadd.f32 %v5216_v46, %v23760_v53  ;;  %v5365_v18 = vpop.f32.mrb[154].mxu1  ;;  %v18963_v23 = vpop.f32.mrb[155].mxu0  ;;  %v21070_v3 = vld [vmem:[%s26818_s5 + $0x28] sm:$0xff] (%p2771_p12)   ;;  %v21071_v44 = vld [vmem:[%s26818_s5 + $0x30] sm:$0xff] (%p2771_p12)   ;;  %v21072_v39 = vld [vmem:[%s26818_s5 + $0x38] sm:$0xff] (%p2771_p12)  }
 0x49e   : >> { %v18999_v35 = vpop.f32.mrb[155].mxu1  ;;  %v21073_v24 = vld [vmem:[%s26818_s5 + $0x80] sm:$0xff] (%p2771_p12)   ;;  %v21075_v58 = vld [vmem:[%s26818_s5 + $0x90] sm:$0xff] (%p2771_p12)   ;;  %v21076_v46 = vld [vmem:[%s26818_s5 + $0x98] sm:$0xff] (%p2771_p12)  }
 0x49f   : >> { %5424 = vst [vmem:[%s23775_s29 + $0x10] sm:$0xff] %v5416_v7  ;;  %v5400_v16 = vadd.f32 %v23769_v38, %v5383_v33  ;;  %v5384_v45 = vadd.f32 %v5365_v18, %v5235_v63  ;;  %v21077_v7 = vld [vmem:[%s26818_s5 + $0xa0] sm:$0xff] (%p2771_p12)   ;;  %v21078_v33 = vld [vmem:[%s26818_s5 + $0xa8] sm:$0xff] (%p2771_p12)   ;;  %v21079_v63 = vld [vmem:[%s26818_s5 + $0xb0] sm:$0xff] (%p2771_p12)  }
 0x4a0   : > { %v21080_v18 = vld [vmem:[%s26818_s5 + $0xb8] sm:$0xff] (%p2771_p12)   ;;  %v21081_v23 = vld [vmem:[%s26818_s5 + $0xc0] sm:$0xff] (%p2771_p12)   ;;  %v21082_v35 = vld [vmem:[%s26818_s5 + $0xc8] sm:$0xff] (%p2771_p12)  }
 0x4a1   : >> { %v5401_v8 = vadd.f32 %v23769_v38, %v5384_v45  ;;  %v5410_v21 = vmax.f32 %v5400_v16, 0.0  ;;  %v21083_v16 = vld [vmem:[%s26818_s5 + $0xd0] sm:$0xff] (%p2771_p12)  }
 0x4a2   : >> { %v5221_v17 = vpop.f32.mrb[156].mxu0 }
 0x4a3   : >> { %v5411_v13 = vmax.f32 %v5401_v8, 0.0  ;;  %v5236_v34 = vadd.f32 %v5221_v17, %v23762_v2  ;;  %v5370_v60 = vpop.f32.mrb[156].mxu1  ;;  %v18966_v51 = vpop.f32.mrb[157].mxu0  ;;  %v21084_v8 = vld [vmem:[%s26818_s5 + $0xd8] sm:$0xff] (%p2771_p12)  }
 0x4a4   : >> { %v19002_v42 = vpop.f32.mrb[157].mxu1  ;;  %v5224_v53 = vpop.f32.mrb[158].mxu0  ;;  %v21089_v51 = vld [vmem:[%s26818_s5 + $0x100] sm:$0xff] (%p2771_p12)  }
 0x4a5   : >> { %v5417_v54 = vpack.c.bf16 %v5411_v13, %v5410_v21  ;;  %v5385_v61 = vadd.f32 %v5370_v60, %v5236_v34  ;;  %v5237_v10 = vadd.f32 %v5224_v53, %v23764_v4  ;;  %v5373_v29 = vpop.f32.mrb[158].mxu1  ;;  %v18967_v15 = vpop.f32.mrb[159].mxu0  ;;  %v21057_v4 = vld [vmem:[%s26818_s5 + $0x40] sm:$0xff] (%p2771_p12)   ;;  %v21086_v13 = vld [vmem:[%s26818_s5 + $0xe8] sm:$0xff] (%p2771_p12)   ;;  %v21087_v34 = vld [vmem:[%s26818_s5 + $0xf0] sm:$0xff] (%p2771_p12)  }
 0x4a6   : >> { %v19003_v48 = vpop.f32.mrb[159].mxu1  ;;  %19004 = vmatprep.subr.bf16.mxu0 (%p2771_p12), %v21057_v4  ;;  %v21085_v21 = vld [vmem:[%s26818_s5 + $0xe0] sm:$0xff] (%p2771_p12)   ;;  %v21088_v60 = vld [vmem:[%s26818_s5 + $0xf8] sm:$0xff] (%p2771_p12)   ;;  %v21090_v53 = vld [vmem:[%s26818_s5 + $0x108] sm:$0xff] (%p2771_p12)  }
 0x4a7   : >> { %5425 = vst [vmem:[%s23775_s29 + $0x18] sm:$0xff] %v5417_v54  ;;  %v5402_v62 = vadd.f32 %v23769_v38, %v5385_v61  ;;  %v5386_v28 = vadd.f32 %v5373_v29, %v5237_v10  ;;  %19005 = vmatpush3.bf16.msra.mxu0 (%p2771_p12), %v21057_v4  ;;  %v21091_v10 = vld [vmem:[%s26818_s5 + $0x110] sm:$0xff] (%p2771_p12)   ;;  %v21092_v48 = vld [vmem:[%s26818_s5 + $0x118] sm:$0xff] (%p2771_p12)   ;;  %v23948_v4 = vld [vmem:[%s26818_s5 + $0x140] sm:$0xff] (%p2771_p12)  }
 0x4a8   : > { %19006 = vmatprep.subr.bf16.mxu0 (%p2771_p12), %v21058_v11 }
 0x4a9   : >> { %v5403_v5 = vadd.f32 %v23769_v38, %v5386_v28  ;;  %v5412_v6 = vmax.f32 %v5402_v62, 0.0  ;;  %2773 = sbr.rel (!%p2771_p12) target bundleno = 630 (0x276), region = 205  ;;  %v21059_v38 = vld [vmem:[%s26818_s5 + $0x50] sm:$0xff] (%p2771_p12)  }
 0x4ab   : >> { %v5413_v2 = vmax.f32 %v5403_v5, 0.0  ;;  %19007 = vmatpush3.bf16.msra.mxu0 (%p2771_p12), %v21058_v11  ;;  %v21093_v5 = vld [vmem:[%s26818_s5 + $0x120] sm:$0xff] (%p2771_p12)  }
 0x4ac   : > { %19008 = vmatprep.subr.bf16.mxu0 (%p2771_p12), %v21059_v38 }
 0x4ad   : >> { %v5418_v49 = vpack.c.bf16 %v5413_v2, %v5412_v6  ;;  %v21094_v6 = vld [vmem:[%s26818_s5 + $0x128] sm:$0xff] (%p2771_p12)   ;;  %v21095_v2 = vld [vmem:[%s26818_s5 + $0x130] sm:$0xff] (%p2771_p12)  }
 0x4af   : >> { %5426 = vst [vmem:[%s23775_s29 + $0x20] sm:$0xff] %v5418_v49  ;;  %19009 = vmatpush3.bf16.msra.mxu0 (%p2771_p12), %v21059_v38  ;;  %v21096_v49 = vld [vmem:[%s26818_s5 + $0x138] sm:$0xff] (%p2771_p12)   ;;  %s26905_s29 = sand.u32 (%p2771_p12), 1, %s21871_s10  }
 0x4b0   : > { %19010 = vmatprep.subr.bf16.mxu0 %v21060_v55  ;;  %s15118_s13 = scalar_lea.sflag [#allocation5], %s26905_s29 }
 0x4b3   : > { %19011 = vmatpush3.bf16.msra.mxu0 %v21060_v55  ;;  %v23954_v55 = vld [vmem:[%s26818_s5 + $0x148] sm:$0xff]  }
 0x4b4   : > { %19012 = vmatprep.subr.bf16.mxu0 %v21061_v19 }
 0x4b6   : > { %v23811_v0 = vld [vmem:[#allocation3 + $0x8] sm:$0xff]  ;;  %v5473_v59 = vld [vmem:[#allocation3] sm:$0xf0]  ;;  %v23827_v32 = vld [vmem:[#allocation3 + $0x10] sm:$0xff] }
 0x4b7   : > { %v5498_v43 = vrot.slane %v5473_v59, 4  ;;  %v5499_v41 = vrot.slane %v23811_v0, 4  ;;  %19013 = vmatpush3.bf16.msra.mxu0 %v21061_v19  ;;  %v23829_v27 = vld [vmem:[#allocation3 + $0x18] sm:$0xff]  ;;  %v5501_v9 = vrot.slane %v23827_v32, 4  ;;  %v5474_v57 = vld [vmem:[#allocation3 + $0x20] sm:$0xf] }
 0x4b8   : > { %19014 = vmatprep.subr.bf16.mxu0 %v21062_v31  ;;  %v5503_v22 = vrot.slane %v23829_v27, 4  ;;  %v5505_v40 = vrot.slane %v5474_v57, 4  ;;  %v5453_v12 = vld [vmem:[#allocation3] sm:$0xff]  ;;  %v5877_v17 = vld [vmem:[#allocation3 + $0x28] sm:$0xff]  ;;  %v5878_v42 = vld [vmem:[#allocation3 + $0x30] sm:$0xff] }
 0x4b9   : > { %v5500_v50 = vsel %vm2829_vm2, %v5498_v43, %v5499_v41  ;;  %v5502_v37 = vsel %vm2829_vm2, %v5499_v41, %v5501_v9  ;;  %v5737_v45 = vld [vmem:[#allocation3 + $0x20] sm:$0xff]  ;;  %v23920_v54 = vld [vmem:[#allocation3 + $0x38] sm:$0xff]  ;;  %v6019_v61 = vld [vmem:[#allocation3 + $0x28] sm:$0xf0]  ;;  %v6047_v15 = vrot.slane %v5878_v42, 4 }
 0x4ba   : > { %19020 = vmatprep.mubr.bf16.mxu0 %v5500_v50  ;;  %v5504_v26 = vsel %vm2829_vm2, %v5501_v9, %v5503_v22  ;;  %v5506_v36 = vsel %vm2829_vm2, %v5503_v22, %v5505_v40  ;;  %v6046_v29 = vrot.slane %v6019_v61, 4  ;;  %v5880_v62 = vld [vmem:[#allocation3 + $0x40] sm:$0xff]  ;;  %v6049_v11 = vrot.slane %v23920_v54, 4  ;;  %v23968_v41 = vld [vmem:[%s26818_s5 + $0x150] sm:$0xff]   ;;  %v23975_v19 = vld [vmem:[%s26818_s5 + $0x158] sm:$0xff]  }
 0x4bb   : > { %19015 = vmatpush3.bf16.msra.mxu0 %v21062_v31  ;;  %v6051_v38 = vrot.slane %v5880_v62, 4  ;;  %v24016_v9 = vld [vmem:[%s26818_s5 + $0x180] sm:$0xff]   ;;  %v24031_v22 = vld [vmem:[%s26818_s5 + $0x190] sm:$0xff]   ;;  %v24058_v40 = vld [vmem:[%s26818_s5 + $0x1a8] sm:$0xff]  }
 0x4bc   : > { %19016 = vmatprep.subr.bf16.mxu0 %v21063_v1  ;;  %v23930_v28 = vsel %vm2829_vm2, %v6046_v29, %v6047_v15  ;;  %v23957_v59 = vsel %vm2829_vm2, %v6047_v15, %v6049_v11  ;;  %v24051_v57 = vld [vmem:[%s26818_s5 + $0x1a0] sm:$0xff]   ;;  %v24206_v61 = vld [vmem:[%s26818_s5 + $0x230] sm:$0xff]  }
 0x4bd   : > { %v23961_v43 = vsel %vm2829_vm2, %v6049_v11, %v6051_v38  ;;  %26863 = vst [vmem:[#allocation8_spill] sm:$0xff] %v24206_v61  ;;  %v21131_v29 = vld [vmem:[%s26820_s7 + $0x4] ss:$16 sps:$4 sm:$0xff]   ;;  %v21129_v15 = vld [vmem:[%s26820_s7] ss:$16 sps:$4 sm:$0xff]  }
 0x4be   : > { %v21140_v11 = vld [vmem:[%s26820_s7 + $0x60] ss:$16 sps:$4 sm:$0xff]  }
 0x4bf   : > { %19017 = vmatpush3.bf16.msra.mxu0 %v21063_v1  ;;  %v23985_v1 = vld [vmem:[%s26818_s5 + $0x160] sm:$0xff]  }
 0x4c0   : > { %19018 = vmatprep.subr.bf16.mxu0 %v21064_v20 }
 0x4c3   : > { %19019 = vmatpush3.bf16.msra.mxu0 %v21064_v20  ;;  %v23993_v20 = vld [vmem:[%s26818_s5 + $0x168] sm:$0xff]  }
 0x4c4   : > { %19028 = vmatprep.subr.bf16.mxu0 %v21065_v30 }
 0x4c6   : > { %19021 = vmatmul.mubr.bf16.vlgmr.msra.gmra.mrb[0].mxu0 %v5502_v37  ;;  %v24034_v37 = vld [vmem:[#allocation3 + $0x48] sm:$0xff] }
 0x4c7   : > { %19029 = vmatpush3.bf16.msra.mxu0 %v21065_v30  ;;  %19024 = vmatprep.mubr.bf16.mxu0 %v5504_v26  ;;  %v24023_v30 = vld [vmem:[%s26818_s5 + $0x188] sm:$0xff]   ;;  %v24042_v26 = vld [vmem:[#allocation3 + $0x50] sm:$0xff] }
 0x4c8   : > { %19030 = vmatprep.subr.bf16.mxu0 %v21066_v25 }
 0x4cb   : > { %19031 = vmatpush3.bf16.msra.mxu0 %v21066_v25  ;;  %v24040_v25 = vld [vmem:[%s26818_s5 + $0x198] sm:$0xff]  }
 0x4cc   : > { %19032 = vmatprep.subr.bf16.mxu0 %v21067_v47 }
 0x4ce   : > { %19025 = vmatmul.mubr.bf16.gmra.mrb[4].mxu0 %v5506_v36  ;;  %v24079_v36 = vld [vmem:[%s26818_s5 + $0x1c0] sm:$0xff]  }
 0x4cf   : > { %19033 = vmatpush3.bf16.msra.mxu0 %v21067_v47  ;;  %19044 = vmatprep.mubr.bf16.mxu0 %v5453_v12  ;;  %v24065_v47 = vld [vmem:[%s26818_s5 + $0x1b0] sm:$0xff]   ;;  %v24082_v12 = vld [vmem:[#allocation3 + $0x58] sm:$0xff] }
 0x4d0   : > { %19034 = vmatprep.subr.bf16.mxu0 %v21068_v14 }
 0x4d3   : > { %19035 = vmatpush3.bf16.msra.mxu0 %v21068_v14  ;;  %v24072_v14 = vld [vmem:[%s26818_s5 + $0x1b8] sm:$0xff]  }
 0x4d4   : > { %19036 = vmatprep.subr.bf16.mxu0 %v21069_v56 }
 0x4d7   : > { %19037 = vmatpush3.bf16.msra.mxu0 %v21069_v56  ;;  %v24088_v56 = vld [vmem:[%s26818_s5 + $0x1c8] sm:$0xff]  }
 0x4d8   : > { %19038 = vmatprep.subr.bf16.mxu0 %v21070_v3 }
 0x4db   : > { %19039 = vmatpush3.bf16.msra.mxu0 %v21070_v3  ;;  %v24090_v3 = vld [vmem:[#allocation3 + $0x60] sm:$0xff] }
 0x4dc   : > { %19040 = vmatprep.subr.bf16.mxu0 %v21071_v44 }
 0x4df   : > { %19041 = vmatpush3.bf16.msra.mxu0 %v21071_v44  ;;  %v6462_v44 = vld [vmem:[#allocation3 + $0x50] sm:$0xf0] }
 0x4e0   : > { %19042 = vmatprep.subr.bf16.mxu0 %v21072_v39 }
 0x4e3   : > { %19043 = vmatpush3.bf16.msra.mxu0 %v21072_v39  ;;  %v24099_v39 = vld [vmem:[%s26818_s5 + $0x1d0] sm:$0xff]  }
 0x4e4   : > { %19052 = vmatprep.subr.bf16.mxu0 %v21073_v24 }
 0x4e6   : > { %19045 = vmatmul.mubr.bf16.vlgmr.msra.gmra.mrb[0].mxu0 %v23811_v0 }
 0x4e7   : > { %19053 = vmatpush3.bf16.msra.mxu0 %v21073_v24  ;;  %19048 = vmatprep.mubr.bf16.mxu0 %v23827_v32  ;;  %v6489_v24 = vrot.slane %v6462_v44, 4  ;;  %v16325_v44 = vld [vmem:[%s26819_s6] ss:$0 sm:$0xff] }
 0x4e8   : > { %19054 = vmatprep.subr.bf16.mxu0 %v21074_v52 }
 0x4eb   : > { %19055 = vmatpush3.bf16.msra.mxu0 %v21074_v52  ;;  %v6490_v52 = vrot.slane %v24082_v12, 4 }
 0x4ec   : > { %19056 = vmatprep.subr.bf16.mxu0 %v21075_v58 }
 0x4ee   : > { %19049 = vmatmul.mubr.bf16.gmra.mrb[4].mxu0 %v23829_v27 }
 0x4ef   : > { %19057 = vmatpush3.bf16.msra.mxu0 %v21075_v58  ;;  %19068 = vmatprep.mubr.bf16.mxu0 %v23811_v0  ;;  %v6023_v0 = vld [vmem:[#allocation3 + $0x48] sm:$0xf] }
 0x4f0   : > { %19058 = vmatprep.subr.bf16.mxu0 %v21076_v46  ;;  %v6053_v50 = vrot.slane %v6023_v0, 4  ;;  %v24103_v58 = vld [vmem:[#allocation3 + $0x68] sm:$0xff]  ;;  %v26828_v0 = vmov 0  }
 0x4f1   : > { %7013 = vmatprep.mubr.bf16.mxu1 %v26828_v0 }
 0x4f2   : > { %v23979_v31 = vsel %vm2829_vm2, %v6051_v38, %v6053_v50  ;;  %v21143_v38 = vld [vmem:[%s26820_s7 + $0xc] ss:$16 sps:$4 sm:$0xff]  }
 0x4f3   : > { %19059 = vmatpush3.bf16.msra.mxu0 %v21076_v46  ;;  %v24109_v46 = vld [vmem:[%s26818_s5 + $0x1d8] sm:$0xff]  }
 0x4f4   : > { %19060 = vmatprep.subr.bf16.mxu0 %v21077_v7  ;;  %v21146_v50 = vld [vmem:[%s26820_s7 + $0x4c] ss:$16 sps:$4 sm:$0xff]  }
 0x4f7   : > { %19061 = vmatpush3.bf16.msra.mxu0 %v21077_v7  ;;  %v24112_v7 = vsel %vm2829_vm2, %v6489_v24, %v6490_v52 }
 0x4f8   : > { %19062 = vmatprep.subr.bf16.mxu0 %v21078_v33 }
 0x4fb   : > { %19063 = vmatpush3.bf16.msra.mxu0 %v21078_v33  ;;  %v24121_v33 = vld [vmem:[%s26818_s5 + $0x1e0] sm:$0xff]  }
 0x4fc   : > { %19064 = vmatprep.subr.bf16.mxu0 %v21079_v63 }
 0x4ff   : > { %19065 = vmatpush3.bf16.msra.mxu0 %v21079_v63  ;;  %v24128_v63 = vld [vmem:[%s26818_s5 + $0x1e8] sm:$0xff]  }
 0x500   : > { %19066 = vmatprep.subr.bf16.mxu0 %v21080_v18 }
 0x503   : > { %19067 = vmatpush3.bf16.msra.mxu0 %v21080_v18  ;;  %v24135_v18 = vld [vmem:[%s26818_s5 + $0x1f0] sm:$0xff]  }
 0x504   : > { %19076 = vmatprep.subr.bf16.mxu0 %v21081_v23 }
 0x506   : > { %19069 = vmatmul.mubr.bf16.vlgmr.msra.gmra.mrb[0].mxu0 %v23827_v32  ;;  %v24000_v32 = vld [vmem:[%s26818_s5 + $0x170] sm:$0xff]  }
 0x507   : > { %19077 = vmatpush3.bf16.msra.mxu0 %v21081_v23  ;;  %19072 = vmatprep.mubr.bf16.mxu0 %v23829_v27  ;;  %v24007_v27 = vld [vmem:[%s26818_s5 + $0x178] sm:$0xff]  }
 0x508   : > { %19078 = vmatprep.subr.bf16.mxu0 %v21082_v35  ;;  %v24142_v23 = vld [vmem:[%s26818_s5 + $0x1f8] sm:$0xff]  }
 0x50b   : > { %19079 = vmatpush3.bf16.msra.mxu0 %v21082_v35  ;;  %v6492_v35 = vrot.slane %v24090_v3, 4 }
 0x50c   : > { %19080 = vmatprep.subr.bf16.mxu0 %v21083_v16 }
 0x50e   : > { %19073 = vmatmul.mubr.bf16.gmra.mrb[4].mxu0 %v5737_v45  ;;  %v6494_v45 = vrot.slane %v24103_v58, 4 }
 0x50f   : > { %19081 = vmatpush3.bf16.msra.mxu0 %v21083_v16  ;;  %19092 = vmatprep.mubr.bf16.mxu0 %v5877_v17  ;;  %v24150_v16 = vld [vmem:[%s26818_s5 + $0x200] sm:$0xff]   ;;  %v24161_v17 = vld [vmem:[%s26818_s5 + $0x208] sm:$0xff]  }
 0x510   : > { %19082 = vmatprep.subr.bf16.mxu0 %v21084_v8 }
 0x513   : > { %19083 = vmatpush3.bf16.msra.mxu0 %v21084_v8  ;;  %v24155_v8 = vsel %vm2829_vm2, %v6490_v52, %v6492_v35 }
 0x514   : > { %19084 = vmatprep.subr.bf16.mxu0 %v21085_v21 }
 0x517   : > { %19085 = vmatpush3.bf16.msra.mxu0 %v21085_v21  ;;  %v24164_v21 = vsel %vm2829_vm2, %v6492_v35, %v6494_v45 }
 0x518   : > { %19086 = vmatprep.subr.bf16.mxu0 %v21086_v13 }
 0x51b   : > { %19087 = vmatpush3.bf16.msra.mxu0 %v21086_v13  ;;  %v6466_v13 = vld [vmem:[#allocation3 + $0x70] sm:$0xf] }
 0x51c   : > { %19088 = vmatprep.subr.bf16.mxu0 %v21087_v34 }
 0x51f   : > { %19089 = vmatpush3.bf16.msra.mxu0 %v21087_v34  ;;  %v6496_v34 = vrot.slane %v6466_v13, 4 }
 0x520   : > { %19090 = vmatprep.subr.bf16.mxu0 %v21088_v60 }
 0x523   : > { %19091 = vmatpush3.bf16.msra.mxu0 %v21088_v60  ;;  %v24173_v60 = vld [vmem:[%s26818_s5 + $0x210] sm:$0xff]  }
 0x524   : > { %19100 = vmatprep.subr.bf16.mxu0 %v21089_v51 }
 0x526   : > { %19093 = vmatmul.mubr.bf16.vlgmr.msra.gmra.mrb[0].mxu0 %v5878_v42 }
 0x527   : > { %19101 = vmatpush3.bf16.msra.mxu0 %v21089_v51  ;;  %19096 = vmatprep.mubr.bf16.mxu0 %v23920_v54  ;;  %v24177_v51 = vsel %vm2829_vm2, %v6494_v45, %v6496_v34 }
 0x528   : > { %19102 = vmatprep.subr.bf16.mxu0 %v21090_v53 }
 0x52b   : > { %19103 = vmatpush3.bf16.msra.mxu0 %v21090_v53  ;;  %v24192_v53 = vld [vmem:[%s26818_s5 + $0x220] sm:$0xff]  }
 0x52c   : > { %19104 = vmatprep.subr.bf16.mxu0 %v21091_v10 }
 0x52e   : > { %19097 = vmatmul.mubr.bf16.gmra.mrb[4].mxu0 %v5880_v62 }
 0x52f   : > { %19105 = vmatpush3.bf16.msra.mxu0 %v21091_v10  ;;  %19116 = vmatprep.mubr.bf16.mxu0 %v23930_v28  ;;  %v24213_v10 = vld [vmem:[%s26818_s5 + $0x238] sm:$0xff]  }
 0x530   : > { %19106 = vmatprep.subr.bf16.mxu0 %v21092_v48  ;;  %26864 = vst [vmem:[#allocation9_spill] sm:$0xff] %v24213_v10 }
 0x533   : > { %19107 = vmatpush3.bf16.msra.mxu0 %v21092_v48  ;;  %v24226_v48 = vld [vmem:[#allocation3 + $0x70] sm:$0xff] }
 0x534   : > { %19108 = vmatprep.subr.bf16.mxu0 %v21093_v5 }
 0x537   : > { %19109 = vmatpush3.bf16.msra.mxu0 %v21093_v5  ;;  %v21137_v5 = vld [vmem:[%s26820_s7 + $0x40] ss:$16 sps:$4 sm:$0xff]  }
 0x538   : > { %19110 = vmatprep.subr.bf16.mxu0 %v21094_v6 }
 0x53b   : > { %19111 = vmatpush3.bf16.msra.mxu0 %v21094_v6  ;;  %v21134_v6 = vld [vmem:[%s26820_s7 + $0x24] ss:$16 sps:$4 sm:$0xff]  }
 0x53c   : > { %19112 = vmatprep.subr.bf16.mxu0 %v21095_v2 }
 0x53f   : > { %19113 = vmatpush3.bf16.msra.mxu0 %v21095_v2  ;;  %v21132_v2 = vld [vmem:[%s26820_s7 + $0x20] ss:$16 sps:$4 sm:$0xff]  }
 0x540   : > { %19114 = vmatprep.subr.bf16.mxu0 %v21096_v49 }
 0x543   : > { %19115 = vmatpush3.bf16.msra.mxu0 %v21096_v49  ;;  %v21138_v49 = vld [vmem:[%s26820_s7 + $0x64] ss:$16 sps:$4 sm:$0xff]  }
 0x544   : > { %19124 = vmatprep.subr.bf16.mxu0 %v23948_v4 }
 0x546   : > { %19117 = vmatmul.mubr.bf16.vlgmr.msra.gmra.mrb[0].mxu0 %v23957_v59 }
 0x547   : > { %19125 = vmatpush3.bf16.msra.mxu0 %v23948_v4  ;;  %19120 = vmatprep.mubr.bf16.mxu0 %v23961_v43 }
 0x548   : > { %19126 = vmatprep.subr.bf16.mxu0 %v23954_v55 }
 0x54b   : > { %19127 = vmatpush3.bf16.msra.mxu0 %v23954_v55 }
 0x54c   : > { %19128 = vmatprep.subr.bf16.mxu0 %v23968_v41 }
 0x54e   : > { %19121 = vmatmul.mubr.bf16.gmra.mrb[4].mxu0 %v23979_v31 }
 0x54f   : > { %19129 = vmatpush3.bf16.msra.mxu0 %v23968_v41  ;;  %19140 = vmatprep.mubr.bf16.mxu0 %v5878_v42  ;;  %v24183_v42 = vld [vmem:[%s26818_s5 + $0x218] sm:$0xff]  }
 0x550   : > { %19130 = vmatprep.subr.bf16.mxu0 %v23975_v19 }
 0x553   : > { %19131 = vmatpush3.bf16.msra.mxu0 %v23975_v19 }
 0x554   : > { %19132 = vmatprep.subr.bf16.mxu0 %v23985_v1 }
 0x557   : > { %19133 = vmatpush3.bf16.msra.mxu0 %v23985_v1 }
 0x558   : > { %19134 = vmatprep.subr.bf16.mxu0 %v23993_v20 }
 0x55b   : > { %19135 = vmatpush3.bf16.msra.mxu0 %v23993_v20 }
 0x55c   : > { %19136 = vmatprep.subr.bf16.mxu0 %v24000_v32 }
 0x55f   : > { %19137 = vmatpush3.bf16.msra.mxu0 %v24000_v32 }
 0x560   : > { %19138 = vmatprep.subr.bf16.mxu0 %v24007_v27 }
 0x563   : > { %19139 = vmatpush3.bf16.msra.mxu0 %v24007_v27 }
 0x564   : > { %19148 = vmatprep.subr.bf16.mxu0 %v24016_v9 }
 0x566   : > { %19141 = vmatmul.mubr.bf16.vlgmr.msra.gmra.mrb[0].mxu0 %v23920_v54  ;;  %v24199_v54 = vld [vmem:[%s26818_s5 + $0x228] sm:$0xff]  }
 0x567   : > { %19149 = vmatpush3.bf16.msra.mxu0 %v24016_v9  ;;  %19144 = vmatprep.mubr.bf16.mxu0 %v5880_v62  ;;  %26862 = vst [vmem:[#allocation7_spill] sm:$0xff] %v24199_v54  ;;  %v21135_v62 = vld [vmem:[%s26820_s7 + $0x44] ss:$16 sps:$4 sm:$0xff]  }
 0x568   : > { %19150 = vmatprep.subr.bf16.mxu0 %v24023_v30  ;;  %6981 = vmatprep.subr.bf16.mxu1 %v21135_v62 }
 0x569   : > { %6982 = vmatpush1.bf16.msra.mxu1 %v21137_v5 }
 0x56a   : > { %6983 = vmatprep.subr.bf16.mxu1 %v21138_v49 }
 0x56b   : > { %19151 = vmatpush3.bf16.msra.mxu0 %v24023_v30 }
 0x56c   : > { %19152 = vmatprep.subr.bf16.mxu0 %v24031_v22 }
 0x56d   : > { %6984 = vmatpush1.bf16.msra.mxu1 %v21140_v11  ;;  %v21141_v11 = vld [vmem:[%s26820_s7 + $0x8] ss:$16 sps:$4 sm:$0xff]  }
 0x56e   : > { %19145 = vmatmul.mubr.bf16.gmra.mrb[4].mxu0 %v24034_v37  ;;  %7022 = vmatprep.subr.bf16.mxu1 %v21146_v50 }
 0x56f   : > { %19153 = vmatpush3.bf16.msra.mxu0 %v24031_v22  ;;  %19164 = vmatprep.mubr.bf16.mxu0 %v24042_v26 }
 0x570   : > { %19154 = vmatprep.subr.bf16.mxu0 %v24040_v25 }
 0x573   : > { %19155 = vmatpush3.bf16.msra.mxu0 %v24040_v25 }
 0x574   : > { %19156 = vmatprep.subr.bf16.mxu0 %v24051_v57 }
 0x577   : > { %19157 = vmatpush3.bf16.msra.mxu0 %v24051_v57 }
 0x578   : > { %19158 = vmatprep.subr.bf16.mxu0 %v24058_v40 }
 0x57b   : > { %19159 = vmatpush3.bf16.msra.mxu0 %v24058_v40 }
 0x57c   : > { %19160 = vmatprep.subr.bf16.mxu0 %v24065_v47 }
 0x57f   : > { %19161 = vmatpush3.bf16.msra.mxu0 %v24065_v47 }
 0x580   : > { %19162 = vmatprep.subr.bf16.mxu0 %v24072_v14 }
 0x583   : > { %19163 = vmatpush3.bf16.msra.mxu0 %v24072_v14 }
 0x584   : > { %19172 = vmatprep.subr.bf16.mxu0 %v24079_v36 }
 0x586   : > { %19165 = vmatmul.mubr.bf16.vlgmr.msra.gmra.mrb[0].mxu0 %v24082_v12 }
 0x587   : > { %19173 = vmatpush3.bf16.msra.mxu0 %v24079_v36  ;;  %19168 = vmatprep.mubr.bf16.mxu0 %v24090_v3 }
 0x588   : > { %19174 = vmatprep.subr.bf16.mxu0 %v24088_v56 }
 0x58b   : > { %19175 = vmatpush3.bf16.msra.mxu0 %v24088_v56 }
 0x58c   : > { %19176 = vmatprep.subr.bf16.mxu0 %v24099_v39 }
 0x58e   : > { %19169 = vmatmul.mubr.bf16.gmra.mrb[4].mxu0 %v24103_v58 }
 0x58f   : > { %19177 = vmatpush3.bf16.msra.mxu0 %v24099_v39  ;;  %19188 = vmatprep.mubr.bf16.mxu0 %v24112_v7 }
 0x590   : > { %19178 = vmatprep.subr.bf16.mxu0 %v24109_v46 }
 0x593   : > { %19179 = vmatpush3.bf16.msra.mxu0 %v24109_v46 }
 0x594   : > { %19180 = vmatprep.subr.bf16.mxu0 %v24121_v33 }
 0x597   : > { %19181 = vmatpush3.bf16.msra.mxu0 %v24121_v33 }
 0x598   : > { %19182 = vmatprep.subr.bf16.mxu0 %v24128_v63 }
 0x59b   : > { %19183 = vmatpush3.bf16.msra.mxu0 %v24128_v63 }
 0x59c   : > { %19184 = vmatprep.subr.bf16.mxu0 %v24135_v18 }
 0x59f   : > { %19185 = vmatpush3.bf16.msra.mxu0 %v24135_v18 }
 0x5a0   : > { %19186 = vmatprep.subr.bf16.mxu0 %v24142_v23 }
 0x5a3   : > { %19187 = vmatpush3.bf16.msra.mxu0 %v24142_v23 }
 0x5a4   : > { %19196 = vmatprep.subr.bf16.mxu0 %v24150_v16 }
 0x5a6   : > { %19189 = vmatmul.mubr.bf16.vlgmr.msra.gmra.mrb[0].mxu0 %v24155_v8 }
 0x5a7   : > { %19197 = vmatpush3.bf16.msra.mxu0 %v24150_v16  ;;  %19192 = vmatprep.mubr.bf16.mxu0 %v24164_v21 }
 0x5a8   : > { %19198 = vmatprep.subr.bf16.mxu0 %v24161_v17 }
 0x5ab   : > { %19199 = vmatpush3.bf16.msra.mxu0 %v24161_v17 }
 0x5ac   : > { %19200 = vmatprep.subr.bf16.mxu0 %v24173_v60 }
 0x5ae   : > { %19193 = vmatmul.mubr.bf16.gmra.mrb[4].mxu0 %v24177_v51 }
 0x5af   : > { %19201 = vmatpush3.bf16.msra.mxu0 %v24173_v60  ;;  %19212 = vmatprep.mubr.bf16.mxu0 %v24082_v12 }
 0x5b0   : > { %19202 = vmatprep.subr.bf16.mxu0 %v24183_v42 }
 0x5b3   : > { %19203 = vmatpush3.bf16.msra.mxu0 %v24183_v42 }
 0x5b4   : > { %19204 = vmatprep.subr.bf16.mxu0 %v24192_v53 }
 0x5b7   : > { %19205 = vmatpush3.bf16.msra.mxu0 %v24192_v53 }
 0x5b8   : > { %19206 = vmatprep.subr.bf16.mxu0 %v24199_v54 }
 0x5bb   : > { %19207 = vmatpush3.bf16.msra.mxu0 %v24199_v54  ;;  %v21631_v54 = vld [vmem:[#allocation3 + $0x40] sm:$0xff] }
 0x5bc   : > { %19208 = vmatprep.subr.bf16.mxu0 %v24206_v61 }
 0x5bf   : > { %19209 = vmatpush3.bf16.msra.mxu0 %v24206_v61  ;;  %v21155_v61 = vld [vmem:[%s26820_s7 + $0x84] ss:$16 sps:$4 sm:$0xff]  }
 0x5c0   : > { %19210 = vmatprep.subr.bf16.mxu0 %v24213_v10 }
 0x5c3   : > { %19211 = vmatpush3.bf16.msra.mxu0 %v24213_v10  ;;  %v21150_v10 = vld [vmem:[%s26820_s7 + $0x68] ss:$16 sps:$4 sm:$0xff]  }
 0x5c4   : > { %6841 = vmatprep.subr.bf16.mxu0 %v21131_v29 }
 0x5c6   : > { %19213 = vmatmul.mubr.bf16.vlgmr.msra.gmra.mrb[0].mxu0 %v24090_v3 }
 0x5c7   : > { %19216 = vmatprep.mubr.bf16.mxu0 %v24103_v58  ;;  %6842 = vmatpush1.bf16.msra.mxu0 %v21129_v15 }
 0x5c8   : > { %6843 = vmatprep.subr.bf16.mxu0 %v21134_v6 }
 0x5cb   : > { %6844 = vmatpush1.bf16.msra.mxu0 %v21132_v2 }
 0x5cc   : > { %6882 = vmatprep.subr.bf16.mxu0 %v21143_v38 }
 0x5ce   : > { %19217 = vmatmul.mubr.bf16.gmra.mrb[4].mxu0 %v24226_v48 }
 0x5cf   : > { %6873 = vmatprep.mubr.bf16.mxu0 %v26828_v0 }
 0x699   : > { %v19214_v24 = vpop.f32.mrb[0].mxu0 }
 0x69a   : > { %v6771_v52 = vadd.f32 %v19214_v24, %v16325_v44  ;;  %v6723_v35 = vpop.f32.mrb[1].mxu0  ;;  %v21149_v24 = vld [vmem:[%s26820_s7 + $0x2c] ss:$16 sps:$4 sm:$0xff]  }
 0x69b   : > { %v6769_v45 = vadd.f32 %v16325_v44, %v6723_v35  ;;  %v19215_v13 = vpop.f32.mrb[2].mxu0 }
 0x69c   : > { %v6772_v34 = vadd.f32 %v19215_v13, %v16325_v44  ;;  %v6726_v29 = vpop.f32.mrb[3].mxu0  ;;  %v6779_v62 = vmax.f32 %v6771_v52, 0.0  ;;  %v21144_v52 = vld [vmem:[%s26820_s7 + $0x48] ss:$16 sps:$4 sm:$0xff]  }
 0x69d   : > { %v6770_v15 = vadd.f32 %v16325_v44, %v6726_v29  ;;  %v6777_v6 = vmax.f32 %v6769_v45, 0.0 }
 0x69e   : > { %v6780_v5 = vmax.f32 %v6772_v34, 0.0 }
 0x69f   : > { %v6778_v2 = vmax.f32 %v6770_v15, 0.0  ;;  %v21152_v15 = vld [vmem:[%s26820_s7 + $0x6c] ss:$16 sps:$4 sm:$0xff]  }
 0x6a0   : > { %v24258_v49 = vpack.c.bf16 %v6780_v5, %v6779_v62 }
 0x6a1   : > { %v6785_v38 = vpack.c.bf16 %v6778_v2, %v6777_v6  ;;  %v19218_v50 = vpop.f32.mrb[4].mxu0  ;;  %v21147_v6 = vld [vmem:[%s26820_s7 + $0x28] ss:$16 sps:$4 sm:$0xff]  }
 0x6a2   : > { %v6775_v35 = vadd.f32 %v19218_v50, %v16325_v44  ;;  %v6739_v13 = vpop.f32.mrb[5].mxu0 }
 0x6a3   : > { %v6773_v45 = vadd.f32 %v16325_v44, %v6739_v13  ;;  %v19219_v34 = vpop.f32.mrb[6].mxu0  ;;  %16334 = vmatmul.mubr.msk.bf16.vlgmr.msra.gmra.mrb[8].mxu0 %vm6837_vm3, %v6785_v38  ;;  %v6937_v29 = vrot.slane %v6785_v38, 4 }
 0x6a4   : > { %v6776_v62 = vadd.f32 %v19219_v34, %v16325_v44  ;;  %6883 = vmatpush1.bf16.msra.mxu0 %v21141_v11  ;;  %v6742_v5 = vpop.f32.mrb[7].mxu0  ;;  %6914 = vmatprep.mubr.bf16.mxu0 %v26828_v0  ;;  %v6783_v50 = vmax.f32 %v6775_v35, 0.0  ;;  %v24292_v35 = vld [vmem:[%s26818_s5 + $0x40] sm:$0xff]  }
 0x6a5   : > { %v6774_v2 = vadd.f32 %v16325_v44, %v6742_v5  ;;  %16352 = vmatmul.mubr.msk.bf16.vlgmr.msra.gmra.mrb[0].mxu1 %vm6837_vm3, %v6937_v29  ;;  %6884 = vmatprep.subr.bf16.mxu0 %v21149_v24  ;;  %v6781_v11 = vmax.f32 %v6773_v45, 0.0  ;;  %v21158_v45 = vld [vmem:[%s26820_s7 + $0xa4] ss:$16 sps:$4 sm:$0xff]   ;;  %v21162_v5 = vld [vmem:[%s26820_s7 + $0xa8] ss:$16 sps:$4 sm:$0xff]  }
 0x6a6   : > { %v6784_v13 = vmax.f32 %v6776_v62, 0.0  ;;  %7023 = vmatpush1.bf16.msra.mxu1 %v21144_v52  ;;  %7054 = vmatprep.mubr.bf16.mxu1 %v26828_v0  ;;  %v21153_v52 = vld [vmem:[%s26820_s7 + $0x80] ss:$16 sps:$4 sm:$0xff]   ;;  %v24337_v62 = vld [vmem:[%s26818_s5 + $0x58] sm:$0xff]  }
 0x6a7   : > { %v6782_v34 = vmax.f32 %v6774_v2, 0.0  ;;  %7024 = vmatprep.subr.bf16.mxu1 %v21152_v15  ;;  %v21164_v15 = vld [vmem:[%s26820_s7 + $0xac] ss:$16 sps:$4 sm:$0xff]   ;;  %v24351_v2 = vld [vmem:[%s26818_s5 + $0x60] sm:$0xff]  }
 0x6a8   : > { %v24285_v44 = vpack.c.bf16 %v6784_v13, %v6783_v50  ;;  %6885 = vmatpush1.bf16.msra.mxu0 %v21147_v6  ;;  %v21167_v6 = vld [vmem:[%s26820_s7 + $0xc4] ss:$16 sps:$4 sm:$0xff]   ;;  %v21165_v50 = vld [vmem:[%s26820_s7 + $0xc0] ss:$16 sps:$4 sm:$0xff]  }
 0x6a9   : > { %v24287_v24 = vpack.c.bf16 %v6782_v34, %v6781_v11  ;;  %19220 = vmatprep.subr.bf16.mxu0 %v24292_v35  ;;  %v21170_v13 = vld [vmem:[%s26820_s7 + $0xe4] ss:$16 sps:$4 sm:$0xff]   ;;  %v24366_v11 = vld [vmem:[%s26818_s5 + $0x68] sm:$0xff]   ;;  %v21168_v34 = vld [vmem:[%s26820_s7 + $0xe0] ss:$16 sps:$4 sm:$0xff]  }
 0x6aa   : > { %7025 = vmatpush1.bf16.msra.mxu1 %v21150_v10  ;;  %v24308_v10 = vld [vmem:[%s26818_s5 + $0x48] sm:$0xff]  }
 0x6ab   : > { %16335 = vmatmul.mubr.msk.bf16.vlgmr.msra.gmra.mrb[12].mxu0 %vm6837_vm3, %v6785_v38  ;;  %7119 = vmatprep.subr.bf16.mxu1 %v21155_v61  ;;  %v21156_v61 = vld [vmem:[%s26820_s7 + $0xa0] ss:$16 sps:$4 sm:$0xff]  }
 0x6ac   : > { %19221 = vmatpush3.bf16.msra.mxu0 %v24292_v35  ;;  %19236 = vmatprep.mubr.bf16.mxu0 %v23930_v28  ;;  %v21161_v28 = vld [vmem:[%s26820_s7 + $0x8c] ss:$16 sps:$4 sm:$0xff]   ;;  %v24322_v38 = vld [vmem:[%s26818_s5 + $0x50] sm:$0xff]  }
 0x6ad   : > { %16353 = vmatmul.mubr.msk.bf16.vlgmr.msra.gmra.mrb[4].mxu1 %vm6837_vm3, %v6937_v29  ;;  %19222 = vmatprep.subr.bf16.mxu0 %v24308_v10  ;;  %v21159_v29 = vld [vmem:[%s26820_s7 + $0x88] ss:$16 sps:$4 sm:$0xff]  }
 0x6ae   : > { %7120 = vmatpush1.bf16.msra.mxu1 %v21153_v52  ;;  %7151 = vmatprep.mubr.bf16.mxu1 %v26828_v0  ;;  %v21173_v52 = vld [vmem:[%s26820_s7 + $0xcc] ss:$16 sps:$4 sm:$0xff]  }
 0x6af   : > { %7121 = vmatprep.subr.bf16.mxu1 %v21158_v45  ;;  %v24380_v45 = vld [vmem:[%s26818_s5 + $0x70] sm:$0xff]  }
 0x6b0   : > { %19223 = vmatpush3.bf16.msra.mxu0 %v24308_v10 }
 0x6b1   : > { %19224 = vmatprep.subr.bf16.mxu0 %v24322_v38 }
 0x6b2   : > { %7122 = vmatpush1.bf16.msra.mxu1 %v21156_v61  ;;  %v21171_v61 = vld [vmem:[%s26820_s7 + $0xc8] ss:$16 sps:$4 sm:$0xff]  }
 0x6b3   : > { %7160 = vmatprep.subr.bf16.mxu1 %v21161_v28  ;;  %v7215_v28 = vrot.slane %v24258_v49, 4 }
 0x6b4   : > { %19225 = vmatpush3.bf16.msra.mxu0 %v24322_v38 }
 0x6b5   : > { %16370 = vmatmul.mubr.msk.bf16.vlgmr.msra.gmra.mrb[0].mxu1 %vm6837_vm3, %v24258_v49  ;;  %19226 = vmatprep.subr.bf16.mxu0 %v24337_v62 }
 0x6b6   : > { %7161 = vmatpush1.bf16.msra.mxu1 %v21159_v29  ;;  %7192 = vmatprep.mubr.bf16.mxu1 %v26828_v0  ;;  %v21176_v29 = vld [vmem:[%s26820_s7 + $0xec] ss:$16 sps:$4 sm:$0xff]  }
 0x6b7   : > { %7162 = vmatprep.subr.bf16.mxu1 %v21164_v15  ;;  %v24395_v15 = vld [vmem:[%s26818_s5 + $0x78] sm:$0xff]  }
 0x6b8   : > { %19227 = vmatpush3.bf16.msra.mxu0 %v24337_v62 }
 0x6b9   : > { %19228 = vmatprep.subr.bf16.mxu0 %v24351_v2 }
 0x6ba   : > { %7163 = vmatpush1.bf16.msra.mxu1 %v21162_v5  ;;  %v21179_v5 = vld [vmem:[%s26820_s7 + $0x104] ss:$16 sps:$4 sm:$0xff]  }
 0x6bb   : > { %7259 = vmatprep.subr.bf16.mxu1 %v21167_v6  ;;  %v24409_v6 = vld [vmem:[%s26818_s5] sm:$0xff]  }
 0x6bc   : > { %19229 = vmatpush3.bf16.msra.mxu0 %v24351_v2 }
 0x6bd   : > { %16371 = vmatmul.mubr.msk.bf16.vlgmr.msra.gmra.mrb[4].mxu1 %vm6837_vm3, %v24258_v49  ;;  %19230 = vmatprep.subr.bf16.mxu0 %v24366_v11  ;;  %v21174_v49 = vld [vmem:[%s26820_s7 + $0xe8] ss:$16 sps:$4 sm:$0xff]  }
 0x6be   : > { %7260 = vmatpush1.bf16.msra.mxu1 %v21165_v50  ;;  %7291 = vmatprep.mubr.bf16.mxu1 %v26828_v0  ;;  %v21177_v50 = vld [vmem:[%s26820_s7 + $0x100] ss:$16 sps:$4 sm:$0xff]  }
 0x6bf   : > { %7261 = vmatprep.subr.bf16.mxu1 %v21170_v13  ;;  %v21182_v13 = vld [vmem:[%s26820_s7 + $0x124] ss:$16 sps:$4 sm:$0xff]  }
 0x6c0   : > { %19231 = vmatpush3.bf16.msra.mxu0 %v24366_v11 }
 0x6c1   : > { %19232 = vmatprep.subr.bf16.mxu0 %v24380_v45 }
 0x6c2   : > { %7262 = vmatpush1.bf16.msra.mxu1 %v21168_v34  ;;  %v24425_v34 = vld [vmem:[%s26818_s5 + $0x8] sm:$0xff]  }
 0x6c3   : > { %7300 = vmatprep.subr.bf16.mxu1 %v21173_v52  ;;  %v24439_v52 = vld [vmem:[%s26818_s5 + $0x10] sm:$0xff]  }
 0x6c4   : > { %19233 = vmatpush3.bf16.msra.mxu0 %v24380_v45 }
 0x6c5   : > { %16388 = vmatmul.mubr.msk.bf16.vlgmr.msra.gmra.mrb[0].mxu1 %vm6837_vm3, %v7215_v28  ;;  %19234 = vmatprep.subr.bf16.mxu0 %v24395_v15 }
 0x6c6   : > { %7301 = vmatpush1.bf16.msra.mxu1 %v21171_v61  ;;  %7332 = vmatprep.mubr.bf16.mxu1 %v26828_v0  ;;  %v21183_v61 = vld [vmem:[%s26820_s7 + $0x108] ss:$16 sps:$4 sm:$0xff]  }
 0x6c7   : > { %7302 = vmatprep.subr.bf16.mxu1 %v21176_v29  ;;  %v21620_v29 = vld [vmem:[#allocation3 + $0x28] sm:$0xff] }
 0x6c8   : > { %19235 = vmatpush3.bf16.msra.mxu0 %v24395_v15 }
 0x6c9   : > { %19244 = vmatprep.subr.bf16.mxu0 %v24409_v6 }
 0x6ca   : > { %7303 = vmatpush1.bf16.msra.mxu1 %v21174_v49  ;;  %v24455_v49 = vld [vmem:[%s26818_s5 + $0x18] sm:$0xff]  }
 0x6cb   : > { %19237 = vmatmul.mubr.bf16.vlgmr.msra.gmra.mrb[16].mxu0 %v23957_v59  ;;  %7397 = vmatprep.subr.bf16.mxu1 %v21179_v5  ;;  %v21180_v59 = vld [vmem:[%s26820_s7 + $0x120] ss:$16 sps:$4 sm:$0xff]   ;;  %v21186_v5 = vld [vmem:[%s26820_s7 + $0x128] ss:$16 sps:$4 sm:$0xff]  }
 0x6cc   : > { %19245 = vmatpush3.bf16.msra.mxu0 %v24409_v6  ;;  %19240 = vmatprep.mubr.bf16.mxu0 %v23961_v43  ;;  %v21185_v43 = vld [vmem:[%s26820_s7 + $0x10c] ss:$16 sps:$4 sm:$0xff]  }
 0x6cd   : > { %16389 = vmatmul.mubr.msk.bf16.vlgmr.msra.gmra.mrb[4].mxu1 %vm6837_vm3, %v7215_v28  ;;  %19246 = vmatprep.subr.bf16.mxu0 %v24425_v34  ;;  %v21188_v28 = vld [vmem:[%s26820_s7 + $0x12c] ss:$16 sps:$4 sm:$0xff]  }
 0x6ce   : > { %7398 = vmatpush1.bf16.msra.mxu1 %v21177_v50  ;;  %7429 = vmatprep.mubr.bf16.mxu1 %v26828_v0  ;;  %v24469_v50 = vld [vmem:[%s26818_s5 + $0x20] sm:$0xff]  }
 0x6cf   : > { %7399 = vmatprep.subr.bf16.mxu1 %v21182_v13  ;;  %v21189_v13 = vld [vmem:[%s26820_s7 + $0x140] ss:$16 sps:$4 sm:$0xff]  }
 0x6d0   : > { %19247 = vmatpush3.bf16.msra.mxu0 %v24425_v34 }
 0x6d1   : > { %19248 = vmatprep.subr.bf16.mxu0 %v24439_v52 }
 0x6d2   : > { %7400 = vmatpush1.bf16.msra.mxu1 %v21180_v59  ;;  %v21194_v59 = vld [vmem:[%s26820_s7 + $0x164] ss:$16 sps:$4 sm:$0xff]  }
 0x6d3   : > { %7438 = vmatprep.subr.bf16.mxu1 %v21185_v43  ;;  %19241 = vmatmul.mubr.bf16.gmra.mrb[20].mxu0 %v23979_v31  ;;  %v21191_v31 = vld [vmem:[%s26820_s7 + $0x144] ss:$16 sps:$4 sm:$0xff]   ;;  %v24484_v43 = vld [vmem:[%s26818_s5 + $0x28] sm:$0xff]  }
 0x6d4   : > { %19249 = vmatpush3.bf16.msra.mxu0 %v24439_v52  ;;  %19260 = vmatprep.mubr.bf16.mxu0 %v21620_v29  ;;  %v24498_v29 = vld [vmem:[%s26818_s5 + $0x30] sm:$0xff]  }
 0x6d5   : > { %16406 = vmatmul.mubr.msk.bf16.vlgmr.msra.gmra.mrb[0].mxu1 %vm6837_vm3, %v24287_v24  ;;  %19250 = vmatprep.subr.bf16.mxu0 %v24455_v49  ;;  %26865 = vst [vmem:[#allocation10_spill] sm:$0xff] %v24498_v29 }
 0x6d6   : > { %7439 = vmatpush1.bf16.msra.mxu1 %v21183_v61  ;;  %7470 = vmatprep.mubr.bf16.mxu1 %v26828_v0  ;;  %v21192_v61 = vld [vmem:[%s26820_s7 + $0x160] ss:$16 sps:$4 sm:$0xff]  }
 0x6d7   : > { %7440 = vmatprep.subr.bf16.mxu1 %v21188_v28  ;;  %v21197_v28 = vld [vmem:[%s26820_s7 + $0x14c] ss:$16 sps:$4 sm:$0xff]  }
 0x6d8   : > { %19251 = vmatpush3.bf16.msra.mxu0 %v24455_v49 }
 0x6d9   : > { %19252 = vmatprep.subr.bf16.mxu0 %v24469_v50 }
 0x6da   : > { %7441 = vmatpush1.bf16.msra.mxu1 %v21186_v5  ;;  %v21195_v5 = vld [vmem:[%s26820_s7 + $0x148] ss:$16 sps:$4 sm:$0xff]  }
 0x6db   : > { %7537 = vmatprep.subr.bf16.mxu1 %v21191_v31  ;;  %v7493_v31 = vrot.slane %v24287_v24, 4 }
 0x6dc   : > { %19253 = vmatpush3.bf16.msra.mxu0 %v24469_v50 }
 0x6dd   : > { %16407 = vmatmul.mubr.msk.bf16.vlgmr.msra.gmra.mrb[4].mxu1 %vm6837_vm3, %v24287_v24  ;;  %19254 = vmatprep.subr.bf16.mxu0 %v24484_v43  ;;  %v21198_v24 = vld [vmem:[%s26820_s7 + $0x168] ss:$16 sps:$4 sm:$0xff]  }
 0x6de   : > { %7538 = vmatpush1.bf16.msra.mxu1 %v21189_v13  ;;  %7569 = vmatprep.mubr.bf16.mxu1 %v26828_v0  ;;  %v21200_v13 = vld [vmem:[%s26820_s7 + $0x16c] ss:$16 sps:$4 sm:$0xff]  }
 0x6df   : > { %7539 = vmatprep.subr.bf16.mxu1 %v21194_v59  ;;  %v24513_v59 = vld [vmem:[%s26818_s5 + $0x38] sm:$0xff]  }
 0x6e0   : > { %19255 = vmatpush3.bf16.msra.mxu0 %v24484_v43  ;;  %26866 = vst [vmem:[#allocation11_spill] sm:$0xff] %v24513_v59 }
 0x6e1   : > { %19256 = vmatprep.subr.bf16.mxu0 %v24498_v29 }
 0x6e2   : > { %7540 = vmatpush1.bf16.msra.mxu1 %v21192_v61  ;;  %v21203_v61 = vld [vmem:[%s26820_s7 + $0x184] ss:$16 sps:$4 sm:$0xff]  }
 0x6e3   : > { %7578 = vmatprep.subr.bf16.mxu1 %v21197_v28  ;;  %v24527_v28 = vld [vmem:[%s26818_s5 + $0x80] sm:$0xff]  }
 0x6e4   : > { %19257 = vmatpush3.bf16.msra.mxu0 %v24498_v29  ;;  %26867 = vst [vmem:[#allocation12_spill] sm:$0xff] %v24527_v28  ;;  %v26869_v29 = vmov 0  }
 0x6e5   : > { %16424 = vmatmul.mubr.msk.bf16.vlgmr.msra.gmra.mrb[0].mxu1 %vm6837_vm3, %v7493_v31  ;;  %19258 = vmatprep.subr.bf16.mxu0 %v24513_v59 }
 0x6e6   : > { %7579 = vmatpush1.bf16.msra.mxu1 %v21195_v5  ;;  %7610 = vmatprep.mubr.bf16.mxu1 %v26828_v0  ;;  %v21201_v5 = vld [vmem:[%s26820_s7 + $0x180] ss:$16 sps:$4 sm:$0xff]  }
 0x6e7   : > { %7580 = vmatprep.subr.bf16.mxu1 %v21200_v13  ;;  %v21627_v0 = vld [vmem:[#allocation3 + $0x30] sm:$0xff] }
 0x6e8   : > { %19259 = vmatpush3.bf16.msra.mxu0 %v24513_v59  ;;  %v21206_v13 = vld [vmem:[%s26820_s7 + $0x1a4] ss:$16 sps:$4 sm:$0xff]   ;;  %v24537_v59 = vld [vmem:[#allocation3 + $0x38] sm:$0xff] }
 0x6e9   : > { %19268 = vmatprep.subr.bf16.mxu0 %v24527_v28 }
 0x6ea   : > { %7581 = vmatpush1.bf16.msra.mxu1 %v21198_v24  ;;  %v24544_v24 = vld [vmem:[%s26818_s5 + $0x88] sm:$0xff]  }
 0x6eb   : > { %19261 = vmatmul.mubr.bf16.vlgmr.msra.gmra.mrb[16].mxu0 %v21627_v0  ;;  %7675 = vmatprep.subr.bf16.mxu1 %v21203_v61  ;;  %26868 = vst [vmem:[#allocation13_spill] sm:$0xff] %v24544_v24  ;;  %v21204_v61 = vld [vmem:[%s26820_s7 + $0x1a0] ss:$16 sps:$4 sm:$0xff]  }
 0x6ec   : > { %19269 = vmatpush3.bf16.msra.mxu0 %v24527_v28  ;;  %19264 = vmatprep.mubr.bf16.mxu0 %v24537_v59  ;;  %v21209_v28 = vld [vmem:[%s26820_s7 + $0x18c] ss:$16 sps:$4 sm:$0xff]  }
 0x6ed   : > { %16425 = vmatmul.mubr.msk.bf16.vlgmr.msra.gmra.mrb[4].mxu1 %vm6837_vm3, %v7493_v31  ;;  %19270 = vmatprep.subr.bf16.mxu0 %v24544_v24  ;;  %v24558_v31 = vld [vmem:[%s26818_s5 + $0x90] sm:$0xff]  }
 0x6ee   : > { %7676 = vmatpush1.bf16.msra.mxu1 %v21201_v5  ;;  %7707 = vmatprep.mubr.bf16.mxu1 %v26869_v29  ;;  %26870 = vst [vmem:[#allocation14_spill] sm:$0xff] %v24558_v31  ;;  %v21207_v5 = vld [vmem:[%s26820_s7 + $0x188] ss:$16 sps:$4 sm:$0xff]  }
 0x6ef   : > { %7677 = vmatprep.subr.bf16.mxu1 %v21206_v13  ;;  %v21212_v13 = vld [vmem:[%s26820_s7 + $0x1ac] ss:$16 sps:$4 sm:$0xff]  }
 0x6f0   : > { %19271 = vmatpush3.bf16.msra.mxu0 %v24544_v24  ;;  %v21224_v24 = vld [vmem:[%s26820_s7 + $0x1ec] ss:$16 sps:$4 sm:$0xff]  }
 0x6f1   : > { %19272 = vmatprep.subr.bf16.mxu0 %v24558_v31 }
 0x6f2   : > { %7678 = vmatpush1.bf16.msra.mxu1 %v21204_v61  ;;  %v24573_v61 = vld [vmem:[%s26818_s5 + $0x98] sm:$0xff]  }
 0x6f3   : > { %7716 = vmatprep.subr.bf16.mxu1 %v21209_v28  ;;  %19265 = vmatmul.mubr.bf16.gmra.mrb[20].mxu0 %v21631_v54  ;;  %26871 = vst [vmem:[#allocation15_spill] sm:$0xff] %v24573_v61  ;;  %v21210_v28 = vld [vmem:[%s26820_s7 + $0x1a8] ss:$16 sps:$4 sm:$0xff]  }
 0x6f4   : > { %19273 = vmatpush3.bf16.msra.mxu0 %v24558_v31  ;;  %19284 = vmatprep.mubr.bf16.mxu0 %v21627_v0  ;;  %v21215_v0 = vld [vmem:[%s26820_s7 + $0x1c4] ss:$16 sps:$4 sm:$0xff]  }
 0x6f5   : > { %16442 = vmatmul.mubr.msk.bf16.vlgmr.msra.gmra.mrb[0].mxu1 %vm6837_vm3, %v24285_v44  ;;  %19274 = vmatprep.subr.bf16.mxu0 %v24573_v61  ;;  %v24587_v31 = vld [vmem:[%s26818_s5 + $0xa0] sm:$0xff]  }
 0x6f6   : > { %7717 = vmatpush1.bf16.msra.mxu1 %v21207_v5  ;;  %7748 = vmatprep.mubr.bf16.mxu1 %v26869_v29  ;;  %26872 = vst [vmem:[#allocation16_spill] sm:$0xff] %v24587_v31  ;;  %v21213_v5 = vld [vmem:[%s26820_s7 + $0x1c0] ss:$16 sps:$4 sm:$0xff]  }
 0x6f7   : > { %7718 = vmatprep.subr.bf16.mxu1 %v21212_v13  ;;  %v21218_v13 = vld [vmem:[%s26820_s7 + $0x1e4] ss:$16 sps:$4 sm:$0xff]  }
 0x6f8   : > { %19275 = vmatpush3.bf16.msra.mxu0 %v24573_v61  ;;  %v24602_v61 = vld [vmem:[%s26818_s5 + $0xa8] sm:$0xff]  }
 0x6f9   : > { %19276 = vmatprep.subr.bf16.mxu0 %v24587_v31  ;;  %26873 = vst [vmem:[#allocation17_spill] sm:$0xff] %v24602_v61 }
 0x6fa   : > { %7719 = vmatpush1.bf16.msra.mxu1 %v21210_v28  ;;  %v21216_v28 = vld [vmem:[%s26820_s7 + $0x1e0] ss:$16 sps:$4 sm:$0xff]  }
 0x6fb   : > { %7815 = vmatprep.subr.bf16.mxu1 %v21215_v0  ;;  %v21221_v0 = vld [vmem:[%s26820_s7 + $0x1cc] ss:$16 sps:$4 sm:$0xff]  }
 0x6fc   : > { %19277 = vmatpush3.bf16.msra.mxu0 %v24587_v31  ;;  %v24616_v31 = vld [vmem:[%s26818_s5 + $0xb0] sm:$0xff]  }
 0x6fd   : > { %16443 = vmatmul.mubr.msk.bf16.vlgmr.msra.gmra.mrb[4].mxu1 %vm6837_vm3, %v24285_v44  ;;  %19278 = vmatprep.subr.bf16.mxu0 %v24602_v61 }
 0x6fe   : > { %7816 = vmatpush1.bf16.msra.mxu1 %v21213_v5  ;;  %7847 = vmatprep.mubr.bf16.mxu1 %v26869_v29  ;;  %v21219_v5 = vld [vmem:[%s26820_s7 + $0x1c8] ss:$16 sps:$4 sm:$0xff]  }
 0x6ff   : > { %7817 = vmatprep.subr.bf16.mxu1 %v21218_v13  ;;  %v7771_v13 = vrot.slane %v24285_v44, 4  ;;  %v21222_v44 = vld [vmem:[%s26820_s7 + $0x1e8] ss:$16 sps:$4 sm:$0xff]  }
 0x700   : > { %19279 = vmatpush3.bf16.msra.mxu0 %v24602_v61  ;;  %v24631_v61 = vld [vmem:[%s26818_s5 + $0xb8] sm:$0xff]  }
 0x701   : > { %19280 = vmatprep.subr.bf16.mxu0 %v24616_v31 }
 0x702   : > { %7818 = vmatpush1.bf16.msra.mxu1 %v21216_v28  ;;  %v24642_v28 = vld [vmem:[%s26818_s5 + $0xc0] sm:$0xff]  }
 0x703   : > { %7856 = vmatprep.subr.bf16.mxu1 %v21221_v0 }
 0x704   : > { %19281 = vmatpush3.bf16.msra.mxu0 %v24616_v31 }
 0x705   : > { %16460 = vmatmul.mubr.msk.bf16.vlgmr.msra.gmra.mrb[0].mxu1 %vm6837_vm3, %v7771_v13  ;;  %19282 = vmatprep.subr.bf16.mxu0 %v24631_v61 }
 0x706   : > { %7857 = vmatpush1.bf16.msra.mxu1 %v21219_v5  ;;  %7888 = vmatprep.mubr.bf16.mxu1 %v26869_v29  ;;  %v24997_v5 = vld [vmem:[%s26818_s5 + $0x148] sm:$0xff]  }
 0x707   : > { %7858 = vmatprep.subr.bf16.mxu1 %v21224_v24  ;;  %v24652_v24 = vld [vmem:[%s26818_s5 + $0xc8] sm:$0xff]  }
 0x708   : > { %19283 = vmatpush3.bf16.msra.mxu0 %v24631_v61 }
 0x709   : > { %19292 = vmatprep.subr.bf16.mxu0 %v24642_v28 }
 0x70a   : > { %7859 = vmatpush1.bf16.msra.mxu1 %v21222_v44  ;;  %v25013_v44 = vld [vmem:[%s26818_s5 + $0x158] sm:$0xff]  }
 0x70b   : > { %19285 = vmatmul.mubr.bf16.vlgmr.msra.gmra.mrb[16].mxu0 %v24537_v59  ;;  %19340 = vmatprep.subr.bf16.mxu1 %v23948_v4  ;;  %v24803_v59 = vld [vmem:[#allocation3 + $0x88] sm:$0xff] }
 0x70c   : > { %19293 = vmatpush3.bf16.msra.mxu0 %v24642_v28  ;;  %19288 = vmatprep.mubr.bf16.mxu0 %v21631_v54  ;;  %v24662_v54 = vld [vmem:[%s26818_s5 + $0xd0] sm:$0xff]  }
 0x70d   : > { %16461 = vmatmul.mubr.msk.bf16.vlgmr.msra.gmra.mrb[4].mxu1 %vm6837_vm3, %v7771_v13  ;;  %19294 = vmatprep.subr.bf16.mxu0 %v24652_v24  ;;  %v25004_v13 = vld [vmem:[%s26818_s5 + $0x150] sm:$0xff]  }
 0x70e   : > { %19341 = vmatpush3.bf16.msra.mxu1 %v23948_v4  ;;  %19356 = vmatprep.mubr.bf16.mxu1 %v24082_v12  ;;  %v24673_v4 = vld [vmem:[%s26818_s5 + $0xd8] sm:$0xff]  }
 0x70f   : > { %19342 = vmatprep.subr.bf16.mxu1 %v23954_v55 }
 0x710   : > { %19295 = vmatpush3.bf16.msra.mxu0 %v24652_v24 }
 0x711   : > { %19296 = vmatprep.subr.bf16.mxu0 %v24662_v54 }
 0x712   : > { %19343 = vmatpush3.bf16.msra.mxu1 %v23954_v55  ;;  %v24682_v55 = vld [vmem:[%s26818_s5 + $0xe0] sm:$0xff]  }
 0x713   : > { %19344 = vmatprep.subr.bf16.mxu1 %v23968_v41  ;;  %19289 = vmatmul.mubr.bf16.gmra.mrb[20].mxu0 %v24034_v37  ;;  %v24753_v37 = vld [vmem:[%s26818_s5 + $0x118] sm:$0xff]  }
 0x714   : > { %19297 = vmatpush3.bf16.msra.mxu0 %v24662_v54  ;;  %19308 = vmatprep.mubr.bf16.mxu0 %v24042_v26 }
 0x715   : > { %19298 = vmatprep.subr.bf16.mxu0 %v24673_v4 }
 0x716   : > { %19345 = vmatpush3.bf16.msra.mxu1 %v23968_v41  ;;  %v24691_v41 = vld [vmem:[%s26818_s5 + $0xe8] sm:$0xff]  }
 0x717   : > { %19346 = vmatprep.subr.bf16.mxu1 %v23975_v19 }
 0x718   : > { %19299 = vmatpush3.bf16.msra.mxu0 %v24673_v4 }
 0x719   : > { %19300 = vmatprep.subr.bf16.mxu0 %v24682_v55 }
 0x71a   : > { %19347 = vmatpush3.bf16.msra.mxu1 %v23975_v19  ;;  %v24700_v19 = vld [vmem:[%s26818_s5 + $0xf0] sm:$0xff]  }
 0x71b   : > { %19348 = vmatprep.subr.bf16.mxu1 %v23985_v1 }
 0x71c   : > { %19301 = vmatpush3.bf16.msra.mxu0 %v24682_v55 }
 0x71d   : > { %19302 = vmatprep.subr.bf16.mxu0 %v24691_v41 }
 0x71e   : > { %19349 = vmatpush3.bf16.msra.mxu1 %v23985_v1  ;;  %v24709_v1 = vld [vmem:[%s26818_s5 + $0xf8] sm:$0xff]  }
 0x71f   : > { %19350 = vmatprep.subr.bf16.mxu1 %v23993_v20 }
 0x720   : > { %19303 = vmatpush3.bf16.msra.mxu0 %v24691_v41 }
 0x721   : > { %19304 = vmatprep.subr.bf16.mxu0 %v24700_v19 }
 0x722   : > { %19351 = vmatpush3.bf16.msra.mxu1 %v23993_v20  ;;  %v24718_v20 = vld [vmem:[%s26818_s5 + $0x100] sm:$0xff]  }
 0x723   : > { %19352 = vmatprep.subr.bf16.mxu1 %v24000_v32 }
 0x724   : > { %19305 = vmatpush3.bf16.msra.mxu0 %v24700_v19 }
 0x725   : > { %19306 = vmatprep.subr.bf16.mxu0 %v24709_v1 }
 0x726   : > { %19353 = vmatpush3.bf16.msra.mxu1 %v24000_v32  ;;  %v24730_v32 = vld [vmem:[%s26818_s5 + $0x108] sm:$0xff]  }
 0x727   : > { %19354 = vmatprep.subr.bf16.mxu1 %v24007_v27 }
 0x728   : > { %19307 = vmatpush3.bf16.msra.mxu0 %v24709_v1 }
 0x729   : > { %19316 = vmatprep.subr.bf16.mxu0 %v24718_v20 }
 0x72a   : > { %19355 = vmatpush3.bf16.msra.mxu1 %v24007_v27  ;;  %v24740_v27 = vld [vmem:[%s26818_s5 + $0x110] sm:$0xff]  }
 0x72b   : > { %19309 = vmatmul.mubr.bf16.vlgmr.msra.gmra.mrb[16].mxu0 %v24082_v12  ;;  %19364 = vmatprep.subr.bf16.mxu1 %v24016_v9 }
 0x72c   : > { %19317 = vmatpush3.bf16.msra.mxu0 %v24718_v20  ;;  %19312 = vmatprep.mubr.bf16.mxu0 %v24090_v3 }
 0x72d   : > { %19357 = vmatmul.mubr.bf16.vlgmr.msra.gmra.mrb[8].mxu1 %v24090_v3  ;;  %19318 = vmatprep.subr.bf16.mxu0 %v24730_v32 }
 0x72e   : > { %19365 = vmatpush3.bf16.msra.mxu1 %v24016_v9  ;;  %19360 = vmatprep.mubr.bf16.mxu1 %v24103_v58  ;;  %v24746_v9 = vld [vmem:[#allocation3 + $0x78] sm:$0xff] }
 0x72f   : > { %19366 = vmatprep.subr.bf16.mxu1 %v24023_v30 }
 0x730   : > { %19319 = vmatpush3.bf16.msra.mxu0 %v24730_v32 }
 0x731   : > { %19320 = vmatprep.subr.bf16.mxu0 %v24740_v27 }
 0x732   : > { %19367 = vmatpush3.bf16.msra.mxu1 %v24023_v30  ;;  %v24764_v30 = vld [vmem:[%s26818_s5 + $0x120] sm:$0xff]  }
 0x733   : > { %19368 = vmatprep.subr.bf16.mxu1 %v24031_v22  ;;  %19313 = vmatmul.mubr.bf16.gmra.mrb[20].mxu0 %v24103_v58 }
 0x734   : > { %19321 = vmatpush3.bf16.msra.mxu0 %v24740_v27  ;;  %19332 = vmatprep.mubr.bf16.mxu0 %v24112_v7 }
 0x735   : > { %19322 = vmatprep.subr.bf16.mxu0 %v24753_v37  ;;  %19361 = vmatmul.mubr.bf16.gmra.mrb[12].mxu1 %v24226_v48 }
 0x736   : > { %19369 = vmatpush3.bf16.msra.mxu1 %v24031_v22  ;;  %19380 = vmatprep.mubr.bf16.mxu1 %v24746_v9  ;;  %v24773_v22 = vld [vmem:[%s26818_s5 + $0x128] sm:$0xff]  }
 0x737   : > { %19370 = vmatprep.subr.bf16.mxu1 %v24040_v25 }
 0x738   : > { %19323 = vmatpush3.bf16.msra.mxu0 %v24753_v37 }
 0x739   : > { %19324 = vmatprep.subr.bf16.mxu0 %v24764_v30 }
 0x73a   : > { %19371 = vmatpush3.bf16.msra.mxu1 %v24040_v25  ;;  %v24782_v25 = vld [vmem:[%s26818_s5 + $0x130] sm:$0xff]  }
 0x73b   : > { %19372 = vmatprep.subr.bf16.mxu1 %v24051_v57 }
 0x73c   : > { %19325 = vmatpush3.bf16.msra.mxu0 %v24764_v30 }
 0x73d   : > { %19326 = vmatprep.subr.bf16.mxu0 %v24773_v22 }
 0x73e   : > { %19373 = vmatpush3.bf16.msra.mxu1 %v24051_v57  ;;  %v24791_v57 = vld [vmem:[%s26818_s5 + $0x138] sm:$0xff]  }
 0x73f   : > { %19374 = vmatprep.subr.bf16.mxu1 %v24058_v40 }
 0x740   : > { %19327 = vmatpush3.bf16.msra.mxu0 %v24773_v22 }
 0x741   : > { %19328 = vmatprep.subr.bf16.mxu0 %v24782_v25 }
 0x742   : > { %19375 = vmatpush3.bf16.msra.mxu1 %v24058_v40  ;;  %v24799_v40 = vld [vmem:[#allocation3 + $0x80] sm:$0xff] }
 0x743   : > { %19376 = vmatprep.subr.bf16.mxu1 %v24065_v47  ;;  %v8412_v0 = vrot.slane %v24799_v40, 4 }
 0x744   : > { %19329 = vmatpush3.bf16.msra.mxu0 %v24782_v25 }
 0x745   : > { %19330 = vmatprep.subr.bf16.mxu0 %v24791_v57 }
 0x746   : > { %19377 = vmatpush3.bf16.msra.mxu1 %v24065_v47  ;;  %v8401_v47 = vld [vmem:[#allocation3 + $0x78] sm:$0xf0] }
 0x747   : > { %19378 = vmatprep.subr.bf16.mxu1 %v24072_v14 }
 0x748   : > { %19331 = vmatpush3.bf16.msra.mxu0 %v24791_v57 }
 0x749   : > { %19436 = vmatprep.subr.bf16.mxu0 %v24292_v35 }
 0x74a   : > { %19379 = vmatpush3.bf16.msra.mxu1 %v24072_v14  ;;  %v8411_v14 = vrot.slane %v8401_v47, 4  ;;  %v25111_v47 = vld [vmem:[%s26818_s5 + $0x1b8] sm:$0xff]  }
 0x74b   : > { %19333 = vmatmul.mubr.bf16.vlgmr.msra.gmra.mrb[16].mxu0 %v24155_v8  ;;  %19388 = vmatprep.subr.bf16.mxu1 %v24079_v36 }
 0x74c   : > { %19437 = vmatpush3.bf16.msra.mxu0 %v24292_v35  ;;  %19336 = vmatprep.mubr.bf16.mxu0 %v24164_v21  ;;  %v24816_v35 = vld [vmem:[#allocation3 + $0x90] sm:$0xff] }
 0x74d   : > { %19381 = vmatmul.mubr.bf16.vlgmr.msra.gmra.mrb[8].mxu1 %v24799_v40  ;;  %19438 = vmatprep.subr.bf16.mxu0 %v24308_v10 }
 0x74e   : > { %19389 = vmatpush3.bf16.msra.mxu1 %v24079_v36  ;;  %19384 = vmatprep.mubr.bf16.mxu1 %v24803_v59  ;;  %v24821_v36 = vsel %vm2829_vm2, %v8411_v14, %v8412_v0 }
 0x74f   : > { %19390 = vmatprep.subr.bf16.mxu1 %v24088_v56 }
 0x750   : > { %19439 = vmatpush3.bf16.msra.mxu0 %v24308_v10 }
 0x751   : > { %19440 = vmatprep.subr.bf16.mxu0 %v24322_v38 }
 0x752   : > { %19391 = vmatpush3.bf16.msra.mxu1 %v24088_v56  ;;  %v8414_v56 = vrot.slane %v24803_v59, 4 }
 0x753   : > { %19337 = vmatmul.mubr.bf16.gmra.mrb[20].mxu0 %v24177_v51  ;;  %19392 = vmatprep.subr.bf16.mxu1 %v24099_v39 }
 0x754   : > { %19441 = vmatpush3.bf16.msra.mxu0 %v24322_v38  ;;  %19452 = vmatprep.mubr.bf16.mxu0 %v24112_v7  ;;  %v26879_v38 = vld [vmem:[#allocation10_spill] sm:$0xff] }
 0x755   : > { %19442 = vmatprep.subr.bf16.mxu0 %v24337_v62  ;;  %19385 = vmatmul.mubr.bf16.gmra.mrb[12].mxu1 %v24816_v35 }
 0x756   : > { %19393 = vmatpush3.bf16.msra.mxu1 %v24099_v39  ;;  %19404 = vmatprep.mubr.bf16.mxu1 %v24821_v36  ;;  %v8416_v39 = vrot.slane %v24816_v35, 4 }
 0x757   : > { %19394 = vmatprep.subr.bf16.mxu1 %v24109_v46 }
 0x758   : > { %19443 = vmatpush3.bf16.msra.mxu0 %v24337_v62  ;;  %v24857_v7 = vsel %vm2829_vm2, %v8414_v56, %v8416_v39  ;;  %v26881_v62 = vld [vmem:[#allocation11_spill] sm:$0xff] }
 0x759   : > { %19444 = vmatprep.subr.bf16.mxu0 %v24351_v2 }
 0x75a   : > { %19395 = vmatpush3.bf16.msra.mxu1 %v24109_v46  ;;  %v24852_v46 = vsel %vm2829_vm2, %v8412_v0, %v8414_v56 }
 0x75b   : > { %19396 = vmatprep.subr.bf16.mxu1 %v24121_v33 }
 0x75c   : > { %19445 = vmatpush3.bf16.msra.mxu0 %v24351_v2  ;;  %v26883_v2 = vld [vmem:[#allocation12_spill] sm:$0xff] }
 0x75d   : > { %19446 = vmatprep.subr.bf16.mxu0 %v24366_v11 }
 0x75e   : > { %19397 = vmatpush3.bf16.msra.mxu1 %v24121_v33  ;;  %v8405_v33 = vld [vmem:[#allocation3 + $0x98] sm:$0xf] }
 0x75f   : > { %19398 = vmatprep.subr.bf16.mxu1 %v24128_v63 }
 0x760   : > { %19447 = vmatpush3.bf16.msra.mxu0 %v24366_v11  ;;  %v26884_v11 = vld [vmem:[#allocation13_spill] sm:$0xff] }
 0x761   : > { %19448 = vmatprep.subr.bf16.mxu0 %v24380_v45 }
 0x762   : > { %19399 = vmatpush3.bf16.msra.mxu1 %v24128_v63  ;;  %v8418_v63 = vrot.slane %v8405_v33, 4 }
 0x763   : > { %19400 = vmatprep.subr.bf16.mxu1 %v24135_v18 }
 0x764   : > { %19449 = vmatpush3.bf16.msra.mxu0 %v24380_v45  ;;  %v26885_v45 = vld [vmem:[#allocation14_spill] sm:$0xff] }
 0x765   : > { %19450 = vmatprep.subr.bf16.mxu0 %v24395_v15 }
 0x766   : > { %19401 = vmatpush3.bf16.msra.mxu1 %v24135_v18  ;;  %v24870_v18 = vsel %vm2829_vm2, %v8416_v39, %v8418_v63  ;;  %v25121_v39 = vld [vmem:[#allocation3 + $0xa8] sm:$0xff]  ;;  %v25128_v63 = vld [vmem:[%s26818_s5 + $0x1c0] sm:$0xff]  }
 0x767   : > { %19402 = vmatprep.subr.bf16.mxu1 %v24142_v23 }
 0x768   : > { %19451 = vmatpush3.bf16.msra.mxu0 %v24395_v15  ;;  %v24916_v15 = vld [vmem:[#allocation3 + $0x98] sm:$0xff] }
 0x769   : > { %19460 = vmatprep.subr.bf16.mxu0 %v24409_v6 }
 0x76a   : > { %19403 = vmatpush3.bf16.msra.mxu1 %v24142_v23 }
 0x76b   : > { %19453 = vmatmul.mubr.bf16.vlgmr.msra.gmra.mrb[24].mxu0 %v24155_v8  ;;  %19412 = vmatprep.subr.bf16.mxu1 %v24150_v16 }
 0x76c   : > { %19461 = vmatpush3.bf16.msra.mxu0 %v24409_v6  ;;  %19456 = vmatprep.mubr.bf16.mxu0 %v24164_v21  ;;  %v26887_v6 = vld [vmem:[#allocation16_spill] sm:$0xff] }
 0x76d   : > { %19405 = vmatmul.mubr.bf16.vlgmr.msra.gmra.mrb[8].mxu1 %v24852_v46  ;;  %19462 = vmatprep.subr.bf16.mxu0 %v24425_v34 }
 0x76e   : > { %19413 = vmatpush3.bf16.msra.mxu1 %v24150_v16  ;;  %19408 = vmatprep.mubr.bf16.mxu1 %v24857_v7 }
 0x76f   : > { %19414 = vmatprep.subr.bf16.mxu1 %v24161_v17 }
 0x770   : > { %19463 = vmatpush3.bf16.msra.mxu0 %v24425_v34  ;;  %v26888_v34 = vld [vmem:[#allocation17_spill] sm:$0xff] }
 0x771   : > { %19464 = vmatprep.subr.bf16.mxu0 %v24439_v52 }
 0x772   : > { %19415 = vmatpush3.bf16.msra.mxu1 %v24161_v17 }
 0x773   : > { %19416 = vmatprep.subr.bf16.mxu1 %v24173_v60  ;;  %19457 = vmatmul.mubr.bf16.gmra.mrb[28].mxu0 %v24177_v51 }
 0x774   : > { %19465 = vmatpush3.bf16.msra.mxu0 %v24439_v52  ;;  %19476 = vmatprep.mubr.bf16.mxu0 %v24042_v26  ;;  %v21655_v52 = vld [vmem:[#allocation3 + $0x68] sm:$0xff] }
 0x775   : > { %19466 = vmatprep.subr.bf16.mxu0 %v24455_v49  ;;  %19409 = vmatmul.mubr.bf16.gmra.mrb[12].mxu1 %v24870_v18 }
 0x776   : > { %19417 = vmatpush3.bf16.msra.mxu1 %v24173_v60  ;;  %v24879_v23 = vpop.f32.mrb[8].mxu0  ;;  %19428 = vmatprep.mubr.bf16.mxu1 %v24799_v40  ;;  %v26878_v60 = vld [vmem:[#allocation7_spill] sm:$0xff] }
 0x777   : > { %26874 = vst [vmem:[#allocation18_spill] sm:$0xff] %v24879_v23  ;;  %v24882_v16 = vpop.f32.mrb[9].mxu0  ;;  %19418 = vmatprep.subr.bf16.mxu1 %v24183_v42 }
 0x778   : > { %26875 = vst [vmem:[#allocation19_spill] sm:$0xff] %v24882_v16  ;;  %19467 = vmatpush3.bf16.msra.mxu0 %v24455_v49  ;;  %v6879_v8 = vpop.f32.mrb[10].mxu0  ;;  %v21225_v49 = vld [vmem:[%s26820_s7 + $0x200] ss:$16 sps:$4 sm:$0xff]  }
 0x779   : > { %v6880_v17 = vpop.f32.mrb[11].mxu0  ;;  %19468 = vmatprep.subr.bf16.mxu0 %v24469_v50  ;;  %v25131_v8 = vld [vmem:[#allocation3 + $0xb0] sm:$0xff]  ;;  %v25261_v16 = vld [vmem:[%s26819_s6] ss:$0 sm:$0xff] }
 0x77a   : > { %19419 = vmatpush3.bf16.msra.mxu1 %v24183_v42  ;;  %v26880_v42 = vld [vmem:[#allocation8_spill] sm:$0xff] }
 0x77b   : > { %19420 = vmatprep.subr.bf16.mxu1 %v24192_v53  ;;  %v10203_v17 = vld [vmem:[#allocation3 + $0xa0] sm:$0xf0] }
 0x77c   : > { %19469 = vmatpush3.bf16.msra.mxu0 %v24469_v50  ;;  %v21230_v50 = vld [vmem:[%s26820_s7 + $0x224] ss:$16 sps:$4 sm:$0xff]  }
 0x77d   : > { %19470 = vmatprep.subr.bf16.mxu0 %v24484_v43 }
 0x77e   : > { %19421 = vmatpush3.bf16.msra.mxu1 %v24192_v53  ;;  %v24892_v26 = vpop.f32.mrb[12].mxu0  ;;  %v26882_v53 = vld [vmem:[#allocation9_spill] sm:$0xff] }
 0x77f   : > { %26876 = vst [vmem:[#allocation20_spill] sm:$0xff] %v24892_v26  ;;  %v24894_v21 = vpop.f32.mrb[13].mxu0  ;;  %19422 = vmatprep.subr.bf16.mxu1 %v26878_v60 }
 0x780   : > { %26877 = vst [vmem:[#allocation21_spill] sm:$0xff] %v24894_v21  ;;  %19471 = vmatpush3.bf16.msra.mxu0 %v24484_v43  ;;  %v6920_v51 = vpop.f32.mrb[14].mxu0  ;;  %v21228_v43 = vld [vmem:[%s26820_s7 + $0x220] ss:$16 sps:$4 sm:$0xff]  }
 0x781   : > { %v6921_v10 = vpop.f32.mrb[15].mxu0  ;;  %19472 = vmatprep.subr.bf16.mxu0 %v26879_v38  ;;  %v10213_v51 = vrot.slane %v10203_v17, 4  ;;  %v25232_v17 = vld [vmem:[%s26818_s5 + $0x218] sm:$0xff]  }
 0x782   : > { %19423 = vmatpush3.bf16.msra.mxu1 %v26878_v60  ;;  %v25139_v60 = vld [vmem:[%s26818_s5 + $0x1c8] sm:$0xff]   ;;  %v10214_v10 = vrot.slane %v25121_v39, 4  ;;  %26890 = vst [vmem:[#allocation10_spill] sm:$0xff] %v25232_v17 }
 0x783   : > { %19424 = vmatprep.subr.bf16.mxu1 %v26880_v42 }
 0x784   : > { %19473 = vmatpush3.bf16.msra.mxu0 %v26879_v38  ;;  %v25144_v38 = vld [vmem:[#allocation3 + $0xb8] sm:$0xff] }
 0x785   : > { %19474 = vmatprep.subr.bf16.mxu0 %v26881_v62 }
 0x786   : > { %19425 = vmatpush3.bf16.msra.mxu1 %v26880_v42  ;;  %v25149_v42 = vld [vmem:[%s26818_s5 + $0x1d0] sm:$0xff]  }
 0x787   : > { %19426 = vmatprep.subr.bf16.mxu1 %v26882_v53 }
 0x788   : > { %19475 = vmatpush3.bf16.msra.mxu0 %v26881_v62  ;;  %v25153_v62 = vsel %vm2829_vm2, %v10213_v51, %v10214_v10  ;;  %v25239_v51 = vld [vmem:[%s26818_s5 + $0x220] sm:$0xff]  }
 0x789   : > { %19484 = vmatprep.subr.bf16.mxu0 %v26883_v2  ;;  %26891 = vst [vmem:[#allocation8_spill] sm:$0xff] %v25239_v51 }
 0x78a   : > { %19427 = vmatpush3.bf16.msra.mxu1 %v26882_v53  ;;  %v25161_v53 = vld [vmem:[%s26818_s5 + $0x1d8] sm:$0xff]  }
 0x78b   : > { %19477 = vmatmul.mubr.bf16.vlgmr.msra.gmra.mrb[24].mxu0 %v24082_v12  ;;  %v21653_v12 = vld [vmem:[#allocation3 + $0x58] sm:$0xff] }
 0x78c   : > { %19485 = vmatpush3.bf16.msra.mxu0 %v26883_v2  ;;  %19480 = vmatprep.mubr.bf16.mxu0 %v24090_v3  ;;  %v26886_v3 = vld [vmem:[#allocation15_spill] sm:$0xff]  ;;  %v25168_v2 = vld [vmem:[%s26818_s5 + $0x1e0] sm:$0xff]  }
 0x78d   : > { %19429 = vmatmul.mubr.bf16.vlgmr.msra.gmra.mrb[8].mxu1 %v24803_v59  ;;  %19486 = vmatprep.subr.bf16.mxu0 %v26884_v11 }
 0x78e   : > { %19432 = vmatprep.mubr.bf16.mxu1 %v24816_v35 }
 0x790   : > { %19487 = vmatpush3.bf16.msra.mxu0 %v26884_v11  ;;  %v25175_v11 = vld [vmem:[%s26818_s5 + $0x1e8] sm:$0xff]  }
 0x791   : > { %19488 = vmatprep.subr.bf16.mxu0 %v26885_v45 }
 0x793   : > { %19481 = vmatmul.mubr.bf16.gmra.mrb[28].mxu0 %v24103_v58  ;;  %v21654_v58 = vld [vmem:[#allocation3 + $0x60] sm:$0xff] }
 0x794   : > { %19489 = vmatpush3.bf16.msra.mxu0 %v26885_v45  ;;  %19500 = vmatprep.mubr.bf16.mxu0 %v21653_v12  ;;  %v25182_v45 = vld [vmem:[%s26818_s5 + $0x1f0] sm:$0xff]   ;;  %v10216_v12 = vrot.slane %v25131_v8, 4 }
 0x795   : > { %19433 = vmatmul.mubr.bf16.gmra.mrb[12].mxu1 %v24916_v15  ;;  %19490 = vmatprep.subr.bf16.mxu0 %v26886_v3 }
 0x796   : > { %8675 = vmatprep.mubr.bf16.mxu1 %v26869_v29 }
 0x798   : > { %19491 = vmatpush3.bf16.msra.mxu0 %v26886_v3  ;;  %v25190_v3 = vld [vmem:[%s26818_s5 + $0x1f8] sm:$0xff]  }
 0x799   : > { %19492 = vmatprep.subr.bf16.mxu0 %v26887_v6 }
 0x79c   : > { %19493 = vmatpush3.bf16.msra.mxu0 %v26887_v6  ;;  %v10218_v6 = vrot.slane %v25144_v38, 4 }
 0x79d   : > { %19494 = vmatprep.subr.bf16.mxu0 %v26888_v34 }
 0x7a0   : > { %19495 = vmatpush3.bf16.msra.mxu0 %v26888_v34  ;;  %v25196_v34 = vsel %vm2829_vm2, %v10214_v10, %v10216_v12  ;;  %v25246_v10 = vld [vmem:[%s26818_s5 + $0x228] sm:$0xff]  }
 0x7a1   : > { %19496 = vmatprep.subr.bf16.mxu0 %v24616_v31  ;;  %26892 = vst [vmem:[#allocation11_spill] sm:$0xff] %v25246_v10 }
 0x7a4   : > { %19497 = vmatpush3.bf16.msra.mxu0 %v24616_v31  ;;  %v24985_v31 = vld [vmem:[%s26818_s5 + $0x140] sm:$0xff]  }
 0x7a5   : > { %19498 = vmatprep.subr.bf16.mxu0 %v24631_v61 }
 0x7a8   : > { %19499 = vmatpush3.bf16.msra.mxu0 %v24631_v61  ;;  %v21233_v61 = vld [vmem:[%s26820_s7 + $0x20c] ss:$16 sps:$4 sm:$0xff]  }
 0x7a9   : > { %19508 = vmatprep.subr.bf16.mxu0 %v24642_v28 }
 0x7ab   : > { %19501 = vmatmul.mubr.bf16.vlgmr.msra.gmra.mrb[24].mxu0 %v21654_v58  ;;  %v25201_v58 = vld [vmem:[%s26818_s5 + $0x200] sm:$0xff]  }
 0x7ac   : > { %19509 = vmatpush3.bf16.msra.mxu0 %v24642_v28  ;;  %19504 = vmatprep.mubr.bf16.mxu0 %v21655_v52  ;;  %v25020_v28 = vld [vmem:[%s26818_s5 + $0x160] sm:$0xff]   ;;  %v25205_v52 = vsel %vm2829_vm2, %v10216_v12, %v10218_v6 }
 0x7ad   : > { %19510 = vmatprep.subr.bf16.mxu0 %v24652_v24 }
 0x7b0   : > { %19511 = vmatpush3.bf16.msra.mxu0 %v24652_v24  ;;  %v25027_v24 = vld [vmem:[%s26818_s5 + $0x168] sm:$0xff]  }
 0x7b1   : > { %19512 = vmatprep.subr.bf16.mxu0 %v24662_v54 }
 0x7b3   : > { %19505 = vmatmul.mubr.bf16.gmra.mrb[28].mxu0 %v24226_v48  ;;  %v21227_v48 = vld [vmem:[%s26820_s7 + $0x204] ss:$16 sps:$4 sm:$0xff]  }
 0x7b4   : > { %19513 = vmatpush3.bf16.msra.mxu0 %v24662_v54  ;;  %19524 = vmatprep.mubr.bf16.mxu0 %v24746_v9  ;;  %v25034_v54 = vld [vmem:[%s26818_s5 + $0x170] sm:$0xff]  }
 0x7b5   : > { %19514 = vmatprep.subr.bf16.mxu0 %v24673_v4  ;;  %8643 = vmatprep.subr.bf16.mxu1 %v21227_v48  ;;  %v10207_v48 = vld [vmem:[#allocation3 + $0xc0] sm:$0xf] }
 0x7b6   : > { %8644 = vmatpush1.bf16.msra.mxu1 %v21225_v49  ;;  %v10220_v49 = vrot.slane %v10207_v48, 4 }
 0x7b7   : > { %8645 = vmatprep.subr.bf16.mxu1 %v21230_v50  ;;  %v25213_v50 = vld [vmem:[%s26818_s5 + $0x208] sm:$0xff]  }
 0x7b8   : > { %19515 = vmatpush3.bf16.msra.mxu0 %v24673_v4  ;;  %v25041_v4 = vld [vmem:[%s26818_s5 + $0x178] sm:$0xff]  }
 0x7b9   : > { %19516 = vmatprep.subr.bf16.mxu0 %v24682_v55 }
 0x7ba   : > { %8646 = vmatpush1.bf16.msra.mxu1 %v21228_v43  ;;  %v25218_v43 = vsel %vm2829_vm2, %v10218_v6, %v10220_v49  ;;  %v25254_v49 = vld [vmem:[%s26818_s5 + $0x230] sm:$0xff]  }
 0x7bb   : > { %8684 = vmatprep.subr.bf16.mxu1 %v21233_v61  ;;  %v25223_v61 = vld [vmem:[%s26818_s5 + $0x210] sm:$0xff]   ;;  %26893 = vst [vmem:[#allocation9_spill] sm:$0xff] %v25254_v49 }
 0x7bc   : > { %19517 = vmatpush3.bf16.msra.mxu0 %v24682_v55  ;;  %v25048_v55 = vld [vmem:[%s26818_s5 + $0x180] sm:$0xff]   ;;  %26889 = vst [vmem:[#allocation7_spill] sm:$0xff] %v25223_v61 }
 0x7bd   : > { %19518 = vmatprep.subr.bf16.mxu0 %v24691_v41 }
 0x7c0   : > { %19519 = vmatpush3.bf16.msra.mxu0 %v24691_v41  ;;  %v25057_v41 = vld [vmem:[%s26818_s5 + $0x188] sm:$0xff]  }
 0x7c1   : > { %19520 = vmatprep.subr.bf16.mxu0 %v24700_v19 }
 0x7c4   : > { %19521 = vmatpush3.bf16.msra.mxu0 %v24700_v19  ;;  %v25064_v19 = vld [vmem:[%s26818_s5 + $0x190] sm:$0xff]  }
 0x7c5   : > { %19522 = vmatprep.subr.bf16.mxu0 %v24709_v1 }
 0x7c8   : > { %19523 = vmatpush3.bf16.msra.mxu0 %v24709_v1  ;;  %v25067_v1 = vld [vmem:[#allocation3 + $0xa0] sm:$0xff] }
 0x7c9   : > { %19532 = vmatprep.subr.bf16.mxu0 %v24718_v20 }
 0x7cb   : > { %19525 = vmatmul.mubr.bf16.vlgmr.msra.gmra.mrb[24].mxu0 %v24799_v40 }
 0x7cc   : > { %19533 = vmatpush3.bf16.msra.mxu0 %v24718_v20  ;;  %19528 = vmatprep.mubr.bf16.mxu0 %v24803_v59  ;;  %v25075_v20 = vld [vmem:[%s26818_s5 + $0x198] sm:$0xff]  }
 0x7cd   : > { %19534 = vmatprep.subr.bf16.mxu0 %v24730_v32 }
 0x7d0   : > { %19535 = vmatpush3.bf16.msra.mxu0 %v24730_v32  ;;  %v25082_v32 = vld [vmem:[%s26818_s5 + $0x1a0] sm:$0xff]  }
 0x7d1   : > { %19536 = vmatprep.subr.bf16.mxu0 %v24740_v27 }
 0x7d3   : > { %19529 = vmatmul.mubr.bf16.gmra.mrb[28].mxu0 %v24816_v35 }
 0x7d4   : > { %19537 = vmatpush3.bf16.msra.mxu0 %v24740_v27  ;;  %19548 = vmatprep.mubr.bf16.mxu0 %v24821_v36  ;;  %v25089_v27 = vld [vmem:[%s26818_s5 + $0x1a8] sm:$0xff]  }
 0x7d5   : > { %19538 = vmatprep.subr.bf16.mxu0 %v24753_v37 }
 0x7d8   : > { %19539 = vmatpush3.bf16.msra.mxu0 %v24753_v37 }
 0x7d9   : > { %19540 = vmatprep.subr.bf16.mxu0 %v24764_v30 }
 0x7dc   : > { %19541 = vmatpush3.bf16.msra.mxu0 %v24764_v30 }
 0x7dd   : > { %19542 = vmatprep.subr.bf16.mxu0 %v24773_v22 }
 0x7e0   : > { %19543 = vmatpush3.bf16.msra.mxu0 %v24773_v22 }
 0x7e1   : > { %19544 = vmatprep.subr.bf16.mxu0 %v24782_v25 }
 0x7e4   : > { %19545 = vmatpush3.bf16.msra.mxu0 %v24782_v25 }
 0x7e5   : > { %19546 = vmatprep.subr.bf16.mxu0 %v24791_v57 }
 0x7e8   : > { %19547 = vmatpush3.bf16.msra.mxu0 %v24791_v57  ;;  %v25104_v57 = vld [vmem:[%s26818_s5 + $0x1b0] sm:$0xff]  }
 0x7e9   : > { %19556 = vmatprep.subr.bf16.mxu0 %v24985_v31 }
 0x7eb   : > { %19549 = vmatmul.mubr.bf16.vlgmr.msra.gmra.mrb[24].mxu0 %v24852_v46 }
 0x7ec   : > { %19557 = vmatpush3.bf16.msra.mxu0 %v24985_v31  ;;  %19552 = vmatprep.mubr.bf16.mxu0 %v24857_v7 }
 0x7ed   : > { %19558 = vmatprep.subr.bf16.mxu0 %v24997_v5 }
 0x7f0   : > { %19559 = vmatpush3.bf16.msra.mxu0 %v24997_v5 }
 0x7f1   : > { %19560 = vmatprep.subr.bf16.mxu0 %v25004_v13 }
 0x7f3   : > { %19553 = vmatmul.mubr.bf16.gmra.mrb[28].mxu0 %v24870_v18 }
 0x7f4   : > { %19561 = vmatpush3.bf16.msra.mxu0 %v25004_v13  ;;  %19572 = vmatprep.mubr.bf16.mxu0 %v24799_v40 }
 0x7f5   : > { %19562 = vmatprep.subr.bf16.mxu0 %v25013_v44 }
 0x7f8   : > { %19563 = vmatpush3.bf16.msra.mxu0 %v25013_v44 }
 0x7f9   : > { %19564 = vmatprep.subr.bf16.mxu0 %v25020_v28 }
 0x7fc   : > { %19565 = vmatpush3.bf16.msra.mxu0 %v25020_v28 }
 0x7fd   : > { %19566 = vmatprep.subr.bf16.mxu0 %v25027_v24 }
 0x800   : > { %19567 = vmatpush3.bf16.msra.mxu0 %v25027_v24 }
 0x801   : > { %19568 = vmatprep.subr.bf16.mxu0 %v25034_v54 }
 0x804   : > { %19569 = vmatpush3.bf16.msra.mxu0 %v25034_v54 }
 0x805   : > { %19570 = vmatprep.subr.bf16.mxu0 %v25041_v4 }
 0x808   : > { %19571 = vmatpush3.bf16.msra.mxu0 %v25041_v4 }
 0x809   : > { %19580 = vmatprep.subr.bf16.mxu0 %v25048_v55 }
 0x80b   : > { %19573 = vmatmul.mubr.bf16.vlgmr.msra.gmra.mrb[24].mxu0 %v24803_v59 }
 0x80c   : > { %19581 = vmatpush3.bf16.msra.mxu0 %v25048_v55  ;;  %19576 = vmatprep.mubr.bf16.mxu0 %v24816_v35 }
 0x80d   : > { %19582 = vmatprep.subr.bf16.mxu0 %v25057_v41 }
 0x810   : > { %19583 = vmatpush3.bf16.msra.mxu0 %v25057_v41 }
 0x811   : > { %19584 = vmatprep.subr.bf16.mxu0 %v25064_v19 }
 0x813   : > { %19577 = vmatmul.mubr.bf16.gmra.mrb[28].mxu0 %v24916_v15 }
 0x814   : > { %19585 = vmatpush3.bf16.msra.mxu0 %v25064_v19  ;;  %19596 = vmatprep.mubr.bf16.mxu0 %v25067_v1 }
 0x815   : > { %19586 = vmatprep.subr.bf16.mxu0 %v25075_v20 }
 0x818   : > { %19587 = vmatpush3.bf16.msra.mxu0 %v25075_v20 }
 0x819   : > { %19588 = vmatprep.subr.bf16.mxu0 %v25082_v32 }
 0x81c   : > { %19589 = vmatpush3.bf16.msra.mxu0 %v25082_v32 }
 0x81d   : > { %19590 = vmatprep.subr.bf16.mxu0 %v25089_v27 }
 0x81e   : > { %v25092_v37 = vpop.f32.mrb[16].mxu0 }
 0x81f   : > { %v25094_v30 = vpop.f32.mrb[17].mxu0 }
 0x820   : > { %v25096_v22 = vpop.f32.mrb[18].mxu0  ;;  %19591 = vmatpush3.bf16.msra.mxu0 %v25089_v27 }
 0x821   : > { %v25099_v25 = vpop.f32.mrb[19].mxu0  ;;  %19592 = vmatprep.subr.bf16.mxu0 %v25104_v57 }
 0x824   : > { %19593 = vmatpush3.bf16.msra.mxu0 %v25104_v57 }
 0x825   : > { %19594 = vmatprep.subr.bf16.mxu0 %v25111_v47 }
 0x826   : > { %v25114_v14 = vpop.f32.mrb[20].mxu0 }
 0x827   : > { %v25116_v0 = vpop.f32.mrb[21].mxu0 }
 0x828   : > { %v25118_v56 = vpop.f32.mrb[22].mxu0  ;;  %19595 = vmatpush3.bf16.msra.mxu0 %v25111_v47 }
 0x829   : > { %v25123_v33 = vpop.f32.mrb[23].mxu0  ;;  %19604 = vmatprep.subr.bf16.mxu0 %v25128_v63 }
 0x82b   : > { %19597 = vmatmul.mubr.bf16.vlgmr.msra.gmra.mrb[24].mxu0 %v25121_v39 }
 0x82c   : > { %19605 = vmatpush3.bf16.msra.mxu0 %v25128_v63  ;;  %19600 = vmatprep.mubr.bf16.mxu0 %v25131_v8 }
 0x82d   : > { %19606 = vmatprep.subr.bf16.mxu0 %v25139_v60 }
 0x830   : > { %19607 = vmatpush3.bf16.msra.mxu0 %v25139_v60 }
 0x831   : > { %19608 = vmatprep.subr.bf16.mxu0 %v25149_v42 }
 0x833   : > { %19601 = vmatmul.mubr.bf16.gmra.mrb[28].mxu0 %v25144_v38 }
 0x834   : > { %19609 = vmatpush3.bf16.msra.mxu0 %v25149_v42  ;;  %19620 = vmatprep.mubr.bf16.mxu0 %v25153_v62 }
 0x835   : > { %19610 = vmatprep.subr.bf16.mxu0 %v25161_v53 }
 0x838   : > { %19611 = vmatpush3.bf16.msra.mxu0 %v25161_v53 }
 0x839   : > { %19612 = vmatprep.subr.bf16.mxu0 %v25168_v2 }
 0x83c   : > { %19613 = vmatpush3.bf16.msra.mxu0 %v25168_v2 }
 0x83d   : > { %19614 = vmatprep.subr.bf16.mxu0 %v25175_v11 }
 0x840   : > { %19615 = vmatpush3.bf16.msra.mxu0 %v25175_v11 }
 0x841   : > { %19616 = vmatprep.subr.bf16.mxu0 %v25182_v45 }
 0x844   : > { %19617 = vmatpush3.bf16.msra.mxu0 %v25182_v45 }
 0x845   : > { %19618 = vmatprep.subr.bf16.mxu0 %v25190_v3 }
 0x848   : > { %19619 = vmatpush3.bf16.msra.mxu0 %v25190_v3 }
 0x849   : > { %19628 = vmatprep.subr.bf16.mxu0 %v25201_v58 }
 0x84b   : > { %19621 = vmatmul.mubr.bf16.vlgmr.msra.gmra.mrb[24].mxu0 %v25196_v34 }
 0x84c   : > { %19629 = vmatpush3.bf16.msra.mxu0 %v25201_v58  ;;  %19624 = vmatprep.mubr.bf16.mxu0 %v25205_v52 }
 0x84d   : > { %19630 = vmatprep.subr.bf16.mxu0 %v25213_v50 }
 0x850   : > { %19631 = vmatpush3.bf16.msra.mxu0 %v25213_v50 }
 0x851   : > { %19632 = vmatprep.subr.bf16.mxu0 %v25223_v61 }
 0x853   : > { %19625 = vmatmul.mubr.bf16.gmra.mrb[28].mxu0 %v25218_v43 }
 0x854   : > { %19633 = vmatpush3.bf16.msra.mxu0 %v25223_v61  ;;  %19644 = vmatprep.mubr.bf16.mxu0 %v25121_v39 }
 0x855   : > { %19634 = vmatprep.subr.bf16.mxu0 %v25232_v17 }
 0x858   : > { %19635 = vmatpush3.bf16.msra.mxu0 %v25232_v17 }
 0x859   : > { %19636 = vmatprep.subr.bf16.mxu0 %v25239_v51 }
 0x85c   : > { %19637 = vmatpush3.bf16.msra.mxu0 %v25239_v51 }
 0x85d   : > { %19638 = vmatprep.subr.bf16.mxu0 %v25246_v10 }
 0x860   : > { %v19430_v12 = vpop.f32.mrb[8].mxu1  ;;  %19639 = vmatpush3.bf16.msra.mxu0 %v25246_v10 }
 0x861   : > { %v20092_v6 = vadd.f32 %v19430_v12, %v25092_v37  ;;  %v8532_v48 = vpop.f32.mrb[9].mxu1  ;;  %19640 = vmatprep.subr.bf16.mxu0 %v25254_v49 }
 0x862   : > { %v20093_v21 = vadd.f32 %v8532_v48, %v25094_v30  ;;  %v19431_v26 = vpop.f32.mrb[10].mxu1  ;;  %v25272_v30 = vld [vmem:[%s26818_s5 + $0x238] sm:$0xff]  }
 0x863   : > { %v8573_v23 = vadd.f32 %v25261_v16, %v20092_v6  ;;  %v20094_v37 = vadd.f32 %v19431_v26, %v25096_v22  ;;  %v8535_v12 = vpop.f32.mrb[11].mxu1  ;;  %26894 = vst [vmem:[#allocation12_spill] sm:$0xff] %v25272_v30 }
 0x864   : > { %v8571_v10 = vadd.f32 %v25261_v16, %v20093_v21  ;;  %v20095_v51 = vadd.f32 %v8535_v12, %v25099_v25  ;;  %19641 = vmatpush3.bf16.msra.mxu0 %v25254_v49  ;;  %v21689_v49 = vld [vmem:[%s26818_s5 + $0x40] sm:$0xff]  }
 0x865   : > { %v8574_v17 = vadd.f32 %v25261_v16, %v20094_v37  ;;  %19642 = vmatprep.subr.bf16.mxu0 %v25272_v30  ;;  %v8581_v48 = vmax.f32 %v8573_v23, 0.0  ;;  %v21231_v23 = vld [vmem:[%s26820_s7 + $0x208] ss:$16 sps:$4 sm:$0xff]  }
 0x866   : > { %v8572_v6 = vadd.f32 %v25261_v16, %v20095_v51  ;;  %v8579_v22 = vmax.f32 %v8571_v10, 0.0 }
 0x867   : > { %v8582_v26 = vmax.f32 %v8574_v17, 0.0 }
 0x868   : > { %v8580_v61 = vmax.f32 %v8572_v6, 0.0  ;;  %v19434_v21 = vpop.f32.mrb[12].mxu1  ;;  %19643 = vmatpush3.bf16.msra.mxu0 %v25272_v30  ;;  %v21236_v6 = vld [vmem:[%s26820_s7 + $0x22c] ss:$16 sps:$4 sm:$0xff]  }
 0x869   : > { %v25277_v25 = vpack.c.bf16 %v8582_v26, %v8581_v48  ;;  %v20096_v37 = vadd.f32 %v19434_v21, %v25114_v14  ;;  %v8548_v12 = vpop.f32.mrb[13].mxu1  ;;  %19652 = vmatprep.subr.bf16.mxu0 %v21689_v49 }
 0x86a   : > { %v25286_v17 = vpack.c.bf16 %v8580_v61, %v8579_v22  ;;  %v20097_v51 = vadd.f32 %v8548_v12, %v25116_v0  ;;  %v19435_v10 = vpop.f32.mrb[14].mxu1  ;;  %v21690_v61 = vld [vmem:[%s26818_s5 + $0x48] sm:$0xff]  }
 0x86b   : > { %v8577_v14 = vadd.f32 %v25261_v16, %v20096_v37  ;;  %v20098_v48 = vadd.f32 %v19435_v10, %v25118_v56  ;;  %v8551_v26 = vpop.f32.mrb[15].mxu1  ;;  %19645 = vmatmul.mubr.bf16.vlgmr.msra.gmra.mrb[24].mxu0 %v25131_v8  ;;  %v21234_v56 = vld [vmem:[%s26820_s7 + $0x228] ss:$16 sps:$4 sm:$0xff]  }
 0x86c   : > { %v8575_v21 = vadd.f32 %v25261_v16, %v20097_v51  ;;  %v20099_v30 = vadd.f32 %v8551_v26, %v25123_v33  ;;  %16478 = vmatmul.mubr.msk.bf16.vlgmr.msra.gmra.mrb[0].mxu1 %vm6837_vm3, %v25286_v17  ;;  %19653 = vmatpush3.bf16.msra.mxu0 %v21689_v49  ;;  %v21239_v33 = vld [vmem:[%s26820_s7 + $0x244] ss:$16 sps:$4 sm:$0xff]   ;;  %v21692_v26 = vld [vmem:[%s26818_s5 + $0x58] sm:$0xff]  }
 0x86d   : > { %v8578_v0 = vadd.f32 %v25261_v16, %v20098_v48  ;;  %8685 = vmatpush1.bf16.msra.mxu1 %v21231_v23  ;;  %19654 = vmatprep.subr.bf16.mxu0 %v21690_v61  ;;  %v8585_v49 = vmax.f32 %v8577_v14, 0.0  ;;  %v25312_v51 = vld [vmem:[#allocation3 + $0xc0] sm:$0xff] }
 0x86e   : > { %v8576_v22 = vadd.f32 %v25261_v16, %v20099_v30  ;;  %8686 = vmatprep.subr.bf16.mxu1 %v21236_v6  ;;  %19648 = vmatprep.mubr.bf16.mxu0 %v25144_v38  ;;  %v8583_v12 = vmax.f32 %v8575_v21, 0.0  ;;  %v21691_v30 = vld [vmem:[%s26818_s5 + $0x50] sm:$0xff]  }
 0x86f   : > { %v8586_v37 = vmax.f32 %v8578_v0, 0.0  ;;  %8716 = vmatprep.mubr.bf16.mxu1 %v26869_v29  ;;  %v21237_v6 = vld [vmem:[%s26820_s7 + $0x240] ss:$16 sps:$4 sm:$0xff]   ;;  %v21242_v48 = vld [vmem:[%s26820_s7 + $0x264] ss:$16 sps:$4 sm:$0xff]  }
 0x870   : > { %v8584_v23 = vmax.f32 %v8576_v22, 0.0  ;;  %19655 = vmatpush3.bf16.msra.mxu0 %v21690_v61  ;;  %v21240_v21 = vld [vmem:[%s26820_s7 + $0x260] ss:$16 sps:$4 sm:$0xff]   ;;  %v21245_v0 = vld [vmem:[%s26820_s7 + $0x24c] ss:$16 sps:$4 sm:$0xff]   ;;  %v8739_v22 = vrot.slane %v25286_v17, 4 }
 0x871   : > { %v25314_v10 = vpack.c.bf16 %v8586_v37, %v8585_v49  ;;  %8687 = vmatpush1.bf16.msra.mxu1 %v21234_v56  ;;  %19656 = vmatprep.subr.bf16.mxu0 %v21691_v30  ;;  %v21693_v61 = vld [vmem:[%s26818_s5 + $0x60] sm:$0xff]   ;;  %v21243_v56 = vld [vmem:[%s26820_s7 + $0x248] ss:$16 sps:$4 sm:$0xff]   ;;  %v21695_v37 = vld [vmem:[%s26818_s5 + $0x70] sm:$0xff]  }
 0x872   : > { %v25322_v14 = vpack.c.bf16 %v8584_v23, %v8583_v12  ;;  %8783 = vmatprep.subr.bf16.mxu1 %v21239_v33  ;;  %v21248_v33 = vld [vmem:[%s26820_s7 + $0x26c] ss:$16 sps:$4 sm:$0xff]   ;;  %v21246_v49 = vld [vmem:[%s26820_s7 + $0x268] ss:$16 sps:$4 sm:$0xff]   ;;  %v21249_v12 = vld [vmem:[%s26820_s7 + $0x280] ss:$16 sps:$4 sm:$0xff]  }
 0x873   : > { %19649 = vmatmul.mubr.bf16.gmra.mrb[28].mxu0 %v25312_v51  ;;  %v21254_v23 = vld [vmem:[%s26820_s7 + $0x2a4] ss:$16 sps:$4 sm:$0xff]  }
 0x874   : > { %16479 = vmatmul.mubr.msk.bf16.vlgmr.msra.gmra.mrb[4].mxu1 %vm6837_vm3, %v25286_v17  ;;  %19657 = vmatpush3.bf16.msra.mxu0 %v21691_v30  ;;  %v21251_v17 = vld [vmem:[%s26820_s7 + $0x284] ss:$16 sps:$4 sm:$0xff]   ;;  %v21696_v30 = vld [vmem:[%s26818_s5 + $0x78] sm:$0xff]  }
 0x875   : > { %8784 = vmatpush1.bf16.msra.mxu1 %v21237_v6  ;;  %19658 = vmatprep.subr.bf16.mxu0 %v21692_v26  ;;  %v21252_v6 = vld [vmem:[%s26820_s7 + $0x2a0] ss:$16 sps:$4 sm:$0xff]  }
 0x876   : > { %8785 = vmatprep.subr.bf16.mxu1 %v21242_v48  ;;  %8815 = vmatprep.mubr.bf16.mxu1 %v26869_v29  ;;  %v21257_v48 = vld [vmem:[%s26820_s7 + $0x28c] ss:$16 sps:$4 sm:$0xff]  }
 0x877   : > { %19668 = vmatprep.mubr.bf16.mxu0 %v24821_v36  ;;  %v21694_v36 = vld [vmem:[%s26818_s5 + $0x68] sm:$0xff]  }
 0x878   : > { %19659 = vmatpush3.bf16.msra.mxu0 %v21692_v26  ;;  %v21697_v26 = vld [vmem:[%s26818_s5] sm:$0xff]  }
 0x879   : > { %8786 = vmatpush1.bf16.msra.mxu1 %v21240_v21  ;;  %19660 = vmatprep.subr.bf16.mxu0 %v21693_v61  ;;  %v21255_v21 = vld [vmem:[%s26820_s7 + $0x288] ss:$16 sps:$4 sm:$0xff]  }
 0x87a   : > { %8824 = vmatprep.subr.bf16.mxu1 %v21245_v0  ;;  %v21260_v0 = vld [vmem:[%s26820_s7 + $0x2ac] ss:$16 sps:$4 sm:$0xff]  }
 0x87c   : > { %16496 = vmatmul.mubr.msk.bf16.vlgmr.msra.gmra.mrb[0].mxu1 %vm6837_vm3, %v8739_v22  ;;  %19661 = vmatpush3.bf16.msra.mxu0 %v21693_v61  ;;  %v21698_v61 = vld [vmem:[%s26818_s5 + $0x8] sm:$0xff]  }
 0x87d   : > { %8825 = vmatpush1.bf16.msra.mxu1 %v21243_v56  ;;  %19662 = vmatprep.subr.bf16.mxu0 %v21694_v36  ;;  %v21258_v56 = vld [vmem:[%s26820_s7 + $0x2a8] ss:$16 sps:$4 sm:$0xff]  }
 0x87e   : > { %8826 = vmatprep.subr.bf16.mxu1 %v21248_v33  ;;  %8856 = vmatprep.mubr.bf16.mxu1 %v26869_v29  ;;  %v21261_v33 = vld [vmem:[%s26820_s7 + $0x2c0] ss:$16 sps:$4 sm:$0xff]  }
 0x880   : > { %19663 = vmatpush3.bf16.msra.mxu0 %v21694_v36  ;;  %v21266_v36 = vld [vmem:[%s26820_s7 + $0x2e4] ss:$16 sps:$4 sm:$0xff]  }
 0x881   : > { %8827 = vmatpush1.bf16.msra.mxu1 %v21246_v49  ;;  %19664 = vmatprep.subr.bf16.mxu0 %v21695_v37  ;;  %v21264_v49 = vld [vmem:[%s26820_s7 + $0x2e0] ss:$16 sps:$4 sm:$0xff]  }
 0x882   : > { %8921 = vmatprep.subr.bf16.mxu1 %v21251_v17  ;;  %v21701_v17 = vld [vmem:[%s26818_s5 + $0x20] sm:$0xff]  }
 0x884   : > { %16497 = vmatmul.mubr.msk.bf16.vlgmr.msra.gmra.mrb[4].mxu1 %vm6837_vm3, %v8739_v22  ;;  %19665 = vmatpush3.bf16.msra.mxu0 %v21695_v37  ;;  %v21699_v22 = vld [vmem:[%s26818_s5 + $0x10] sm:$0xff]   ;;  %v21267_v37 = vld [vmem:[%s26820_s7 + $0x2c8] ss:$16 sps:$4 sm:$0xff]  }
 0x885   : > { %8922 = vmatpush1.bf16.msra.mxu1 %v21249_v12  ;;  %19666 = vmatprep.subr.bf16.mxu0 %v21696_v30  ;;  %v9017_v12 = vrot.slane %v25277_v25, 4 }
 0x886   : > { %8923 = vmatprep.subr.bf16.mxu1 %v21254_v23  ;;  %8953 = vmatprep.mubr.bf16.mxu1 %v26869_v29  ;;  %v21272_v23 = vld [vmem:[%s26820_s7 + $0x2ec] ss:$16 sps:$4 sm:$0xff]  }
 0x888   : > { %19667 = vmatpush3.bf16.msra.mxu0 %v21696_v30  ;;  %v21270_v30 = vld [vmem:[%s26820_s7 + $0x2e8] ss:$16 sps:$4 sm:$0xff]  }
 0x889   : > { %8924 = vmatpush1.bf16.msra.mxu1 %v21252_v6  ;;  %19676 = vmatprep.subr.bf16.mxu0 %v21697_v26  ;;  %v21703_v6 = vld [vmem:[%s26818_s5 + $0x30] sm:$0xff]  }
 0x88a   : > { %8962 = vmatprep.subr.bf16.mxu1 %v21257_v48  ;;  %v21273_v48 = vld [vmem:[%s26820_s7 + $0x300] ss:$16 sps:$4 sm:$0xff]  }
 0x88b   : > { %19669 = vmatmul.mubr.bf16.vlgmr.msra.gmra.mrb[32].mxu0 %v24852_v46  ;;  %v21263_v46 = vld [vmem:[%s26820_s7 + $0x2c4] ss:$16 sps:$4 sm:$0xff]  }
 0x88c   : > { %16514 = vmatmul.mubr.msk.bf16.vlgmr.msra.gmra.mrb[0].mxu1 %vm6837_vm3, %v25277_v25  ;;  %19677 = vmatpush3.bf16.msra.mxu0 %v21697_v26  ;;  %v21278_v26 = vld [vmem:[%s26820_s7 + $0x324] ss:$16 sps:$4 sm:$0xff]  }
 0x88d   : > { %8963 = vmatpush1.bf16.msra.mxu1 %v21255_v21  ;;  %19678 = vmatprep.subr.bf16.mxu0 %v21698_v61  ;;  %v21704_v21 = vld [vmem:[%s26818_s5 + $0x38] sm:$0xff]  }
 0x88e   : > { %8964 = vmatprep.subr.bf16.mxu1 %v21260_v0  ;;  %8994 = vmatprep.mubr.bf16.mxu1 %v26869_v29  ;;  %v21276_v0 = vld [vmem:[%s26820_s7 + $0x320] ss:$16 sps:$4 sm:$0xff]  }
 0x88f   : > { %19672 = vmatprep.mubr.bf16.mxu0 %v24857_v7  ;;  %v21700_v7 = vld [vmem:[%s26818_s5 + $0x18] sm:$0xff]  }
 0x890   : > { %19679 = vmatpush3.bf16.msra.mxu0 %v21698_v61  ;;  %v21281_v61 = vld [vmem:[%s26820_s7 + $0x30c] ss:$16 sps:$4 sm:$0xff]  }
 0x891   : > { %8965 = vmatpush1.bf16.msra.mxu1 %v21258_v56  ;;  %19680 = vmatprep.subr.bf16.mxu0 %v21699_v22  ;;  %v21705_v56 = vld [vmem:[%s26818_s5 + $0x80] sm:$0xff]  }
 0x892   : > { %9061 = vmatprep.subr.bf16.mxu1 %v21263_v46  ;;  %v21279_v46 = vld [vmem:[%s26820_s7 + $0x308] ss:$16 sps:$4 sm:$0xff]  }
 0x893   : > { %19673 = vmatmul.mubr.bf16.gmra.mrb[36].mxu0 %v24870_v18  ;;  %v21269_v18 = vld [vmem:[%s26820_s7 + $0x2cc] ss:$16 sps:$4 sm:$0xff]  }
 0x894   : > { %16515 = vmatmul.mubr.msk.bf16.vlgmr.msra.gmra.mrb[4].mxu1 %vm6837_vm3, %v25277_v25  ;;  %19681 = vmatpush3.bf16.msra.mxu0 %v21699_v22  ;;  %v21275_v25 = vld [vmem:[%s26820_s7 + $0x304] ss:$16 sps:$4 sm:$0xff]   ;;  %v21284_v22 = vld [vmem:[%s26820_s7 + $0x32c] ss:$16 sps:$4 sm:$0xff]  }
 0x895   : > { %9062 = vmatpush1.bf16.msra.mxu1 %v21261_v33  ;;  %19682 = vmatprep.subr.bf16.mxu0 %v21700_v7  ;;  %v21706_v33 = vld [vmem:[%s26818_s5 + $0x88] sm:$0xff]  }
 0x896   : > { %9063 = vmatprep.subr.bf16.mxu1 %v21266_v36  ;;  %9093 = vmatprep.mubr.bf16.mxu1 %v26869_v29  ;;  %v21282_v36 = vld [vmem:[%s26820_s7 + $0x328] ss:$16 sps:$4 sm:$0xff]  }
 0x897   : > { %19692 = vmatprep.mubr.bf16.mxu0 %v24746_v9  ;;  %v21702_v9 = vld [vmem:[%s26818_s5 + $0x28] sm:$0xff]  }
 0x898   : > { %19683 = vmatpush3.bf16.msra.mxu0 %v21700_v7  ;;  %v21287_v7 = vld [vmem:[%s26820_s7 + $0x344] ss:$16 sps:$4 sm:$0xff]  }
 0x899   : > { %9064 = vmatpush1.bf16.msra.mxu1 %v21264_v49  ;;  %19684 = vmatprep.subr.bf16.mxu0 %v21701_v17  ;;  %v21707_v49 = vld [vmem:[%s26818_s5 + $0x90] sm:$0xff]  }
 0x89a   : > { %9102 = vmatprep.subr.bf16.mxu1 %v21269_v18  ;;  %v21285_v18 = vld [vmem:[%s26820_s7 + $0x340] ss:$16 sps:$4 sm:$0xff]  }
 0x89c   : > { %16532 = vmatmul.mubr.msk.bf16.vlgmr.msra.gmra.mrb[0].mxu1 %vm6837_vm3, %v9017_v12  ;;  %19685 = vmatpush3.bf16.msra.mxu0 %v21701_v17  ;;  %v21290_v17 = vld [vmem:[%s26820_s7 + $0x364] ss:$16 sps:$4 sm:$0xff]  }
 0x89d   : > { %9103 = vmatpush1.bf16.msra.mxu1 %v21267_v37  ;;  %19686 = vmatprep.subr.bf16.mxu0 %v21702_v9  ;;  %v21708_v37 = vld [vmem:[%s26818_s5 + $0x98] sm:$0xff]  }
 0x89e   : > { %9104 = vmatprep.subr.bf16.mxu1 %v21272_v23  ;;  %9134 = vmatprep.mubr.bf16.mxu1 %v26869_v29  ;;  %v21293_v23 = vld [vmem:[%s26820_s7 + $0x34c] ss:$16 sps:$4 sm:$0xff]  }
 0x8a0   : > { %19687 = vmatpush3.bf16.msra.mxu0 %v21702_v9  ;;  %v21709_v9 = vld [vmem:[%s26818_s5 + $0xa0] sm:$0xff]  }
 0x8a1   : > { %9105 = vmatpush1.bf16.msra.mxu1 %v21270_v30  ;;  %19688 = vmatprep.subr.bf16.mxu0 %v21703_v6  ;;  %v21291_v30 = vld [vmem:[%s26820_s7 + $0x348] ss:$16 sps:$4 sm:$0xff]  }
 0x8a2   : > { %9199 = vmatprep.subr.bf16.mxu1 %v21275_v25  ;;  %v9295_v25 = vrot.slane %v25322_v14, 4 }
 0x8a4   : > { %16533 = vmatmul.mubr.msk.bf16.vlgmr.msra.gmra.mrb[4].mxu1 %vm6837_vm3, %v9017_v12  ;;  %19689 = vmatpush3.bf16.msra.mxu0 %v21703_v6  ;;  %v21288_v12 = vld [vmem:[%s26820_s7 + $0x360] ss:$16 sps:$4 sm:$0xff]   ;;  %v21296_v6 = vld [vmem:[%s26820_s7 + $0x36c] ss:$16 sps:$4 sm:$0xff]  }
 0x8a5   : > { %9200 = vmatpush1.bf16.msra.mxu1 %v21273_v48  ;;  %19690 = vmatprep.subr.bf16.mxu0 %v21704_v21  ;;  %v21294_v48 = vld [vmem:[%s26820_s7 + $0x368] ss:$16 sps:$4 sm:$0xff]  }
 0x8a6   : > { %9201 = vmatprep.subr.bf16.mxu1 %v21278_v26  ;;  %9231 = vmatprep.mubr.bf16.mxu1 %v26869_v29  ;;  %v21711_v26 = vld [vmem:[%s26818_s5 + $0xb0] sm:$0xff]  }
 0x8a8   : > { %19691 = vmatpush3.bf16.msra.mxu0 %v21704_v21  ;;  %v21297_v21 = vld [vmem:[%s26820_s7 + $0x380] ss:$16 sps:$4 sm:$0xff]  }
 0x8a9   : > { %9202 = vmatpush1.bf16.msra.mxu1 %v21276_v0  ;;  %19700 = vmatprep.subr.bf16.mxu0 %v21705_v56  ;;  %v21302_v0 = vld [vmem:[%s26820_s7 + $0x3a4] ss:$16 sps:$4 sm:$0xff]  }
 0x8aa   : > { %9240 = vmatprep.subr.bf16.mxu1 %v21281_v61  ;;  %v21712_v61 = vld [vmem:[%s26818_s5 + $0xb8] sm:$0xff]  }
 0x8ab   : > { %19693 = vmatmul.mubr.bf16.vlgmr.msra.gmra.mrb[32].mxu0 %v24799_v40 }
 0x8ac   : > { %16550 = vmatmul.mubr.msk.bf16.vlgmr.msra.gmra.mrb[0].mxu1 %vm6837_vm3, %v25322_v14  ;;  %19701 = vmatpush3.bf16.msra.mxu0 %v21705_v56  ;;  %v21300_v56 = vld [vmem:[%s26820_s7 + $0x3a0] ss:$16 sps:$4 sm:$0xff]  }
 0x8ad   : > { %9241 = vmatpush1.bf16.msra.mxu1 %v21279_v46  ;;  %19702 = vmatprep.subr.bf16.mxu0 %v21706_v33  ;;  %v21305_v46 = vld [vmem:[%s26820_s7 + $0x38c] ss:$16 sps:$4 sm:$0xff]  }
 0x8ae   : > { %9242 = vmatprep.subr.bf16.mxu1 %v21284_v22  ;;  %9272 = vmatprep.mubr.bf16.mxu1 %v26869_v29  ;;  %v21713_v22 = vld [vmem:[%s26818_s5 + $0xc0] sm:$0xff]  }
 0x8af   : > { %19696 = vmatprep.mubr.bf16.mxu0 %v24803_v59 }
 0x8b0   : > { %19703 = vmatpush3.bf16.msra.mxu0 %v21706_v33  ;;  %v21303_v33 = vld [vmem:[%s26820_s7 + $0x388] ss:$16 sps:$4 sm:$0xff]  }
 0x8b1   : > { %9243 = vmatpush1.bf16.msra.mxu1 %v21282_v36  ;;  %19704 = vmatprep.subr.bf16.mxu0 %v21707_v49  ;;  %v21308_v36 = vld [vmem:[%s26820_s7 + $0x3ac] ss:$16 sps:$4 sm:$0xff]  }
 0x8b2   : > { %9339 = vmatprep.subr.bf16.mxu1 %v21287_v7  ;;  %v21714_v7 = vld [vmem:[%s26818_s5 + $0xc8] sm:$0xff]  }
 0x8b3   : > { %19697 = vmatmul.mubr.bf16.gmra.mrb[36].mxu0 %v24816_v35 }
 0x8b4   : > { %16551 = vmatmul.mubr.msk.bf16.vlgmr.msra.gmra.mrb[4].mxu1 %vm6837_vm3, %v25322_v14  ;;  %19705 = vmatpush3.bf16.msra.mxu0 %v21707_v49  ;;  %v21299_v14 = vld [vmem:[%s26820_s7 + $0x384] ss:$16 sps:$4 sm:$0xff]   ;;  %v21306_v49 = vld [vmem:[%s26820_s7 + $0x3a8] ss:$16 sps:$4 sm:$0xff]  }
 0x8b5   : > { %9340 = vmatpush1.bf16.msra.mxu1 %v21285_v18  ;;  %19706 = vmatprep.subr.bf16.mxu0 %v21708_v37  ;;  %v21715_v18 = vld [vmem:[%s26818_s5 + $0xd0] sm:$0xff]  }
 0x8b6   : > { %9341 = vmatprep.subr.bf16.mxu1 %v21290_v17  ;;  %9371 = vmatprep.mubr.bf16.mxu1 %v26869_v29  ;;  %v21309_v17 = vld [vmem:[%s26820_s7 + $0x3c0] ss:$16 sps:$4 sm:$0xff]  }
 0x8b7   : > { %19716 = vmatprep.mubr.bf16.mxu0 %v24799_v40  ;;  %v21710_v40 = vld [vmem:[%s26818_s5 + $0xa8] sm:$0xff]  }
 0x8b8   : > { %19707 = vmatpush3.bf16.msra.mxu0 %v21708_v37  ;;  %v21314_v37 = vld [vmem:[%s26820_s7 + $0x3e4] ss:$16 sps:$4 sm:$0xff]  }
 0x8b9   : > { %9342 = vmatpush1.bf16.msra.mxu1 %v21288_v12  ;;  %19708 = vmatprep.subr.bf16.mxu0 %v21709_v9  ;;  %v21312_v12 = vld [vmem:[%s26820_s7 + $0x3e0] ss:$16 sps:$4 sm:$0xff]  }
 0x8ba   : > { %9380 = vmatprep.subr.bf16.mxu1 %v21293_v23  ;;  %v21717_v23 = vld [vmem:[%s26818_s5 + $0xe0] sm:$0xff]  }
 0x8bc   : > { %16568 = vmatmul.mubr.msk.bf16.vlgmr.msra.gmra.mrb[0].mxu1 %vm6837_vm3, %v9295_v25  ;;  %19709 = vmatpush3.bf16.msra.mxu0 %v21709_v9  ;;  %v21315_v9 = vld [vmem:[%s26820_s7 + $0x3c8] ss:$16 sps:$4 sm:$0xff]  }
 0x8bd   : > { %9381 = vmatpush1.bf16.msra.mxu1 %v21291_v30  ;;  %19710 = vmatprep.subr.bf16.mxu0 %v21710_v40  ;;  %v9573_v30 = vrot.slane %v25314_v10, 4 }
 0x8be   : > { %9382 = vmatprep.subr.bf16.mxu1 %v21296_v6  ;;  %9412 = vmatprep.mubr.bf16.mxu1 %v26869_v29  ;;  %v21318_v6 = vld [vmem:[%s26820_s7 + $0x3e8] ss:$16 sps:$4 sm:$0xff]  }
 0x8c0   : > { %19711 = vmatpush3.bf16.msra.mxu0 %v21710_v40  ;;  %v21719_v40 = vld [vmem:[%s26818_s5 + $0xf0] sm:$0xff]  }
 0x8c1   : > { %9383 = vmatpush1.bf16.msra.mxu1 %v21294_v48  ;;  %19712 = vmatprep.subr.bf16.mxu0 %v21711_v26  ;;  %v21321_v48 = vld [vmem:[%s26820_s7 + $0x400] ss:$16 sps:$4 sm:$0xff]  }
 0x8c2   : > { %9477 = vmatprep.subr.bf16.mxu1 %v21299_v14  ;;  %v21326_v14 = vld [vmem:[%s26820_s7 + $0x424] ss:$16 sps:$4 sm:$0xff]  }
 0x8c4   : > { %16569 = vmatmul.mubr.msk.bf16.vlgmr.msra.gmra.mrb[4].mxu1 %vm6837_vm3, %v9295_v25  ;;  %19713 = vmatpush3.bf16.msra.mxu0 %v21711_v26  ;;  %v21320_v25 = vld [vmem:[%s26820_s7 + $0x3ec] ss:$16 sps:$4 sm:$0xff]  }
 0x8c5   : > { %9478 = vmatpush1.bf16.msra.mxu1 %v21297_v21  ;;  %19714 = vmatprep.subr.bf16.mxu0 %v21712_v61  ;;  %v21720_v26 = vld [vmem:[%s26818_s5 + $0xf8] sm:$0xff]   ;;  %v21324_v21 = vld [vmem:[%s26820_s7 + $0x420] ss:$16 sps:$4 sm:$0xff]  }
 0x8c6   : > { %9479 = vmatprep.subr.bf16.mxu1 %v21302_v0  ;;  %9509 = vmatprep.mubr.bf16.mxu1 %v26869_v29  ;;  %v21329_v0 = vld [vmem:[%s26820_s7 + $0x40c] ss:$16 sps:$4 sm:$0xff]  }
 0x8c8   : > { %19715 = vmatpush3.bf16.msra.mxu0 %v21712_v61  ;;  %v21721_v61 = vld [vmem:[%s26818_s5 + $0x100] sm:$0xff]  }
 0x8c9   : > { %9480 = vmatpush1.bf16.msra.mxu1 %v21300_v56  ;;  %19724 = vmatprep.subr.bf16.mxu0 %v21713_v22  ;;  %v21722_v56 = vld [vmem:[%s26818_s5 + $0x108] sm:$0xff]  }
 0x8ca   : > { %9518 = vmatprep.subr.bf16.mxu1 %v21305_v46  ;;  %v21723_v46 = vld [vmem:[%s26818_s5 + $0x110] sm:$0xff]  }
 0x8cb   : > { %19717 = vmatmul.mubr.bf16.vlgmr.msra.gmra.mrb[32].mxu0 %v24803_v59  ;;  %v21311_v59 = vld [vmem:[%s26820_s7 + $0x3c4] ss:$16 sps:$4 sm:$0xff]  }
 0x8cc   : > { %16586 = vmatmul.mubr.msk.bf16.vlgmr.msra.gmra.mrb[0].mxu1 %vm6837_vm3, %v25314_v10  ;;  %19725 = vmatpush3.bf16.msra.mxu0 %v21713_v22  ;;  %v21724_v22 = vld [vmem:[%s26818_s5 + $0x118] sm:$0xff]  }
 0x8cd   : > { %9519 = vmatpush1.bf16.msra.mxu1 %v21303_v33  ;;  %19726 = vmatprep.subr.bf16.mxu0 %v21714_v7  ;;  %v21725_v33 = vld [vmem:[%s26818_s5 + $0x120] sm:$0xff]  }
 0x8ce   : > { %9520 = vmatprep.subr.bf16.mxu1 %v21308_v36  ;;  %9550 = vmatprep.mubr.bf16.mxu1 %v26869_v29  ;;  %v21726_v36 = vld [vmem:[%s26818_s5 + $0x128] sm:$0xff]  }
 0x8cf   : > { %19720 = vmatprep.mubr.bf16.mxu0 %v24816_v35  ;;  %v21716_v35 = vld [vmem:[%s26818_s5 + $0xd8] sm:$0xff]  }
 0x8d0   : > { %19727 = vmatpush3.bf16.msra.mxu0 %v21714_v7  ;;  %v21727_v7 = vld [vmem:[%s26818_s5 + $0x130] sm:$0xff]  }
 0x8d1   : > { %9521 = vmatpush1.bf16.msra.mxu1 %v21306_v49  ;;  %19728 = vmatprep.subr.bf16.mxu0 %v21715_v18  ;;  %v21728_v49 = vld [vmem:[%s26818_s5 + $0x138] sm:$0xff]  }
 0x8d2   : > { %9617 = vmatprep.subr.bf16.mxu1 %v21311_v59 }
 0x8d3   : > { %19721 = vmatmul.mubr.bf16.gmra.mrb[36].mxu0 %v24916_v15  ;;  %v21317_v15 = vld [vmem:[%s26820_s7 + $0x3cc] ss:$16 sps:$4 sm:$0xff]  }
 0x8d4   : > { %16587 = vmatmul.mubr.msk.bf16.vlgmr.msra.gmra.mrb[4].mxu1 %vm6837_vm3, %v25314_v10  ;;  %19729 = vmatpush3.bf16.msra.mxu0 %v21715_v18  ;;  %v21323_v10 = vld [vmem:[%s26820_s7 + $0x404] ss:$16 sps:$4 sm:$0xff]  }
 0x8d5   : > { %9618 = vmatpush1.bf16.msra.mxu1 %v21309_v17  ;;  %19730 = vmatprep.subr.bf16.mxu0 %v21716_v35 }
 0x8d6   : > { %9619 = vmatprep.subr.bf16.mxu1 %v21314_v37  ;;  %9649 = vmatprep.mubr.bf16.mxu1 %v26869_v29  ;;  %v25731_v37 = vld [vmem:[#allocation3 + $0xd0] sm:$0xff] }
 0x8d7   : > { %19740 = vmatprep.mubr.bf16.mxu0 %v25067_v1  ;;  %v21718_v1 = vld [vmem:[%s26818_s5 + $0xe8] sm:$0xff]  }
 0x8d8   : > { %19731 = vmatpush3.bf16.msra.mxu0 %v21716_v35 }
 0x8d9   : > { %9620 = vmatpush1.bf16.msra.mxu1 %v21312_v12  ;;  %19732 = vmatprep.subr.bf16.mxu0 %v21717_v23 }
 0x8da   : > { %9658 = vmatprep.subr.bf16.mxu1 %v21317_v15  ;;  %v21330_v15 = vld [vmem:[%s26820_s7 + $0x428] ss:$16 sps:$4 sm:$0xff]  }
 0x8dc   : > { %16604 = vmatmul.mubr.msk.bf16.vlgmr.msra.gmra.mrb[0].mxu1 %vm6837_vm3, %v9573_v30  ;;  %19733 = vmatpush3.bf16.msra.mxu0 %v21717_v23  ;;  %v25738_v23 = vld [vmem:[#allocation3 + $0xd8] sm:$0xff] }
 0x8dd   : > { %9659 = vmatpush1.bf16.msra.mxu1 %v21315_v9  ;;  %19734 = vmatprep.subr.bf16.mxu0 %v21718_v1 }
 0x8de   : > { %9660 = vmatprep.subr.bf16.mxu1 %v21320_v25  ;;  %9690 = vmatprep.mubr.bf16.mxu1 %v26869_v29 }
 0x8e0   : > { %19735 = vmatpush3.bf16.msra.mxu0 %v21718_v1 }
 0x8e1   : > { %9661 = vmatpush1.bf16.msra.mxu1 %v21318_v6  ;;  %19736 = vmatprep.subr.bf16.mxu0 %v21719_v40 }
 0x8e2   : > { %10445 = vmatprep.subr.bf16.mxu1 %v21323_v10 }
 0x8e4   : > { %16605 = vmatmul.mubr.msk.bf16.vlgmr.msra.gmra.mrb[4].mxu1 %vm6837_vm3, %v9573_v30  ;;  %19737 = vmatpush3.bf16.msra.mxu0 %v21719_v40  ;;  %v12005_v30 = vld [vmem:[#allocation3 + $0xc8] sm:$0xf0] }
 0x8e5   : > { %19738 = vmatprep.subr.bf16.mxu0 %v21720_v26  ;;  %10446 = vmatpush1.bf16.msra.mxu1 %v21321_v48  ;;  %v12015_v48 = vrot.slane %v12005_v30, 4  ;;  %v21378_v30 = vld [vmem:[%s26820_s7 + $0x528] ss:$16 sps:$4 sm:$0xff]  }
 0x8e6   : > { %10447 = vmatprep.subr.bf16.mxu1 %v21326_v14  ;;  %10477 = vmatprep.mubr.bf16.mxu1 %v26869_v29  ;;  %v12016_v14 = vrot.slane %v25731_v37, 4 }
 0x8e8   : > { %19739 = vmatpush3.bf16.msra.mxu0 %v21720_v26 }
 0x8e9   : > { %19748 = vmatprep.subr.bf16.mxu0 %v21721_v61  ;;  %10448 = vmatpush1.bf16.msra.mxu1 %v21324_v21  ;;  %v25763_v21 = vld [vmem:[#allocation3 + $0xe0] sm:$0xff] }
 0x8ea   : > { %10486 = vmatprep.subr.bf16.mxu1 %v21329_v0  ;;  %v21336_v0 = vld [vmem:[%s26820_s7 + $0x460] ss:$16 sps:$4 sm:$0xff]  }
 0x8eb   : > { %19741 = vmatmul.mubr.bf16.vlgmr.msra.gmra.mrb[32].mxu0 %v25121_v39 }
 0x8ec   : > { %19749 = vmatpush3.bf16.msra.mxu0 %v21721_v61  ;;  %19744 = vmatprep.mubr.bf16.mxu0 %v25131_v8  ;;  %v25770_v61 = vsel %vm2829_vm2, %v12015_v48, %v12016_v14  ;;  %v21389_v48 = vld [vmem:[%s26820_s7 + $0x54c] ss:$16 sps:$4 sm:$0xff]  }
 0x8ed   : > { %19750 = vmatprep.subr.bf16.mxu0 %v21722_v56 }
 0x8f0   : > { %19751 = vmatpush3.bf16.msra.mxu0 %v21722_v56  ;;  %v21341_v56 = vld [vmem:[%s26820_s7 + $0x44c] ss:$16 sps:$4 sm:$0xff]  }
 0x8f1   : > { %19752 = vmatprep.subr.bf16.mxu0 %v21723_v46 }
 0x8f3   : > { %19745 = vmatmul.mubr.bf16.gmra.mrb[36].mxu0 %v25144_v38 }
 0x8f4   : > { %19753 = vmatpush3.bf16.msra.mxu0 %v21723_v46  ;;  %19764 = vmatprep.mubr.bf16.mxu0 %v25153_v62 }
 0x8f5   : > { %19754 = vmatprep.subr.bf16.mxu0 %v21724_v22 }
 0x8f8   : > { %19755 = vmatpush3.bf16.msra.mxu0 %v21724_v22  ;;  %v21344_v22 = vld [vmem:[%s26820_s7 + $0x46c] ss:$16 sps:$4 sm:$0xff]  }
 0x8f9   : > { %19756 = vmatprep.subr.bf16.mxu0 %v21725_v33 }
 0x8fc   : > { %19757 = vmatpush3.bf16.msra.mxu0 %v21725_v33  ;;  %v21347_v33 = vld [vmem:[%s26820_s7 + $0x484] ss:$16 sps:$4 sm:$0xff]  }
 0x8fd   : > { %19758 = vmatprep.subr.bf16.mxu0 %v21726_v36 }
 0x900   : > { %19759 = vmatpush3.bf16.msra.mxu0 %v21726_v36  ;;  %v21350_v36 = vld [vmem:[%s26820_s7 + $0x4a4] ss:$16 sps:$4 sm:$0xff]  }
 0x901   : > { %19760 = vmatprep.subr.bf16.mxu0 %v21727_v7 }
 0x904   : > { %19761 = vmatpush3.bf16.msra.mxu0 %v21727_v7  ;;  %v21353_v7 = vld [vmem:[%s26820_s7 + $0x48c] ss:$16 sps:$4 sm:$0xff]  }
 0x905   : > { %19762 = vmatprep.subr.bf16.mxu0 %v21728_v49 }
 0x908   : > { %19763 = vmatpush3.bf16.msra.mxu0 %v21728_v49  ;;  %v12018_v49 = vrot.slane %v25738_v23, 4 }
 0x909   : > { %19772 = vmatprep.subr.bf16.mxu0 %v24985_v31 }
 0x90b   : > { %19765 = vmatmul.mubr.bf16.vlgmr.msra.gmra.mrb[32].mxu0 %v25196_v34 }
 0x90c   : > { %19773 = vmatpush3.bf16.msra.mxu0 %v24985_v31  ;;  %19768 = vmatprep.mubr.bf16.mxu0 %v25205_v52  ;;  %v25698_v31 = vld [vmem:[#allocation3 + $0xc8] sm:$0xff] }
 0x90d   : > { %19774 = vmatprep.subr.bf16.mxu0 %v24997_v5 }
 0x910   : > { %19775 = vmatpush3.bf16.msra.mxu0 %v24997_v5 }
 0x911   : > { %19776 = vmatprep.subr.bf16.mxu0 %v25004_v13 }
 0x913   : > { %19769 = vmatmul.mubr.bf16.gmra.mrb[36].mxu0 %v25218_v43 }
 0x914   : > { %19777 = vmatpush3.bf16.msra.mxu0 %v25004_v13  ;;  %19788 = vmatprep.mubr.bf16.mxu0 %v25121_v39 }
 0x915   : > { %19778 = vmatprep.subr.bf16.mxu0 %v25013_v44 }
 0x918   : > { %19779 = vmatpush3.bf16.msra.mxu0 %v25013_v44 }
 0x919   : > { %19780 = vmatprep.subr.bf16.mxu0 %v25020_v28 }
 0x91c   : > { %19781 = vmatpush3.bf16.msra.mxu0 %v25020_v28 }
 0x91d   : > { %19782 = vmatprep.subr.bf16.mxu0 %v25027_v24 }
 0x920   : > { %19783 = vmatpush3.bf16.msra.mxu0 %v25027_v24 }
 0x921   : > { %19784 = vmatprep.subr.bf16.mxu0 %v25034_v54 }
 0x924   : > { %19785 = vmatpush3.bf16.msra.mxu0 %v25034_v54 }
 0x925   : > { %19786 = vmatprep.subr.bf16.mxu0 %v25041_v4 }
 0x928   : > { %19787 = vmatpush3.bf16.msra.mxu0 %v25041_v4 }
 0x929   : > { %19796 = vmatprep.subr.bf16.mxu0 %v25048_v55 }
 0x92b   : > { %19789 = vmatmul.mubr.bf16.vlgmr.msra.gmra.mrb[32].mxu0 %v25131_v8 }
 0x92c   : > { %19797 = vmatpush3.bf16.msra.mxu0 %v25048_v55  ;;  %19792 = vmatprep.mubr.bf16.mxu0 %v25144_v38 }
 0x92d   : > { %19798 = vmatprep.subr.bf16.mxu0 %v25057_v41 }
 0x930   : > { %19799 = vmatpush3.bf16.msra.mxu0 %v25057_v41 }
 0x931   : > { %19800 = vmatprep.subr.bf16.mxu0 %v25064_v19 }
 0x933   : > { %19793 = vmatmul.mubr.bf16.gmra.mrb[36].mxu0 %v25312_v51  ;;  %v21332_v51 = vld [vmem:[%s26820_s7 + $0x42c] ss:$16 sps:$4 sm:$0xff]  }
 0x934   : > { %19801 = vmatpush3.bf16.msra.mxu0 %v25064_v19  ;;  %19812 = vmatprep.mubr.bf16.mxu0 %v25698_v31 }
 0x935   : > { %19802 = vmatprep.subr.bf16.mxu0 %v25075_v20 }
 0x938   : > { %19803 = vmatpush3.bf16.msra.mxu0 %v25075_v20 }
 0x939   : > { %19804 = vmatprep.subr.bf16.mxu0 %v25082_v32 }
 0x93c   : > { %19805 = vmatpush3.bf16.msra.mxu0 %v25082_v32 }
 0x93d   : > { %19806 = vmatprep.subr.bf16.mxu0 %v25089_v27 }
 0x93e   : > { %v19646_v5 = vpop.f32.mrb[24].mxu0 }
 0x93f   : > { %v10375_v13 = vadd.f32 %v25261_v16, %v19646_v5  ;;  %v10334_v44 = vpop.f32.mrb[25].mxu0  ;;  %v12020_v5 = vrot.slane %v25763_v21, 4 }
 0x940   : > { %v10373_v28 = vadd.f32 %v25261_v16, %v10334_v44  ;;  %v19647_v24 = vpop.f32.mrb[26].mxu0  ;;  %19807 = vmatpush3.bf16.msra.mxu0 %v25089_v27  ;;  %v21327_v27 = vld [vmem:[%s26820_s7 + $0x408] ss:$16 sps:$4 sm:$0xff]  }
 0x941   : > { %v10376_v54 = vadd.f32 %v25261_v16, %v19647_v24  ;;  %v10337_v4 = vpop.f32.mrb[27].mxu0  ;;  %19808 = vmatprep.subr.bf16.mxu0 %v25104_v57  ;;  %v10383_v41 = vmax.f32 %v10375_v13, 0.0  ;;  %v21356_v13 = vld [vmem:[%s26820_s7 + $0x4ac] ss:$16 sps:$4 sm:$0xff]   ;;  %v21354_v44 = vld [vmem:[%s26820_s7 + $0x4a8] ss:$16 sps:$4 sm:$0xff]  }
 0x942   : > { %v10374_v55 = vadd.f32 %v25261_v16, %v10337_v4  ;;  %v10381_v20 = vmax.f32 %v10373_v28, 0.0  ;;  %v25836_v28 = vsel %vm2829_vm2, %v12018_v49, %v12020_v5  ;;  %v12009_v24 = vld [vmem:[#allocation3 + $0xe8] sm:$0xf]  ;;  %v21357_v4 = vld [vmem:[%s26820_s7 + $0x4c0] ss:$16 sps:$4 sm:$0xff]  }
 0x943   : > { %v10384_v19 = vmax.f32 %v10376_v54, 0.0  ;;  %v12022_v54 = vrot.slane %v12009_v24, 4  ;;  %v21416_v24 = vld [vmem:[%s26820_s7 + $0x5ec] ss:$16 sps:$4 sm:$0xff]  }
 0x944   : > { %v10382_v32 = vmax.f32 %v10374_v55, 0.0  ;;  %19809 = vmatpush3.bf16.msra.mxu0 %v25104_v57  ;;  %v21362_v55 = vld [vmem:[%s26820_s7 + $0x4e4] ss:$16 sps:$4 sm:$0xff]  }
 0x945   : > { %v25715_v39 = vpack.c.bf16 %v10384_v19, %v10383_v41  ;;  %19810 = vmatprep.subr.bf16.mxu0 %v25111_v47  ;;  %v26895_v41 = vld [vmem:[#allocation7_spill] sm:$0xff]  ;;  %v21360_v19 = vld [vmem:[%s26820_s7 + $0x4e0] ss:$16 sps:$4 sm:$0xff]  }
 0x946   : > { %v25721_v8 = vpack.c.bf16 %v10382_v32, %v10381_v20  ;;  %v19650_v38 = vpop.f32.mrb[28].mxu0  ;;  %v21365_v20 = vld [vmem:[%s26820_s7 + $0x4cc] ss:$16 sps:$4 sm:$0xff]   ;;  %v21363_v32 = vld [vmem:[%s26820_s7 + $0x4c8] ss:$16 sps:$4 sm:$0xff]  }
 0x947   : > { %v10379_v59 = vadd.f32 %v25261_v16, %v19650_v38  ;;  %v10350_v18 = vpop.f32.mrb[29].mxu0  ;;  %v26897_v38 = vld [vmem:[#allocation8_spill] sm:$0xff] }
 0x948   : > { %v10377_v57 = vadd.f32 %v25261_v16, %v10350_v18  ;;  %v19651_v17 = vpop.f32.mrb[30].mxu0  ;;  %16622 = vmatmul.mubr.msk.bf16.vlgmr.msra.gmra.mrb[0].mxu1 %vm6837_vm3, %v25721_v8  ;;  %19811 = vmatpush3.bf16.msra.mxu0 %v25111_v47  ;;  %v21335_v47 = vld [vmem:[%s26820_s7 + $0x444] ss:$16 sps:$4 sm:$0xff]   ;;  %v10541_v46 = vrot.slane %v25721_v8, 4  ;;  %v21369_v18 = vld [vmem:[%s26820_s7 + $0x500] ss:$16 sps:$4 sm:$0xff]  }
 0x949   : > { %v10380_v35 = vadd.f32 %v25261_v16, %v19651_v17  ;;  %v10353_v12 = vpop.f32.mrb[31].mxu0  ;;  %10487 = vmatpush1.bf16.msra.mxu1 %v21327_v27  ;;  %19820 = vmatprep.subr.bf16.mxu0 %v25128_v63  ;;  %v10387_v25 = vmax.f32 %v10379_v59, 0.0  ;;  %v10819_v27 = vrot.slane %v25715_v39, 4  ;;  %v26898_v59 = vld [vmem:[#allocation11_spill] sm:$0xff]  ;;  %v26899_v17 = vld [vmem:[#allocation9_spill] sm:$0xff] }
 0x94a   : > { %v10378_v9 = vadd.f32 %v25261_v16, %v10353_v12  ;;  %10488 = vmatprep.subr.bf16.mxu1 %v21332_v51  ;;  %10518 = vmatprep.mubr.bf16.mxu1 %v26869_v29  ;;  %v10385_v6 = vmax.f32 %v10377_v57, 0.0  ;;  %v21333_v16 = vld [vmem:[%s26820_s7 + $0x440] ss:$16 sps:$4 sm:$0xff]   ;;  %v21366_v51 = vld [vmem:[%s26820_s7 + $0x4e8] ss:$16 sps:$4 sm:$0xff]  }
 0x94b   : > { %v10388_v1 = vmax.f32 %v10380_v35, 0.0  ;;  %19813 = vmatmul.mubr.bf16.vlgmr.msra.gmra.mrb[32].mxu0 %v25731_v37  ;;  %v21374_v57 = vld [vmem:[%s26820_s7 + $0x524] ss:$16 sps:$4 sm:$0xff]   ;;  %v21372_v35 = vld [vmem:[%s26820_s7 + $0x520] ss:$16 sps:$4 sm:$0xff]  }
 0x94c   : > { %v10386_v10 = vmax.f32 %v10378_v9, 0.0  ;;  %19821 = vmatpush3.bf16.msra.mxu0 %v25128_v63  ;;  %19816 = vmatprep.mubr.bf16.mxu0 %v25738_v23  ;;  %v21338_v63 = vld [vmem:[%s26820_s7 + $0x464] ss:$16 sps:$4 sm:$0xff]   ;;  %v21377_v12 = vld [vmem:[%s26820_s7 + $0x50c] ss:$16 sps:$4 sm:$0xff]  }
 0x94d   : > { %v25748_v40 = vpack.c.bf16 %v10388_v1, %v10387_v25  ;;  %10489 = vmatpush1.bf16.msra.mxu1 %v21330_v15  ;;  %19822 = vmatprep.subr.bf16.mxu0 %v25139_v60  ;;  %v26900_v15 = vld [vmem:[#allocation12_spill] sm:$0xff]  ;;  %v21375_v9 = vld [vmem:[%s26820_s7 + $0x508] ss:$16 sps:$4 sm:$0xff]  }
 0x94e   : > { %v25755_v26 = vpack.c.bf16 %v10386_v10, %v10385_v6  ;;  %10585 = vmatprep.subr.bf16.mxu1 %v21335_v47  ;;  %v21380_v47 = vld [vmem:[%s26820_s7 + $0x52c] ss:$16 sps:$4 sm:$0xff]   ;;  %v21383_v25 = vld [vmem:[%s26820_s7 + $0x544] ss:$16 sps:$4 sm:$0xff]   ;;  %v21381_v1 = vld [vmem:[%s26820_s7 + $0x540] ss:$16 sps:$4 sm:$0xff]  }
 0x94f   : > { %v21386_v6 = vld [vmem:[%s26820_s7 + $0x564] ss:$16 sps:$4 sm:$0xff]   ;;  %v25933_v10 = vld [vmem:[#allocation3 + $0xe8] sm:$0xff] }
 0x950   : > { %16623 = vmatmul.mubr.msk.bf16.vlgmr.msra.gmra.mrb[4].mxu1 %vm6837_vm3, %v25721_v8  ;;  %19823 = vmatpush3.bf16.msra.mxu0 %v25139_v60  ;;  %v21339_v60 = vld [vmem:[%s26820_s7 + $0x448] ss:$16 sps:$4 sm:$0xff]   ;;  %v21368_v8 = vld [vmem:[%s26820_s7 + $0x4ec] ss:$16 sps:$4 sm:$0xff]  }
 0x951   : > { %10586 = vmatpush1.bf16.msra.mxu1 %v21333_v16  ;;  %19824 = vmatprep.subr.bf16.mxu0 %v25149_v42  ;;  %v21384_v16 = vld [vmem:[%s26820_s7 + $0x560] ss:$16 sps:$4 sm:$0xff]  }
 0x952   : > { %10587 = vmatprep.subr.bf16.mxu1 %v21338_v63  ;;  %10617 = vmatprep.mubr.bf16.mxu1 %v26869_v29  ;;  %v11097_v63 = vrot.slane %v25755_v26, 4 }
 0x953   : > { %19817 = vmatmul.mubr.bf16.gmra.mrb[36].mxu0 %v25763_v21 }
 0x954   : > { %19825 = vmatpush3.bf16.msra.mxu0 %v25149_v42  ;;  %19836 = vmatprep.mubr.bf16.mxu0 %v25770_v61  ;;  %v21342_v42 = vld [vmem:[%s26820_s7 + $0x468] ss:$16 sps:$4 sm:$0xff]  }
 0x955   : > { %10588 = vmatpush1.bf16.msra.mxu1 %v21336_v0  ;;  %19826 = vmatprep.subr.bf16.mxu0 %v25161_v53  ;;  %v21392_v0 = vld [vmem:[%s26820_s7 + $0x56c] ss:$16 sps:$4 sm:$0xff]  }
 0x956   : > { %10626 = vmatprep.subr.bf16.mxu1 %v21341_v56  ;;  %v21390_v56 = vld [vmem:[%s26820_s7 + $0x568] ss:$16 sps:$4 sm:$0xff]  }
 0x958   : > { %16640 = vmatmul.mubr.msk.bf16.vlgmr.msra.gmra.mrb[0].mxu1 %vm6837_vm3, %v10541_v46  ;;  %19827 = vmatpush3.bf16.msra.mxu0 %v25161_v53  ;;  %v21345_v53 = vld [vmem:[%s26820_s7 + $0x480] ss:$16 sps:$4 sm:$0xff]  }
 0x959   : > { %10627 = vmatpush1.bf16.msra.mxu1 %v21339_v60  ;;  %19828 = vmatprep.subr.bf16.mxu0 %v25168_v2  ;;  %v21395_v60 = vld [vmem:[%s26820_s7 + $0x584] ss:$16 sps:$4 sm:$0xff]  }
 0x95a   : > { %10628 = vmatprep.subr.bf16.mxu1 %v21344_v22  ;;  %10658 = vmatprep.mubr.bf16.mxu1 %v26869_v29  ;;  %v21396_v22 = vld [vmem:[%s26820_s7 + $0x5a0] ss:$16 sps:$4 sm:$0xff]  }
 0x95c   : > { %19829 = vmatpush3.bf16.msra.mxu0 %v25168_v2  ;;  %v21348_v2 = vld [vmem:[%s26820_s7 + $0x4a0] ss:$16 sps:$4 sm:$0xff]  }
 0x95d   : > { %10629 = vmatpush1.bf16.msra.mxu1 %v21342_v42  ;;  %19830 = vmatprep.subr.bf16.mxu0 %v25175_v11  ;;  %v21401_v42 = vld [vmem:[%s26820_s7 + $0x58c] ss:$16 sps:$4 sm:$0xff]  }
 0x95e   : > { %10723 = vmatprep.subr.bf16.mxu1 %v21347_v33  ;;  %v21399_v33 = vld [vmem:[%s26820_s7 + $0x588] ss:$16 sps:$4 sm:$0xff]  }
 0x960   : > { %16641 = vmatmul.mubr.msk.bf16.vlgmr.msra.gmra.mrb[4].mxu1 %vm6837_vm3, %v10541_v46  ;;  %19831 = vmatpush3.bf16.msra.mxu0 %v25175_v11  ;;  %v21351_v11 = vld [vmem:[%s26820_s7 + $0x488] ss:$16 sps:$4 sm:$0xff]   ;;  %v21398_v46 = vld [vmem:[%s26820_s7 + $0x5a4] ss:$16 sps:$4 sm:$0xff]  }
 0x961   : > { %10724 = vmatpush1.bf16.msra.mxu1 %v21345_v53  ;;  %19832 = vmatprep.subr.bf16.mxu0 %v25182_v45  ;;  %v21404_v53 = vld [vmem:[%s26820_s7 + $0x5ac] ss:$16 sps:$4 sm:$0xff]  }
 0x962   : > { %10725 = vmatprep.subr.bf16.mxu1 %v21350_v36  ;;  %10755 = vmatprep.mubr.bf16.mxu1 %v26869_v29  ;;  %v21402_v36 = vld [vmem:[%s26820_s7 + $0x5a8] ss:$16 sps:$4 sm:$0xff]  }
 0x964   : > { %19833 = vmatpush3.bf16.msra.mxu0 %v25182_v45  ;;  %v25829_v45 = vsel %vm2829_vm2, %v12016_v14, %v12018_v49  ;;  %v21387_v14 = vld [vmem:[%s26820_s7 + $0x548] ss:$16 sps:$4 sm:$0xff]   ;;  %v21410_v49 = vld [vmem:[%s26820_s7 + $0x5e4] ss:$16 sps:$4 sm:$0xff]  }
 0x965   : > { %10726 = vmatpush1.bf16.msra.mxu1 %v21348_v2  ;;  %19834 = vmatprep.subr.bf16.mxu0 %v25190_v3  ;;  %v21407_v2 = vld [vmem:[%s26820_s7 + $0x5c4] ss:$16 sps:$4 sm:$0xff]  }
 0x966   : > { %10764 = vmatprep.subr.bf16.mxu1 %v21353_v7  ;;  %v21405_v7 = vld [vmem:[%s26820_s7 + $0x5c0] ss:$16 sps:$4 sm:$0xff]  }
 0x968   : > { %16658 = vmatmul.mubr.msk.bf16.vlgmr.msra.gmra.mrb[0].mxu1 %vm6837_vm3, %v25715_v39  ;;  %19835 = vmatpush3.bf16.msra.mxu0 %v25190_v3  ;;  %v21359_v3 = vld [vmem:[%s26820_s7 + $0x4c4] ss:$16 sps:$4 sm:$0xff]  }
 0x969   : > { %10765 = vmatpush1.bf16.msra.mxu1 %v21351_v11  ;;  %19844 = vmatprep.subr.bf16.mxu0 %v25201_v58  ;;  %v21408_v11 = vld [vmem:[%s26820_s7 + $0x5e0] ss:$16 sps:$4 sm:$0xff]  }
 0x96a   : > { %10766 = vmatprep.subr.bf16.mxu1 %v21356_v13  ;;  %10796 = vmatprep.mubr.bf16.mxu1 %v26869_v29  ;;  %v21411_v13 = vld [vmem:[%s26820_s7 + $0x5c8] ss:$16 sps:$4 sm:$0xff]  }
 0x96b   : > { %19837 = vmatmul.mubr.bf16.vlgmr.msra.gmra.mrb[32].mxu0 %v25829_v45 }
 0x96c   : > { %19845 = vmatpush3.bf16.msra.mxu0 %v25201_v58  ;;  %19840 = vmatprep.mubr.bf16.mxu0 %v25836_v28  ;;  %v25856_v58 = vsel %vm2829_vm2, %v12020_v5, %v12022_v54  ;;  %v21413_v5 = vld [vmem:[%s26820_s7 + $0x5cc] ss:$16 sps:$4 sm:$0xff]   ;;  %v21417_v54 = vld [vmem:[%s26820_s7 + $0x600] ss:$16 sps:$4 sm:$0xff]  }
 0x96d   : > { %10767 = vmatpush1.bf16.msra.mxu1 %v21354_v44  ;;  %19846 = vmatprep.subr.bf16.mxu0 %v25213_v50  ;;  %v11375_v44 = vrot.slane %v25748_v40, 4 }
 0x96e   : > { %10863 = vmatprep.subr.bf16.mxu1 %v21359_v3  ;;  %v21414_v3 = vld [vmem:[%s26820_s7 + $0x5e8] ss:$16 sps:$4 sm:$0xff]  }
 0x970   : > { %16659 = vmatmul.mubr.msk.bf16.vlgmr.msra.gmra.mrb[4].mxu1 %vm6837_vm3, %v25715_v39  ;;  %19847 = vmatpush3.bf16.msra.mxu0 %v25213_v50  ;;  %v26896_v50 = vld [vmem:[#allocation10_spill] sm:$0xff] }
 0x971   : > { %10864 = vmatpush1.bf16.msra.mxu1 %v21357_v4  ;;  %19848 = vmatprep.subr.bf16.mxu0 %v26895_v41  ;;  %v21371_v39 = vld [vmem:[%s26820_s7 + $0x504] ss:$16 sps:$4 sm:$0xff]  }
 0x972   : > { %10865 = vmatprep.subr.bf16.mxu1 %v21362_v55  ;;  %10895 = vmatprep.mubr.bf16.mxu1 %v26869_v29  ;;  %v21422_v4 = vld [vmem:[%s26820_s7 + $0x624] ss:$16 sps:$4 sm:$0xff]   ;;  %v21420_v55 = vld [vmem:[%s26820_s7 + $0x620] ss:$16 sps:$4 sm:$0xff]  }
 0x973   : > { %19841 = vmatmul.mubr.bf16.gmra.mrb[36].mxu0 %v25856_v58 }
 0x974   : > { %19849 = vmatpush3.bf16.msra.mxu0 %v26895_v41  ;;  %19860 = vmatprep.mubr.bf16.mxu0 %v25731_v37  ;;  %v21425_v41 = vld [vmem:[%s26820_s7 + $0x60c] ss:$16 sps:$4 sm:$0xff]  }
 0x975   : > { %10866 = vmatpush1.bf16.msra.mxu1 %v21360_v19  ;;  %19850 = vmatprep.subr.bf16.mxu0 %v26896_v50 }
 0x976   : > { %10904 = vmatprep.subr.bf16.mxu1 %v21365_v20  ;;  %v26034_v20 = vld [vmem:[%s26819_s6] ss:$0 sm:$0xff] }
 0x978   : > { %16676 = vmatmul.mubr.msk.bf16.vlgmr.msra.gmra.mrb[0].mxu1 %vm6837_vm3, %v10819_v27  ;;  %19851 = vmatpush3.bf16.msra.mxu0 %v26896_v50 }
 0x979   : > { %10905 = vmatpush1.bf16.msra.mxu1 %v21363_v32  ;;  %19852 = vmatprep.subr.bf16.mxu0 %v26897_v38 }
 0x97a   : > { %10906 = vmatprep.subr.bf16.mxu1 %v21368_v8  ;;  %10936 = vmatprep.mubr.bf16.mxu1 %v26869_v29 }
 0x97c   : > { %19853 = vmatpush3.bf16.msra.mxu0 %v26897_v38 }
 0x97d   : > { %10907 = vmatpush1.bf16.msra.mxu1 %v21366_v51  ;;  %19854 = vmatprep.subr.bf16.mxu0 %v26898_v59 }
 0x97e   : > { %11001 = vmatprep.subr.bf16.mxu1 %v21371_v39 }
 0x980   : > { %16677 = vmatmul.mubr.msk.bf16.vlgmr.msra.gmra.mrb[4].mxu1 %vm6837_vm3, %v10819_v27  ;;  %19855 = vmatpush3.bf16.msra.mxu0 %v26898_v59 }
 0x981   : > { %11002 = vmatpush1.bf16.msra.mxu1 %v21369_v18  ;;  %19856 = vmatprep.subr.bf16.mxu0 %v26899_v17 }
 0x982   : > { %11003 = vmatprep.subr.bf16.mxu1 %v21374_v57  ;;  %11033 = vmatprep.mubr.bf16.mxu1 %v26869_v29 }
 0x984   : > { %19857 = vmatpush3.bf16.msra.mxu0 %v26899_v17 }
 0x985   : > { %11004 = vmatpush1.bf16.msra.mxu1 %v21372_v35  ;;  %19858 = vmatprep.subr.bf16.mxu0 %v26900_v15 }
 0x986   : > { %11042 = vmatprep.subr.bf16.mxu1 %v21377_v12  ;;  %v21423_v12 = vld [vmem:[%s26820_s7 + $0x608] ss:$16 sps:$4 sm:$0xff]  }
 0x988   : > { %16694 = vmatmul.mubr.msk.bf16.vlgmr.msra.gmra.mrb[0].mxu1 %vm6837_vm3, %v25755_v26  ;;  %19859 = vmatpush3.bf16.msra.mxu0 %v26900_v15 }
 0x989   : > { %11043 = vmatpush1.bf16.msra.mxu1 %v21375_v9  ;;  %11074 = vmatprep.mubr.bf16.mxu1 %v26869_v29 }
 0x98a   : > { %11044 = vmatprep.subr.bf16.mxu1 %v21380_v47  ;;  %v21428_v47 = vld [vmem:[%s26820_s7 + $0x62c] ss:$16 sps:$4 sm:$0xff]  }
 0x98b   : > { %19861 = vmatmul.mubr.bf16.vlgmr.msra.gmra.mrb[32].mxu0 %v25738_v23 }
 0x98c   : > { %19864 = vmatprep.mubr.bf16.mxu0 %v25763_v21 }
 0x98d   : > { %11045 = vmatpush1.bf16.msra.mxu1 %v21378_v30 }
 0x98e   : > { %11141 = vmatprep.subr.bf16.mxu1 %v21383_v25 }
 0x990   : > { %16695 = vmatmul.mubr.msk.bf16.vlgmr.msra.gmra.mrb[4].mxu1 %vm6837_vm3, %v25755_v26  ;;  %v21393_v26 = vld [vmem:[%s26820_s7 + $0x580] ss:$16 sps:$4 sm:$0xff]  }
 0x991   : > { %11142 = vmatpush1.bf16.msra.mxu1 %v21381_v1  ;;  %11173 = vmatprep.mubr.bf16.mxu1 %v26869_v29 }
 0x992   : > { %11143 = vmatprep.subr.bf16.mxu1 %v21386_v6 }
 0x993   : > { %19865 = vmatmul.mubr.bf16.gmra.mrb[36].mxu0 %v25933_v10 }
 0x995   : > { %11144 = vmatpush1.bf16.msra.mxu1 %v21384_v16 }
 0x996   : > { %11182 = vmatprep.subr.bf16.mxu1 %v21389_v48 }
 0x998   : > { %16712 = vmatmul.mubr.msk.bf16.vlgmr.msra.gmra.mrb[0].mxu1 %vm6837_vm3, %v11097_v63 }
 0x999   : > { %11183 = vmatpush1.bf16.msra.mxu1 %v21387_v14  ;;  %11214 = vmatprep.mubr.bf16.mxu1 %v26869_v29  ;;  %v21426_v14 = vld [vmem:[%s26820_s7 + $0x628] ss:$16 sps:$4 sm:$0xff]  }
 0x99a   : > { %11184 = vmatprep.subr.bf16.mxu1 %v21392_v0  ;;  %v21431_v0 = vld [vmem:[%s26820_s7 + $0x644] ss:$16 sps:$4 sm:$0xff]  }
 0x99d   : > { %11185 = vmatpush1.bf16.msra.mxu1 %v21390_v56 }
 0x99e   : > { %11279 = vmatprep.subr.bf16.mxu1 %v21395_v60 }
 0x9a0   : > { %16713 = vmatmul.mubr.msk.bf16.vlgmr.msra.gmra.mrb[4].mxu1 %vm6837_vm3, %v11097_v63 }
 0x9a1   : > { %11280 = vmatpush1.bf16.msra.mxu1 %v21393_v26  ;;  %11311 = vmatprep.mubr.bf16.mxu1 %v26869_v29 }
 0x9a2   : > { %11281 = vmatprep.subr.bf16.mxu1 %v21398_v46 }
 0x9a5   : > { %11282 = vmatpush1.bf16.msra.mxu1 %v21396_v22 }
 0x9a6   : > { %11320 = vmatprep.subr.bf16.mxu1 %v21401_v42  ;;  %v21429_v42 = vld [vmem:[%s26820_s7 + $0x640] ss:$16 sps:$4 sm:$0xff]  }
 0x9a8   : > { %16730 = vmatmul.mubr.msk.bf16.vlgmr.msra.gmra.mrb[0].mxu1 %vm6837_vm3, %v25748_v40 }
 0x9a9   : > { %11321 = vmatpush1.bf16.msra.mxu1 %v21399_v33  ;;  %11352 = vmatprep.mubr.bf16.mxu1 %v26869_v29 }
 0x9aa   : > { %11322 = vmatprep.subr.bf16.mxu1 %v21404_v53  ;;  %v21434_v53 = vld [vmem:[%s26820_s7 + $0x664] ss:$16 sps:$4 sm:$0xff]  }
 0x9ad   : > { %11323 = vmatpush1.bf16.msra.mxu1 %v21402_v36  ;;  %v21432_v36 = vld [vmem:[%s26820_s7 + $0x660] ss:$16 sps:$4 sm:$0xff]  }
 0x9ae   : > { %11419 = vmatprep.subr.bf16.mxu1 %v21407_v2  ;;  %v21437_v2 = vld [vmem:[%s26820_s7 + $0x64c] ss:$16 sps:$4 sm:$0xff]  }
 0x9b0   : > { %16731 = vmatmul.mubr.msk.bf16.vlgmr.msra.gmra.mrb[4].mxu1 %vm6837_vm3, %v25748_v40  ;;  %v21419_v40 = vld [vmem:[%s26820_s7 + $0x604] ss:$16 sps:$4 sm:$0xff]  }
 0x9b1   : > { %11420 = vmatpush1.bf16.msra.mxu1 %v21405_v7  ;;  %11451 = vmatprep.mubr.bf16.mxu1 %v26869_v29  ;;  %v21435_v7 = vld [vmem:[%s26820_s7 + $0x648] ss:$16 sps:$4 sm:$0xff]  }
 0x9b2   : > { %11421 = vmatprep.subr.bf16.mxu1 %v21410_v49 }
 0x9b5   : > { %11422 = vmatpush1.bf16.msra.mxu1 %v21408_v11  ;;  %v21440_v11 = vld [vmem:[%s26820_s7 + $0x66c] ss:$16 sps:$4 sm:$0xff]  }
 0x9b6   : > { %11460 = vmatprep.subr.bf16.mxu1 %v21413_v5  ;;  %v21438_v5 = vld [vmem:[%s26820_s7 + $0x668] ss:$16 sps:$4 sm:$0xff]  }
 0x9b8   : > { %16748 = vmatmul.mubr.msk.bf16.vlgmr.msra.gmra.mrb[0].mxu1 %vm6837_vm3, %v11375_v44 }
 0x9b9   : > { %11461 = vmatpush1.bf16.msra.mxu1 %v21411_v13  ;;  %11492 = vmatprep.mubr.bf16.mxu1 %v26869_v29  ;;  %v21443_v13 = vld [vmem:[%s26820_s7 + $0x684] ss:$16 sps:$4 sm:$0xff]  }
 0x9ba   : > { %11462 = vmatprep.subr.bf16.mxu1 %v21416_v24  ;;  %v21446_v24 = vld [vmem:[%s26820_s7 + $0x6a4] ss:$16 sps:$4 sm:$0xff]  }
 0x9bd   : > { %11463 = vmatpush1.bf16.msra.mxu1 %v21414_v3  ;;  %v21444_v3 = vld [vmem:[%s26820_s7 + $0x6a0] ss:$16 sps:$4 sm:$0xff]  }
 0x9be   : > { %12247 = vmatprep.subr.bf16.mxu1 %v21419_v40  ;;  %v21449_v40 = vld [vmem:[%s26820_s7 + $0x68c] ss:$16 sps:$4 sm:$0xff]  }
 0x9c0   : > { %16749 = vmatmul.mubr.msk.bf16.vlgmr.msra.gmra.mrb[4].mxu1 %vm6837_vm3, %v11375_v44  ;;  %v21441_v44 = vld [vmem:[%s26820_s7 + $0x680] ss:$16 sps:$4 sm:$0xff]  }
 0x9c1   : > { %12279 = vmatprep.mubr.bf16.mxu1 %v26869_v29  ;;  %12248 = vmatpush1.bf16.msra.mxu1 %v21417_v54  ;;  %v21447_v54 = vld [vmem:[%s26820_s7 + $0x688] ss:$16 sps:$4 sm:$0xff]  }
 0x9c2   : > { %12249 = vmatprep.subr.bf16.mxu1 %v21422_v4  ;;  %v21452_v4 = vld [vmem:[%s26820_s7 + $0x6ac] ss:$16 sps:$4 sm:$0xff]  }
 0x9c5   : > { %12250 = vmatpush1.bf16.msra.mxu1 %v21420_v55  ;;  %v21450_v55 = vld [vmem:[%s26820_s7 + $0x6a8] ss:$16 sps:$4 sm:$0xff]  }
 0x9c6   : > { %12288 = vmatprep.subr.bf16.mxu1 %v21425_v41  ;;  %v21455_v41 = vld [vmem:[%s26820_s7 + $0x6c4] ss:$16 sps:$4 sm:$0xff]  }
 0xa5e   : > { %v19862_v19 = vpop.f32.mrb[32].mxu0 }
 0xa5f   : > { %v12177_v50 = vadd.f32 %v26034_v20, %v19862_v19  ;;  %v12136_v32 = vpop.f32.mrb[33].mxu0  ;;  %v21453_v19 = vld [vmem:[%s26820_s7 + $0x6c0] ss:$16 sps:$4 sm:$0xff]  }
 0xa60   : > { %v12175_v27 = vadd.f32 %v26034_v20, %v12136_v32  ;;  %v19863_v8 = vpop.f32.mrb[34].mxu0  ;;  %v21456_v32 = vld [vmem:[%s26820_s7 + $0x6e0] ss:$16 sps:$4 sm:$0xff]  }
 0xa61   : > { %v12178_v38 = vadd.f32 %v26034_v20, %v19863_v8  ;;  %v12139_v51 = vpop.f32.mrb[35].mxu0  ;;  %v12185_v59 = vmax.f32 %v12177_v50, 0.0  ;;  %v21458_v50 = vld [vmem:[%s26820_s7 + $0x6e4] ss:$16 sps:$4 sm:$0xff]   ;;  %v21459_v8 = vld [vmem:[%s26820_s7 + $0x6c8] ss:$16 sps:$4 sm:$0xff]  }
 0xa62   : > { %v12176_v39 = vadd.f32 %v26034_v20, %v12139_v51  ;;  %v12183_v57 = vmax.f32 %v12175_v27, 0.0  ;;  %v21461_v27 = vld [vmem:[%s26820_s7 + $0x6cc] ss:$16 sps:$4 sm:$0xff]  }
 0xa63   : > { %v12186_v18 = vmax.f32 %v12178_v38, 0.0  ;;  %v21464_v51 = vld [vmem:[%s26820_s7 + $0x6ec] ss:$16 sps:$4 sm:$0xff]  }
 0xa64   : > { %v12184_v17 = vmax.f32 %v12176_v39, 0.0  ;;  %v21462_v39 = vld [vmem:[%s26820_s7 + $0x6e8] ss:$16 sps:$4 sm:$0xff]  }
 0xa65   : > { %v26040_v35 = vpack.c.bf16 %v12186_v18, %v12185_v59  ;;  %v21467_v59 = vld [vmem:[%s26820_s7 + $0x704] ss:$16 sps:$4 sm:$0xff]   ;;  %v21465_v18 = vld [vmem:[%s26820_s7 + $0x700] ss:$16 sps:$4 sm:$0xff]  }
 0xa66   : > { %v12191_v15 = vpack.c.bf16 %v12184_v17, %v12183_v57  ;;  %v19866_v9 = vpop.f32.mrb[36].mxu0  ;;  %v21470_v57 = vld [vmem:[%s26820_s7 + $0x724] ss:$16 sps:$4 sm:$0xff]   ;;  %v21468_v17 = vld [vmem:[%s26820_s7 + $0x720] ss:$16 sps:$4 sm:$0xff]  }
 0xa67   : > { %v12181_v30 = vadd.f32 %v26034_v20, %v19866_v9  ;;  %v12152_v25 = vpop.f32.mrb[37].mxu0  ;;  %v12621_v38 = vrot.slane %v26040_v35, 4  ;;  %v21474_v9 = vld [vmem:[%s26820_s7 + $0x728] ss:$16 sps:$4 sm:$0xff]  }
 0xa68   : > { %v12179_v1 = vadd.f32 %v26034_v20, %v12152_v25  ;;  %v19867_v6 = vpop.f32.mrb[38].mxu0  ;;  %16766 = vmatmul.mubr.msk.bf16.vlgmr.msra.gmra.mrb[0].mxu1 %vm6837_vm3, %v12191_v15  ;;  %v12343_v49 = vrot.slane %v12191_v15, 4  ;;  %v21482_v25 = vld [vmem:[%s26820_s7 + $0x764] ss:$16 sps:$4 sm:$0xff]  }
 0xa69   : > { %v12182_v16 = vadd.f32 %v26034_v20, %v19867_v6  ;;  %12289 = vmatpush1.bf16.msra.mxu1 %v21423_v12  ;;  %v12155_v48 = vpop.f32.mrb[39].mxu0  ;;  %12320 = vmatprep.mubr.bf16.mxu1 %v26869_v29  ;;  %v12189_v56 = vmax.f32 %v12181_v30, 0.0  ;;  %v21471_v12 = vld [vmem:[%s26820_s7 + $0x708] ss:$16 sps:$4 sm:$0xff]   ;;  %v21477_v30 = vld [vmem:[%s26820_s7 + $0x740] ss:$16 sps:$4 sm:$0xff]  }
 0xa6a   : > { %v12180_v63 = vadd.f32 %v26034_v20, %v12155_v48  ;;  %12290 = vmatprep.subr.bf16.mxu1 %v21428_v47  ;;  %v12187_v26 = vmax.f32 %v12179_v1, 0.0  ;;  %v21479_v47 = vld [vmem:[%s26820_s7 + $0x744] ss:$16 sps:$4 sm:$0xff]   ;;  %v21480_v1 = vld [vmem:[%s26820_s7 + $0x760] ss:$16 sps:$4 sm:$0xff]  }
 0xa6b   : > { %v12190_v60 = vmax.f32 %v12182_v16, 0.0  ;;  %v21485_v6 = vld [vmem:[%s26820_s7 + $0x74c] ss:$16 sps:$4 sm:$0xff]   ;;  %v21483_v16 = vld [vmem:[%s26820_s7 + $0x748] ss:$16 sps:$4 sm:$0xff]  }
 0xa6c   : > { %v12188_v46 = vmax.f32 %v12180_v63, 0.0  ;;  %v21486_v63 = vld [vmem:[%s26820_s7 + $0x768] ss:$16 sps:$4 sm:$0xff]  }
 0xa6d   : > { %v26060_v22 = vpack.c.bf16 %v12190_v60, %v12189_v56  ;;  %12291 = vmatpush1.bf16.msra.mxu1 %v21426_v14  ;;  %v21488_v14 = vld [vmem:[%s26820_s7 + $0x76c] ss:$16 sps:$4 sm:$0xff]   ;;  %v21489_v56 = vld [vmem:[%s26820_s7 + $0x780] ss:$16 sps:$4 sm:$0xff]   ;;  %v21494_v60 = vld [vmem:[%s26820_s7 + $0x7a4] ss:$16 sps:$4 sm:$0xff]  }
 0xa6e   : > { %v26065_v33 = vpack.c.bf16 %v12188_v46, %v12187_v26  ;;  %12387 = vmatprep.subr.bf16.mxu1 %v21431_v0  ;;  %v21491_v0 = vld [vmem:[%s26820_s7 + $0x784] ss:$16 sps:$4 sm:$0xff]   ;;  %v21492_v26 = vld [vmem:[%s26820_s7 + $0x7a0] ss:$16 sps:$4 sm:$0xff]   ;;  %v21497_v46 = vld [vmem:[%s26820_s7 + $0x78c] ss:$16 sps:$4 sm:$0xff]  }
 0xa70   : > { %16767 = vmatmul.mubr.msk.bf16.vlgmr.msra.gmra.mrb[4].mxu1 %vm6837_vm3, %v12191_v15  ;;  %v21476_v15 = vld [vmem:[%s26820_s7 + $0x72c] ss:$16 sps:$4 sm:$0xff]   ;;  %v12899_v48 = vrot.slane %v26065_v33, 4 }
 0xa71   : > { %12388 = vmatpush1.bf16.msra.mxu1 %v21429_v42  ;;  %12419 = vmatprep.mubr.bf16.mxu1 %v26869_v29  ;;  %v21495_v42 = vld [vmem:[%s26820_s7 + $0x788] ss:$16 sps:$4 sm:$0xff]  }
 0xa72   : > { %12389 = vmatprep.subr.bf16.mxu1 %v21434_v53  ;;  %v21498_v53 = vld [vmem:[%s26820_s7 + $0x7a8] ss:$16 sps:$4 sm:$0xff]  }
 0xa75   : > { %12390 = vmatpush1.bf16.msra.mxu1 %v21432_v36  ;;  %v21503_v36 = vld [vmem:[%s26820_s7 + $0x7c4] ss:$16 sps:$4 sm:$0xff]  }
 0xa76   : > { %12428 = vmatprep.subr.bf16.mxu1 %v21437_v2  ;;  %v21501_v2 = vld [vmem:[%s26820_s7 + $0x7c0] ss:$16 sps:$4 sm:$0xff]  }
 0xa78   : > { %16784 = vmatmul.mubr.msk.bf16.vlgmr.msra.gmra.mrb[0].mxu1 %vm6837_vm3, %v12343_v49 }
 0xa79   : > { %12429 = vmatpush1.bf16.msra.mxu1 %v21435_v7  ;;  %12460 = vmatprep.mubr.bf16.mxu1 %v26869_v29  ;;  %v21506_v7 = vld [vmem:[%s26820_s7 + $0x7e4] ss:$16 sps:$4 sm:$0xff]  }
 0xa7a   : > { %12430 = vmatprep.subr.bf16.mxu1 %v21440_v11  ;;  %v21509_v11 = vld [vmem:[%s26820_s7 + $0x7cc] ss:$16 sps:$4 sm:$0xff]  }
 0xa7d   : > { %12431 = vmatpush1.bf16.msra.mxu1 %v21438_v5  ;;  %v21507_v5 = vld [vmem:[%s26820_s7 + $0x7c8] ss:$16 sps:$4 sm:$0xff]  }
 0xa7e   : > { %12525 = vmatprep.subr.bf16.mxu1 %v21443_v13  ;;  %v13177_v13 = vrot.slane %v26060_v22, 4 }
 0xa80   : > { %16785 = vmatmul.mubr.msk.bf16.vlgmr.msra.gmra.mrb[4].mxu1 %vm6837_vm3, %v12343_v49  ;;  %v21504_v49 = vld [vmem:[%s26820_s7 + $0x7e0] ss:$16 sps:$4 sm:$0xff]  }
 0xa81   : > { %12526 = vmatpush1.bf16.msra.mxu1 %v21441_v44  ;;  %12557 = vmatprep.mubr.bf16.mxu1 %v26869_v29  ;;  %v21512_v44 = vld [vmem:[%s26820_s7 + $0x7ec] ss:$16 sps:$4 sm:$0xff]  }
 0xa82   : > { %12527 = vmatprep.subr.bf16.mxu1 %v21446_v24  ;;  %v21510_v24 = vld [vmem:[%s26820_s7 + $0x7e8] ss:$16 sps:$4 sm:$0xff]  }
 0xa85   : > { %12528 = vmatpush1.bf16.msra.mxu1 %v21444_v3  ;;  %v21731_v3 = vld [vmem:[%s26818_s5 + $0x48] sm:$0xff]  }
 0xa86   : > { %12566 = vmatprep.subr.bf16.mxu1 %v21449_v40  ;;  %v21732_v40 = vld [vmem:[%s26818_s5 + $0x50] sm:$0xff]  }
 0xa88   : > { %16802 = vmatmul.mubr.msk.bf16.vlgmr.msra.gmra.mrb[0].mxu1 %vm6837_vm3, %v26040_v35 }
 0xa89   : > { %12567 = vmatpush1.bf16.msra.mxu1 %v21447_v54  ;;  %12598 = vmatprep.mubr.bf16.mxu1 %v26869_v29  ;;  %v21733_v54 = vld [vmem:[%s26818_s5 + $0x58] sm:$0xff]  }
 0xa8a   : > { %12568 = vmatprep.subr.bf16.mxu1 %v21452_v4  ;;  %v21735_v4 = vld [vmem:[%s26818_s5 + $0x68] sm:$0xff]  }
 0xa8d   : > { %12569 = vmatpush1.bf16.msra.mxu1 %v21450_v55  ;;  %v21736_v55 = vld [vmem:[%s26818_s5 + $0x70] sm:$0xff]  }
 0xa8e   : > { %12665 = vmatprep.subr.bf16.mxu1 %v21455_v41  ;;  %v21737_v41 = vld [vmem:[%s26818_s5 + $0x78] sm:$0xff]  }
 0xa90   : > { %16803 = vmatmul.mubr.msk.bf16.vlgmr.msra.gmra.mrb[4].mxu1 %vm6837_vm3, %v26040_v35  ;;  %v21473_v35 = vld [vmem:[%s26820_s7 + $0x70c] ss:$16 sps:$4 sm:$0xff]  }
 0xa91   : > { %12666 = vmatpush1.bf16.msra.mxu1 %v21453_v19  ;;  %12697 = vmatprep.mubr.bf16.mxu1 %v26869_v29  ;;  %v21738_v19 = vld [vmem:[%s26818_s5] sm:$0xff]  }
 0xa92   : > { %12667 = vmatprep.subr.bf16.mxu1 %v21458_v50  ;;  %v21739_v50 = vld [vmem:[%s26818_s5 + $0x8] sm:$0xff]  }
 0xa95   : > { %12668 = vmatpush1.bf16.msra.mxu1 %v21456_v32  ;;  %v21740_v32 = vld [vmem:[%s26818_s5 + $0x10] sm:$0xff]  }
 0xa96   : > { %12706 = vmatprep.subr.bf16.mxu1 %v21461_v27  ;;  %v21741_v27 = vld [vmem:[#allocation3 + $0xa0] sm:$0xff] }
 0xa98   : > { %16820 = vmatmul.mubr.msk.bf16.vlgmr.msra.gmra.mrb[0].mxu1 %vm6837_vm3, %v12621_v38 }
 0xa99   : > { %12707 = vmatpush1.bf16.msra.mxu1 %v21459_v8  ;;  %12738 = vmatprep.mubr.bf16.mxu1 %v26869_v29  ;;  %v21744_v8 = vld [vmem:[%s26818_s5 + $0x28] sm:$0xff]  }
 0xa9a   : > { %12708 = vmatprep.subr.bf16.mxu1 %v21464_v51  ;;  %v21747_v51 = vld [vmem:[%s26818_s5 + $0x80] sm:$0xff]  }
 0xa9d   : > { %12709 = vmatpush1.bf16.msra.mxu1 %v21462_v39  ;;  %v21748_v39 = vld [vmem:[#allocation3 + $0xa8] sm:$0xff] }
 0xa9e   : > { %12803 = vmatprep.subr.bf16.mxu1 %v21467_v59  ;;  %v21749_v59 = vld [vmem:[#allocation3 + $0xb0] sm:$0xff] }
 0xaa0   : > { %16821 = vmatmul.mubr.msk.bf16.vlgmr.msra.gmra.mrb[4].mxu1 %vm6837_vm3, %v12621_v38  ;;  %v21746_v38 = vld [vmem:[%s26818_s5 + $0x38] sm:$0xff]  }
 0xaa1   : > { %12804 = vmatpush1.bf16.msra.mxu1 %v21465_v18  ;;  %12835 = vmatprep.mubr.bf16.mxu1 %v26869_v29  ;;  %v21750_v18 = vld [vmem:[%s26818_s5 + $0x88] sm:$0xff]  }
 0xaa2   : > { %12805 = vmatprep.subr.bf16.mxu1 %v21470_v57  ;;  %v21751_v57 = vld [vmem:[%s26818_s5 + $0x90] sm:$0xff]  }
 0xaa5   : > { %12806 = vmatpush1.bf16.msra.mxu1 %v21468_v17  ;;  %v21752_v17 = vld [vmem:[#allocation3 + $0xb8] sm:$0xff] }
 0xaa6   : > { %12844 = vmatprep.subr.bf16.mxu1 %v21473_v35  ;;  %v21753_v35 = vld [vmem:[%s26818_s5 + $0x98] sm:$0xff]  }
 0xaa8   : > { %16838 = vmatmul.mubr.msk.bf16.vlgmr.msra.gmra.mrb[0].mxu1 %vm6837_vm3, %v26065_v33 }
 0xaa9   : > { %12845 = vmatpush1.bf16.msra.mxu1 %v21471_v12  ;;  %12876 = vmatprep.mubr.bf16.mxu1 %v26869_v29  ;;  %v21754_v12 = vld [vmem:[%s26818_s5 + $0xa0] sm:$0xff]  }
 0xaaa   : > { %12846 = vmatprep.subr.bf16.mxu1 %v21476_v15  ;;  %v21755_v15 = vld [vmem:[%s26818_s5 + $0xa8] sm:$0xff]  }
 0xaad   : > { %12847 = vmatpush1.bf16.msra.mxu1 %v21474_v9  ;;  %v21756_v9 = vld [vmem:[%s26818_s5 + $0xb0] sm:$0xff]  }
 0xaae   : > { %12943 = vmatprep.subr.bf16.mxu1 %v21479_v47  ;;  %v21757_v47 = vld [vmem:[%s26818_s5 + $0xb8] sm:$0xff]  }
 0xab0   : > { %16839 = vmatmul.mubr.msk.bf16.vlgmr.msra.gmra.mrb[4].mxu1 %vm6837_vm3, %v26065_v33  ;;  %v21500_v33 = vld [vmem:[%s26820_s7 + $0x7ac] ss:$16 sps:$4 sm:$0xff]  }
 0xab1   : > { %12944 = vmatpush1.bf16.msra.mxu1 %v21477_v30  ;;  %12975 = vmatprep.mubr.bf16.mxu1 %v26869_v29  ;;  %v21758_v30 = vld [vmem:[%s26818_s5 + $0xc0] sm:$0xff]  }
 0xab2   : > { %12945 = vmatprep.subr.bf16.mxu1 %v21482_v25  ;;  %v21759_v25 = vld [vmem:[%s26818_s5 + $0xc8] sm:$0xff]  }
 0xab5   : > { %12946 = vmatpush1.bf16.msra.mxu1 %v21480_v1  ;;  %v21760_v1 = vld [vmem:[%s26818_s5 + $0xd0] sm:$0xff]  }
 0xab6   : > { %12984 = vmatprep.subr.bf16.mxu1 %v21485_v6  ;;  %v21761_v6 = vld [vmem:[#allocation3 + $0xc0] sm:$0xff] }
 0xab8   : > { %16856 = vmatmul.mubr.msk.bf16.vlgmr.msra.gmra.mrb[0].mxu1 %vm6837_vm3, %v12899_v48 }
 0xab9   : > { %12985 = vmatpush1.bf16.msra.mxu1 %v21483_v16  ;;  %13016 = vmatprep.mubr.bf16.mxu1 %v26869_v29  ;;  %v21762_v16 = vld [vmem:[%s26818_s5 + $0xd8] sm:$0xff]  }
 0xaba   : > { %12986 = vmatprep.subr.bf16.mxu1 %v21488_v14  ;;  %v21764_v14 = vld [vmem:[%s26818_s5 + $0xe8] sm:$0xff]  }
 0xabd   : > { %12987 = vmatpush1.bf16.msra.mxu1 %v21486_v63  ;;  %v21766_v63 = vld [vmem:[%s26818_s5 + $0xf8] sm:$0xff]  }
 0xabe   : > { %13081 = vmatprep.subr.bf16.mxu1 %v21491_v0  ;;  %v21767_v0 = vld [vmem:[%s26818_s5 + $0x100] sm:$0xff]  }
 0xac0   : > { %16857 = vmatmul.mubr.msk.bf16.vlgmr.msra.gmra.mrb[4].mxu1 %vm6837_vm3, %v12899_v48  ;;  %v21763_v48 = vld [vmem:[%s26818_s5 + $0xe0] sm:$0xff]  }
 0xac1   : > { %13082 = vmatpush1.bf16.msra.mxu1 %v21489_v56  ;;  %13113 = vmatprep.mubr.bf16.mxu1 %v26869_v29  ;;  %v21768_v56 = vld [vmem:[%s26818_s5 + $0x108] sm:$0xff]  }
 0xac2   : > { %13083 = vmatprep.subr.bf16.mxu1 %v21494_v60  ;;  %v21769_v60 = vld [vmem:[%s26818_s5 + $0x110] sm:$0xff]  }
 0xac5   : > { %13084 = vmatpush1.bf16.msra.mxu1 %v21492_v26  ;;  %v21772_v26 = vld [vmem:[%s26818_s5 + $0x128] sm:$0xff]  }
 0xac6   : > { %13122 = vmatprep.subr.bf16.mxu1 %v21497_v46  ;;  %v21774_v46 = vld [vmem:[%s26818_s5 + $0x138] sm:$0xff]  }
 0xac8   : > { %16874 = vmatmul.mubr.msk.bf16.vlgmr.msra.gmra.mrb[0].mxu1 %vm6837_vm3, %v26060_v22 }
 0xac9   : > { %13123 = vmatpush1.bf16.msra.mxu1 %v21495_v42  ;;  %13154 = vmatprep.mubr.bf16.mxu1 %v26869_v29  ;;  %v21775_v42 = vld [vmem:[%s26818_s5 + $0x140] sm:$0xff]  }
 0xaca   : > { %13124 = vmatprep.subr.bf16.mxu1 %v21500_v33  ;;  %v21776_v33 = vld [vmem:[%s26818_s5 + $0x148] sm:$0xff]  }
 0xacd   : > { %13125 = vmatpush1.bf16.msra.mxu1 %v21498_v53  ;;  %v21777_v53 = vld [vmem:[%s26818_s5 + $0x150] sm:$0xff]  }
 0xace   : > { %13221 = vmatprep.subr.bf16.mxu1 %v21503_v36  ;;  %v21778_v36 = vld [vmem:[#allocation3 + $0xd0] sm:$0xff] }
 0xad0   : > { %16875 = vmatmul.mubr.msk.bf16.vlgmr.msra.gmra.mrb[4].mxu1 %vm6837_vm3, %v26060_v22  ;;  %v21730_v22 = vld [vmem:[%s26818_s5 + $0x40] sm:$0xff]  }
 0xad1   : > { %13222 = vmatpush1.bf16.msra.mxu1 %v21501_v2  ;;  %13253 = vmatprep.mubr.bf16.mxu1 %v26869_v29  ;;  %v21781_v2 = vld [vmem:[%s26818_s5 + $0x168] sm:$0xff]  }
 0xad2   : > { %13223 = vmatprep.subr.bf16.mxu1 %v21506_v7  ;;  %v21783_v7 = vld [vmem:[%s26818_s5 + $0x178] sm:$0xff]  }
 0xad5   : > { %13224 = vmatpush1.bf16.msra.mxu1 %v21504_v49  ;;  %v21784_v49 = vld [vmem:[%s26818_s5 + $0x180] sm:$0xff]  }
 0xad6   : > { %13262 = vmatprep.subr.bf16.mxu1 %v21509_v11  ;;  %v21785_v11 = vld [vmem:[#allocation3 + $0xd8] sm:$0xff] }
 0xad8   : > { %16892 = vmatmul.mubr.msk.bf16.vlgmr.msra.gmra.mrb[0].mxu1 %vm6837_vm3, %v13177_v13 }
 0xad9   : > { %13263 = vmatpush1.bf16.msra.mxu1 %v21507_v5  ;;  %13294 = vmatprep.mubr.bf16.mxu1 %v26869_v29  ;;  %v21786_v5 = vld [vmem:[%s26818_s5 + $0x188] sm:$0xff]  }
 0xada   : > { %13264 = vmatprep.subr.bf16.mxu1 %v21512_v44  ;;  %v13730_v44 = vld [vmem:[#allocation3 + $0xf0] sm:$0xff] }
 0xadd   : > { %13265 = vmatpush1.bf16.msra.mxu1 %v21510_v24  ;;  %v21789_v24 = vld [vmem:[%s26818_s5 + $0x1a0] sm:$0xff]  }
 0xade   : > { %19868 = vmatprep.subr.bf16.mxu1 %v21730_v22 }
 0xae0   : > { %16893 = vmatmul.mubr.msk.bf16.vlgmr.msra.gmra.mrb[4].mxu1 %vm6837_vm3, %v13177_v13  ;;  %v21787_v13 = vld [vmem:[%s26818_s5 + $0x190] sm:$0xff]  }
 0xae1   : > { %19869 = vmatpush3.bf16.msra.mxu1 %v21730_v22  ;;  %19884 = vmatprep.mubr.bf16.mxu1 %v25153_v62  ;;  %v21734_v62 = vld [vmem:[%s26818_s5 + $0x60] sm:$0xff]   ;;  %v21790_v22 = vld [vmem:[%s26818_s5 + $0x1a8] sm:$0xff]  }
 0xae2   : > { %19870 = vmatprep.subr.bf16.mxu1 %v21731_v3 }
 0xae5   : > { %19871 = vmatpush3.bf16.msra.mxu1 %v21731_v3  ;;  %v21792_v3 = vld [vmem:[%s26818_s5 + $0x1b8] sm:$0xff]  }
 0xae6   : > { %19872 = vmatprep.subr.bf16.mxu1 %v21732_v40 }
 0xae9   : > { %19873 = vmatpush3.bf16.msra.mxu1 %v21732_v40  ;;  %v13731_v40 = vld [vmem:[#allocation3 + $0xf8] sm:$0xff] }
 0xaea   : > { %19874 = vmatprep.subr.bf16.mxu1 %v21733_v54 }
 0xaed   : > { %19875 = vmatpush3.bf16.msra.mxu1 %v21733_v54  ;;  %v21793_v54 = vld [vmem:[%s26818_s5 + $0x1c0] sm:$0xff]  }
 0xaee   : > { %19876 = vmatprep.subr.bf16.mxu1 %v21734_v62 }
 0xaf1   : > { %19877 = vmatpush3.bf16.msra.mxu1 %v21734_v62  ;;  %v26452_v62 = vld [vmem:[#allocation3 + $0x100] sm:$0xff] }
 0xaf2   : > { %19878 = vmatprep.subr.bf16.mxu1 %v21735_v4 }
 0xaf5   : > { %19879 = vmatpush3.bf16.msra.mxu1 %v21735_v4  ;;  %v13807_v4 = vld [vmem:[#allocation3 + $0xf0] sm:$0xf0] }
 0xaf6   : > { %19880 = vmatprep.subr.bf16.mxu1 %v21736_v55 }
 0xaf9   : > { %19881 = vmatpush3.bf16.msra.mxu1 %v21736_v55  ;;  %v21794_v55 = vld [vmem:[%s26818_s5 + $0x1c8] sm:$0xff]  }
 0xafa   : > { %19882 = vmatprep.subr.bf16.mxu1 %v21737_v41 }
 0xafd   : > { %19883 = vmatpush3.bf16.msra.mxu1 %v21737_v41  ;;  %v13817_v41 = vrot.slane %v13807_v4, 4 }
 0xafe   : > { %19892 = vmatprep.subr.bf16.mxu1 %v21738_v19 }
 0xb00   : > { %19885 = vmatmul.mubr.bf16.vlgmr.msra.gmra.mrb[16].mxu1 %v25196_v34  ;;  %v21742_v34 = vld [vmem:[%s26818_s5 + $0x18] sm:$0xff]  }
 0xb01   : > { %19893 = vmatpush3.bf16.msra.mxu1 %v21738_v19  ;;  %19888 = vmatprep.mubr.bf16.mxu1 %v25205_v52  ;;  %v21743_v52 = vld [vmem:[%s26818_s5 + $0x20] sm:$0xff]   ;;  %v13818_v19 = vrot.slane %v13731_v40, 4 }
 0xb02   : > { %19894 = vmatprep.subr.bf16.mxu1 %v21739_v50 }
 0xb05   : > { %19895 = vmatpush3.bf16.msra.mxu1 %v21739_v50  ;;  %v13733_v50 = vld [vmem:[#allocation3 + $0x108] sm:$0xff] }
 0xb06   : > { %19896 = vmatprep.subr.bf16.mxu1 %v21740_v32 }
 0xb08   : > { %19889 = vmatmul.mubr.bf16.gmra.mrb[20].mxu1 %v25218_v43  ;;  %v21745_v43 = vld [vmem:[%s26818_s5 + $0x30] sm:$0xff]  }
 0xb09   : > { %19897 = vmatpush3.bf16.msra.mxu1 %v21740_v32  ;;  %19908 = vmatprep.mubr.bf16.mxu1 %v21741_v27  ;;  %v21795_v32 = vld [vmem:[%s26818_s5 + $0x1d0] sm:$0xff]   ;;  %v13819_v27 = vsel %vm2829_vm2, %v13817_v41, %v13818_v19 }
 0xb0a   : > { %19898 = vmatprep.subr.bf16.mxu1 %v21742_v34  ;;  %v21525_v41 = vld [vmem:[%s26820_s7 + $0x840] ss:$16 sps:$4 sm:$0xff]  }
 0xb0d   : > { %19899 = vmatpush3.bf16.msra.mxu1 %v21742_v34  ;;  %v21796_v34 = vld [vmem:[%s26818_s5 + $0x1d8] sm:$0xff]  }
 0xb0e   : > { %19900 = vmatprep.subr.bf16.mxu1 %v21743_v52 }
 0xb11   : > { %19901 = vmatpush3.bf16.msra.mxu1 %v21743_v52  ;;  %v21797_v52 = vld [vmem:[%s26818_s5 + $0x1e0] sm:$0xff]  }
 0xb12   : > { %19902 = vmatprep.subr.bf16.mxu1 %v21744_v8 }
 0xb15   : > { %19903 = vmatpush3.bf16.msra.mxu1 %v21744_v8  ;;  %v21798_v8 = vld [vmem:[%s26818_s5 + $0x1e8] sm:$0xff]  }
 0xb16   : > { %19904 = vmatprep.subr.bf16.mxu1 %v21745_v43 }
 0xb19   : > { %19905 = vmatpush3.bf16.msra.mxu1 %v21745_v43  ;;  %v21799_v43 = vld [vmem:[%s26818_s5 + $0x1f0] sm:$0xff]  }
 0xb1a   : > { %19906 = vmatprep.subr.bf16.mxu1 %v21746_v38 }
 0xb1d   : > { %19907 = vmatpush3.bf16.msra.mxu1 %v21746_v38  ;;  %v13820_v38 = vrot.slane %v26452_v62, 4 }
 0xb1e   : > { %19916 = vmatprep.subr.bf16.mxu1 %v21747_v51 }
 0xb20   : > { %19909 = vmatmul.mubr.bf16.vlgmr.msra.gmra.mrb[16].mxu1 %v21748_v39 }
 0xb21   : > { %19917 = vmatpush3.bf16.msra.mxu1 %v21747_v51  ;;  %19912 = vmatprep.mubr.bf16.mxu1 %v21749_v59  ;;  %v21800_v51 = vld [vmem:[%s26818_s5 + $0x1f8] sm:$0xff]  }
 0xb22   : > { %19918 = vmatprep.subr.bf16.mxu1 %v21750_v18 }
 0xb25   : > { %19919 = vmatpush3.bf16.msra.mxu1 %v21750_v18  ;;  %v21801_v18 = vld [vmem:[%s26818_s5 + $0x200] sm:$0xff]  }
 0xb26   : > { %19920 = vmatprep.subr.bf16.mxu1 %v21751_v57 }
 0xb28   : > { %19913 = vmatmul.mubr.bf16.gmra.mrb[20].mxu1 %v21752_v17 }
 0xb29   : > { %19921 = vmatpush3.bf16.msra.mxu1 %v21751_v57  ;;  %19932 = vmatprep.mubr.bf16.mxu1 %v21748_v39  ;;  %v13822_v39 = vrot.slane %v13733_v50, 4 }
 0xb2a   : > { %19922 = vmatprep.subr.bf16.mxu1 %v21753_v35 }
 0xb2b   : > { %v13823_v57 = vsel %vm2829_vm2, %v13820_v38, %v13822_v39 }
 0xb2d   : > { %19923 = vmatpush3.bf16.msra.mxu1 %v21753_v35 }
 0xb2e   : > { %19924 = vmatprep.subr.bf16.mxu1 %v21754_v12 }
 0xb31   : > { %19925 = vmatpush3.bf16.msra.mxu1 %v21754_v12  ;;  %v21802_v12 = vld [vmem:[%s26818_s5 + $0x208] sm:$0xff]  }
 0xb32   : > { %19926 = vmatprep.subr.bf16.mxu1 %v21755_v15 }
 0xb35   : > { %19927 = vmatpush3.bf16.msra.mxu1 %v21755_v15 }
 0xb36   : > { %19928 = vmatprep.subr.bf16.mxu1 %v21756_v9 }
 0xb39   : > { %19929 = vmatpush3.bf16.msra.mxu1 %v21756_v9  ;;  %v21803_v9 = vld [vmem:[%s26818_s5 + $0x210] sm:$0xff]  }
 0xb3a   : > { %19930 = vmatprep.subr.bf16.mxu1 %v21757_v47 }
 0xb3d   : > { %19931 = vmatpush3.bf16.msra.mxu1 %v21757_v47  ;;  %v21804_v47 = vld [vmem:[%s26818_s5 + $0x218] sm:$0xff]  }
 0xb3e   : > { %19940 = vmatprep.subr.bf16.mxu1 %v21758_v30 }
 0xb40   : > { %19933 = vmatmul.mubr.bf16.vlgmr.msra.gmra.mrb[16].mxu1 %v21749_v59  ;;  %v13821_v59 = vsel %vm2829_vm2, %v13818_v19, %v13820_v38  ;;  %v21537_v38 = vld [vmem:[%s26820_s7 + $0x880] ss:$16 sps:$4 sm:$0xff]  }
 0xb41   : > { %19941 = vmatpush3.bf16.msra.mxu1 %v21758_v30  ;;  %19936 = vmatprep.mubr.bf16.mxu1 %v21752_v17  ;;  %v13811_v17 = vld [vmem:[#allocation3 + $0x110] sm:$0xf]  ;;  %v21805_v30 = vld [vmem:[%s26818_s5 + $0x220] sm:$0xff]  }
 0xb42   : > { %19942 = vmatprep.subr.bf16.mxu1 %v21759_v25  ;;  %v13824_v35 = vrot.slane %v13811_v17, 4  ;;  %v21546_v17 = vld [vmem:[%s26820_s7 + $0x8a8] ss:$16 sps:$4 sm:$0xff]  }
 0xb44   : > { %v13825_v15 = vsel %vm2829_vm2, %v13822_v39, %v13824_v35  ;;  %v21540_v39 = vld [vmem:[%s26820_s7 + $0x8a0] ss:$16 sps:$4 sm:$0xff]   ;;  %v21551_v35 = vld [vmem:[%s26820_s7 + $0x8c4] ss:$16 sps:$4 sm:$0xff]  }
 0xb45   : > { %19943 = vmatpush3.bf16.msra.mxu1 %v21759_v25  ;;  %v21806_v25 = vld [vmem:[%s26818_s5 + $0x228] sm:$0xff]  }
 0xb46   : > { %19944 = vmatprep.subr.bf16.mxu1 %v21760_v1 }
 0xb48   : > { %19937 = vmatmul.mubr.bf16.gmra.mrb[20].mxu1 %v21761_v6  ;;  %v21808_v6 = vld [vmem:[%s26818_s5 + $0x238] sm:$0xff]  }
 0xb49   : > { %19945 = vmatpush3.bf16.msra.mxu1 %v21760_v1  ;;  %19956 = vmatprep.mubr.bf16.mxu1 %v25698_v31  ;;  %v21765_v31 = vld [vmem:[%s26818_s5 + $0xf0] sm:$0xff]  }
 0xb4a   : > { %19946 = vmatprep.subr.bf16.mxu1 %v21762_v16  ;;  %v21807_v1 = vld [vmem:[%s26818_s5 + $0x230] sm:$0xff]  }
 0xb4d   : > { %19947 = vmatpush3.bf16.msra.mxu1 %v21762_v16  ;;  %v21515_v16 = vld [vmem:[%s26820_s7 + $0x804] ss:$16 sps:$4 sm:$0xff]  }
 0xb4e   : > { %19948 = vmatprep.subr.bf16.mxu1 %v21763_v48 }
 0xb51   : > { %19949 = vmatpush3.bf16.msra.mxu1 %v21763_v48  ;;  %v21513_v48 = vld [vmem:[%s26820_s7 + $0x800] ss:$16 sps:$4 sm:$0xff]  }
 0xb52   : > { %19950 = vmatprep.subr.bf16.mxu1 %v21764_v14 }
 0xb55   : > { %19951 = vmatpush3.bf16.msra.mxu1 %v21764_v14  ;;  %v13903_v14 = vld [vmem:[#allocation3 + $0x110] sm:$0xff] }
 0xb56   : > { %19952 = vmatprep.subr.bf16.mxu1 %v21765_v31 }
 0xb59   : > { %19953 = vmatpush3.bf16.msra.mxu1 %v21765_v31  ;;  %v21516_v31 = vld [vmem:[%s26820_s7 + $0x820] ss:$16 sps:$4 sm:$0xff]  }
 0xb5a   : > { %19954 = vmatprep.subr.bf16.mxu1 %v21766_v63 }
 0xb5d   : > { %19955 = vmatpush3.bf16.msra.mxu1 %v21766_v63  ;;  %v21518_v63 = vld [vmem:[%s26820_s7 + $0x824] ss:$16 sps:$4 sm:$0xff]  }
 0xb5e   : > { %19964 = vmatprep.subr.bf16.mxu1 %v21767_v0 }
 0xb60   : > { %19957 = vmatmul.mubr.bf16.vlgmr.msra.gmra.mrb[16].mxu1 %v25731_v37  ;;  %v21770_v37 = vld [vmem:[%s26818_s5 + $0x118] sm:$0xff]  }
 0xb61   : > { %19965 = vmatpush3.bf16.msra.mxu1 %v21767_v0  ;;  %19960 = vmatprep.mubr.bf16.mxu1 %v25738_v23  ;;  %v21771_v23 = vld [vmem:[%s26818_s5 + $0x120] sm:$0xff]   ;;  %v21521_v0 = vld [vmem:[%s26820_s7 + $0x80c] ss:$16 sps:$4 sm:$0xff]  }
 0xb62   : > { %19966 = vmatprep.subr.bf16.mxu1 %v21768_v56 }
 0xb65   : > { %19967 = vmatpush3.bf16.msra.mxu1 %v21768_v56 }
 0xb66   : > { %19968 = vmatprep.subr.bf16.mxu1 %v21769_v60 }
 0xb68   : > { %19961 = vmatmul.mubr.bf16.gmra.mrb[20].mxu1 %v25763_v21 }
 0xb69   : > { %19969 = vmatpush3.bf16.msra.mxu1 %v21769_v60  ;;  %19980 = vmatprep.mubr.bf16.mxu1 %v25770_v61  ;;  %v21773_v61 = vld [vmem:[%s26818_s5 + $0x130] sm:$0xff]  }
 0xb6a   : > { %19970 = vmatprep.subr.bf16.mxu1 %v21770_v37 }
 0xb6d   : > { %19971 = vmatpush3.bf16.msra.mxu1 %v21770_v37 }
 0xb6e   : > { %19972 = vmatprep.subr.bf16.mxu1 %v21771_v23 }
 0xb71   : > { %19973 = vmatpush3.bf16.msra.mxu1 %v21771_v23 }
 0xb72   : > { %19974 = vmatprep.subr.bf16.mxu1 %v21772_v26 }
 0xb75   : > { %19975 = vmatpush3.bf16.msra.mxu1 %v21772_v26 }
 0xb76   : > { %19976 = vmatprep.subr.bf16.mxu1 %v21773_v61 }
 0xb79   : > { %19977 = vmatpush3.bf16.msra.mxu1 %v21773_v61 }
 0xb7a   : > { %19978 = vmatprep.subr.bf16.mxu1 %v21774_v46 }
 0xb7d   : > { %19979 = vmatpush3.bf16.msra.mxu1 %v21774_v46 }
 0xb7e   : > { %19988 = vmatprep.subr.bf16.mxu1 %v21775_v42 }
 0xb80   : > { %19981 = vmatmul.mubr.bf16.vlgmr.msra.gmra.mrb[16].mxu1 %v25829_v45  ;;  %v21779_v45 = vld [vmem:[%s26818_s5 + $0x158] sm:$0xff]  }
 0xb81   : > { %19989 = vmatpush3.bf16.msra.mxu1 %v21775_v42  ;;  %19984 = vmatprep.mubr.bf16.mxu1 %v25836_v28  ;;  %v21780_v28 = vld [vmem:[%s26818_s5 + $0x160] sm:$0xff]  }
 0xb82   : > { %19990 = vmatprep.subr.bf16.mxu1 %v21776_v33 }
 0xb85   : > { %19991 = vmatpush3.bf16.msra.mxu1 %v21776_v33 }
 0xb86   : > { %19992 = vmatprep.subr.bf16.mxu1 %v21777_v53 }
 0xb88   : > { %19985 = vmatmul.mubr.bf16.gmra.mrb[20].mxu1 %v25856_v58  ;;  %v21782_v58 = vld [vmem:[%s26818_s5 + $0x170] sm:$0xff]  }
 0xb89   : > { %19993 = vmatpush3.bf16.msra.mxu1 %v21777_v53  ;;  %20004 = vmatprep.mubr.bf16.mxu1 %v21778_v36 }
 0xb8a   : > { %19994 = vmatprep.subr.bf16.mxu1 %v21779_v45 }
 0xb8d   : > { %19995 = vmatpush3.bf16.msra.mxu1 %v21779_v45 }
 0xb8e   : > { %19996 = vmatprep.subr.bf16.mxu1 %v21780_v28 }
 0xb91   : > { %19997 = vmatpush3.bf16.msra.mxu1 %v21780_v28 }
 0xb92   : > { %19998 = vmatprep.subr.bf16.mxu1 %v21781_v2 }
 0xb95   : > { %19999 = vmatpush3.bf16.msra.mxu1 %v21781_v2  ;;  %v21519_v2 = vld [vmem:[%s26820_s7 + $0x808] ss:$16 sps:$4 sm:$0xff]  }
 0xb96   : > { %20000 = vmatprep.subr.bf16.mxu1 %v21782_v58 }
 0xb99   : > { %20001 = vmatpush3.bf16.msra.mxu1 %v21782_v58 }
 0xb9a   : > { %20002 = vmatprep.subr.bf16.mxu1 %v21783_v7 }
 0xb9d   : > { %20003 = vmatpush3.bf16.msra.mxu1 %v21783_v7 }
 0xb9e   : > { %20012 = vmatprep.subr.bf16.mxu1 %v21784_v49 }
 0xba0   : > { %20005 = vmatmul.mubr.bf16.vlgmr.msra.gmra.mrb[16].mxu1 %v21785_v11 }
 0xba1   : > { %20013 = vmatpush3.bf16.msra.mxu1 %v21784_v49  ;;  %20008 = vmatprep.mubr.bf16.mxu1 %v25763_v21  ;;  %v21788_v21 = vld [vmem:[%s26818_s5 + $0x198] sm:$0xff]  }
 0xba2   : > { %20014 = vmatprep.subr.bf16.mxu1 %v21786_v5  ;;  %v21524_v49 = vld [vmem:[%s26820_s7 + $0x82c] ss:$16 sps:$4 sm:$0xff]  }
 0xba5   : > { %20015 = vmatpush3.bf16.msra.mxu1 %v21786_v5 }
 0xba6   : > { %20016 = vmatprep.subr.bf16.mxu1 %v21787_v13 }
 0xba8   : > { %20009 = vmatmul.mubr.bf16.gmra.mrb[20].mxu1 %v25933_v10  ;;  %v21791_v10 = vld [vmem:[%s26818_s5 + $0x1b0] sm:$0xff]  }
 0xba9   : > { %20017 = vmatpush3.bf16.msra.mxu1 %v21787_v13  ;;  %20028 = vmatprep.mubr.bf16.mxu1 %v13730_v44 }
 0xbaa   : > { %20018 = vmatprep.subr.bf16.mxu1 %v21788_v21 }
 0xbad   : > { %20019 = vmatpush3.bf16.msra.mxu1 %v21788_v21 }
 0xbae   : > { %20020 = vmatprep.subr.bf16.mxu1 %v21789_v24 }
 0xbb1   : > { %20021 = vmatpush3.bf16.msra.mxu1 %v21789_v24 }
 0xbb2   : > { %20022 = vmatprep.subr.bf16.mxu1 %v21790_v22 }
 0xbb5   : > { %20023 = vmatpush3.bf16.msra.mxu1 %v21790_v22  ;;  %v21522_v22 = vld [vmem:[%s26820_s7 + $0x828] ss:$16 sps:$4 sm:$0xff]  }
 0xbb6   : > { %20024 = vmatprep.subr.bf16.mxu1 %v21791_v10 }
 0xbb9   : > { %20025 = vmatpush3.bf16.msra.mxu1 %v21791_v10 }
 0xbba   : > { %20026 = vmatprep.subr.bf16.mxu1 %v21792_v3 }
 0xbbd   : > { %20027 = vmatpush3.bf16.msra.mxu1 %v21792_v3  ;;  %v21527_v3 = vld [vmem:[%s26820_s7 + $0x844] ss:$16 sps:$4 sm:$0xff]  }
 0xbbe   : > { %20036 = vmatprep.subr.bf16.mxu1 %v21793_v54 }
 0xbc0   : > { %20029 = vmatmul.mubr.bf16.vlgmr.msra.gmra.mrb[16].mxu1 %v13731_v40 }
 0xbc1   : > { %20037 = vmatpush3.bf16.msra.mxu1 %v21793_v54  ;;  %20032 = vmatprep.mubr.bf16.mxu1 %v26452_v62 }
 0xbc2   : > { %20038 = vmatprep.subr.bf16.mxu1 %v21794_v55 }
 0xbc5   : > { %20039 = vmatpush3.bf16.msra.mxu1 %v21794_v55 }
 0xbc6   : > { %20040 = vmatprep.subr.bf16.mxu1 %v21795_v32 }
 0xbc8   : > { %20033 = vmatmul.mubr.bf16.gmra.mrb[20].mxu1 %v13733_v50 }
 0xbc9   : > { %20041 = vmatpush3.bf16.msra.mxu1 %v21795_v32  ;;  %20052 = vmatprep.mubr.bf16.mxu1 %v13819_v27  ;;  %v21533_v32 = vld [vmem:[%s26820_s7 + $0x84c] ss:$16 sps:$4 sm:$0xff]   ;;  %v21531_v27 = vld [vmem:[%s26820_s7 + $0x848] ss:$16 sps:$4 sm:$0xff]  }
 0xbca   : > { %20042 = vmatprep.subr.bf16.mxu1 %v21796_v34 }
 0xbcd   : > { %20043 = vmatpush3.bf16.msra.mxu1 %v21796_v34 }
 0xbce   : > { %20044 = vmatprep.subr.bf16.mxu1 %v21797_v52 }
 0xbd1   : > { %20045 = vmatpush3.bf16.msra.mxu1 %v21797_v52  ;;  %v21536_v52 = vld [vmem:[%s26820_s7 + $0x86c] ss:$16 sps:$4 sm:$0xff]  }
 0xbd2   : > { %20046 = vmatprep.subr.bf16.mxu1 %v21798_v8 }
 0xbd5   : > { %20047 = vmatpush3.bf16.msra.mxu1 %v21798_v8  ;;  %v21534_v8 = vld [vmem:[%s26820_s7 + $0x868] ss:$16 sps:$4 sm:$0xff]  }
 0xbd6   : > { %20048 = vmatprep.subr.bf16.mxu1 %v21799_v43 }
 0xbd9   : > { %20049 = vmatpush3.bf16.msra.mxu1 %v21799_v43  ;;  %v21539_v43 = vld [vmem:[%s26820_s7 + $0x884] ss:$16 sps:$4 sm:$0xff]  }
 0xbda   : > { %20050 = vmatprep.subr.bf16.mxu1 %v21800_v51 }
 0xbdd   : > { %20051 = vmatpush3.bf16.msra.mxu1 %v21800_v51  ;;  %v21542_v51 = vld [vmem:[%s26820_s7 + $0x8a4] ss:$16 sps:$4 sm:$0xff]  }
 0xbde   : > { %20060 = vmatprep.subr.bf16.mxu1 %v21801_v18 }
 0xbe0   : > { %20053 = vmatmul.mubr.bf16.vlgmr.msra.gmra.mrb[16].mxu1 %v13821_v59  ;;  %v21545_v59 = vld [vmem:[%s26820_s7 + $0x88c] ss:$16 sps:$4 sm:$0xff]  }
 0xbe1   : > { %20061 = vmatpush3.bf16.msra.mxu1 %v21801_v18  ;;  %20056 = vmatprep.mubr.bf16.mxu1 %v13823_v57  ;;  %v21543_v18 = vld [vmem:[%s26820_s7 + $0x888] ss:$16 sps:$4 sm:$0xff]   ;;  %v21548_v57 = vld [vmem:[%s26820_s7 + $0x8ac] ss:$16 sps:$4 sm:$0xff]  }
 0xbe2   : > { %20062 = vmatprep.subr.bf16.mxu1 %v21802_v12 }
 0xbe5   : > { %20063 = vmatpush3.bf16.msra.mxu1 %v21802_v12  ;;  %v21549_v12 = vld [vmem:[%s26820_s7 + $0x8c0] ss:$16 sps:$4 sm:$0xff]  }
 0xbe6   : > { %20064 = vmatprep.subr.bf16.mxu1 %v21803_v9 }
 0xbe8   : > { %20057 = vmatmul.mubr.bf16.gmra.mrb[20].mxu1 %v13825_v15  ;;  %v21554_v15 = vld [vmem:[%s26820_s7 + $0x8e4] ss:$16 sps:$4 sm:$0xff]  }
 0xbe9   : > { %20065 = vmatpush3.bf16.msra.mxu1 %v21803_v9  ;;  %20076 = vmatprep.mubr.bf16.mxu1 %v13731_v40  ;;  %v21552_v9 = vld [vmem:[%s26820_s7 + $0x8e0] ss:$16 sps:$4 sm:$0xff]  }
 0xbea   : > { %20066 = vmatprep.subr.bf16.mxu1 %v21804_v47 }
 0xbed   : > { %20067 = vmatpush3.bf16.msra.mxu1 %v21804_v47  ;;  %v21557_v47 = vld [vmem:[%s26820_s7 + $0x8cc] ss:$16 sps:$4 sm:$0xff]  }
 0xbee   : > { %20068 = vmatprep.subr.bf16.mxu1 %v21805_v30 }
 0xbf1   : > { %20069 = vmatpush3.bf16.msra.mxu1 %v21805_v30  ;;  %v21555_v30 = vld [vmem:[%s26820_s7 + $0x8c8] ss:$16 sps:$4 sm:$0xff]  }
 0xbf2   : > { %20070 = vmatprep.subr.bf16.mxu1 %v21806_v25 }
 0xbf5   : > { %20071 = vmatpush3.bf16.msra.mxu1 %v21806_v25 }
 0xbf6   : > { %20072 = vmatprep.subr.bf16.mxu1 %v21807_v1 }
 0xbf9   : > { %20073 = vmatpush3.bf16.msra.mxu1 %v21807_v1  ;;  %v21560_v1 = vld [vmem:[%s26820_s7 + $0x8ec] ss:$16 sps:$4 sm:$0xff]  }
 0xbfa   : > { %20074 = vmatprep.subr.bf16.mxu1 %v21808_v6 }
 0xbfd   : > { %20075 = vmatpush3.bf16.msra.mxu1 %v21808_v6  ;;  %v21558_v6 = vld [vmem:[%s26820_s7 + $0x8e8] ss:$16 sps:$4 sm:$0xff]  }
 0xbfe   : > { %14049 = vmatprep.subr.bf16.mxu1 %v21515_v16  ;;  %v21563_v16 = vld [vmem:[%s26820_s7 + $0x904] ss:$16 sps:$4 sm:$0xff]  }
 0xc00   : > { %20077 = vmatmul.mubr.bf16.vlgmr.msra.gmra.mrb[16].mxu1 %v26452_v62 }
 0xc01   : > { %20080 = vmatprep.mubr.bf16.mxu1 %v13733_v50  ;;  %14050 = vmatpush1.bf16.msra.mxu1 %v21513_v48  ;;  %v21528_v50 = vld [vmem:[%s26820_s7 + $0x860] ss:$16 sps:$4 sm:$0xff]  }
 0xc02   : > { %14051 = vmatprep.subr.bf16.mxu1 %v21518_v63  ;;  %v21561_v48 = vld [vmem:[%s26820_s7 + $0x900] ss:$16 sps:$4 sm:$0xff]   ;;  %v21569_v63 = vld [vmem:[%s26820_s7 + $0x90c] ss:$16 sps:$4 sm:$0xff]  }
 0xc05   : > { %14052 = vmatpush1.bf16.msra.mxu1 %v21516_v31  ;;  %v21564_v31 = vld [vmem:[%s26820_s7 + $0x920] ss:$16 sps:$4 sm:$0xff]  }
 0xc06   : > { %14090 = vmatprep.subr.bf16.mxu1 %v21521_v0  ;;  %v21567_v0 = vld [vmem:[%s26820_s7 + $0x908] ss:$16 sps:$4 sm:$0xff]  }
 0xc08   : > { %20081 = vmatmul.mubr.bf16.gmra.mrb[20].mxu1 %v13903_v14  ;;  %v21566_v14 = vld [vmem:[%s26820_s7 + $0x924] ss:$16 sps:$4 sm:$0xff]  }
 0xc09   : > { %14081 = vmatprep.mubr.bf16.mxu1 %v26869_v29 }
 0xcd3   : > { %v20078_v56 = vpop.f32.mrb[16].mxu1 }
 0xcd4   : > { %v13979_v60 = vadd.f32 %v26034_v20, %v20078_v56  ;;  %v13938_v37 = vpop.f32.mrb[17].mxu1  ;;  %v21572_v56 = vld [vmem:[%s26820_s7 + $0x92c] ss:$16 sps:$4 sm:$0xff]  }
 0xcd5   : > { %v13977_v23 = vadd.f32 %v26034_v20, %v13938_v37  ;;  %v20079_v26 = vpop.f32.mrb[18].mxu1  ;;  %v21575_v37 = vld [vmem:[%s26820_s7 + $0x944] ss:$16 sps:$4 sm:$0xff]  }
 0xcd6   : > { %v13980_v61 = vadd.f32 %v26034_v20, %v20079_v26  ;;  %v13941_v46 = vpop.f32.mrb[19].mxu1  ;;  %v13987_v33 = vmax.f32 %v13979_v60, 0.0  ;;  %v21570_v60 = vld [vmem:[%s26820_s7 + $0x928] ss:$16 sps:$4 sm:$0xff]   ;;  %v21578_v26 = vld [vmem:[%s26820_s7 + $0x964] ss:$16 sps:$4 sm:$0xff]  }
 0xcd7   : > { %v13978_v42 = vadd.f32 %v26034_v20, %v13941_v46  ;;  %v13985_v36 = vmax.f32 %v13977_v23, 0.0  ;;  %v21573_v23 = vld [vmem:[%s26820_s7 + $0x940] ss:$16 sps:$4 sm:$0xff]   ;;  %v21581_v46 = vld [vmem:[%s26820_s7 + $0x94c] ss:$16 sps:$4 sm:$0xff]  }
 0xcd8   : > { %v13988_v53 = vmax.f32 %v13980_v61, 0.0  ;;  %v21576_v61 = vld [vmem:[%s26820_s7 + $0x960] ss:$16 sps:$4 sm:$0xff]  }
 0xcd9   : > { %v13986_v45 = vmax.f32 %v13978_v42, 0.0  ;;  %v21579_v42 = vld [vmem:[%s26820_s7 + $0x948] ss:$16 sps:$4 sm:$0xff]  }
 0xcda   : > { %v26526_v28 = vpack.c.bf16 %v13988_v53, %v13987_v33  ;;  %v21584_v53 = vld [vmem:[%s26820_s7 + $0x96c] ss:$16 sps:$4 sm:$0xff]  }
 0xcdb   : > { %v13993_v58 = vpack.c.bf16 %v13986_v45, %v13985_v36  ;;  %v20082_v7 = vpop.f32.mrb[20].mxu1  ;;  %v21582_v36 = vld [vmem:[%s26820_s7 + $0x968] ss:$16 sps:$4 sm:$0xff]   ;;  %v21587_v45 = vld [vmem:[%s26820_s7 + $0x984] ss:$16 sps:$4 sm:$0xff]  }
 0xcdc   : > { %v13983_v11 = vadd.f32 %v26034_v20, %v20082_v7  ;;  %v13954_v5 = vpop.f32.mrb[21].mxu1  ;;  %v14423_v25 = vrot.slane %v26526_v28, 4  ;;  %v21593_v7 = vld [vmem:[%s26820_s7 + $0x98c] ss:$16 sps:$4 sm:$0xff]  }
 0xcdd   : > { %v13981_v13 = vadd.f32 %v26034_v20, %v13954_v5  ;;  %v20083_v44 = vpop.f32.mrb[22].mxu1  ;;  %16910 = vmatmul.mubr.msk.bf16.vlgmr.msra.gmra.mrb[0].mxu1 %vm6837_vm3, %v13993_v58  ;;  %v14145_v34 = vrot.slane %v13993_v58, 4  ;;  %v21594_v5 = vld [vmem:[%s26820_s7 + $0x9a8] ss:$16 sps:$4 sm:$0xff]  }
 0xcde   : > { %v13984_v21 = vadd.f32 %v26034_v20, %v20083_v44  ;;  %14091 = vmatpush1.bf16.msra.mxu1 %v21519_v2  ;;  %v13957_v24 = vpop.f32.mrb[23].mxu1  ;;  %14122 = vmatprep.mubr.bf16.mxu1 %v26869_v29  ;;  %v13991_v40 = vmax.f32 %v13983_v11, 0.0  ;;  %v21590_v2 = vld [vmem:[%s26820_s7 + $0x9a4] ss:$16 sps:$4 sm:$0xff]   ;;  %v21596_v11 = vld [vmem:[%s26820_s7 + $0x9ac] ss:$16 sps:$4 sm:$0xff]  }
 0xcdf   : > { %v13982_v10 = vadd.f32 %v26034_v20, %v13957_v24  ;;  %14092 = vmatprep.subr.bf16.mxu1 %v21524_v49  ;;  %v13989_v62 = vmax.f32 %v13981_v13, 0.0  ;;  %v21530_v20 = vld [vmem:[%s26820_s7 + $0x864] ss:$16 sps:$4 sm:$0xff]   ;;  %v21591_v49 = vld [vmem:[%s26820_s7 + $0x988] ss:$16 sps:$4 sm:$0xff]  }
 0xce0   : > { %v13992_v54 = vmax.f32 %v13984_v21, 0.0  ;;  %v21599_v13 = vld [vmem:[%s26820_s7 + $0x9c4] ss:$16 sps:$4 sm:$0xff]   ;;  %v21597_v44 = vld [vmem:[%s26820_s7 + $0x9c0] ss:$16 sps:$4 sm:$0xff]  }
 0xce1   : > { %v13990_v4 = vmax.f32 %v13982_v10, 0.0  ;;  %v21602_v21 = vld [vmem:[%s26820_s7 + $0x9e4] ss:$16 sps:$4 sm:$0xff]   ;;  %v21600_v24 = vld [vmem:[%s26820_s7 + $0x9e0] ss:$16 sps:$4 sm:$0xff]  }
 0xce2   : > { %v26546_v55 = vpack.c.bf16 %v13992_v54, %v13991_v40  ;;  %14093 = vmatpush1.bf16.msra.mxu1 %v21522_v22  ;;  %v21605_v22 = vld [vmem:[%s26820_s7 + $0x9cc] ss:$16 sps:$4 sm:$0xff]   ;;  %v21603_v10 = vld [vmem:[%s26820_s7 + $0x9c8] ss:$16 sps:$4 sm:$0xff]  }
 0xce3   : > { %v26551_v19 = vpack.c.bf16 %v13990_v4, %v13989_v62  ;;  %14189 = vmatprep.subr.bf16.mxu1 %v21527_v3  ;;  %v21608_v40 = vld [vmem:[%s26820_s7 + $0x9ec] ss:$16 sps:$4 sm:$0xff]   ;;  %v21606_v54 = vld [vmem:[%s26820_s7 + $0x9e8] ss:$16 sps:$4 sm:$0xff]   ;;  %v5429_v62 = vlaneseq }
 0xce4   : > { %v14979_v3 = vrot.slane %v26546_v55, 4 }
 0xce5   : > { %16911 = vmatmul.mubr.msk.bf16.vlgmr.msra.gmra.mrb[4].mxu1 %vm6837_vm3, %v13993_v58  ;;  %v14701_v33 = vrot.slane %v26551_v19, 4  ;;  %v21588_v58 = vld [vmem:[%s26820_s7 + $0x9a0] ss:$16 sps:$4 sm:$0xff]   ;;  %v5430_v4 = vshrl.u32 %v5429_v62, 7 }
 0xce6   : > { %14190 = vmatpush1.bf16.msra.mxu1 %v21525_v41  ;;  %14221 = vmatprep.mubr.bf16.mxu1 %v26869_v29  ;;  %v5427_v41 = vld [vmem:[%s26821_s8] sm:$0xf] }
 0xce7   : > { %14191 = vmatprep.subr.bf16.mxu1 %v21530_v20 }
 0xcea   : > { %14192 = vmatpush1.bf16.msra.mxu1 %v21528_v50 }
 0xceb   : > { %14230 = vmatprep.subr.bf16.mxu1 %v21533_v32  ;;  %v26901_v32 = vld [vmem:[#allocation18_spill] sm:$0xff] }
 0xced   : > { %16928 = vmatmul.mubr.msk.bf16.vlgmr.msra.gmra.mrb[0].mxu1 %vm6837_vm3, %v14145_v34 }
 0xcee   : > { %14231 = vmatpush1.bf16.msra.mxu1 %v21531_v27  ;;  %14262 = vmatprep.mubr.bf16.mxu1 %v26869_v29 }
 0xcef   : > { %14232 = vmatprep.subr.bf16.mxu1 %v21536_v52 }
 0xcf2   : > { %14233 = vmatpush1.bf16.msra.mxu1 %v21534_v8  ;;  %v5443_v8 = vsub.s32 3, %v5430_v4 }
 0xcf3   : > { %14327 = vmatprep.subr.bf16.mxu1 %v21539_v43 }
 0xcf5   : > { %16929 = vmatmul.mubr.msk.bf16.vlgmr.msra.gmra.mrb[4].mxu1 %vm6837_vm3, %v14145_v34  ;;  %v5439_v34 = vsub.s32 2, %v5430_v4 }
 0xcf6   : > { %14328 = vmatpush1.bf16.msra.mxu1 %v21537_v38  ;;  %14359 = vmatprep.mubr.bf16.mxu1 %v26869_v29 }
 0xcf7   : > { %14329 = vmatprep.subr.bf16.mxu1 %v21542_v51 }
 0xcfa   : > { %14330 = vmatpush1.bf16.msra.mxu1 %v21540_v39 }
 0xcfb   : > { %14368 = vmatprep.subr.bf16.mxu1 %v21545_v59 }
 0xcfd   : > { %16946 = vmatmul.mubr.msk.bf16.vlgmr.msra.gmra.mrb[0].mxu1 %vm6837_vm3, %v26526_v28 }
 0xcfe   : > { %14369 = vmatpush1.bf16.msra.mxu1 %v21543_v18  ;;  %14400 = vmatprep.mubr.bf16.mxu1 %v26869_v29  ;;  %v5440_v18 = vrot.slane %v5427_v41, %v5439_v34 }
 0xcff   : > { %14370 = vmatprep.subr.bf16.mxu1 %v21548_v57 }
 0xd02   : > { %14371 = vmatpush1.bf16.msra.mxu1 %v21546_v17 }
 0xd03   : > { %14467 = vmatprep.subr.bf16.mxu1 %v21551_v35  ;;  %v5444_v35 = vrot.slane %v5427_v41, %v5443_v8 }
 0xd05   : > { %16947 = vmatmul.mubr.msk.bf16.vlgmr.msra.gmra.mrb[4].mxu1 %vm6837_vm3, %v26526_v28  ;;  %v21585_v28 = vld [vmem:[%s26820_s7 + $0x980] ss:$16 sps:$4 sm:$0xff]  }
 0xd06   : > { %14468 = vmatpush1.bf16.msra.mxu1 %v21549_v12  ;;  %14499 = vmatprep.mubr.bf16.mxu1 %v26869_v29 }
 0xd07   : > { %14469 = vmatprep.subr.bf16.mxu1 %v21554_v15  ;;  %v26903_v15 = vld [vmem:[#allocation20_spill] sm:$0xff] }
 0xd0a   : > { %14470 = vmatpush1.bf16.msra.mxu1 %v21552_v9  ;;  %v6925_v9 = vadd.f32 %v26903_v15, %v5440_v18 }
 0xd0b   : > { %14508 = vmatprep.subr.bf16.mxu1 %v21557_v47  ;;  %v26904_v47 = vld [vmem:[#allocation21_spill] sm:$0xff] }
 0xd0d   : > { %16964 = vmatmul.mubr.msk.bf16.vlgmr.msra.gmra.mrb[0].mxu1 %vm6837_vm3, %v14423_v25 }
 0xd0e   : > { %14509 = vmatpush1.bf16.msra.mxu1 %v21555_v30  ;;  %14540 = vmatprep.mubr.bf16.mxu1 %v26869_v29  ;;  %v6926_v30 = vadd.f32 %v26904_v47, %v5444_v35 }
 0xd0f   : > { %14510 = vmatprep.subr.bf16.mxu1 %v21560_v1 }
 0xd12   : > { %14511 = vmatpush1.bf16.msra.mxu1 %v21558_v6 }
 0xd13   : > { %14605 = vmatprep.subr.bf16.mxu1 %v21563_v16 }
 0xd15   : > { %16965 = vmatmul.mubr.msk.bf16.vlgmr.msra.gmra.mrb[4].mxu1 %vm6837_vm3, %v14423_v25 }
 0xd16   : > { %14606 = vmatpush1.bf16.msra.mxu1 %v21561_v48  ;;  %14637 = vmatprep.mubr.bf16.mxu1 %v26869_v29 }
 0xd17   : > { %14607 = vmatprep.subr.bf16.mxu1 %v21566_v14 }
 0xd1a   : > { %14608 = vmatpush1.bf16.msra.mxu1 %v21564_v31 }
 0xd1b   : > { %14646 = vmatprep.subr.bf16.mxu1 %v21569_v63 }
 0xd1d   : > { %16982 = vmatmul.mubr.msk.bf16.vlgmr.msra.gmra.mrb[0].mxu1 %vm6837_vm3, %v26551_v19 }
 0xd1e   : > { %14647 = vmatpush1.bf16.msra.mxu1 %v21567_v0  ;;  %14678 = vmatprep.mubr.bf16.mxu1 %v26869_v29 }
 0xd1f   : > { %14648 = vmatprep.subr.bf16.mxu1 %v21572_v56 }
 0xd22   : > { %14649 = vmatpush1.bf16.msra.mxu1 %v21570_v60 }
 0xd23   : > { %14745 = vmatprep.subr.bf16.mxu1 %v21575_v37 }
 0xd25   : > { %16983 = vmatmul.mubr.msk.bf16.vlgmr.msra.gmra.mrb[4].mxu1 %vm6837_vm3, %v26551_v19  ;;  %v5435_v19 = vsub.s32 1, %v5430_v4 }
 0xd26   : > { %14746 = vmatpush1.bf16.msra.mxu1 %v21573_v23  ;;  %14777 = vmatprep.mubr.bf16.mxu1 %v26869_v29 }
 0xd27   : > { %14747 = vmatprep.subr.bf16.mxu1 %v21578_v26  ;;  %v5436_v50 = vrot.slane %v5427_v41, %v5435_v19 }
 0xd2a   : > { %14748 = vmatpush1.bf16.msra.mxu1 %v21576_v61 }
 0xd2b   : > { %14786 = vmatprep.subr.bf16.mxu1 %v21581_v46 }
 0xd2d   : > { %17000 = vmatmul.mubr.msk.bf16.vlgmr.msra.gmra.mrb[0].mxu1 %vm6837_vm3, %v14701_v33 }
 0xd2e   : > { %14787 = vmatpush1.bf16.msra.mxu1 %v21579_v42  ;;  %14818 = vmatprep.mubr.bf16.mxu1 %v26869_v29 }
 0xd2f   : > { %14788 = vmatprep.subr.bf16.mxu1 %v21584_v53 }
 0xd32   : > { %14789 = vmatpush1.bf16.msra.mxu1 %v21582_v36 }
 0xd33   : > { %14883 = vmatprep.subr.bf16.mxu1 %v21587_v45 }
 0xd35   : > { %17001 = vmatmul.mubr.msk.bf16.vlgmr.msra.gmra.mrb[4].mxu1 %vm6837_vm3, %v14701_v33 }
 0xd36   : > { %14884 = vmatpush1.bf16.msra.mxu1 %v21585_v28  ;;  %14915 = vmatprep.mubr.bf16.mxu1 %v26869_v29 }
 0xd37   : > { %14885 = vmatprep.subr.bf16.mxu1 %v21590_v2 }
 0xd3a   : > { %14886 = vmatpush1.bf16.msra.mxu1 %v21588_v58 }
 0xd3b   : > { %14924 = vmatprep.subr.bf16.mxu1 %v21593_v7 }
 0xd3d   : > { %17018 = vmatmul.mubr.msk.bf16.vlgmr.msra.gmra.mrb[0].mxu1 %vm6837_vm3, %v26546_v55 }
 0xd3e   : > { %14925 = vmatpush1.bf16.msra.mxu1 %v21591_v49  ;;  %14956 = vmatprep.mubr.bf16.mxu1 %v26869_v29 }
 0xd3f   : > { %14926 = vmatprep.subr.bf16.mxu1 %v21596_v11 }
 0xd42   : > { %14927 = vmatpush1.bf16.msra.mxu1 %v21594_v5 }
 0xd43   : > { %15023 = vmatprep.subr.bf16.mxu1 %v21599_v13 }
 0xd45   : > { %17019 = vmatmul.mubr.msk.bf16.vlgmr.msra.gmra.mrb[4].mxu1 %vm6837_vm3, %v26546_v55  ;;  %v5431_v55 = vsub.s32 0, %v5430_v4 }
 0xd46   : > { %15024 = vmatpush1.bf16.msra.mxu1 %v21597_v44  ;;  %15055 = vmatprep.mubr.bf16.mxu1 %v26869_v29 }
 0xd47   : > { %15025 = vmatprep.subr.bf16.mxu1 %v21602_v21  ;;  %v5432_v20 = vrot.slane %v5427_v41, %v5431_v55 }
 0xd49   : > { %v6923_v27 = vadd.f32 %v26901_v32, %v5432_v20 }
 0xd4a   : > { %15026 = vmatpush1.bf16.msra.mxu1 %v21600_v24 }
 0xd4b   : > { %15064 = vmatprep.subr.bf16.mxu1 %v21605_v22 }
 0xd4d   : > { %17036 = vmatmul.mubr.msk.bf16.vlgmr.msra.gmra.mrb[0].mxu1 %vm6837_vm3, %v14979_v3 }
 0xd4e   : > { %15065 = vmatpush1.bf16.msra.mxu1 %v21603_v10  ;;  %15096 = vmatprep.mubr.bf16.mxu1 %v26869_v29  ;;  %v26902_v29 = vld [vmem:[#allocation19_spill] sm:$0xff] }
 0xd4f   : > { %15066 = vmatprep.subr.bf16.mxu1 %v21608_v40  ;;  %v6924_v52 = vadd.f32 %v26902_v29, %v5436_v50 }
 0xd52   : > { %15067 = vmatpush1.bf16.msra.mxu1 %v21606_v54 }
 0xd55   : > { %17037 = vmatmul.mubr.msk.bf16.vlgmr.msra.gmra.mrb[4].mxu1 %vm6837_vm3, %v14979_v3 }
 0xe20   : > { %v15057_v43 = vpop.f32.mrb[0].mxu1 }
 0xe21   : > { %v20085_v38 = vadd.f32 %v15057_v43, %v6923_v27  ;;  %v15059_v51 = vpop.f32.mrb[1].mxu1 }
 0xe22   : > { %v20087_v39 = vadd.f32 %v15059_v51, %v6924_v52  ;;  %v15061_v59 = vpop.f32.mrb[2].mxu1 }
 0xe23   : > { %v15109_v57 = vmax.f32 %v20085_v38, 0.0  ;;  %v15062_v17 = vpop.f32.mrb[3].mxu1 }
 0xe24   : > { %v15110_v12 = vmax.f32 %v20087_v39, 0.0 }
 0xe25   : > { %15113 = vst [vmem:[%s22003_s28] sm:$0xff] %v15109_v57 }
 0xe26   : > { %15114 = vst [vmem:[%s22003_s28 + $0x8] sm:$0xff] %v15110_v12 }
 0xe28   : > { %v15098_v25 = vpop.f32.mrb[4].mxu1 }
 0xe29   : > { %v20089_v1 = vadd.f32 %v15098_v25, %v6925_v9  ;;  %v15100_v6 = vpop.f32.mrb[5].mxu1 }
 0xe2a   : > { %v20091_v16 = vadd.f32 %v15100_v6, %v6926_v30  ;;  %v15102_v48 = vpop.f32.mrb[6].mxu1 }
 0xe2b   : > { %v15111_v14 = vmax.f32 %v20089_v1, 0.0  ;;  %v15103_v31 = vpop.f32.mrb[7].mxu1 }
 0xe2c   : > { %v15112_v63 = vmax.f32 %v20091_v16, 0.0 }
 0xe2d   : > { %15115 = vst [vmem:[%s22003_s28 + $0x10] sm:$0xff] %v15111_v14 }
 0xe2e   : > { %15116 = vst [vmem:[%s22003_s28 + $0x18] sm:$0xff] %v15112_v63 }
 0xe2f   : > { %21822 = shalt.err (!%p21819_p7)
}
 0xe30   : > { %s21823_s28 = scalar_lea.hbm %s26767_s27, 512  ;;  %s21827_s26 = scalar_lea.hbm %s26822_s9, 1024 }
 0xe31   : > { %p21824_p8 = scmp.ne.s32.totalorder %s26767_s27, %s21823_s28  ;;  %p21828_p11 = scmp.lt.u32.totalorder %s26767_s27, %s26822_s9 }
 0xe32   : > { %p21829_p12 = scmp.lt.u32.totalorder %s21827_s26, %s21823_s28  ;;  %p21831_p0 = scmp.lt.u32.totalorder %s21823_s28, %s26767_s27 }
 0xe33   : > { %p21825_p9 = pnand %p21824_p8, %p21983_p5 }
 0xe34   : > { %p21830_p13 = por %p21829_p12, %p21828_p11 }
 0xe35   : > { %p21826_p10 = pneg %p21825_p9 }
 0xe36   : > { %p21832_p1 = por %p21831_p0, %p21830_p13 }
 0xe38   : > { %p21833_p2 = pnand %p21832_p1, %p21826_p10 }
 0xe3a   : > { %21836 = shalt.err (!%p21833_p2)
}
 0xe3b   : > { %20717 = dma.vmem_to_hbm [thread:$0]  (%p21983_p5), %s26769_s17, 512, %s26767_s27, %s15118_s13  }
 0xe3c PF: > { %p20723_p3 = scmp.ge.s32.totalorder %s21879_s12, 2  ;;  %s15144_s24 = sand.u32 1, %s21867_s30  }
 0xe3d   : > { %s15145_s16 = scalar_lea.sflag [#allocation5], %s15144_s24 }
 0xe3e   : > { %p20720_p4 = pnand %p20723_p3, %p21987_p6 }
 0xe40   : > { %21862 = dma.done.wait (!%p20720_p4), %s15145_s16, 512  }
 0xe41   : > { %21864 = vsyncadd (!%p20720_p4), %s15145_s16, 4294966784  ;;  %p19_p7 = scmp.ge.s32.totalorder %s21970_s15, 4   ;;  %s26906_s30 = smov %s21871_s10 }
 0xe42   : > { %s26907_s10 = smov %s21875_s11  ;;  %s26908_s11 = smov %s21981_s18 }
 0xe43   : > { %s26909_s12 = smov %s21970_s15  ;;  %21 = sbr.rel (!%p19_p7) target bundleno = 3 (0x3), region = 216 }
 0xe4a   :  { %15150 = vsyncpa [#allocation5], 1 }
 0xe4b   :  { %15152 = vsyncpa [#allocation5 + $0x1], 1 }

</bundles_post_ra>
